<compile_context>
chip_gen: v6e
topology: v6e:2x2x1
jax: 0.10.0
libtpu: 0.0.40
codegen_flags: <defaults>
</compile_context>

<pallas_src>
import jax
import jax.numpy as jnp
import numpy as np
from jax.experimental import pallas as pl
from jax.experimental.pallas import tpu as pltpu

BN_EPS = 1e-5


def gcn_kernel(scal_ref,   # SMEM (1+J0,) : [mean(bq)-mean(bk), alpha*wp4[0..J0-1]]
               x_ref,      # VMEM (b_tile*C, NJ) : batch tile, batch folded into rows
               wp_ref,     # VMEM (NJ, J0) : pool1 weight (transposed)
               w1t_ref,    # VMEM (C, C)   : conv1 1x1 weight, transposed
               wc_ref,     # VMEM (C, NC)  : classifier weight (transposed)
               qkw_ref,    # VMEM (2, C, 1): mean-folded conv_q1 / conv_k1 weights
               cvec_ref,   # VMEM (3, C)   : [conv1 bias, BN scale, BN shift*sum(wp4)+bp4]
               jvec_ref,   # VMEM (2, J0)  : [pool1 bias, adj1 @ pool4 weight]
               bc_ref,     # VMEM (1, NC)  : classifier bias
               out_ref):   # VMEM (b_tile, NC)
    C = cvec_ref.shape[1]
    BC, NJ = x_ref.shape
    B = BC // C                       # samples in this batch tile (static)
    J0 = wp_ref.shape[1]

    # pool1: Linear over joints; whole batch tile folded into the MXU M dim.
    x1f = jnp.dot(x_ref[...], wp_ref[...], preferred_element_type=jnp.float32)
    x1f = x1f + jvec_ref[0:1, :]                               # + pool1 bias
    x1 = x1f.reshape(B, C, J0)                                 # (B, C, J0)

    # conv_q1/conv_k1 + mean over channels, folded into mean weights (VPU + sublane reduce).
    # Only qm - km matters, so the bias difference is folded into qm.
    qm = jnp.sum(x1 * qkw_ref[0:1], axis=1) + scal_ref[0]      # (B, J0)
    km = jnp.sum(x1 * qkw_ref[1:2], axis=1)                    # (B, J0)

    # v = A1 @ pool4.weight with A1 = adj1 + alpha * tanh(q_i - k_j):
    #   v[b,j] = (adj1 @ wp4)[j] + sum_k tanh(qm[b,j] - km[b,k]) * (alpha*wp4[k])
    # J0 = num_joints//32 is tiny, so the k-contraction is unrolled on the VPU/EUP
    # instead of pushing 4-wide operands through the MXU.
    vt = jnp.zeros((B, J0), jnp.float32)
    for k in range(J0):
        vt = vt + jnp.tanh(qm - km[:, k:k + 1]) * scal_ref[1 + k]
    v = vt + jvec_ref[1:2, :]                                  # (B, J0)

    # Graph matmul + pool4 fused: contract joints first (lane reduce over J0).
    u = jnp.sum(x1 * v[:, None, :], axis=-1)                   # (B, C)
    sv = jnp.sum(v, axis=-1, keepdims=True)                    # (B, 1)

    # conv1 (1x1) as one batch-major matmul, then eval-mode BatchNorm + pool4 bias.
    p = jnp.dot(u, w1t_ref[...], preferred_element_type=jnp.float32)
    p = p + sv * cvec_ref[0:1, :]                              # conv1 bias * sum_j v
    p = p * cvec_ref[1:2, :] + cvec_ref[2:3, :]                # BN scale / fused shift

    # classifier (dropout is identity in eval mode).
    out_ref[...] = (jnp.dot(p, wc_ref[...], preferred_element_type=jnp.float32)
                    + bc_ref[...])


def _prep_params(params):
    """Exact algebraic folding of the GCN parameters (eval-mode BN / dropout)."""
    f32 = jnp.float32
    wq_mean = jnp.mean(params["wq"], axis=0)                   # (C,)
    wk_mean = jnp.mean(params["wk"], axis=0)                   # (C,)
    d_bias = jnp.mean(params["bq"]) - jnp.mean(params["bk"])   # scalar

    wp4 = params["wp4"][:, 0]                                  # (J0,)
    alpha = params["alpha"][0, 0]
    va = params["adj1"] @ wp4                                  # (J0,)
    sw = jnp.sum(wp4)

    scale = params["bn_gamma"][:, 0] * jax.lax.rsqrt(params["bn_var"][:, 0] + BN_EPS)
    shift = params["bn_beta"][:, 0] - scale * params["bn_mean"][:, 0]
    pool_bias = shift * sw + params["bp4"][0, 0]               # (C,)

    return dict(
        scal=jnp.concatenate([d_bias[None], alpha * wp4]).astype(f32),       # (1+J0,)
        wp=params["wp"].astype(f32),                                          # (NJ, J0)
        w1t=params["w1"].T.astype(f32),                                       # (C, C)
        wc=params["wc"].astype(f32),                                          # (C, NC)
        qkw=jnp.stack([wq_mean, wk_mean])[:, :, None].astype(f32),            # (2, C, 1)
        cvec=jnp.stack([params["b1"][:, 0], scale, pool_bias]).astype(f32),   # (3, C)
        jvec=jnp.stack([params["bp"][0], va]).astype(f32),                    # (2, J0)
        bc=params["bc"].astype(f32),                                          # (1, NC)
    )


def gcn_forward(x, params, b_tile=32):
    B, C, NJ = x.shape
    prep = _prep_params(params)
    NC = prep["wc"].shape[1]

    # Pad batch to a multiple of the batch tile; grid iterates over batch tiles.
    pad = (-B) % b_tile
    if pad:
        x = jnp.concatenate([x, jnp.zeros((pad, C, NJ), x.dtype)], axis=0)
    Bp = B + pad
    x2 = x.reshape(Bp * C, NJ).astype(jnp.float32)             # batch folded into rows

    def _rep(arr):
        zeros = (0,) * arr.ndim
        return pl.BlockSpec(arr.shape, lambda i, _z=zeros: _z)

    out = pl.pallas_call(
        gcn_kernel,
        out_shape=jax.ShapeDtypeStruct((Bp, NC), jnp.float32),
        grid=(Bp // b_tile,),
        in_specs=[
            pl.BlockSpec(memory_space=pltpu.MemorySpace.SMEM),     # folded scalars
            pl.BlockSpec((b_tile * C, NJ), lambda i: (i, 0)),      # x batch tile
            _rep(prep["wp"]),
            _rep(prep["w1t"]),
            _rep(prep["wc"]),
            _rep(prep["qkw"]),
            _rep(prep["cvec"]),
            _rep(prep["jvec"]),
            _rep(prep["bc"]),
        ],
        out_specs=pl.BlockSpec((b_tile, NC), lambda i: (i, 0)),
        compiler_params=pltpu.CompilerParams(
            dimension_semantics=("parallel",)),
    )(prep["scal"], x2, prep["wp"], prep["w1t"], prep["wc"],
      prep["qkw"], prep["cvec"], prep["jvec"], prep["bc"])
    return out[:B]


def gcn_reference(x, params):
    """Pure-JAX reference mirroring the PyTorch forward (eval mode)."""
    with jax.default_matmul_precision("highest"):
        x1 = jnp.einsum("bcn,nj->bcj", x, params["wp"]) + params["bp"]
        q = jnp.einsum("qc,bcj->bqj", params["wq"], x1) + params["bq"]
        k = jnp.einsum("qc,bcj->bqj", params["wk"], x1) + params["bk"]
        qm = q.mean(axis=1)                                    # (B, J0)
        km = k.mean(axis=1)                                    # (B, J0)
        A1 = jnp.tanh(qm[:, :, None] - km[:, None, :])         # (B, J0, J0)
        A1 = params["adj1"][None] + A1 * params["alpha"][0, 0]
        y = jnp.einsum("oc,bcj->boj", params["w1"], x1) + params["b1"]
        z = jnp.einsum("bcj,bjk->bck", y, A1)
        inv = jax.lax.rsqrt(params["bn_var"] + BN_EPS)
        z = (z - params["bn_mean"]) * inv * params["bn_gamma"] + params["bn_beta"]
        p = jnp.einsum("bcj,jo->bco", z, params["wp4"]) + params["bp4"][0, 0]
        p = p[:, :, 0]                                         # (B, C)
        return p @ params["wc"] + params["bc"]                 # (B, NC)


if __name__ == "__main__":
    # Shapes consistent with the module: num_joints=128 -> joints[0]=4, in_features=32.
    B, C, NJ, NC = 64, 32, 128, 16
    J0 = NJ // 32      # 4
    Cq = C // 4        # 8

    key = jax.random.PRNGKey(0)
    ks = jax.random.split(key, 20)

    def init(k, shape, scale=0.1):
        return scale * jax.random.normal(k, shape, dtype=jnp.float32)

    params = {
        "wp": init(ks[0], (NJ, J0)),          # pool1.weight.T
        "bp": init(ks[1], (1, J0)),           # pool1.bias
        "wq": init(ks[2], (Cq, C)),           # conv_q1.weight (1x1)
        "bq": init(ks[3], (Cq, 1)),           # conv_q1.bias
        "wk": init(ks[4], (Cq, C)),           # conv_k1.weight (1x1)
        "bk": init(ks[5], (Cq, 1)),           # conv_k1.bias
        "adj1": jnp.eye(J0, dtype=jnp.float32) / 100.0 + 1.0 / 100.0,
        # nn.Parameter(torch.zeros(1)); set nonzero so the attention branch is exercised
        "alpha": jnp.full((1, 1), 0.25, dtype=jnp.float32),
        "w1": init(ks[6], (C, C)),            # conv1.weight (1x1)
        "b1": init(ks[7], (C, 1)),            # conv1.bias
        "bn_gamma": 1.0 + init(ks[8], (C, 1)),
        "bn_beta": init(ks[9], (C, 1)),
        "bn_mean": init(ks[10], (C, 1)),
        "bn_var": jnp.abs(init(ks[11], (C, 1))) + 1.0,
        "wp4": init(ks[12], (J0, 1)),         # pool4.weight.T
        "bp4": init(ks[13], (1, 1)),          # pool4.bias
        "wc": init(ks[14], (C, NC)),          # classifier.weight.T
        "bc": init(ks[15], (1, NC)),          # classifier.bias
    }

    x = jax.random.normal(ks[16], (B, C, NJ), dtype=jnp.float32)

    out = gcn_forward(x, params)
    jax.block_until_ready(out)

    ref = gcn_reference(x, params)
    assert out.shape == (B, NC)
    np.testing.assert_allclose(np.array(out), np.array(ref), rtol=1e-4, atol=1e-4)

    print("KERNEL_OK")
</pallas_src>

<mosaic_0001>
module attributes {stable_mosaic.version = 11 : i64} {
  func.func @gcn_kernel(%arg0: i32, %arg1: memref<5xf32, #tpu.memory_space<smem>>, %arg2: memref<1024x128xf32, #tpu.memory_space<vmem>>, %arg3: memref<128x4xf32, #tpu.memory_space<vmem>>, %arg4: memref<32x32xf32, #tpu.memory_space<vmem>>, %arg5: memref<32x16xf32, #tpu.memory_space<vmem>>, %arg6: memref<2x32x1xf32, #tpu.memory_space<vmem>>, %arg7: memref<3x32xf32, #tpu.memory_space<vmem>>, %arg8: memref<2x4xf32, #tpu.memory_space<vmem>>, %arg9: memref<1x16xf32, #tpu.memory_space<vmem>>, %arg10: memref<32x16xf32, #tpu.memory_space<vmem>>) attributes {dimension_semantics = [#tpu.dimension_semantics<parallel>], iteration_bounds = array<i64: 2>, scalar_prefetch = 0 : i64, scratch_operands = 0 : i64, tpu.core_type = #tpu.core_type<tc>, window_params = [{transform_indices = @transform_0, window_bounds = array<i64: 5>}, {transform_indices = @transform_1, window_bounds = array<i64: 1024, 128>}, {pipeline_mode = #tpu.pipeline_mode<synchronous>, transform_indices = @transform_2, window_bounds = array<i64: 128, 4>}, {pipeline_mode = #tpu.pipeline_mode<synchronous>, transform_indices = @transform_3, window_bounds = array<i64: 32, 32>}, {pipeline_mode = #tpu.pipeline_mode<synchronous>, transform_indices = @transform_4, window_bounds = array<i64: 32, 16>}, {pipeline_mode = #tpu.pipeline_mode<synchronous>, transform_indices = @transform_5, window_bounds = array<i64: 2, 32, 1>}, {pipeline_mode = #tpu.pipeline_mode<synchronous>, transform_indices = @transform_6, window_bounds = array<i64: 3, 32>}, {pipeline_mode = #tpu.pipeline_mode<synchronous>, transform_indices = @transform_7, window_bounds = array<i64: 2, 4>}, {pipeline_mode = #tpu.pipeline_mode<synchronous>, transform_indices = @transform_8, window_bounds = array<i64: 1, 16>}, {transform_indices = @transform_9, window_bounds = array<i64: 32, 16>}]} {
    %c0 = arith.constant 0 : index
    %c0_0 = arith.constant 0 : index
    %0 = vector.load %arg2[%c0, %c0_0] : memref<1024x128xf32, #tpu.memory_space<vmem>>, vector<1024x128xf32>
    %c0_1 = arith.constant 0 : index
    %c0_2 = arith.constant 0 : index
    %1 = vector.load %arg3[%c0_1, %c0_2] : memref<128x4xf32, #tpu.memory_space<vmem>>, vector<128x4xf32>
    %cst = arith.constant dense<0.000000e+00> : vector<1024x4xf32>
    %2 = tpu.matmul %0, %1, %cst {dimension_numbers = #tpu.dot_dimension_numbers<[1], [0], [0], [1], [0, 0, 1, 1], [], []>} : vector<1024x128xf32>, vector<128x4xf32>, vector<1024x4xf32> -> vector<1024x4xf32>
    %c0_3 = arith.constant 0 : index
    %c0_4 = arith.constant 0 : index
    %3 = vector.load %arg8[%c0_3, %c0_4] : memref<2x4xf32, #tpu.memory_space<vmem>>, vector<1x4xf32>
    %4 = vector.broadcast %3 : vector<1x4xf32> to vector<1024x4xf32>
    %5 = arith.addf %2, %4 : vector<1024x4xf32>
    %6 = vector.shape_cast %5 : vector<1024x4xf32> to vector<32x32x4xf32>
    %c0_5 = arith.constant 0 : index
    %c0_6 = arith.constant 0 : index
    %c0_7 = arith.constant 0 : index
    %7 = vector.load %arg6[%c0_5, %c0_6, %c0_7] : memref<2x32x1xf32, #tpu.memory_space<vmem>>, vector<1x32x1xf32>
    %8 = vector.broadcast %7 : vector<1x32x1xf32> to vector<32x32x4xf32>
    %9 = arith.mulf %6, %8 : vector<32x32x4xf32>
    %cst_8 = arith.constant dense<0.000000e+00> : vector<32x4xf32>
    %10 = vector.multi_reduction <add>, %9, %cst_8 [1] : vector<32x32x4xf32> to vector<32x4xf32>
    %c0_9 = arith.constant 0 : index
    %11 = memref.load %arg1[%c0_9] : memref<5xf32, #tpu.memory_space<smem>>
    %12 = vector.broadcast %11 : f32 to vector<32x4xf32>
    %13 = arith.addf %10, %12 : vector<32x4xf32>
    %c1 = arith.constant 1 : index
    %c0_10 = arith.constant 0 : index
    %c0_11 = arith.constant 0 : index
    %14 = vector.load %arg6[%c1, %c0_10, %c0_11] : memref<2x32x1xf32, #tpu.memory_space<vmem>>, vector<1x32x1xf32>
    %15 = vector.broadcast %14 : vector<1x32x1xf32> to vector<32x32x4xf32>
    %16 = arith.mulf %6, %15 : vector<32x32x4xf32>
    %cst_12 = arith.constant dense<0.000000e+00> : vector<32x4xf32>
    %17 = vector.multi_reduction <add>, %16, %cst_12 [1] : vector<32x32x4xf32> to vector<32x4xf32>
    %cst_13 = arith.constant 0.000000e+00 : f32
    %18 = vector.broadcast %cst_13 : f32 to vector<32x4xf32>
    %19 = vector.extract_strided_slice %17 {offsets = [0, 0], sizes = [32, 1], strides = [1, 1]} : vector<32x4xf32> to vector<32x1xf32>
    %20 = vector.broadcast %19 : vector<32x1xf32> to vector<32x4xf32>
    %21 = arith.subf %13, %20 : vector<32x4xf32>
    %22 = math.tanh %21 : vector<32x4xf32>
    %c1_14 = arith.constant 1 : index
    %23 = memref.load %arg1[%c1_14] : memref<5xf32, #tpu.memory_space<smem>>
    %24 = vector.broadcast %23 : f32 to vector<32x4xf32>
    %25 = arith.mulf %22, %24 : vector<32x4xf32>
    %26 = arith.addf %18, %25 : vector<32x4xf32>
    %27 = vector.extract_strided_slice %17 {offsets = [0, 1], sizes = [32, 1], strides = [1, 1]} : vector<32x4xf32> to vector<32x1xf32>
    %28 = vector.broadcast %27 : vector<32x1xf32> to vector<32x4xf32>
    %29 = arith.subf %13, %28 : vector<32x4xf32>
    %30 = math.tanh %29 : vector<32x4xf32>
    %c2 = arith.constant 2 : index
    %31 = memref.load %arg1[%c2] : memref<5xf32, #tpu.memory_space<smem>>
    %32 = vector.broadcast %31 : f32 to vector<32x4xf32>
    %33 = arith.mulf %30, %32 : vector<32x4xf32>
    %34 = arith.addf %26, %33 : vector<32x4xf32>
    %35 = vector.extract_strided_slice %17 {offsets = [0, 2], sizes = [32, 1], strides = [1, 1]} : vector<32x4xf32> to vector<32x1xf32>
    %36 = vector.broadcast %35 : vector<32x1xf32> to vector<32x4xf32>
    %37 = arith.subf %13, %36 : vector<32x4xf32>
    %38 = math.tanh %37 : vector<32x4xf32>
    %c3 = arith.constant 3 : index
    %39 = memref.load %arg1[%c3] : memref<5xf32, #tpu.memory_space<smem>>
    %40 = vector.broadcast %39 : f32 to vector<32x4xf32>
    %41 = arith.mulf %38, %40 : vector<32x4xf32>
    %42 = arith.addf %34, %41 : vector<32x4xf32>
    %43 = vector.extract_strided_slice %17 {offsets = [0, 3], sizes = [32, 1], strides = [1, 1]} : vector<32x4xf32> to vector<32x1xf32>
    %44 = vector.broadcast %43 : vector<32x1xf32> to vector<32x4xf32>
    %45 = arith.subf %13, %44 : vector<32x4xf32>
    %46 = math.tanh %45 : vector<32x4xf32>
    %c4 = arith.constant 4 : index
    %47 = memref.load %arg1[%c4] : memref<5xf32, #tpu.memory_space<smem>>
    %48 = vector.broadcast %47 : f32 to vector<32x4xf32>
    %49 = arith.mulf %46, %48 : vector<32x4xf32>
    %50 = arith.addf %42, %49 : vector<32x4xf32>
    %c1_15 = arith.constant 1 : index
    %c0_16 = arith.constant 0 : index
    %51 = vector.load %arg8[%c1_15, %c0_16] : memref<2x4xf32, #tpu.memory_space<vmem>>, vector<1x4xf32>
    %52 = vector.broadcast %51 : vector<1x4xf32> to vector<32x4xf32>
    %53 = arith.addf %50, %52 : vector<32x4xf32>
    %54 = vector.shape_cast %53 : vector<32x4xf32> to vector<32x1x4xf32>
    %55 = vector.broadcast %54 : vector<32x1x4xf32> to vector<32x32x4xf32>
    %56 = arith.mulf %6, %55 : vector<32x32x4xf32>
    %cst_17 = arith.constant dense<0.000000e+00> : vector<32x32xf32>
    %57 = vector.multi_reduction <add>, %56, %cst_17 [2] : vector<32x32x4xf32> to vector<32x32xf32>
    %cst_18 = arith.constant dense<0.000000e+00> : vector<32xf32>
    %58 = vector.multi_reduction <add>, %53, %cst_18 [1] : vector<32x4xf32> to vector<32xf32>
    %59 = vector.shape_cast %58 : vector<32xf32> to vector<32x1xf32>
    %c0_19 = arith.constant 0 : index
    %c0_20 = arith.constant 0 : index
    %60 = vector.load %arg4[%c0_19, %c0_20] : memref<32x32xf32, #tpu.memory_space<vmem>>, vector<32x32xf32>
    %cst_21 = arith.constant dense<0.000000e+00> : vector<32x32xf32>
    %61 = tpu.matmul %57, %60, %cst_21 {dimension_numbers = #tpu.dot_dimension_numbers<[1], [0], [0], [1], [0, 0, 1, 1], [], []>} : vector<32x32xf32>, vector<32x32xf32>, vector<32x32xf32> -> vector<32x32xf32>
    %c0_22 = arith.constant 0 : index
    %c0_23 = arith.constant 0 : index
    %62 = vector.load %arg7[%c0_22, %c0_23] : memref<3x32xf32, #tpu.memory_space<vmem>>, vector<1x32xf32>
    %63 = vector.broadcast %59 : vector<32x1xf32> to vector<32x32xf32>
    %64 = vector.broadcast %62 : vector<1x32xf32> to vector<32x32xf32>
    %65 = arith.mulf %63, %64 : vector<32x32xf32>
    %66 = arith.addf %61, %65 : vector<32x32xf32>
    %c1_24 = arith.constant 1 : index
    %c0_25 = arith.constant 0 : index
    %67 = vector.load %arg7[%c1_24, %c0_25] : memref<3x32xf32, #tpu.memory_space<vmem>>, vector<1x32xf32>
    %68 = vector.broadcast %67 : vector<1x32xf32> to vector<32x32xf32>
    %69 = arith.mulf %66, %68 : vector<32x32xf32>
    %c2_26 = arith.constant 2 : index
    %c0_27 = arith.constant 0 : index
    %70 = vector.load %arg7[%c2_26, %c0_27] : memref<3x32xf32, #tpu.memory_space<vmem>>, vector<1x32xf32>
    %71 = vector.broadcast %70 : vector<1x32xf32> to vector<32x32xf32>
    %72 = arith.addf %69, %71 : vector<32x32xf32>
    %c0_28 = arith.constant 0 : index
    %c0_29 = arith.constant 0 : index
    %73 = vector.load %arg5[%c0_28, %c0_29] : memref<32x16xf32, #tpu.memory_space<vmem>>, vector<32x16xf32>
    %cst_30 = arith.constant dense<0.000000e+00> : vector<32x16xf32>
    %74 = tpu.matmul %72, %73, %cst_30 {dimension_numbers = #tpu.dot_dimension_numbers<[1], [0], [0], [1], [0, 0, 1, 1], [], []>} : vector<32x32xf32>, vector<32x16xf32>, vector<32x16xf32> -> vector<32x16xf32>
    %c0_31 = arith.constant 0 : index
    %c0_32 = arith.constant 0 : index
    %75 = vector.load %arg9[%c0_31, %c0_32] : memref<1x16xf32, #tpu.memory_space<vmem>>, vector<1x16xf32>
    %76 = vector.broadcast %75 : vector<1x16xf32> to vector<32x16xf32>
    %77 = arith.addf %74, %76 : vector<32x16xf32>
    %c0_33 = arith.constant 0 : index
    %c0_34 = arith.constant 0 : index
    %78 = vector.load %arg10[%c0_33, %c0_34] : memref<32x16xf32, #tpu.memory_space<vmem>>, vector<32x16xf32>
    tpu.vector_store %arg10[%c0_33, %c0_34], %77 {strides = array<i32>} : memref<32x16xf32, #tpu.memory_space<vmem>>, vector<32x16xf32>,
    return
  }
  func.func @transform_0(%arg0: i32) -> i32 {
    %c0_i32 = arith.constant 0 : i32
    %c0_i32_0 = arith.constant 0 : i32
    return %c0_i32 : i32
  }
  func.func @transform_1(%arg0: i32) -> (i32, i32) {
    %c0_i32 = arith.constant 0 : i32
    %c0_i32_0 = arith.constant 0 : i32
    return %arg0, %c0_i32 : i32, i32
  }
  func.func @transform_2(%arg0: i32) -> (i32, i32) {
    %c0_i32 = arith.constant 0 : i32
    %c0_i32_0 = arith.constant 0 : i32
    %c0_i32_1 = arith.constant 0 : i32
    return %c0_i32, %c0_i32_0 : i32, i32
  }
  func.func @transform_3(%arg0: i32) -> (i32, i32) {
    %c0_i32 = arith.constant 0 : i32
    %c0_i32_0 = arith.constant 0 : i32
    %c0_i32_1 = arith.constant 0 : i32
    return %c0_i32, %c0_i32_0 : i32, i32
  }
  func.func @transform_4(%arg0: i32) -> (i32, i32) {
    %c0_i32 = arith.constant 0 : i32
    %c0_i32_0 = arith.constant 0 : i32
    %c0_i32_1 = arith.constant 0 : i32
    return %c0_i32, %c0_i32_0 : i32, i32
  }
  func.func @transform_5(%arg0: i32) -> (i32, i32, i32) {
    %c0_i32 = arith.constant 0 : i32
    %c0_i32_0 = arith.constant 0 : i32
    %c0_i32_1 = arith.constant 0 : i32
    %c0_i32_2 = arith.constant 0 : i32
    return %c0_i32, %c0_i32_0, %c0_i32_1 : i32, i32, i32
  }
  func.func @transform_6(%arg0: i32) -> (i32, i32) {
    %c0_i32 = arith.constant 0 : i32
    %c0_i32_0 = arith.constant 0 : i32
    %c0_i32_1 = arith.constant 0 : i32
    return %c0_i32, %c0_i32_0 : i32, i32
  }
  func.func @transform_7(%arg0: i32) -> (i32, i32) {
    %c0_i32 = arith.constant 0 : i32
    %c0_i32_0 = arith.constant 0 : i32
    %c0_i32_1 = arith.constant 0 : i32
    return %c0_i32, %c0_i32_0 : i32, i32
  }
  func.func @transform_8(%arg0: i32) -> (i32, i32) {
    %c0_i32 = arith.constant 0 : i32
    %c0_i32_0 = arith.constant 0 : i32
    %c0_i32_1 = arith.constant 0 : i32
    return %c0_i32, %c0_i32_0 : i32, i32
  }
  func.func @transform_9(%arg0: i32) -> (i32, i32) {
    %c0_i32 = arith.constant 0 : i32
    %c0_i32_0 = arith.constant 0 : i32
    return %arg0, %c0_i32 : i32, i32
  }
}

</mosaic_0001>

<bundles_post_ra>
// kernel: tpu_custom_call.1
= control target key start
LH: loop header
LB: loop body
LE: loop exit
PB: predicated region body
PF: predicated region fallthrough
CT: control target
= control target key end

     0   :  { %s10467_s0 = inlined_call_operand.vmem [shape: f32[5], index: 0, kind: input, shape index: {}]   ;;  %s10468_s1 = inlined_call_operand.hbm [shape: f32[2048,128], index: 1, kind: input, shape index: {}]   ;;  %s10469_s2 = inlined_call_operand.vmem [shape: f32[128,4], index: 2, kind: input, shape index: {}]   ;;  %s10470_s3 = inlined_call_operand.vmem [shape: f32[32,32], index: 3, kind: input, shape index: {}]   ;;  %s10471_s4 = inlined_call_operand.vmem [shape: f32[32,16], index: 4, kind: input, shape index: {}]   ;;  %s10472_s5 = inlined_call_operand.vmem [shape: f32[2,32,1], index: 5, kind: input, shape index: {}]   ;;  %s10473_s6 = inlined_call_operand.vmem [shape: f32[3,32], index: 6, kind: input, shape index: {}]   ;;  %s10474_s7 = inlined_call_operand.vmem [shape: f32[2,4], index: 7, kind: input, shape index: {}]   ;;  %s10475_s8 = inlined_call_operand.vmem [shape: f32[1,16], index: 8, kind: input, shape index: {}]   ;;  %s10476_s9 = inlined_call_operand.vmem [shape: f32[64,16], index: 9, kind: output, shape index: {}]  }
   0x1   :  { %10797 = sst [smem:[#allocation172_spill]] %s10467_s0 }
   0x2   :  { %14 = vsyncpa [#allocation4], 0 }
   0x3   :  { %15 = vsyncpa [#allocation3], 0 }
   0x4   :  { %17 = vsyncpa [#allocation3 + $0x1], 0  ;;  %s6394_s30 = smov 0   ;;  %s6396_s10 = smov 0  }
   0x5   :  { %s6398_s11 = smov 0   ;;  %s6400_s12 = smov 0  }
   0x6 LB: > { %s10479_s13 = sadd.s32 4294967295, %s6334_s12   ;;  %s6414_s14 = sadd.s32 1, %s6334_s12   ;;  %s6334_s12 = sphi %s6400_s12, %s11376_s12   ;;  %s6330_s11 = sphi %s6398_s11, %s11375_s11   ;;  %s6326_s10 = sphi %s6396_s10, %s11374_s10   ;;  %s6322_s30 = sphi %s6394_s30, %s11373_s30  }
   0x7   : > { %s48_s15 = ssub.s32 %s6334_s12, %s6414_s14  ;;  %s51_s16 = sadd.s32 1, %s6330_s11 }
   0x8   : > { %p49_p0 = scmp.eq.s32.totalorder %s48_s15, 0  ;;  %p58_p1 = scmp.ne.s32.totalorder %s6330_s11, %s6326_s10 }
   0x9   : > { %p59_p2 = scmp.eq.s32.totalorder %s6334_s12, 0  ;;  %p64_p3 = scmp.ne.s32.totalorder %s6326_s10, %s6322_s30 }
   0xa   : > { %s6424_s17 = scalar_select %p49_p0, %s6330_s11, %s51_s16  }
   0xb   : > { %p60_p4 = por %p59_p2, %p58_p1  ;;  %p6428_p5 = scmp.eq.s32.totalorder %s10479_s13, 0 }
   0xc   : > { %p5338_p6 = scmp.ge.s32.totalorder %s6334_s12, 1  ;;  %p248_p7 = scmp.lt.s32.totalorder %s6334_s12, 3 }
   0xd   : > { %s10798_s18 = scalar_select %p6428_p5, 1, 0 }
   0xe   : > { %p6436_p8 = por %p6428_p5, %p64_p3  ;;  %p6440_p9 = pnand %p5338_p6, %p248_p7 }
   0xf   : > { %s10801_s0 = sld [smem:[#allocation172_spill]]  ;;  %p5833_p11 = scmp.lt.s32.totalorder %s6334_s12, 2 }
  0x10   : > { %s10799_s19 = scalar_select %p6436_p8, 1, 0 }
  0x11   : > { %s10800_s20 = scalar_select %p6440_p9, 1, 0 }
  0x12   : > { %p5824_p10 = pneg %p6440_p9  ;;  %s293_s24 = sand.u32 1, %s6330_s11  }
  0x13   : > { %p6457_p13 = pnand %p5833_p11, %p60_p4  ;;  %s5341_s27 = sshll.u32 %s293_s24, 10 }
  0x14   : > { %p6453_p12 = pnand %p5824_p10, %p6428_p5 }
  0x15   : > { %s261_s23 = sshll.u32 %s10801_s0, 4  ;;  %s262_s23 = int_to_ptr.vmem [resolvable:$true] %s261_s23 }
  0x16   : > { %s6253_s28 = scalar_lea.vmem %s262_s23, 16  ;;  %p6255_p1 = pneg %p6453_p12 }
  0x17   : > { %p6254_p0 = scmp.ne.s32.totalorder %s262_s23, %s6253_s28  ;;  %p6261_p6 = scmp.lt.s32.totalorder %s262_s23, %s262_s23 }
  0x18   : > { %p6262_p7 = scmp.lt.s32.totalorder %s6253_s28, %s6253_s28 }
  0x19   : > { %p6256_p2 = pnand %p6255_p1, %p6254_p0 }
  0x1a   : > { %p6263_p8 = por %p6262_p7, %p6261_p6 }
  0x1b   : > { %p6257_p3 = pneg %p6256_p2 }
  0x1d   : > { %p6264_p9 = pnand %p6263_p8, %p6257_p3 }
  0x1f   : > { %6267 = shalt.err (!%p6264_p9)
}
  0x20   : > { %s6336_s29 = smov [#allocation2]   ;;  %s5373_s30 = sshll.u32 %s6334_s12, 14 }
  0x21   : > { %5827 = dma.vmem_to_smem (!%p6453_p12), %s262_s23, 16, %s6336_s29, [#allocation4]  }
  0x22   : > { %s6469_s21 = scalar_lea.hbm %s10468_s1, %s5373_s30  ;;  %s297_s22 = scalar_lea.vmem [#allocation5], %s5341_s27 }
  0x23   : > { %s304_s28 = sshll.u32 %s297_s22, 4  ;;  %s6473_s13 = scalar_lea.sflag [#allocation3], %s293_s24  ;;  %s6471_s28 = int_to_ptr.vmem [resolvable:$true] %s304_s28 }
  0x24   : > { %s6268_s0 = scalar_lea.hbm %s6469_s21, 16384  ;;  %p6270_p8 = pneg %p6457_p13 }
  0x25   : > { %p6269_p4 = scmp.ne.s32.totalorder %s6469_s21, %s6268_s0  ;;  %s6273_s29 = scalar_lea.hbm %s10468_s1, 32768 }
  0x26   : > { %p6274_p11 = scmp.lt.s32.totalorder %s6469_s21, %s10468_s1  ;;  %p6275_p12 = scmp.lt.s32.totalorder %s6273_s29, %s6268_s0 }
  0x27   : > { %p6271_p9 = pnand %p6270_p8, %p6269_p4 }
  0x28   : > { %p6276_p0 = por %p6275_p12, %p6274_p11 }
  0x29   : > { %p6272_p10 = pneg %p6271_p9 }
  0x2b   : > { %p6277_p1 = pnand %p6276_p0, %p6272_p10 }
  0x2d   : > { %6280 = shalt.err (!%p6277_p1)
}
  0x2e   : > { %s6281_s24 = scalar_lea.vmem %s6471_s28, 16384  ;;  %s6337_s27 = smov [#allocation5]  }
  0x2f   : > { %p6282_p2 = scmp.ne.s32.totalorder %s6471_s28, %s6281_s24  ;;  %s6286_s16 = sshll.u32 %s6337_s27, 4  ;;  %s6287_s16 = int_to_ptr.vmem [resolvable:$false] %s6286_s16 }
  0x30   : > { %s6288_s22 = scalar_lea.vmem %s6287_s16, 32768  ;;  %p6289_p7 = scmp.lt.s32.totalorder %s6471_s28, %s6287_s16 }
  0x31   : > { %p6284_p3 = pnand %p6282_p2, %p6270_p8  ;;  %p6290_p4 = scmp.lt.s32.totalorder %s6288_s22, %s6281_s24 }
  0x33   : > { %p6285_p6 = pneg %p6284_p3  ;;  %p6291_p9 = por %p6290_p4, %p6289_p7 }
  0x35   : > { %p6292_p5 = pnand %p6291_p9, %p6285_p6 }
  0x37   : > { %6295 = shalt.err (!%p6292_p5)
}
  0x38   : > { %s6338_s0 = smov 128   ;;  %s6339_s23 = smov 8  }
  0x39   : > { %5831 = dma.hbm_to_vmem [thread:$0]  (!%p6457_p13), %s6469_s21, 16384, %s6471_s28, %s6473_s13, %s6338_s0, %s6338_s0, %s6339_s23  }
  0x3a   : > { %p10804_p8 = scmp.ne.s32.totalorder %s10800_s20, 0 }
  0x3c   : > { %316 = sbr.rel (%p10804_p8) target bundleno = 1555 (0x613), region = 56 }
  0x41   : > { %p10805_p10 = scmp.ne.s32.totalorder %s10798_s18, 0 }
  0x43   : > { %6313 = dma.done.wait (%p10805_p10), [#allocation4], 16  }
  0x44   : > { %6315 = vsyncadd (%p10805_p10), [#allocation4], 4294967280  ;;  %s322_s25 = sand.u32 1, %s6326_s10   ;;  %p10806_p5 = scmp.ne.s32.totalorder %s10799_s19, 0 }
  0x45   : > { %s5346_s29 = sshll.u32 %s322_s25, 10  ;;  %s323_s30 = scalar_lea.sflag [#allocation3], %s322_s25 }
  0x46   : > { %s6501_s15 = scalar_lea.vmem [#allocation5], %s5346_s29 }
  0x47   : > { %6317 = dma.done.wait (%p10806_p5), %s323_s30, 16384  }
  0x48   : > { %6319 = vsyncadd (%p10806_p5), %s323_s30, 4294950912 }
  0x49   : > { %331 = sfence }
  0x4a   : > { %v512_v0 = vld [vmem:[%s10469_s2 + $0x78] sm:$0xff]  ;;  %v511_v1 = vld [vmem:[%s10469_s2 + $0x70] sm:$0xff]  ;;  %v510_v2 = vld [vmem:[%s10469_s2 + $0x68] sm:$0xff]  ;;  %v10484_v28 = vmov 0   ;;  %vm1375_vm0 = vcmask 31744   ;;  %s7728_s18 = sld [smem:[#allocation2]] }
  0x4b   : > { %5534 = vmatprep.subr.mxu0 %v512_v0  ;;  %5786 = vmatprep.subr.mxu1 %v512_v0  ;;  %v509_v3 = vld [vmem:[%s10469_s2 + $0x60] sm:$0xff]  ;;  %v508_v4 = vld [vmem:[%s10469_s2 + $0x58] sm:$0xff]  ;;  %v507_v5 = vld [vmem:[%s10469_s2 + $0x50] sm:$0xff]  ;;  %s7885_s21 = sld [smem:[#allocation2 + $0x2]]  ;;  %vm4169_vm1 = vcmask 1041409   ;;  %vm4172_vm2 = vcmask 1042434  }
  0x4c   : > { %5535 = vmatpush3.msra.mxu0 %v512_v0  ;;  %5802 = vmatpush3.msra.mxu1 %v512_v0  ;;  %v506_v6 = vld [vmem:[%s10469_s2 + $0x48] sm:$0xff]  ;;  %v505_v7 = vld [vmem:[%s10469_s2 + $0x40] sm:$0xff]  ;;  %v504_v8 = vld [vmem:[%s10469_s2 + $0x38] sm:$0xff]  ;;  %s7894_s28 = sld [smem:[#allocation2 + $0x1]]  ;;  %vm4175_vm3 = vcmask 1043459   ;;  %vm4178_vm4 = vcmask 1044484  }
  0x4d   : > { %5536 = vmatprep.subr.mxu0 %v511_v1  ;;  %5787 = vmatprep.subr.mxu1 %v511_v1  ;;  %v503_v9 = vld [vmem:[%s10469_s2 + $0x30] sm:$0xff]  ;;  %v502_v10 = vld [vmem:[%s10469_s2 + $0x28] sm:$0xff]  ;;  %v501_v11 = vld [vmem:[%s10469_s2 + $0x20] sm:$0xff]  ;;  %s7902_s19 = sld [smem:[#allocation2 + $0x3]]  ;;  %vm4181_vm5 = vcmask 1045509   ;;  %vm4184_vm6 = vcmask 1046534  }
  0x4e   : > { %5537 = vmatpush3.msra.mxu0 %v511_v1  ;;  %5803 = vmatpush3.msra.mxu1 %v511_v1  ;;  %v500_v12 = vld [vmem:[%s10469_s2 + $0x18] sm:$0xff]  ;;  %v499_v13 = vld [vmem:[%s10469_s2 + $0x10] sm:$0xff]  ;;  %v498_v14 = vld [vmem:[%s10469_s2 + $0x8] sm:$0xff]  ;;  %s7920_s24 = sld [smem:[#allocation2 + $0x4]]  ;;  %vm4187_vm7 = vcmask 1047559   ;;  %vm4399_vm8 = vcmask 130112  }
  0x4f   : > { %5538 = vmatprep.subr.mxu0 %v510_v2  ;;  %5788 = vmatprep.subr.mxu1 %v510_v2  ;;  %v497_v15 = vld [vmem:[%s10469_s2] sm:$0xff]  ;;  %v370_v18 = vld [vmem:[%s6501_s15 + $0x8] sm:$0xff]  ;;  %v371_v20 = vld [vmem:[%s6501_s15 + $0x10] sm:$0xff]  ;;  %vm4406_vm9 = vcmask 195712   ;;  %vm4413_vm10 = vcmask 261312   ;;  %vm5032_vm11 = vcmask 261120  }
  0x50   : > { %5539 = vmatpush3.msra.mxu0 %v510_v2  ;;  %5804 = vmatpush3.msra.mxu1 %v510_v2  ;;  %v369_v16 = vld [vmem:[%s6501_s15] sm:$0xff]  ;;  %v438_v19 = vld [vmem:[%s6501_s15 + $0x228] sm:$0xff]  ;;  %v439_v21 = vld [vmem:[%s6501_s15 + $0x230] sm:$0xff]  ;;  %vm5252_vm12 = vcmask 130048  }
  0x51   : > { %5540 = vmatprep.subr.mxu0 %v509_v3  ;;  %5789 = vmatprep.subr.mxu1 %v509_v3  ;;  %v437_v17 = vld [vmem:[%s6501_s15 + $0x220] sm:$0xff]  ;;  %v1225_v23 = vld [vmem:[%s10472_s5 + $0x10] sm:$0xff]  ;;  %v372_v24 = vld [vmem:[%s6501_s15 + $0x18] sm:$0xff] }
  0x52   : > { %5541 = vmatpush3.msra.mxu0 %v509_v3  ;;  %5805 = vmatpush3.msra.mxu1 %v509_v3  ;;  %v1223_v22 = vld [vmem:[%s10472_s5] sm:$0xff]  ;;  %v440_v25 = vld [vmem:[%s6501_s15 + $0x238] sm:$0xff]  ;;  %v1224_v29 = vld [vmem:[%s10472_s5 + $0x8] sm:$0xff] }
  0x53   : > { %5542 = vmatprep.subr.mxu0 %v508_v4  ;;  %5790 = vmatprep.subr.mxu1 %v508_v4  ;;  %v373_v26 = vld [vmem:[%s6501_s15 + $0x20] sm:$0xff]  ;;  %v1226_v30 = vld [vmem:[%s10472_s5 + $0x18] sm:$0xff]  ;;  %v374_v31 = vld [vmem:[%s6501_s15 + $0x28] sm:$0xff] }
  0x54   : > { %5543 = vmatpush3.msra.mxu0 %v508_v4  ;;  %5806 = vmatpush3.msra.mxu1 %v508_v4  ;;  %v441_v27 = vld [vmem:[%s6501_s15 + $0x240] sm:$0xff]  ;;  %v442_v32 = vld [vmem:[%s6501_s15 + $0x248] sm:$0xff]  ;;  %v375_v33 = vld [vmem:[%s6501_s15 + $0x30] sm:$0xff] }
  0x55   : > { %5544 = vmatprep.subr.mxu0 %v507_v5  ;;  %5791 = vmatprep.subr.mxu1 %v507_v5  ;;  %v443_v34 = vld [vmem:[%s6501_s15 + $0x250] sm:$0xff]  ;;  %v5350_v35 = vld [vmem:[%s10472_s5 + $0x20] sm:$0xff]  ;;  %v5351_v36 = vld [vmem:[%s10472_s5 + $0x28] sm:$0xff] }
  0x56   : > { %5545 = vmatpush3.msra.mxu0 %v507_v5  ;;  %5807 = vmatpush3.msra.mxu1 %v507_v5  ;;  %v376_v37 = vld [vmem:[%s6501_s15 + $0x38] sm:$0xff]  ;;  %v377_v39 = vld [vmem:[%s6501_s15 + $0x40] sm:$0xff]  ;;  %v5352_v41 = vld [vmem:[%s10472_s5 + $0x30] sm:$0xff] }
  0x57   : > { %5546 = vmatprep.subr.mxu0 %v506_v6  ;;  %5792 = vmatprep.subr.mxu1 %v506_v6  ;;  %v444_v38 = vld [vmem:[%s6501_s15 + $0x258] sm:$0xff]  ;;  %v445_v40 = vld [vmem:[%s6501_s15 + $0x260] sm:$0xff]  ;;  %v378_v43 = vld [vmem:[%s6501_s15 + $0x48] sm:$0xff] }
  0x58   : > { %5547 = vmatpush3.msra.mxu0 %v506_v6  ;;  %5808 = vmatpush3.msra.mxu1 %v506_v6  ;;  %v5353_v42 = vld [vmem:[%s10472_s5 + $0x38] sm:$0xff]  ;;  %v446_v44 = vld [vmem:[%s6501_s15 + $0x268] sm:$0xff]  ;;  %v379_v45 = vld [vmem:[%s6501_s15 + $0x50] sm:$0xff] }
  0x59   : > { %5548 = vmatprep.subr.mxu0 %v505_v7  ;;  %5793 = vmatprep.subr.mxu1 %v505_v7  ;;  %v447_v46 = vld [vmem:[%s6501_s15 + $0x270] sm:$0xff]  ;;  %v380_v47 = vld [vmem:[%s6501_s15 + $0x58] sm:$0xff]  ;;  %v381_v49 = vld [vmem:[%s6501_s15 + $0x60] sm:$0xff] }
  0x5a   : > { %5549 = vmatpush3.msra.mxu0 %v505_v7  ;;  %5809 = vmatpush3.msra.mxu1 %v505_v7  ;;  %v448_v48 = vld [vmem:[%s6501_s15 + $0x278] sm:$0xff]  ;;  %v449_v50 = vld [vmem:[%s6501_s15 + $0x280] sm:$0xff]  ;;  %v382_v51 = vld [vmem:[%s6501_s15 + $0x68] sm:$0xff] }
  0x5b   : > { %5550 = vmatprep.subr.mxu0 %v504_v8  ;;  %5794 = vmatprep.subr.mxu1 %v504_v8  ;;  %v450_v52 = vld [vmem:[%s6501_s15 + $0x288] sm:$0xff]  ;;  %v383_v53 = vld [vmem:[%s6501_s15 + $0x70] sm:$0xff]  ;;  %v384_v55 = vld [vmem:[%s6501_s15 + $0x78] sm:$0xff] }
  0x5c   : > { %5551 = vmatpush3.msra.mxu0 %v504_v8  ;;  %5810 = vmatpush3.msra.mxu1 %v504_v8  ;;  %v451_v54 = vld [vmem:[%s6501_s15 + $0x290] sm:$0xff]  ;;  %v452_v56 = vld [vmem:[%s6501_s15 + $0x298] sm:$0xff]  ;;  %v385_v57 = vld [vmem:[%s6501_s15 + $0x80] sm:$0xff] }
  0x5d   : > { %5552 = vmatprep.subr.mxu0 %v503_v9  ;;  %5795 = vmatprep.subr.mxu1 %v503_v9  ;;  %v453_v58 = vld [vmem:[%s6501_s15 + $0x2a0] sm:$0xff]  ;;  %v386_v59 = vld [vmem:[%s6501_s15 + $0x88] sm:$0xff]  ;;  %v387_v61 = vld [vmem:[%s6501_s15 + $0x90] sm:$0xff] }
  0x5e   : > { %5553 = vmatpush3.msra.mxu0 %v503_v9  ;;  %5811 = vmatpush3.msra.mxu1 %v503_v9  ;;  %v454_v60 = vld [vmem:[%s6501_s15 + $0x2a8] sm:$0xff]  ;;  %v455_v62 = vld [vmem:[%s6501_s15 + $0x2b0] sm:$0xff]  ;;  %v388_v63 = vld [vmem:[%s6501_s15 + $0x98] sm:$0xff] }
  0x5f   : > { %5554 = vmatprep.subr.mxu0 %v502_v10  ;;  %5796 = vmatprep.subr.mxu1 %v502_v10  ;;  %v456_v0 = vld [vmem:[%s6501_s15 + $0x2b8] sm:$0xff]  ;;  %v389_v1 = vld [vmem:[%s6501_s15 + $0xa0] sm:$0xff]  ;;  %v390_v3 = vld [vmem:[%s6501_s15 + $0xa8] sm:$0xff] }
  0x60   : > { %5555 = vmatpush3.msra.mxu0 %v502_v10  ;;  %5812 = vmatpush3.msra.mxu1 %v502_v10  ;;  %v457_v2 = vld [vmem:[%s6501_s15 + $0x2c0] sm:$0xff]  ;;  %v458_v4 = vld [vmem:[%s6501_s15 + $0x2c8] sm:$0xff]  ;;  %v391_v5 = vld [vmem:[%s6501_s15 + $0xb0] sm:$0xff] }
  0x61   : > { %5556 = vmatprep.subr.mxu0 %v501_v11  ;;  %5797 = vmatprep.subr.mxu1 %v501_v11  ;;  %v459_v6 = vld [vmem:[%s6501_s15 + $0x2d0] sm:$0xff]  ;;  %v392_v7 = vld [vmem:[%s6501_s15 + $0xb8] sm:$0xff]  ;;  %v393_v9 = vld [vmem:[%s6501_s15 + $0xc0] sm:$0xff] }
  0x62   : > { %5557 = vmatpush3.msra.mxu0 %v501_v11  ;;  %5813 = vmatpush3.msra.mxu1 %v501_v11  ;;  %v460_v8 = vld [vmem:[%s6501_s15 + $0x2d8] sm:$0xff]  ;;  %v461_v10 = vld [vmem:[%s6501_s15 + $0x2e0] sm:$0xff]  ;;  %v394_v11 = vld [vmem:[%s6501_s15 + $0xc8] sm:$0xff] }
  0x63   : > { %5558 = vmatprep.subr.mxu0 %v500_v12  ;;  %5798 = vmatprep.subr.mxu1 %v500_v12 }
  0x64   : > { %5559 = vmatpush3.msra.mxu0 %v500_v12  ;;  %5814 = vmatpush3.msra.mxu1 %v500_v12  ;;  %v462_v12 = vld [vmem:[%s6501_s15 + $0x2e8] sm:$0xff] }
  0x65   : > { %5560 = vmatprep.subr.mxu0 %v499_v13  ;;  %5799 = vmatprep.subr.mxu1 %v499_v13 }
  0x66   : > { %5561 = vmatpush3.msra.mxu0 %v499_v13  ;;  %5815 = vmatpush3.msra.mxu1 %v499_v13  ;;  %v395_v13 = vld [vmem:[%s6501_s15 + $0xd0] sm:$0xff] }
  0x67   : > { %5562 = vmatprep.subr.mxu0 %v498_v14  ;;  %5800 = vmatprep.subr.mxu1 %v498_v14 }
  0x68   : > { %5563 = vmatpush3.msra.mxu0 %v498_v14  ;;  %5816 = vmatpush3.msra.mxu1 %v498_v14  ;;  %v463_v14 = vld [vmem:[%s6501_s15 + $0x2f0] sm:$0xff] }
  0x69   : > { %5564 = vmatprep.subr.mxu0 %v497_v15  ;;  %5801 = vmatprep.subr.mxu1 %v497_v15 }
  0x6a   : > { %5565 = vmatpush3.msra.mxu0 %v497_v15  ;;  %5817 = vmatpush3.msra.mxu1 %v497_v15  ;;  %v396_v15 = vld [vmem:[%s6501_s15 + $0xd8] sm:$0xff] }
  0x6b   : > { %5566 = vmatprep.mubr.f32.mxu0 %v369_v16  ;;  %5668 = vmatprep.mubr.f32.mxu1 %v437_v17  ;;  %v464_v16 = vld [vmem:[%s6501_s15 + $0x2f8] sm:$0xff]  ;;  %v397_v17 = vld [vmem:[%s6501_s15 + $0xe0] sm:$0xff] }
  0x6c   : > { %5567 = vmatmul.mubr.f32.vlgmr.msra.gmra.mxu0 %v370_v18  ;;  %5669 = vmatmul.mubr.f32.vlgmr.msra.gmra.mxu1 %v438_v19  ;;  %v465_v18 = vld [vmem:[%s6501_s15 + $0x300] sm:$0xff]  ;;  %v398_v19 = vld [vmem:[%s6501_s15 + $0xe8] sm:$0xff] }
  0x6d   : > { %5569 = vmatprep.mubr.f32.mxu0 %v371_v20  ;;  %5671 = vmatprep.mubr.f32.mxu1 %v439_v21  ;;  %v466_v20 = vld [vmem:[%s6501_s15 + $0x308] sm:$0xff]  ;;  %v399_v21 = vld [vmem:[%s6501_s15 + $0xf0] sm:$0xff] }
  0x6e   : > { %5874 = vset.pattern.permute.xlu0 %v10484_v28  ;;  %5875 = vset.pattern.permute.xlu1 %v10484_v28 }
  0x6f   : > { %1229 = vperm.xlu0 %5874, %v1223_v22   ;;  %1239 = vperm.xlu1 %5875, %v1225_v23   ;;  %v467_v22 = vld [vmem:[%s6501_s15 + $0x310] sm:$0xff]  ;;  %v400_v23 = vld [vmem:[%s6501_s15 + $0xf8] sm:$0xff] }
  0x70   : > { %5570 = vmatmul.mubr.f32.gmra.mxu0 %v372_v24  ;;  %5672 = vmatmul.mubr.f32.gmra.mxu1 %v440_v25  ;;  %v468_v24 = vld [vmem:[%s6501_s15 + $0x318] sm:$0xff]  ;;  %v401_v25 = vld [vmem:[%s6501_s15 + $0x100] sm:$0xff] }
  0x71   : > { %5572 = vmatprep.mubr.f32.mxu0 %v373_v26  ;;  %5674 = vmatprep.mubr.f32.mxu1 %v441_v27  ;;  %v469_v26 = vld [vmem:[%s6501_s15 + $0x320] sm:$0xff]  ;;  %v402_v27 = vld [vmem:[%s6501_s15 + $0x108] sm:$0xff] }
  0x73   : > { %1234 = vperm.xlu0 %5874, %v1224_v29   ;;  %1244 = vperm.xlu1 %5875, %v1226_v30   ;;  %v470_v29 = vld [vmem:[%s6501_s15 + $0x328] sm:$0xff]  ;;  %v403_v30 = vld [vmem:[%s6501_s15 + $0x110] sm:$0xff] }
  0x74   : > { %5573 = vmatmul.mubr.f32.gmra.mxu0 %v374_v31  ;;  %5675 = vmatmul.mubr.f32.gmra.mxu1 %v442_v32  ;;  %v471_v31 = vld [vmem:[%s6501_s15 + $0x330] sm:$0xff]  ;;  %v404_v32 = vld [vmem:[%s6501_s15 + $0x118] sm:$0xff] }
  0x75   : > { %5575 = vmatprep.mubr.f32.mxu0 %v375_v33  ;;  %5677 = vmatprep.mubr.f32.mxu1 %v443_v34  ;;  %v472_v33 = vld [vmem:[%s6501_s15 + $0x338] sm:$0xff]  ;;  %v405_v34 = vld [vmem:[%s6501_s15 + $0x120] sm:$0xff] }
  0x77   : > { %1833 = vperm.xlu0 %5874, %v5350_v35   ;;  %1838 = vperm.xlu1 %5875, %v5351_v36   ;;  %v473_v35 = vld [vmem:[%s6501_s15 + $0x340] sm:$0xff]  ;;  %v406_v36 = vld [vmem:[%s6501_s15 + $0x128] sm:$0xff] }
  0x78   : > { %5576 = vmatmul.mubr.f32.gmra.mxu0 %v376_v37  ;;  %5678 = vmatmul.mubr.f32.gmra.mxu1 %v444_v38  ;;  %v474_v37 = vld [vmem:[%s6501_s15 + $0x348] sm:$0xff]  ;;  %v407_v38 = vld [vmem:[%s6501_s15 + $0x130] sm:$0xff] }
  0x79   : > { %5578 = vmatprep.mubr.f32.mxu0 %v377_v39  ;;  %5680 = vmatprep.mubr.f32.mxu1 %v445_v40  ;;  %v475_v39 = vld [vmem:[%s6501_s15 + $0x350] sm:$0xff]  ;;  %v408_v40 = vld [vmem:[%s6501_s15 + $0x138] sm:$0xff] }
  0x7b   : > { %1843 = vperm.xlu0 %5874, %v5352_v41   ;;  %1848 = vperm.xlu1 %5875, %v5353_v42   ;;  %v476_v41 = vld [vmem:[%s6501_s15 + $0x358] sm:$0xff]  ;;  %v409_v42 = vld [vmem:[%s6501_s15 + $0x140] sm:$0xff] }
  0x7c   : > { %5579 = vmatmul.mubr.f32.gmra.mxu0 %v378_v43  ;;  %5681 = vmatmul.mubr.f32.gmra.mxu1 %v446_v44  ;;  %v477_v43 = vld [vmem:[%s6501_s15 + $0x360] sm:$0xff]  ;;  %v410_v44 = vld [vmem:[%s6501_s15 + $0x148] sm:$0xff] }
  0x7d   : > { %5581 = vmatprep.mubr.f32.mxu0 %v379_v45  ;;  %5683 = vmatprep.mubr.f32.mxu1 %v447_v46  ;;  %v478_v45 = vld [vmem:[%s6501_s15 + $0x368] sm:$0xff]  ;;  %v411_v46 = vld [vmem:[%s6501_s15 + $0x150] sm:$0xff] }
  0x80   : > { %5582 = vmatmul.mubr.f32.gmra.mxu0 %v380_v47  ;;  %5684 = vmatmul.mubr.f32.gmra.mxu1 %v448_v48  ;;  %v479_v47 = vld [vmem:[%s6501_s15 + $0x370] sm:$0xff]  ;;  %v412_v48 = vld [vmem:[%s6501_s15 + $0x158] sm:$0xff] }
  0x81   : > { %5584 = vmatprep.mubr.f32.mxu0 %v381_v49  ;;  %5686 = vmatprep.mubr.f32.mxu1 %v449_v50  ;;  %v480_v49 = vld [vmem:[%s6501_s15 + $0x378] sm:$0xff]  ;;  %v413_v50 = vld [vmem:[%s6501_s15 + $0x160] sm:$0xff] }
  0x84   : > { %5585 = vmatmul.mubr.f32.gmra.mxu0 %v382_v51  ;;  %5687 = vmatmul.mubr.f32.gmra.mxu1 %v450_v52  ;;  %v481_v51 = vld [vmem:[%s6501_s15 + $0x380] sm:$0xff]  ;;  %v414_v52 = vld [vmem:[%s6501_s15 + $0x168] sm:$0xff] }
  0x85   : > { %5587 = vmatprep.mubr.f32.mxu0 %v383_v53  ;;  %5689 = vmatprep.mubr.f32.mxu1 %v451_v54  ;;  %v482_v53 = vld [vmem:[%s6501_s15 + $0x388] sm:$0xff]  ;;  %v415_v54 = vld [vmem:[%s6501_s15 + $0x170] sm:$0xff] }
  0x88   : > { %5588 = vmatmul.mubr.f32.gmra.mxu0 %v384_v55  ;;  %5690 = vmatmul.mubr.f32.gmra.mxu1 %v452_v56  ;;  %v483_v55 = vld [vmem:[%s6501_s15 + $0x390] sm:$0xff]  ;;  %v416_v56 = vld [vmem:[%s6501_s15 + $0x178] sm:$0xff] }
  0x89   : > { %5590 = vmatprep.mubr.f32.mxu0 %v385_v57  ;;  %5692 = vmatprep.mubr.f32.mxu1 %v453_v58  ;;  %v484_v57 = vld [vmem:[%s6501_s15 + $0x398] sm:$0xff]  ;;  %v417_v58 = vld [vmem:[%s6501_s15 + $0x180] sm:$0xff] }
  0x8c   : > { %5591 = vmatmul.mubr.f32.gmra.mxu0 %v386_v59  ;;  %5693 = vmatmul.mubr.f32.gmra.mxu1 %v454_v60  ;;  %v485_v59 = vld [vmem:[%s6501_s15 + $0x3a0] sm:$0xff]  ;;  %v418_v60 = vld [vmem:[%s6501_s15 + $0x188] sm:$0xff] }
  0x8d   : > { %5593 = vmatprep.mubr.f32.mxu0 %v387_v61  ;;  %5695 = vmatprep.mubr.f32.mxu1 %v455_v62  ;;  %v486_v61 = vld [vmem:[%s6501_s15 + $0x3a8] sm:$0xff]  ;;  %v419_v62 = vld [vmem:[%s6501_s15 + $0x190] sm:$0xff] }
  0x90   : > { %5594 = vmatmul.mubr.f32.gmra.mxu0 %v388_v63  ;;  %5696 = vmatmul.mubr.f32.gmra.mxu1 %v456_v0  ;;  %v487_v63 = vld [vmem:[%s6501_s15 + $0x3b0] sm:$0xff]  ;;  %v420_v0 = vld [vmem:[%s6501_s15 + $0x198] sm:$0xff] }
  0x91   : > { %5596 = vmatprep.mubr.f32.mxu0 %v389_v1  ;;  %5698 = vmatprep.mubr.f32.mxu1 %v457_v2  ;;  %v488_v1 = vld [vmem:[%s6501_s15 + $0x3b8] sm:$0xff]  ;;  %v421_v2 = vld [vmem:[%s6501_s15 + $0x1a0] sm:$0xff] }
  0x94   : > { %5597 = vmatmul.mubr.f32.gmra.mxu0 %v390_v3  ;;  %5699 = vmatmul.mubr.f32.gmra.mxu1 %v458_v4  ;;  %v489_v3 = vld [vmem:[%s6501_s15 + $0x3c0] sm:$0xff]  ;;  %v422_v4 = vld [vmem:[%s6501_s15 + $0x1a8] sm:$0xff] }
  0x95   : > { %5599 = vmatprep.mubr.f32.mxu0 %v391_v5  ;;  %5701 = vmatprep.mubr.f32.mxu1 %v459_v6  ;;  %v490_v5 = vld [vmem:[%s6501_s15 + $0x3c8] sm:$0xff]  ;;  %v423_v6 = vld [vmem:[%s6501_s15 + $0x1b0] sm:$0xff] }
  0x98   : > { %5600 = vmatmul.mubr.f32.gmra.mxu0 %v392_v7  ;;  %5702 = vmatmul.mubr.f32.gmra.mxu1 %v460_v8  ;;  %v491_v7 = vld [vmem:[%s6501_s15 + $0x3d0] sm:$0xff]  ;;  %v424_v8 = vld [vmem:[%s6501_s15 + $0x1b8] sm:$0xff] }
  0x99   : > { %5602 = vmatprep.mubr.f32.mxu0 %v393_v9  ;;  %5704 = vmatprep.mubr.f32.mxu1 %v461_v10  ;;  %v492_v9 = vld [vmem:[%s6501_s15 + $0x3d8] sm:$0xff]  ;;  %v425_v10 = vld [vmem:[%s6501_s15 + $0x1c0] sm:$0xff] }
  0x9c   : > { %5603 = vmatmul.mubr.f32.gmra.mxu0 %v394_v11  ;;  %5705 = vmatmul.mubr.f32.gmra.mxu1 %v462_v12  ;;  %v493_v11 = vld [vmem:[%s6501_s15 + $0x3e0] sm:$0xff]  ;;  %v426_v12 = vld [vmem:[%s6501_s15 + $0x1c8] sm:$0xff] }
  0x9d   : > { %5605 = vmatprep.mubr.f32.mxu0 %v395_v13  ;;  %5707 = vmatprep.mubr.f32.mxu1 %v463_v14  ;;  %v494_v13 = vld [vmem:[%s6501_s15 + $0x3e8] sm:$0xff]  ;;  %v427_v14 = vld [vmem:[%s6501_s15 + $0x1d0] sm:$0xff] }
  0xa0   : > { %5606 = vmatmul.mubr.f32.gmra.mxu0 %v396_v15  ;;  %5708 = vmatmul.mubr.f32.gmra.mxu1 %v464_v16  ;;  %v495_v15 = vld [vmem:[%s6501_s15 + $0x3f0] sm:$0xff]  ;;  %v428_v16 = vld [vmem:[%s6501_s15 + $0x1d8] sm:$0xff] }
  0xa1   : > { %5608 = vmatprep.mubr.f32.mxu0 %v397_v17  ;;  %5710 = vmatprep.mubr.f32.mxu1 %v465_v18  ;;  %v496_v17 = vld [vmem:[%s6501_s15 + $0x3f8] sm:$0xff]  ;;  %v429_v18 = vld [vmem:[%s6501_s15 + $0x1e0] sm:$0xff] }
  0xa4   : > { %5609 = vmatmul.mubr.f32.gmra.mxu0 %v398_v19  ;;  %5711 = vmatmul.mubr.f32.gmra.mxu1 %v466_v20  ;;  %v430_v19 = vld [vmem:[%s6501_s15 + $0x1e8] sm:$0xff]  ;;  %v431_v20 = vld [vmem:[%s6501_s15 + $0x1f0] sm:$0xff] }
  0xa5   : > { %5611 = vmatprep.mubr.f32.mxu0 %v399_v21  ;;  %5713 = vmatprep.mubr.f32.mxu1 %v467_v22  ;;  %v432_v21 = vld [vmem:[%s6501_s15 + $0x1f8] sm:$0xff]  ;;  %v433_v22 = vld [vmem:[%s6501_s15 + $0x200] sm:$0xff] }
  0xa8   : > { %5612 = vmatmul.mubr.f32.gmra.mxu0 %v400_v23  ;;  %5714 = vmatmul.mubr.f32.gmra.mxu1 %v468_v24  ;;  %v434_v23 = vld [vmem:[%s6501_s15 + $0x208] sm:$0xff]  ;;  %v435_v24 = vld [vmem:[%s6501_s15 + $0x210] sm:$0xff] }
  0xa9   : > { %5614 = vmatprep.mubr.f32.mxu0 %v401_v25  ;;  %5716 = vmatprep.mubr.f32.mxu1 %v469_v26  ;;  %v436_v25 = vld [vmem:[%s6501_s15 + $0x218] sm:$0xff] }
  0xac   : > { %5615 = vmatmul.mubr.f32.gmra.mxu0 %v402_v27  ;;  %5717 = vmatmul.mubr.f32.gmra.mxu1 %v470_v29 }
  0xad   : > { %5617 = vmatprep.mubr.f32.mxu0 %v403_v30  ;;  %5719 = vmatprep.mubr.f32.mxu1 %v471_v31 }
  0xb0   : > { %5618 = vmatmul.mubr.f32.gmra.mxu0 %v404_v32  ;;  %5720 = vmatmul.mubr.f32.gmra.mxu1 %v472_v33 }
  0xb1   : > { %5620 = vmatprep.mubr.f32.mxu0 %v405_v34  ;;  %5722 = vmatprep.mubr.f32.mxu1 %v473_v35 }
  0xb4   : > { %5621 = vmatmul.mubr.f32.gmra.mxu0 %v406_v36  ;;  %5723 = vmatmul.mubr.f32.gmra.mxu1 %v474_v37 }
  0xb5   : > { %5623 = vmatprep.mubr.f32.mxu0 %v407_v38  ;;  %5725 = vmatprep.mubr.f32.mxu1 %v475_v39  ;;  %v6722_v38 = vld [vmem:[%s10474_s7] ss:$0 sm:$0xff] }
  0xb8   : > { %5624 = vmatmul.mubr.f32.gmra.mxu0 %v408_v40  ;;  %5726 = vmatmul.mubr.f32.gmra.mxu1 %v476_v41 }
  0xb9   : > { %5626 = vmatprep.mubr.f32.mxu0 %v409_v42  ;;  %5728 = vmatprep.mubr.f32.mxu1 %v477_v43 }
  0xbc   : > { %5627 = vmatmul.mubr.f32.gmra.mxu0 %v410_v44  ;;  %5729 = vmatmul.mubr.f32.gmra.mxu1 %v478_v45 }
  0xbd   : > { %5629 = vmatprep.mubr.f32.mxu0 %v411_v46  ;;  %5731 = vmatprep.mubr.f32.mxu1 %v479_v47 }
  0xc0   : > { %5630 = vmatmul.mubr.f32.gmra.mxu0 %v412_v48  ;;  %5732 = vmatmul.mubr.f32.gmra.mxu1 %v480_v49 }
  0xc1   : > { %5632 = vmatprep.mubr.f32.mxu0 %v413_v50  ;;  %5734 = vmatprep.mubr.f32.mxu1 %v481_v51 }
  0xc4   : > { %5633 = vmatmul.mubr.f32.gmra.mxu0 %v414_v52  ;;  %5735 = vmatmul.mubr.f32.gmra.mxu1 %v482_v53 }
  0xc5   : > { %5635 = vmatprep.mubr.f32.mxu0 %v415_v54  ;;  %5737 = vmatprep.mubr.f32.mxu1 %v483_v55 }
  0xc8   : > { %5636 = vmatmul.mubr.f32.gmra.mxu0 %v416_v56  ;;  %5738 = vmatmul.mubr.f32.gmra.mxu1 %v484_v57 }
  0xc9   : > { %5638 = vmatprep.mubr.f32.mxu0 %v417_v58  ;;  %5740 = vmatprep.mubr.f32.mxu1 %v485_v59 }
  0xcc   : > { %5639 = vmatmul.mubr.f32.gmra.mxu0 %v418_v60  ;;  %5741 = vmatmul.mubr.f32.gmra.mxu1 %v486_v61 }
  0xcd   : > { %5641 = vmatprep.mubr.f32.mxu0 %v419_v62  ;;  %5743 = vmatprep.mubr.f32.mxu1 %v487_v63 }
  0xd0   : > { %5642 = vmatmul.mubr.f32.gmra.mxu0 %v420_v0  ;;  %5744 = vmatmul.mubr.f32.gmra.mxu1 %v488_v1 }
  0xd1   : > { %5644 = vmatprep.mubr.f32.mxu0 %v421_v2  ;;  %5746 = vmatprep.mubr.f32.mxu1 %v489_v3 }
  0xd4   : > { %5645 = vmatmul.mubr.f32.gmra.mxu0 %v422_v4  ;;  %5747 = vmatmul.mubr.f32.gmra.mxu1 %v490_v5 }
  0xd5   : > { %5647 = vmatprep.mubr.f32.mxu0 %v423_v6  ;;  %5749 = vmatprep.mubr.f32.mxu1 %v491_v7 }
  0xd8   : > { %5648 = vmatmul.mubr.f32.gmra.mxu0 %v424_v8  ;;  %5750 = vmatmul.mubr.f32.gmra.mxu1 %v492_v9 }
  0xd9   : > { %5650 = vmatprep.mubr.f32.mxu0 %v425_v10  ;;  %5752 = vmatprep.mubr.f32.mxu1 %v493_v11 }
  0xdc   : > { %5651 = vmatmul.mubr.f32.gmra.mxu0 %v426_v12  ;;  %5753 = vmatmul.mubr.f32.gmra.mxu1 %v494_v13 }
  0xdd   : > { %5653 = vmatprep.mubr.f32.mxu0 %v427_v14  ;;  %5755 = vmatprep.mubr.f32.mxu1 %v495_v15 }
  0xe0   : > { %5654 = vmatmul.mubr.f32.gmra.mxu0 %v428_v16  ;;  %5756 = vmatmul.mubr.f32.gmra.mxu1 %v496_v17 }
  0xe1   : > { %5656 = vmatprep.mubr.f32.mxu0 %v429_v18 }
  0xe4   : > { %5657 = vmatmul.mubr.f32.gmra.mxu0 %v430_v19 }
  0xe5   : > { %5659 = vmatprep.mubr.f32.mxu0 %v431_v20 }
  0xe8   : > { %5660 = vmatmul.mubr.f32.gmra.mxu0 %v432_v21 }
  0xe9   : > { %5662 = vmatprep.mubr.f32.mxu0 %v433_v22 }
  0xea   : > { %v6709_v26 = vpop.permute.xlu0 %1229  ;;  %v6711_v31 = vpop.permute.xlu1 %1239 }
  0xeb   : > { %10807 = vst [vmem:[#allocation8_spill] sm:$0xff] %v6709_v26  ;;  %10808 = vst [vmem:[#allocation9_spill] sm:$0xff] %v6711_v31 }
  0xec   : > { %5663 = vmatmul.mubr.f32.gmra.mxu0 %v434_v23 }
  0xed   : > { %5665 = vmatprep.mubr.f32.mxu0 %v435_v24 }
  0xee   : > { %v6713_v33 = vpop.permute.xlu0 %1234  ;;  %v6715_v36 = vpop.permute.xlu1 %1244 }
  0xef   : > { %10809 = vst [vmem:[#allocation10_spill] sm:$0xff] %v6713_v33  ;;  %10810 = vst [vmem:[#allocation11_spill] sm:$0xff] %v6715_v36 }
  0xf0   : > { %5666 = vmatmul.mubr.f32.gmra.mxu0 %v436_v25 }
  0xf2   : > { %v6717_v37 = vpop.permute.xlu0 %1833  ;;  %v6744_v48 = vpop.permute.xlu1 %1838 }
  0xf6   : > { %v6746_v49 = vpop.permute.xlu0 %1843  ;;  %v6768_v61 = vpop.permute.xlu1 %1848 }
 0x12c   : > { %v5670_v27 = vpop.f32.mrf.mxu1  ;;  %v5568_v29 = vpop.f32.mrf.mxu0 }
 0x12d   : > { %v6731_v43 = vadd.f32 %v5670_v27, %v6722_v38  ;;  %v6737_v45 = vadd.f32 %v5568_v29, %v6722_v38 }
 0x12e   : > { %v924_v30 = vpop.f32.mrf.mxu1  ;;  %v584_v32 = vpop.f32.mrf.mxu0 }
 0x12f   : > { %v6725_v40 = vadd.f32 %v6722_v38, %v924_v30  ;;  %v6728_v42 = vadd.f32 %v6722_v38, %v584_v32  ;;  %10813 = vst [vmem:[#allocation14_spill] sm:$0xff] %v6731_v43  ;;  %10815 = vst [vmem:[#allocation16_spill] sm:$0xff] %v6737_v45  ;;  %v1920_v51 = vmul.f32 %v6744_v48, %v6731_v43 }
 0x130   : > { %v5673_v34 = vpop.f32.mrf.mxu1  ;;  %v5571_v35 = vpop.f32.mrf.mxu0  ;;  %v1852_v53 = vmul.f32 %v6744_v48, %v6737_v45 }
 0x131   : > { %10811 = vst [vmem:[#allocation12_spill] sm:$0xff] %v6725_v40  ;;  %10812 = vst [vmem:[#allocation13_spill] sm:$0xff] %v6728_v42  ;;  %v1919_v47 = vmul.f32 %v6717_v37, %v6725_v40  ;;  %v1851_v50 = vmul.f32 %v6717_v37, %v6728_v42  ;;  %v6760_v56 = vadd.f32 %v5673_v34, %v6722_v38  ;;  %v2201_v59 = vsel %vm1375_vm0, %v1920_v51, 0.0 }
 0x132   : > { %v934_v39 = vpop.f32.mrf.mxu1  ;;  %v594_v41 = vpop.f32.mrf.mxu0  ;;  %v6764_v58 = vadd.f32 %v5571_v35, %v6722_v38  ;;  %v1980_v62 = vsel %vm1375_vm0, %v1852_v53, 0.0  ;;  %v10482_v53 = vmov 1  }
 0x133   : > { %v6734_v44 = vadd.f32 %v6722_v38, %v934_v39  ;;  %v6740_v46 = vadd.f32 %v6722_v38, %v594_v41  ;;  %v2200_v55 = vsel %vm1375_vm0, %v1919_v47, 0.0  ;;  %10817 = vst [vmem:[#allocation18_spill] sm:$0xff] %v6760_v56  ;;  %v1979_v57 = vsel %vm1375_vm0, %v1851_v50, 0.0 }
 0x134   : > { %10818 = vst [vmem:[#allocation19_spill] sm:$0xff] %v6764_v58  ;;  %v2202_v63 = vadd.f32 %v2201_v59, %v2200_v55  ;;  %v1981_v1 = vadd.f32 %v1980_v62, %v1979_v57  ;;  %v1922_v2 = vmul.f32 %v6768_v61, %v6760_v56  ;;  %v1854_v3 = vmul.f32 %v6768_v61, %v6764_v58  ;;  %v5574_v9 = vpop.f32.mrf.mxu0  ;;  %v5676_v39 = vpop.f32.mrf.mxu1 }
 0x135   : > { %10814 = vst [vmem:[#allocation15_spill] sm:$0xff] %v6734_v44  ;;  %10816 = vst [vmem:[#allocation17_spill] sm:$0xff] %v6740_v46  ;;  %v1921_v52 = vmul.f32 %v6746_v49, %v6734_v44  ;;  %v1853_v54 = vmul.f32 %v6746_v49, %v6740_v46  ;;  %v6782_v24 = vadd.f32 %v5574_v9, %v6722_v38  ;;  %v10494_v50 = vmov 2  }
 0x136   : > { %v2205_v6 = vsel %vm1375_vm0, %v1922_v2, 0.0  ;;  %v1984_v7 = vsel %vm1375_vm0, %v1854_v3, 0.0  ;;  %v604_v12 = vpop.f32.mrf.mxu0  ;;  %v944_v55 = vpop.f32.mrf.mxu1  ;;  %v10486_v62 = vmov 3  }
 0x137   : > { %v2203_v60 = vsel %vm1375_vm0, %v1921_v52, 0.0  ;;  %v1982_v0 = vsel %vm1375_vm0, %v1853_v54, 0.0  ;;  %v6779_v21 = vadd.f32 %v6722_v38, %v604_v12  ;;  %10820 = vst [vmem:[#allocation21_spill] sm:$0xff] %v6782_v24  ;;  %v1856_v34 = vmul.f32 %v6744_v48, %v6782_v24 }
 0x138   : > { %v2204_v4 = vadd.f32 %v2203_v60, %v2202_v63  ;;  %v1983_v5 = vadd.f32 %v1982_v0, %v1981_v1  ;;  %v5577_v14 = vpop.f32.mrf.mxu0  ;;  %v5679_v63 = vpop.f32.mrf.mxu1 }
 0x139   : > { %10819 = vst [vmem:[#allocation20_spill] sm:$0xff] %v6779_v21  ;;  %v1855_v30 = vmul.f32 %v6717_v37, %v6779_v21  ;;  %v6795_v47 = vadd.f32 %v5577_v14, %v6722_v38  ;;  %v1993_v51 = vsel %vm1375_vm0, %v1856_v34, 0.0 }
 0x13a   : > { %v2206_v8 = vadd.f32 %v2205_v6, %v2204_v4  ;;  %v1985_v10 = vadd.f32 %v1984_v7, %v1983_v5  ;;  %v614_v19 = vpop.f32.mrf.mxu0  ;;  %v954_v3 = vpop.f32.mrf.mxu1  ;;  %v6808_v4 = vadd.f32 %v6722_v38, %v944_v55  ;;  %v6811_v6 = vadd.f32 %v5676_v39, %v6722_v38 }
 0x13b   : > { %v6785_v25 = vadd.f32 %v6722_v38, %v614_v19  ;;  %v1992_v41 = vsel %vm1375_vm0, %v1855_v30, 0.0  ;;  %10822 = vst [vmem:[#allocation23_spill] sm:$0xff] %v6795_v47  ;;  %v1858_v57 = vmul.f32 %v6768_v61, %v6795_v47  ;;  %v6814_v7 = vadd.f32 %v6722_v38, %v954_v3 }
 0x13c   : > { %v2207_v11 = vrot.slane %v2206_v8, 4  ;;  %v1986_v13 = vrot.slane %v1985_v10, 4  ;;  %v1994_v54 = vadd.f32 %v1993_v51, %v1992_v41  ;;  %v5580_v60 = vpop.f32.mrf.mxu0  ;;  %10823 = vst [vmem:[#allocation24_spill] sm:$0xff] %v6808_v4  ;;  %10824 = vst [vmem:[#allocation25_spill] sm:$0xff] %v6811_v6  ;;  %v5682_v9 = vpop.f32.mrf.mxu1  ;;  %v1924_v12 = vmul.f32 %v6744_v48, %v6811_v6 }
 0x13d   : > { %10821 = vst [vmem:[#allocation22_spill] sm:$0xff] %v6785_v25  ;;  %v1857_v35 = vmul.f32 %v6746_v49, %v6785_v25  ;;  %v1997_v0 = vsel %vm1375_vm0, %v1858_v57, 0.0  ;;  %10825 = vst [vmem:[#allocation26_spill] sm:$0xff] %v6814_v7  ;;  %v6861_v3 = vadd.f32 %v5682_v9, %v6722_v38 }
 0x13e   : > { %v2208_v15 = vadd.f32 %v2207_v11, %v2206_v8  ;;  %v1987_v16 = vadd.f32 %v1986_v13, %v1985_v10  ;;  %v624_v2 = vpop.f32.mrf.mxu0  ;;  %v1923_v10 = vmul.f32 %v6717_v37, %v6808_v4  ;;  %v1925_v13 = vmul.f32 %v6746_v49, %v6814_v7 }
 0x13f   : > { %v1995_v52 = vsel %vm1375_vm0, %v1857_v35, 0.0  ;;  %10832 = vst [vmem:[#allocation33_spill] sm:$0xff] %v6861_v3  ;;  %v1928_v9 = vmul.f32 %v6744_v48, %v6861_v3 }
 0x140   : > { %v2209_v17 = vrot.slane %v2208_v15, 2  ;;  %v1988_v18 = vrot.slane %v1987_v16, 2  ;;  %v1996_v59 = vadd.f32 %v1995_v52, %v1994_v54  ;;  %v5583_v8 = vpop.f32.mrf.mxu0 }
 0x141   : > { %v6851_v57 = vadd.f32 %v5583_v8, %v6722_v38 }
 0x142   : > { %v2210_v20 = vadd.f32 %v2209_v17, %v2208_v15  ;;  %v1989_v22 = vadd.f32 %v1988_v18, %v1987_v16  ;;  %v1998_v1 = vadd.f32 %v1997_v0, %v1996_v59  ;;  %v634_v14 = vpop.f32.mrf.mxu0  ;;  %v6824_v15 = vadd.f32 %v6722_v38, %v624_v2  ;;  %v964_v16 = vpop.f32.mrf.mxu1 }
 0x143   : > { %v2213_v17 = vsel %vm1375_vm0, %v1923_v10, 0.0  ;;  %v6828_v18 = vadd.f32 %v5679_v63, %v6722_v38  ;;  %10830 = vst [vmem:[#allocation31_spill] sm:$0xff] %v6851_v57  ;;  %v6855_v63 = vadd.f32 %v6722_v38, %v964_v16  ;;  %v1862_v10 = vmul.f32 %v6768_v61, %v6851_v57 }
 0x144   : > { %v2211_v23 = vrot.slane %v2210_v20, 1  ;;  %v1990_v27 = vrot.slane %v1989_v22, 1  ;;  %v1999_v5 = vrot.slane %v1998_v1, 4  ;;  %10826 = vst [vmem:[#allocation27_spill] sm:$0xff] %v6824_v15  ;;  %v5685_v34 = vpop.f32.mrf.mxu1 }
 0x145   : > { %10827 = vst [vmem:[#allocation28_spill] sm:$0xff] %v6828_v18  ;;  %v1926_v35 = vmul.f32 %v6768_v61, %v6828_v18  ;;  %10831 = vst [vmem:[#allocation32_spill] sm:$0xff] %v6855_v63  ;;  %v2010_v16 = vsel %vm1375_vm0, %v1862_v10, 0.0 }
 0x146   : > { %v2212_v29 = vadd.f32 %v2211_v23, %v2210_v20  ;;  %v1991_v32 = vadd.f32 %v1990_v27, %v1989_v22  ;;  %v2000_v11 = vadd.f32 %v1999_v5, %v1998_v1  ;;  %v6831_v20 = vadd.f32 %v5580_v60, %v6722_v38  ;;  %v974_v59 = vpop.f32.mrf.mxu1 }
 0x147   : > { %v6834_v22 = vadd.f32 %v6722_v38, %v634_v14  ;;  %v2214_v23 = vsel %vm1375_vm0, %v1924_v12, 0.0  ;;  %v2216_v27 = vsel %vm1375_vm0, %v1925_v13, 0.0  ;;  %v2218_v60 = vsel %vm1375_vm0, %v1926_v35, 0.0 }
 0x148   : > { %2482 = vperm.xlu1 %5875, %v2212_v29   ;;  %2397 = vperm.xlu0 %5874, %v1991_v32   ;;  %v2001_v19 = vrot.slane %v2000_v11, 2  ;;  %10828 = vst [vmem:[#allocation29_spill] sm:$0xff] %v6831_v20  ;;  %v2215_v30 = vadd.f32 %v2214_v23, %v2213_v17  ;;  %v1860_v51 = vmul.f32 %v6744_v48, %v6831_v20  ;;  %v5688_v17 = vpop.f32.mrf.mxu1 }
 0x149   : > { %10829 = vst [vmem:[#allocation30_spill] sm:$0xff] %v6834_v22  ;;  %v1861_v52 = vmul.f32 %v6746_v49, %v6834_v22  ;;  %v6864_v8 = vadd.f32 %v6722_v38, %v974_v59  ;;  %v6879_v23 = vadd.f32 %v5685_v34, %v6722_v38 }
 0x14a   : > { %v2217_v41 = vadd.f32 %v2216_v27, %v2215_v30  ;;  %v2006_v1 = vsel %vm1375_vm0, %v1860_v51, 0.0  ;;  %v2227_v30 = vsel %vm1375_vm0, %v1928_v9, 0.0  ;;  %v5586_v9 = vpop.f32.mrf.mxu0 }
 0x14b   : > { %v2008_v2 = vsel %vm1375_vm0, %v1861_v52, 0.0  ;;  %10833 = vst [vmem:[#allocation34_spill] sm:$0xff] %v6864_v8  ;;  %v1929_v14 = vmul.f32 %v6746_v49, %v6864_v8  ;;  %10834 = vst [vmem:[#allocation35_spill] sm:$0xff] %v6879_v23  ;;  %v1930_v51 = vmul.f32 %v6768_v61, %v6879_v23 }
 0x14c   : > { %5879 = vset.pattern.permute.xlu1 %v10494_v50  ;;  %5876 = vset.pattern.permute.xlu0 %v10482_v53  ;;  %v2219_v0 = vadd.f32 %v2218_v60, %v2217_v41 }
 0x14d   : > { %3012 = vperm.xlu1 %5879, %v2212_v29   ;;  %2686 = vperm.xlu0 %5876, %v1991_v32   ;;  %v2231_v34 = vsel %vm1375_vm0, %v1930_v51, 0.0 }
 0x14e   : > { %v2220_v13 = vrot.slane %v2219_v0, 4 }
 0x151   : > { %5880 = vset.pattern.permute.xlu1 %v10486_v62  ;;  %2754 = vperm.xlu0 %5876, %v2212_v29  }
 0x152   : > { %3270 = vperm.xlu1 %5880, %v2212_v29   ;;  %v2002_v29 = vadd.f32 %v2001_v19, %v2000_v11  ;;  %v1927_v11 = vmul.f32 %v6717_v37, %v6855_v63 }
 0x154   : > { %v2003_v39 = vrot.slane %v2002_v29, 1  ;;  %v2226_v19 = vsel %vm1375_vm0, %v1927_v11, 0.0 }
 0x155   : > { %5877 = vset.pattern.permute.xlu0 %v10494_v50  ;;  %v2228_v35 = vadd.f32 %v2227_v30, %v2226_v19 }
 0x156   : > { %5881 = vset.pattern.permute.xlu1 %v10484_v28  ;;  %2944 = vperm.xlu0 %5877, %v1991_v32   ;;  %v6847_v54 = vadd.f32 %v2003_v39, %v2002_v29  ;;  %v2221_v29 = vadd.f32 %v2220_v13, %v2219_v0  ;;  %v984_v39 = vpop.f32.mrf.mxu1 }
 0x157   : > { %v6887_v11 = vadd.f32 %v6722_v38, %v984_v39 }
 0x158   : > { %2402 = vperm.xlu1 %5881, %v6847_v54   ;;  %v2222_v41 = vrot.slane %v2221_v29, 2  ;;  %v5691_v60 = vpop.f32.mrf.mxu1 }
 0x159   : > { %10835 = vst [vmem:[#allocation36_spill] sm:$0xff] %v6887_v11  ;;  %v6905_v51 = vadd.f32 %v5691_v60, %v6722_v38 }
 0x15a   : > { %5878 = vset.pattern.permute.xlu0 %v10486_v62  ;;  %v2223_v59 = vadd.f32 %v2222_v41, %v2221_v29  ;;  %v994_v10 = vpop.f32.mrf.mxu1 }
 0x15b   : > { %3202 = vperm.xlu0 %5878, %v1991_v32   ;;  %v1859_v32 = vmul.f32 %v6717_v37, %v6824_v15  ;;  %10838 = vst [vmem:[#allocation39_spill] sm:$0xff] %v6905_v51 }
 0x15c   : > { %5883 = vset.pattern.permute.xlu1 %v10482_v53 }
 0x15d   : > { %v2005_v55 = vsel %vm1375_vm0, %v1859_v32, 0.0  ;;  %2690 = vperm.xlu1 %5883, %v6847_v54   ;;  %v2229_v32 = vsel %vm1375_vm0, %v1929_v14, 0.0  ;;  %v6890_v14 = vadd.f32 %v5688_v17, %v6722_v38 }
 0x15e   : > { %v2007_v5 = vadd.f32 %v2006_v1, %v2005_v55  ;;  %v2230_v55 = vadd.f32 %v2229_v32, %v2228_v35  ;;  %v2224_v1 = vrot.slane %v2223_v59, 1  ;;  %v644_v35 = vpop.f32.mrf.mxu0 }
 0x15f   : > { %5882 = vset.pattern.permute.xlu0 %v10484_v28  ;;  %10836 = vst [vmem:[#allocation37_spill] sm:$0xff] %v6890_v14  ;;  %v1932_v32 = vmul.f32 %v6744_v48, %v6890_v14 }
 0x160   : > { %v2009_v12 = vadd.f32 %v2008_v2, %v2007_v5  ;;  %v2232_v5 = vadd.f32 %v2231_v34, %v2230_v55  ;;  %v2225_v0 = vadd.f32 %v2224_v1, %v2223_v59  ;;  %v5589_v59 = vpop.f32.mrf.mxu0 }
 0x161   : > { %v2240_v55 = vsel %vm1375_vm0, %v1932_v32, 0.0 }
 0x162   : > { %v2011_v27 = vadd.f32 %v2010_v16, %v2009_v12  ;;  %2758 = vperm.xlu1 %5883, %v2225_v0   ;;  %2487 = vperm.xlu0 %5882, %v2225_v0   ;;  %v2233_v13 = vrot.slane %v2232_v5, 4  ;;  %v6893_v16 = vadd.f32 %v6722_v38, %v994_v10 }
 0x164   : > { %v2012_v52 = vrot.slane %v2011_v27, 4  ;;  %10837 = vst [vmem:[#allocation38_spill] sm:$0xff] %v6893_v16  ;;  %v2234_v30 = vadd.f32 %v2233_v13, %v2232_v5  ;;  %v1933_v17 = vmul.f32 %v6746_v49, %v6893_v16  ;;  %v1934_v5 = vmul.f32 %v6768_v61, %v6905_v51 }
 0x166   : > { %v2013_v2 = vadd.f32 %v2012_v52, %v2011_v27  ;;  %5884 = vset.pattern.permute.xlu1 %v10494_v50  ;;  %v1931_v27 = vmul.f32 %v6717_v37, %v6887_v11  ;;  %v2235_v52 = vrot.slane %v2234_v30, 2  ;;  %v2242_v1 = vsel %vm1375_vm0, %v1933_v17, 0.0 }
 0x167   : > { %2948 = vperm.xlu1 %5884, %v6847_v54  }
 0x168   : > { %v2014_v12 = vrot.slane %v2013_v2, 2  ;;  %v2239_v41 = vsel %vm1375_vm0, %v1931_v27, 0.0  ;;  %v2236_v34 = vadd.f32 %v2235_v52, %v2234_v30  ;;  %v6920_v27 = vadd.f32 %v5586_v9, %v6722_v38 }
 0x169   : > { %v6935_v52 = vadd.f32 %v5589_v59, %v6722_v38  ;;  %v6944_v59 = vpop.f32.mrf.mxu1 }
 0x16a   : > { %v2015_v19 = vadd.f32 %v2014_v12, %v2013_v2  ;;  %v2241_v2 = vadd.f32 %v2240_v55, %v2239_v41  ;;  %v2237_v60 = vrot.slane %v2236_v34, 1  ;;  %v654_v12 = vpop.f32.mrf.mxu0  ;;  %10840 = vst [vmem:[#allocation41_spill] sm:$0xff] %v6920_v27 }
 0x16b   : > { %5885 = vset.pattern.permute.xlu1 %v10486_v62  ;;  %10842 = vst [vmem:[#allocation43_spill] sm:$0xff] %v6935_v52 }
 0x16c   : > { %v2016_v29 = vrot.slane %v2015_v19, 1  ;;  %3206 = vperm.xlu1 %5885, %v6847_v54   ;;  %v2243_v10 = vadd.f32 %v2242_v1, %v2241_v2  ;;  %v2238_v13 = vadd.f32 %v2237_v60, %v2236_v34  ;;  %v6916_v54 = vadd.f32 %v6722_v38, %v644_v35 }
 0x16d   : > { %v1864_v35 = vmul.f32 %v6744_v48, %v6920_v27  ;;  %v1866_v2 = vmul.f32 %v6768_v61, %v6935_v52 }
 0x16e   : > { %v2017_v39 = vadd.f32 %v2016_v29, %v2015_v19  ;;  %10839 = vst [vmem:[#allocation40_spill] sm:$0xff] %v6916_v54  ;;  %v2244_v19 = vsel %vm1375_vm0, %v1934_v5, 0.0  ;;  %v6923_v29 = vadd.f32 %v6722_v38, %v654_v12  ;;  %v1863_v32 = vmul.f32 %v6717_v37, %v6916_v54 }
 0x16f   : > { %v2245_v30 = vadd.f32 %v2244_v19, %v2243_v10  ;;  %v2023_v12 = vsel %vm1375_vm0, %v1866_v2, 0.0 }
 0x170   : > { %2407 = vperm.xlu0 %5882, %v2017_v39   ;;  %5886 = vset.pattern.permute.xlu1 %v10494_v50  ;;  %10841 = vst [vmem:[#allocation42_spill] sm:$0xff] %v6923_v29  ;;  %v1865_v17 = vmul.f32 %v6746_v49, %v6923_v29  ;;  %v2018_v41 = vsel %vm1375_vm0, %v1863_v32, 0.0 }
 0x171   : > { %3016 = vperm.xlu1 %5886, %v2225_v0   ;;  %v2246_v9 = vrot.slane %v2245_v30, 4 }
 0x172   : > { %v2021_v55 = vsel %vm1375_vm0, %v1865_v17, 0.0 }
 0x173   : > { %v2247_v1 = vadd.f32 %v2246_v9, %v2245_v30  ;;  %v6948_v30 = vpop.f32.mrf.mxu1 }
 0x174   : > { %5890 = vset.pattern.permute.xlu0 %v10482_v53 }
 0x175   : > { %2762 = vperm.xlu0 %5890, %v2238_v13   ;;  %5887 = vset.pattern.permute.xlu1 %v10486_v62  ;;  %v2248_v5 = vrot.slane %v2247_v1, 2 }
 0x176   : > { %3274 = vperm.xlu1 %5887, %v2225_v0   ;;  %v2019_v0 = vsel %vm1375_vm0, %v1864_v35, 0.0  ;;  %v5592_v35 = vpop.f32.mrf.mxu0 }
 0x177   : > { %v2020_v34 = vadd.f32 %v2019_v0, %v2018_v41  ;;  %v2249_v10 = vadd.f32 %v2248_v5, %v2247_v1  ;;  %v6950_v0 = vpop.f32.mrf.mxu1 }
 0x178   : > { %v664_v41 = vpop.f32.mrf.mxu0 }
 0x179   : > { %5892 = vset.pattern.permute.xlu0 %v10486_v62  ;;  %v2022_v60 = vadd.f32 %v2021_v55, %v2020_v34  ;;  %v2250_v32 = vrot.slane %v2249_v10, 1  ;;  %v6953_v34 = vpop.f32.mrf.mxu1 }
 0x17a   : > { %3210 = vperm.xlu0 %5892, %v2017_v39   ;;  %5888 = vset.pattern.permute.xlu1 %v10484_v28  ;;  %v5595_v1 = vpop.f32.mrf.mxu0 }
 0x17b   : > { %2492 = vperm.xlu1 %5888, %v2238_v13   ;;  %v2024_v19 = vadd.f32 %v2023_v12, %v2022_v60  ;;  %v2251_v17 = vadd.f32 %v2250_v32, %v2249_v10  ;;  %v5700_v10 = vpop.f32.mrf.mxu1  ;;  %v6957_v12 = vadd.f32 %v6722_v38, %v664_v41 }
 0x17c   : > { %v674_v60 = vpop.f32.mrf.mxu0  ;;  %v6987_v52 = vadd.f32 %v5700_v10, %v6722_v38  ;;  %v10852_v10 = vmov 0  }
 0x17d   : > { %v2025_v9 = vrot.slane %v2024_v19, 4  ;;  %10843 = vst [vmem:[#allocation44_spill] sm:$0xff] %v6957_v12 }
 0x17e   : > { %5895 = vset.pattern.permute.xlu0 %v10484_v28  ;;  %10850 = vst [vmem:[#allocation49_spill] sm:$0xff] %v6987_v52 }
 0x17f   : > { %5889 = vset.pattern.permute.xlu1 %v10482_v53  ;;  %2497 = vperm.xlu0 %5895, %v2251_v17   ;;  %v2026_v55 = vadd.f32 %v2025_v9, %v2024_v19  ;;  %v6964_v19 = vadd.f32 %v6722_v38, %v674_v60  ;;  %v1024_v9 = vpop.f32.mrf.mxu1  ;;  %v6976_v60 = vadd.f32 %v5595_v1, %v6722_v38  ;;  %v10849_v1 = vmov 3  }
 0x180   : > { %2694 = vperm.xlu1 %5889, %v2017_v39  }
 0x181   : > { %v2027_v2 = vrot.slane %v2026_v55, 2  ;;  %10845 = vst [vmem:[#allocation46_spill] sm:$0xff] %v6964_v19  ;;  %v1869_v41 = vmul.f32 %v6746_v49, %v6964_v19  ;;  %10847 = vst [vmem:[#allocation47_spill] sm:$0xff] %v6976_v60  ;;  %v1870_v11 = vmul.f32 %v6768_v61, %v6976_v60 }
 0x183   : > { %5896 = vset.pattern.permute.xlu0 %v10482_v53  ;;  %v2028_v5 = vadd.f32 %v2027_v2, %v2026_v55  ;;  %v6961_v53 = vadd.f32 %v5592_v35, %v6722_v38  ;;  %v5703_v2 = vpop.f32.mrf.mxu1  ;;  %v10846_v35 = vmov 1  }
 0x184   : > { %5891 = vset.pattern.permute.xlu1 %v10494_v50 }
 0x185   : > { %2952 = vperm.xlu1 %5891, %v2017_v39   ;;  %v2029_v39 = vrot.slane %v2028_v5, 1  ;;  %10844 = vst [vmem:[#allocation45_spill] sm:$0xff] %v6961_v53  ;;  %v1868_v55 = vmul.f32 %v6744_v48, %v6961_v53  ;;  %v1034_v16 = vpop.f32.mrf.mxu1 }
 0x187   : > { %v2030_v32 = vadd.f32 %v2029_v39, %v2028_v5  ;;  %v5598_v39 = vpop.f32.mrf.mxu0 }
 0x189   : > { %3020 = vperm.xlu1 %5891, %v2238_v13   ;;  %2698 = vperm.xlu0 %5896, %v2030_v32   ;;  %v684_v14 = vpop.f32.mrf.mxu0 }
 0x18d   : > { %5893 = vset.pattern.permute.xlu1 %v10486_v62  ;;  %5898 = vset.pattern.permute.xlu0 %v10494_v50  ;;  %v2034_v62 = vsel %vm1375_vm0, %v1869_v41, 0.0  ;;  %v6983_v50 = vadd.f32 %v6722_v38, %v1024_v9 }
 0x18e   : > { %3278 = vperm.xlu1 %5893, %v2238_v13   ;;  %v1867_v13 = vmul.f32 %v6717_v37, %v6957_v12  ;;  %2956 = vperm.xlu0 %5898, %v2030_v32  }
 0x18f   : > { %10848 = vst [vmem:[#allocation48_spill] sm:$0xff] %v6983_v50  ;;  %v1939_v41 = vmul.f32 %v6717_v37, %v6983_v50 }
 0x190   : > { %v2031_v5 = vsel %vm1375_vm0, %v1867_v13, 0.0 }
 0x192   : > { %5894 = vset.pattern.permute.xlu1 %v10484_v28  ;;  %v2032_v28 = vsel %vm1375_vm0, %v1868_v55, 0.0  ;;  %3024 = vperm.xlu0 %5898, %v2251_v17   ;;  %v6990_v55 = vadd.f32 %v6722_v38, %v1034_v16  ;;  %v2265_v16 = vsel %vm1375_vm0, %v1939_v41, 0.0 }
 0x193   : > { %2412 = vperm.xlu1 %5894, %v2030_v32   ;;  %v2033_v51 = vadd.f32 %v2032_v28, %v2031_v5  ;;  %v2036_v28 = vsel %vm1375_vm0, %v1870_v11, 0.0  ;;  %v5601_v5 = vpop.f32.mrf.mxu0  ;;  %v7003_v11 = vadd.f32 %v5703_v2, %v6722_v38 }
 0x194   : > { %10851 = vst [vmem:[#allocation50_spill] sm:$0xff] %v6990_v55 }
 0x195   : > { %v2035_v13 = vadd.f32 %v2034_v62, %v2033_v51  ;;  %v1940_v62 = vmul.f32 %v6744_v48, %v6987_v52  ;;  %v1941_v51 = vmul.f32 %v6746_v49, %v6990_v55  ;;  %10853 = vst [vmem:[#allocation51_spill] sm:$0xff] %v7003_v11  ;;  %v694_v50 = vpop.f32.mrf.mxu0  ;;  %v7012_v55 = vadd.f32 %v5598_v39, %v6722_v38 }
 0x196   : > { %5900 = vset.pattern.permute.xlu0 %v10849_v1  ;;  %v1942_v41 = vmul.f32 %v6768_v61, %v7003_v11  ;;  %v7017_v2 = vadd.f32 %v6722_v38, %v694_v50  ;;  %v7026_v11 = vpop.f32.mrf.mxu1 }
 0x197   : > { %5897 = vset.pattern.permute.xlu1 %v10846_v35  ;;  %v2037_v9 = vadd.f32 %v2036_v28, %v2035_v13  ;;  %3282 = vperm.xlu0 %5900, %v2251_v17   ;;  %v2266_v13 = vsel %vm1375_vm0, %v1940_v62, 0.0  ;;  %v2268_v28 = vsel %vm1375_vm0, %v1941_v51, 0.0  ;;  %10855 = vst [vmem:[#allocation53_spill] sm:$0xff] %v7012_v55  ;;  %v5604_v53 = vpop.f32.mrf.mxu0 }
 0x198   : > { %2766 = vperm.xlu1 %5897, %v2251_v17   ;;  %v7008_v17 = vadd.f32 %v6722_v38, %v684_v14  ;;  %v2267_v52 = vadd.f32 %v2266_v13, %v2265_v16  ;;  %10856 = vst [vmem:[#allocation54_spill] sm:$0xff] %v7017_v2  ;;  %v1872_v14 = vmul.f32 %v6744_v48, %v7012_v55  ;;  %v2270_v51 = vsel %vm1375_vm0, %v1942_v41, 0.0  ;;  %v7034_v12 = vpop.f32.mrf.mxu1 }
 0x199   : > { %v1873_v39 = vmul.f32 %v6746_v49, %v7017_v2 }
 0x19a   : > { %10854 = vst [vmem:[#allocation52_spill] sm:$0xff] %v7008_v17  ;;  %v2269_v60 = vadd.f32 %v2268_v28, %v2267_v52  ;;  %v1871_v62 = vmul.f32 %v6717_v37, %v7008_v17  ;;  %v7030_v52 = vadd.f32 %v5601_v5, %v6722_v38  ;;  %v2045_v28 = vsel %vm1375_vm0, %v1872_v14, 0.0  ;;  %v7040_v5 = vpop.f32.mrf.mxu1 }
 0x19b   : > { %5901 = vset.pattern.permute.xlu0 %v10852_v10  ;;  %v2047_v17 = vsel %vm1375_vm0, %v1873_v39, 0.0 }
 0x19c   : > { %5899 = vset.pattern.permute.xlu1 %v10849_v1  ;;  %v2271_v13 = vadd.f32 %v2270_v51, %v2269_v60  ;;  %v2044_v50 = vsel %vm1375_vm0, %v1871_v62, 0.0  ;;  %10857 = vst [vmem:[#allocation55_spill] sm:$0xff] %v7030_v52  ;;  %v1874_v60 = vmul.f32 %v6768_v61, %v7030_v52 }
 0x19d   : > { %3214 = vperm.xlu1 %5899, %v2030_v32   ;;  %v2038_v32 = vrot.slane %v2037_v9, 4  ;;  %v2046_v55 = vadd.f32 %v2045_v28, %v2044_v50  ;;  %v7044_v28 = vpop.f32.mrf.mxu1 }
 0x19e   : > { %v2272_v41 = vrot.slane %v2271_v13, 4  ;;  %v2049_v14 = vsel %vm1375_vm0, %v1874_v60, 0.0  ;;  %v7069_v60 = vadd.f32 %v5604_v53, %v6722_v38 }
 0x19f   : > { %v2039_v19 = vadd.f32 %v2038_v32, %v2037_v9  ;;  %v704_v9 = vpop.f32.mrf.mxu0  ;;  %v2048_v29 = vadd.f32 %v2047_v17, %v2046_v55  ;;  %v5712_v8 = vpop.f32.mrf.mxu1  ;;  %v7050_v17 = vadd.f32 %v6722_v38, %v6948_v30 }
 0x1a0   : > { %10863 = vst [vmem:[#allocation61_spill] sm:$0xff] %v7069_v60 }
 0x1a1   : > { %5902 = vset.pattern.permute.xlu1 %v10852_v10  ;;  %v2040_v16 = vrot.slane %v2039_v19, 2  ;;  %v5607_v51 = vpop.f32.mrf.mxu0  ;;  %10859 = vst [vmem:[#allocation57_spill] sm:$0xff] %v7050_v17  ;;  %v1935_v30 = vmul.f32 %v6717_v37, %v7050_v17  ;;  %v1876_v17 = vmul.f32 %v6744_v48, %v7069_v60 }
 0x1a3   : > { %v2041_v32 = vadd.f32 %v2040_v16, %v2039_v19  ;;  %v2273_v19 = vadd.f32 %v2272_v41, %v2271_v13  ;;  %v714_v39 = vpop.f32.mrf.mxu0  ;;  %v2050_v16 = vadd.f32 %v2049_v14, %v2048_v29  ;;  %v7055_v29 = vadd.f32 %v6944_v59, %v6722_v38 }
 0x1a4   : > { %v7062_v41 = vadd.f32 %v6722_v38, %v704_v9  ;;  %v2252_v53 = vsel %vm1375_vm0, %v1935_v30, 0.0  ;;  %v7094_v30 = vadd.f32 %v5607_v51, %v6722_v38 }
 0x1a5   : > { %v2042_v2 = vrot.slane %v2041_v32, 1  ;;  %v2274_v50 = vrot.slane %v2273_v19, 2  ;;  %v5610_v27 = vpop.f32.mrf.mxu0  ;;  %v2051_v54 = vrot.slane %v2050_v16, 4  ;;  %10860 = vst [vmem:[#allocation58_spill] sm:$0xff] %v7055_v29 }
 0x1a6   : > { %10862 = vst [vmem:[#allocation60_spill] sm:$0xff] %v7062_v41  ;;  %10866 = vst [vmem:[#allocation64_spill] sm:$0xff] %v7094_v30 }
 0x1a7   : > { %v7038_v62 = vadd.f32 %v2042_v2, %v2041_v32  ;;  %v2275_v23 = vadd.f32 %v2274_v50, %v2273_v19  ;;  %v724_v2 = vpop.f32.mrf.mxu0  ;;  %v2052_v13 = vadd.f32 %v2051_v54, %v2050_v16  ;;  %v7059_v32 = vadd.f32 %v6722_v38, %v6953_v34 }
 0x1a8   : > { %v7072_v54 = vadd.f32 %v6722_v38, %v714_v39  ;;  %v1936_v34 = vmul.f32 %v6744_v48, %v7055_v29  ;;  %v1875_v19 = vmul.f32 %v6717_v37, %v7062_v41  ;;  %v7084_v39 = vadd.f32 %v6950_v0, %v6722_v38 }
 0x1a9   : > { %2417 = vperm.xlu0 %5901, %v7038_v62   ;;  %v2276_v52 = vrot.slane %v2275_v23, 1  ;;  %10861 = vst [vmem:[#allocation59_spill] sm:$0xff] %v7059_v32  ;;  %v2053_v59 = vrot.slane %v2052_v13, 2  ;;  %v1937_v9 = vmul.f32 %v6746_v49, %v7059_v32 }
 0x1aa   : > { %10864 = vst [vmem:[#allocation62_spill] sm:$0xff] %v7072_v54  ;;  %10865 = vst [vmem:[#allocation63_spill] sm:$0xff] %v7084_v39  ;;  %v1877_v29 = vmul.f32 %v6746_v49, %v7072_v54  ;;  %v2253_v32 = vsel %vm1375_vm0, %v1936_v34, 0.0  ;;  %v1938_v60 = vmul.f32 %v6768_v61, %v7084_v39 }
 0x1ab   : > { %v7046_v55 = vadd.f32 %v2276_v52, %v2275_v23  ;;  %v1064_v23 = vpop.f32.mrf.mxu1  ;;  %v7066_v52 = vpop.f32.mrf.mxu0  ;;  %v2054_v16 = vadd.f32 %v2053_v59, %v2052_v13  ;;  %v2255_v41 = vsel %vm1375_vm0, %v1937_v9, 0.0  ;;  %v2254_v22 = vadd.f32 %v2253_v32, %v2252_v53 }
 0x1ac   : > { %v2057_v13 = vsel %vm1375_vm0, %v1875_v19, 0.0  ;;  %v7101_v63 = vadd.f32 %v6722_v38, %v1064_v23  ;;  %v2058_v9 = vsel %vm1375_vm0, %v1876_v17, 0.0  ;;  %v2060_v32 = vsel %vm1375_vm0, %v1877_v29, 0.0 }
 0x1ad   : > { %10858 = vst [vmem:[#allocation56_spill] sm:$0xff] %v7046_v55  ;;  %2507 = vperm.xlu0 %5901, %v7046_v55   ;;  %v5715_v14 = vpop.f32.mrf.mxu1  ;;  %v734_v50 = vpop.f32.mrf.mxu0  ;;  %v2055_v57 = vrot.slane %v2054_v16, 1  ;;  %v2256_v34 = vadd.f32 %v2255_v41, %v2254_v22  ;;  %v2059_v51 = vadd.f32 %v2058_v9, %v2057_v13  ;;  %v7109_v19 = vadd.f32 %v5712_v8, %v6722_v38 }
 0x1ae   : > { %10868 = vst [vmem:[#allocation66_spill] sm:$0xff] %v7101_v63  ;;  %v1248_v23 = vmul.f32 %v6713_v33, %v6737_v45  ;;  %v7119_v22 = vadd.f32 %v6722_v38, %v724_v2  ;;  %v2257_v17 = vsel %vm1375_vm0, %v1938_v60, 0.0  ;;  %v7123_v41 = vadd.f32 %v5610_v27, %v6722_v38 }
 0x1af   : > { %v1074_v0 = vpop.f32.mrf.mxu1  ;;  %v7096_v59 = vadd.f32 %v2055_v57, %v2054_v16  ;;  %v7103_v54 = vpop.f32.mrf.mxu0  ;;  %10869 = vst [vmem:[#allocation67_spill] sm:$0xff] %v7109_v19  ;;  %v1878_v16 = vmul.f32 %v6768_v61, %v7094_v30  ;;  %v2061_v29 = vadd.f32 %v2060_v32, %v2059_v51  ;;  %v1947_v8 = vmul.f32 %v6717_v37, %v7101_v63 }
 0x1b0   : > { %v7112_v57 = vadd.f32 %v6722_v38, %v1074_v0  ;;  %10871 = vst [vmem:[#allocation69_spill] sm:$0xff] %v7119_v22  ;;  %10872 = vst [vmem:[#allocation70_spill] sm:$0xff] %v7123_v41  ;;  %v1316_v13 = vmul.f32 %v6713_v33, %v6731_v43  ;;  %v1247_v0 = vmul.f32 %v6709_v26, %v6728_v42  ;;  %v1377_v51 = vsel %vm1375_vm0, %v1248_v23, 0.0 }
 0x1b1   : > { %5910 = vset.pattern.permute.xlu0 %v10846_v35  ;;  %10867 = vst [vmem:[#allocation65_spill] sm:$0xff] %v7096_v59  ;;  %v744_v53 = vpop.f32.mrf.mxu0  ;;  %v2258_v9 = vadd.f32 %v2257_v17, %v2256_v34  ;;  %v7132_v2 = vadd.f32 %v6722_v38, %v734_v50  ;;  %v1315_v27 = vmul.f32 %v6709_v26, %v6725_v40  ;;  %v2062_v43 = vsel %vm1375_vm0, %v1878_v16, 0.0  ;;  %v7151_v45 = vpop.f32.mrf.mxu1 }
 0x1b2   : > { %2706 = vperm.xlu0 %5910, %v7096_v59   ;;  %10870 = vst [vmem:[#allocation68_spill] sm:$0xff] %v7112_v57  ;;  %v1948_v60 = vmul.f32 %v6744_v48, %v7109_v19  ;;  %v1949_v32 = vmul.f32 %v6746_v49, %v7112_v57  ;;  %v1879_v34 = vmul.f32 %v6717_v37, %v7119_v22  ;;  %v2291_v42 = vsel %vm1375_vm0, %v1947_v8, 0.0 }
 0x1b3   : > { %10873 = vst [vmem:[#allocation71_spill] sm:$0xff] %v7132_v2  ;;  %v2063_v50 = vadd.f32 %v2062_v43, %v2061_v29  ;;  %v1880_v17 = vmul.f32 %v6744_v48, %v7123_v41  ;;  %v7149_v40 = vadd.f32 %v5715_v14, %v6722_v38  ;;  %v5619_v63 = vpop.f32.mrf.mxu0  ;;  %v1598_v57 = vsel %vm1375_vm0, %v1316_v13, 0.0 }
 0x1b4   : > { %v1376_v23 = vsel %vm1375_vm0, %v1247_v0, 0.0  ;;  %v2259_v16 = vrot.slane %v2258_v9, 4  ;;  %v1881_v19 = vmul.f32 %v6746_v49, %v7132_v2  ;;  %v10875_v43 = vmov 2  }
 0x1b5   : > { %10874 = vst [vmem:[#allocation72_spill] sm:$0xff] %v7149_v40  ;;  %v1597_v29 = vsel %vm1375_vm0, %v1315_v27, 0.0  ;;  %v1249_v8 = vmul.f32 %v6711_v31, %v6740_v46  ;;  %v2292_v14 = vsel %vm1375_vm0, %v1948_v60, 0.0  ;;  %v2294_v41 = vsel %vm1375_vm0, %v1949_v32, 0.0  ;;  %v1084_v32 = vpop.f32.mrf.mxu1  ;;  %v754_v39 = vpop.f32.mrf.mxu0 }
 0x1b6   : > { %2774 = vperm.xlu0 %5910, %v7046_v55   ;;  %v1317_v13 = vmul.f32 %v6711_v31, %v6734_v44  ;;  %v2070_v0 = vsel %vm1375_vm0, %v1879_v34, 0.0  ;;  %v2293_v22 = vadd.f32 %v2292_v14, %v2291_v42  ;;  %v7169_v2 = vadd.f32 %v7066_v52, %v6722_v38 }
 0x1b7   : > { %v1378_v27 = vadd.f32 %v1377_v51, %v1376_v23  ;;  %v2064_v30 = vrot.slane %v2063_v50, 4  ;;  %v2071_v46 = vsel %vm1375_vm0, %v1880_v17, 0.0  ;;  %v1950_v60 = vmul.f32 %v6768_v61, %v7149_v40 }
 0x1b8   : > { %10876 = vst [vmem:[#allocation73_spill] sm:$0xff] %v7169_v2  ;;  %v2295_v59 = vadd.f32 %v2294_v41, %v2293_v22  ;;  %v7176_v44 = vadd.f32 %v6722_v38, %v744_v53  ;;  %v2260_v42 = vadd.f32 %v2259_v16, %v2258_v9  ;;  %v1599_v34 = vadd.f32 %v1598_v57, %v1597_v29  ;;  %v7193_v53 = vpop.f32.mrf.mxu1 }
 0x1b9   : > { %v1250_v52 = vmul.f32 %v6715_v36, %v6764_v58  ;;  %v1379_v51 = vsel %vm1375_vm0, %v1249_v8, 0.0  ;;  %v2072_v23 = vadd.f32 %v2071_v46, %v2070_v0  ;;  %v1600_v17 = vsel %vm1375_vm0, %v1317_v13, 0.0 }
 0x1ba   : > { %5913 = vset.pattern.permute.xlu0 %v10875_v43  ;;  %10877 = vst [vmem:[#allocation74_spill] sm:$0xff] %v7176_v44  ;;  %v1882_v14 = vmul.f32 %v6768_v61, %v7169_v2  ;;  %v7190_v22 = vadd.f32 %v6722_v38, %v754_v39  ;;  %v2296_v57 = vsel %vm1375_vm0, %v1950_v60, 0.0  ;;  %v2261_v46 = vrot.slane %v2260_v42, 2 }
 0x1bb   : > { %3032 = vperm.xlu0 %5913, %v7046_v55   ;;  %v2073_v55 = vsel %vm1375_vm0, %v1881_v19, 0.0  ;;  %v7187_v19 = vadd.f32 %v7103_v54, %v6722_v38  ;;  %v2065_v9 = vadd.f32 %v2064_v30, %v2063_v50  ;;  %v1318_v16 = vmul.f32 %v6715_v36, %v6760_v56  ;;  %v1094_v56 = vpop.f32.mrf.mxu1 }
 0x1bc   : > { %10879 = vst [vmem:[#allocation76_spill] sm:$0xff] %v7190_v22  ;;  %v2074_v41 = vadd.f32 %v2073_v55, %v2072_v23  ;;  %v2297_v29 = vadd.f32 %v2296_v57, %v2295_v59  ;;  %v1883_v8 = vmul.f32 %v6717_v37, %v7176_v44  ;;  %v1380_v13 = vadd.f32 %v1379_v51, %v1378_v27 }
 0x1bd   : > { %10878 = vst [vmem:[#allocation75_spill] sm:$0xff] %v7187_v19  ;;  %v1601_v54 = vadd.f32 %v1600_v17, %v1599_v34  ;;  %v2262_v0 = vadd.f32 %v2261_v46, %v2260_v42  ;;  %v2075_v39 = vsel %vm1375_vm0, %v1882_v14, 0.0  ;;  %v1884_v60 = vmul.f32 %v6744_v48, %v7187_v19 }
 0x1be   : > { %v1885_v55 = vmul.f32 %v6746_v49, %v7190_v22  ;;  %v2066_v23 = vrot.slane %v2065_v9, 2  ;;  %v1381_v30 = vsel %vm1375_vm0, %v1250_v52, 0.0  ;;  %v2076_v50 = vadd.f32 %v2075_v39, %v2074_v41 }
 0x1bf   : > { %5914 = vset.pattern.permute.xlu0 %v10852_v10  ;;  %v2263_v59 = vrot.slane %v2262_v0, 1  ;;  %v1602_v57 = vsel %vm1375_vm0, %v1318_v16, 0.0  ;;  %v2298_v58 = vrot.slane %v2297_v29, 4  ;;  %v2083_v27 = vsel %vm1375_vm0, %v1883_v8, 0.0 }
 0x1c0   : > { %v7208_v42 = vadd.f32 %v5619_v63, %v6722_v38  ;;  %v1382_v34 = vadd.f32 %v1381_v30, %v1380_v13  ;;  %v1603_v51 = vadd.f32 %v1602_v57, %v1601_v54  ;;  %v2067_v14 = vadd.f32 %v2066_v23, %v2065_v9  ;;  %v7221_v13 = vpop.f32.mrf.mxu1 }
 0x1c1   : > { %v7210_v17 = vadd.f32 %v2263_v59, %v2262_v0  ;;  %v1252_v46 = vmul.f32 %v6713_v33, %v6782_v24  ;;  %v2084_v52 = vsel %vm1375_vm0, %v1884_v60, 0.0  ;;  %v7216_v41 = vadd.f32 %v6722_v38, %v1084_v32  ;;  %v7233_v60 = vpop.f32.mrf.mxu0 }
 0x1c2   : > { %10880 = vst [vmem:[#allocation77_spill] sm:$0xff] %v7208_v42  ;;  %v2086_v16 = vsel %vm1375_vm0, %v1885_v55, 0.0  ;;  %v1320_v8 = vmul.f32 %v6713_v33, %v6811_v6  ;;  %v2077_v63 = vrot.slane %v2076_v50, 4  ;;  %v2085_v39 = vadd.f32 %v2084_v52, %v2083_v27 }
 0x1c3   : > { %10881 = vst [vmem:[#allocation78_spill] sm:$0xff] %v7216_v41  ;;  %2502 = vperm.xlu1 %5902, %v7210_v17   ;;  %v2068_v9 = vrot.slane %v2067_v14, 1  ;;  %v7226_v54 = vadd.f32 %v7151_v45, %v6722_v38  ;;  %v1886_v32 = vmul.f32 %v6768_v61, %v7208_v42  ;;  %v7231_v0 = vadd.f32 %v6722_v38, %v1094_v56  ;;  %v1104_v56 = vpop.f32.mrf.mxu1 }
 0x1c4   : > { %v2299_v55 = vadd.f32 %v2298_v58, %v2297_v29  ;;  %v1383_v23 = vrot.slane %v1382_v34, 4  ;;  %v1604_v30 = vrot.slane %v1603_v51, 4  ;;  %v2087_v59 = vadd.f32 %v2086_v16, %v2085_v39  ;;  %v7254_v39 = vpop.f32.mrf.mxu0 }
 0x1c5   : > { %10882 = vst [vmem:[#allocation79_spill] sm:$0xff] %v7226_v54  ;;  %10883 = vst [vmem:[#allocation80_spill] sm:$0xff] %v7231_v0  ;;  %v7235_v57 = vadd.f32 %v2068_v9, %v2067_v14  ;;  %v1390_v27 = vsel %vm1375_vm0, %v1252_v46, 0.0  ;;  %v1251_v45 = vmul.f32 %v6709_v26, %v6779_v21  ;;  %v1951_v52 = vmul.f32 %v6717_v37, %v7216_v41 }
 0x1c6   : > { %v1611_v6 = vsel %vm1375_vm0, %v1320_v8, 0.0  ;;  %v1319_v38 = vmul.f32 %v6709_v26, %v6808_v4  ;;  %v2300_v58 = vrot.slane %v2299_v55, 2  ;;  %v2078_v29 = vadd.f32 %v2077_v63, %v2076_v50 }
 0x1c7   : > { %2427 = vperm.xlu0 %5914, %v7235_v57   ;;  %5903 = vset.pattern.permute.xlu1 %v10846_v35  ;;  %v1253_v14 = vmul.f32 %v6711_v31, %v6785_v25  ;;  %v1952_v46 = vmul.f32 %v6744_v48, %v7226_v54  ;;  %v2088_v16 = vsel %vm1375_vm0, %v1886_v32, 0.0  ;;  %v1953_v8 = vmul.f32 %v6746_v49, %v7231_v0  ;;  %v7266_v32 = vld [vmem:[%s10474_s7] ss:$0 sm:$0xff] }
 0x1c8   : > { %2702 = vperm.xlu1 %5903, %v7038_v62   ;;  %v7257_v9 = vadd.f32 %v1383_v23, %v1382_v34  ;;  %v7259_v24 = vadd.f32 %v1604_v30, %v1603_v51  ;;  %v2089_v50 = vadd.f32 %v2088_v16, %v2087_v59  ;;  %v2301_v63 = vadd.f32 %v2300_v58, %v2299_v55  ;;  %v7277_v23 = vpop.f32.mrf.mxu1  ;;  %v7279_v59 = vpop.permute.xlu1 %2482 }
 0x1c9   : > { %v1389_v25 = vsel %vm1375_vm0, %v1251_v45, 0.0  ;;  %v2304_v4 = vsel %vm1375_vm0, %v1951_v52, 0.0  ;;  %v7270_v21 = vadd.f32 %v7266_v32, %v7193_v53  ;;  %v2079_v42 = vrot.slane %v2078_v29, 2  ;;  %10886 = vst [vmem:[#allocation83_spill] sm:$0xff] %v7279_v59  ;;  %v7284_v58 = vpop.f32.mrf.mxu0 }
 0x1ca   : > { %10884 = vst [vmem:[#allocation81_spill] sm:$0xff] %v7259_v24  ;;  %v1610_v34 = vsel %vm1375_vm0, %v1319_v38, 0.0  ;;  %v1254_v51 = vmul.f32 %v6715_v36, %v6795_v47  ;;  %v1321_v55 = vmul.f32 %v6711_v31, %v6814_v7  ;;  %v2302_v30 = vrot.slane %v2301_v63, 1 }
 0x1cb   : > { %10885 = vst [vmem:[#allocation82_spill] sm:$0xff] %v7270_v21  ;;  %v1392_v45 = vsel %vm1375_vm0, %v1253_v14, 0.0  ;;  %v2305_v52 = vsel %vm1375_vm0, %v1952_v46, 0.0  ;;  %v2307_v53 = vsel %vm1375_vm0, %v1953_v8, 0.0  ;;  %v2080_v38 = vadd.f32 %v2079_v42, %v2078_v29  ;;  %v1114_v42 = vpop.f32.mrf.mxu1 }
 0x1cc   : > { %5904 = vset.pattern.permute.xlu1 %v10875_v43  ;;  %v1391_v16 = vadd.f32 %v1390_v27, %v1389_v25  ;;  %v2306_v47 = vadd.f32 %v2305_v52, %v2304_v4  ;;  %v2090_v0 = vrot.slane %v2089_v50, 4  ;;  %v7287_v7 = vadd.f32 %v2302_v30, %v2301_v63  ;;  %v7318_v30 = vpop.permute.xlu1 %3012 }
 0x1cd   : > { %2960 = vperm.xlu1 %5904, %v7038_v62   ;;  %v7293_v14 = vadd.f32 %v7266_v32, %v7034_v12  ;;  %v1954_v46 = vmul.f32 %v6768_v61, %v7270_v21  ;;  %v2081_v8 = vrot.slane %v2080_v38, 1  ;;  %v1612_v22 = vadd.f32 %v1611_v6, %v1610_v34  ;;  %v774_v6 = vpop.f32.mrf.mxu0  ;;  %10892 = vst [vmem:[#allocation89_spill] sm:$0xff] %v7318_v30 }
 0x1ce   : > { %10887 = vst [vmem:[#allocation84_spill] sm:$0xff] %v7287_v7  ;;  %v1393_v41 = vadd.f32 %v1392_v45, %v1391_v16  ;;  %v1613_v25 = vsel %vm1375_vm0, %v1321_v55, 0.0  ;;  %v2308_v4 = vadd.f32 %v2307_v53, %v2306_v47  ;;  %2517 = vperm.xlu0 %5914, %v7287_v7   ;;  %v1394_v27 = vsel %vm1375_vm0, %v1254_v51, 0.0 }
 0x1cf   : > { %10888 = vst [vmem:[#allocation85_spill] sm:$0xff] %v7293_v14  ;;  %v1322_v29 = vmul.f32 %v6715_v36, %v6828_v18  ;;  %v7304_v12 = vadd.f32 %v7266_v32, %v7026_v11  ;;  %v7308_v63 = vadd.f32 %v7266_v32, %v7044_v28  ;;  %v1256_v47 = vmul.f32 %v6713_v33, %v6831_v20 }
 0x1d0   : > { %v1324_v34 = vmul.f32 %v6713_v33, %v6861_v3  ;;  %v7315_v51 = vadd.f32 %v7266_v32, %v1104_v56  ;;  %v2091_v55 = vadd.f32 %v2090_v0, %v2089_v50  ;;  %v1614_v11 = vadd.f32 %v1613_v25, %v1612_v22  ;;  %v7335_v22 = vpop.f32.mrf.mxu1 }
 0x1d1   : > { %10889 = vst [vmem:[#allocation86_spill] sm:$0xff] %v7304_v12  ;;  %10890 = vst [vmem:[#allocation87_spill] sm:$0xff] %v7308_v63  ;;  %5905 = vset.pattern.permute.xlu1 %v10849_v1  ;;  %v1943_v28 = vmul.f32 %v6717_v37, %v7293_v14  ;;  %v2309_v45 = vsel %vm1375_vm0, %v1954_v46, 0.0  ;;  %v7323_v52 = vadd.f32 %v2081_v8, %v2080_v38  ;;  %v1615_v38 = vsel %vm1375_vm0, %v1322_v29, 0.0  ;;  %v7344_v46 = vpop.f32.mrf.mxu0  ;;  %v7389_v14 = vpop.permute.xlu0 %2397 }
 0x1d2   : > { %10891 = vst [vmem:[#allocation88_spill] sm:$0xff] %v7315_v51  ;;  %3218 = vperm.xlu1 %5905, %v7038_v62   ;;  %v7326_v53 = vadd.f32 %v1394_v27, %v1393_v41  ;;  %v2310_v16 = vadd.f32 %v2309_v45, %v2308_v4  ;;  %v7330_v56 = vadd.f32 %v7266_v32, %v7221_v13  ;;  %v7348_v13 = vsel %vm1375_vm0, %v1256_v47, 0.0 }
 0x1d3   : > { %v7333_v0 = vadd.f32 %v7266_v32, %v1114_v42  ;;  %5923 = vset.pattern.permute.xlu0 %v10846_v35  ;;  %v1944_v62 = vmul.f32 %v6744_v48, %v7304_v12  ;;  %v1945_v41 = vmul.f32 %v6746_v49, %v7308_v63  ;;  %v7351_v8 = vsel %vm1375_vm0, %v1324_v34, 0.0  ;;  %v7386_v63 = vpop.f32.mrf.mxu0 }
 0x1d4   : > { %10893 = vst [vmem:[#allocation90_spill] sm:$0xff] %v7330_v56  ;;  %2714 = vperm.xlu0 %5923, %v7323_v52   ;;  %v1955_v25 = vmul.f32 %v6717_v37, %v7315_v51  ;;  %v2092_v4 = vrot.slane %v2091_v55, 2  ;;  %v7355_v42 = vadd.f32 %v1615_v38, %v1614_v11  ;;  %v2278_v27 = vsel %vm1375_vm0, %v1943_v28, 0.0  ;;  %v7372_v28 = vpop.f32.mrf.mxu1 }
 0x1d5   : > { %10894 = vst [vmem:[#allocation91_spill] sm:$0xff] %v7333_v0  ;;  %v7360_v29 = vadd.f32 %v7266_v32, %v7040_v5  ;;  %v7364_v45 = vadd.f32 %v7266_v32, %v7254_v39  ;;  %v2311_v34 = vrot.slane %v2310_v16, 4  ;;  %v1956_v50 = vmul.f32 %v6744_v48, %v7330_v56  ;;  %v7375_v5 = vpop.permute.xlu1 %3270 }
 0x1d6   : > { %5906 = vset.pattern.permute.xlu1 %v10846_v35  ;;  %v1957_v11 = vmul.f32 %v6746_v49, %v7333_v0  ;;  %10897 = vst [vmem:[#allocation94_spill] sm:$0xff] %v7375_v5  ;;  %v2279_v39 = vsel %vm1375_vm0, %v1944_v62, 0.0  ;;  %v2281_v38 = vsel %vm1375_vm0, %v1945_v41, 0.0  ;;  %v7381_v59 = vadd.f32 %v7266_v32, %v7233_v60  ;;  %v10901_v41 = vld [vmem:[#allocation32_spill] sm:$0xff]  ;;  %v7407_v5 = vpop.f32.mrf.mxu1 }
 0x1d7   : > { %10895 = vst [vmem:[#allocation92_spill] sm:$0xff] %v7360_v29  ;;  %10896 = vst [vmem:[#allocation93_spill] sm:$0xff] %v7364_v45  ;;  %2770 = vperm.xlu1 %5906, %v7210_v17   ;;  %v7384_v47 = vadd.f32 %v7266_v32, %v774_v6  ;;  %v2280_v12 = vadd.f32 %v2279_v39, %v2278_v27  ;;  %v2317_v20 = vsel %vm1375_vm0, %v1955_v25, 0.0  ;;  %v2318_v39 = vsel %vm1375_vm0, %v1956_v50, 0.0 }
 0x1d8   : > { %10898 = vst [vmem:[#allocation95_spill] sm:$0xff] %v7381_v59  ;;  %5926 = vset.pattern.permute.xlu0 %v10875_v43  ;;  %v7394_v62 = vadd.f32 %v7266_v32, %v7277_v23  ;;  %v2093_v60 = vadd.f32 %v2092_v4, %v2091_v55  ;;  %v1255_v6 = vmul.f32 %v6709_v26, %v6824_v15  ;;  %v2320_v23 = vsel %vm1375_vm0, %v1957_v11, 0.0  ;;  %v10903_v4 = vld [vmem:[#allocation30_spill] sm:$0xff]  ;;  %v10904_v11 = vld [vmem:[#allocation31_spill] sm:$0xff]  ;;  %v7438_v51 = vpop.f32.mrf.mxu1 }
 0x1d9   : > { %10899 = vst [vmem:[#allocation96_spill] sm:$0xff] %v7384_v47  ;;  %2972 = vperm.xlu0 %5926, %v7323_v52   ;;  %v1323_v18 = vmul.f32 %v6709_v26, %v10901_v41  ;;  %v1946_v3 = vmul.f32 %v6768_v61, %v7360_v29  ;;  %v1887_v27 = vmul.f32 %v6717_v37, %v7364_v45  ;;  %10902 = vst [vmem:[#allocation98_spill] sm:$0xff] %v7407_v5  ;;  %v10907_v45 = vld [vmem:[#allocation40_spill] sm:$0xff] }
 0x1da   : > { %10900 = vst [vmem:[#allocation97_spill] sm:$0xff] %v7394_v62  ;;  %v2282_v25 = vadd.f32 %v2281_v38, %v2280_v12  ;;  %v2312_v55 = vadd.f32 %v2311_v34, %v2310_v16  ;;  %v1257_v15 = vmul.f32 %v6711_v31, %v10903_v4  ;;  %v1888_v41 = vmul.f32 %v6744_v48, %v7381_v59  ;;  %v7416_v12 = vpop.f32.mrf.mxu0  ;;  %v7425_v4 = vpop.permute.xlu1 %2402 }
 0x1db   : > { %5907 = vset.pattern.permute.xlu1 %v10875_v43  ;;  %v2319_v29 = vadd.f32 %v2318_v39, %v2317_v20  ;;  %v1889_v30 = vmul.f32 %v6746_v49, %v7384_v47  ;;  %v1258_v38 = vmul.f32 %v6715_v36, %v10904_v11  ;;  %v1958_v16 = vmul.f32 %v6768_v61, %v7394_v62  ;;  %v7434_v11 = vpop.permute.xlu0 %2686 }
 0x1dc   : > { %3028 = vperm.xlu1 %5907, %v7210_v17   ;;  %v2094_v34 = vrot.slane %v2093_v60, 1  ;;  %v2283_v20 = vsel %vm1375_vm0, %v1946_v3, 0.0  ;;  %v2096_v39 = vsel %vm1375_vm0, %v1887_v27, 0.0  ;;  %v7431_v47 = vadd.f32 %v7266_v32, %v7284_v58  ;;  %v10906_v27 = vld [vmem:[#allocation34_spill] sm:$0xff] }
 0x1dd   : > { %5928 = vset.pattern.permute.xlu0 %v10849_v1  ;;  %v2321_v50 = vadd.f32 %v2320_v23, %v2319_v29  ;;  %v1402_v62 = vsel %vm1375_vm0, %v1255_v6, 0.0  ;;  %v1623_v0 = vsel %vm1375_vm0, %v1323_v18, 0.0  ;;  %v2284_v56 = vadd.f32 %v2283_v20, %v2282_v25  ;;  %v794_v23 = vpop.f32.mrf.mxu0 }
 0x1de   : > { %10905 = vst [vmem:[#allocation99_spill] sm:$0xff] %v7431_v47  ;;  %3230 = vperm.xlu0 %5928, %v7323_v52   ;;  %v2313_v59 = vrot.slane %v2312_v55, 2  ;;  %v1405_v3 = vsel %vm1375_vm0, %v1257_v15, 0.0  ;;  %v1325_v21 = vmul.f32 %v6711_v31, %v10906_v27  ;;  %v2097_v58 = vsel %vm1375_vm0, %v1888_v41, 0.0 }
 0x1df   : > { %v2099_v29 = vsel %vm1375_vm0, %v1889_v30, 0.0  ;;  %v1259_v6 = vmul.f32 %v6709_v26, %v10907_v45  ;;  %v2098_v18 = vadd.f32 %v2097_v58, %v2096_v39  ;;  %v2322_v25 = vsel %vm1375_vm0, %v1958_v16, 0.0  ;;  %v10910_v39 = vld [vmem:[#allocation41_spill] sm:$0xff]  ;;  %v7463_v58 = vpop.f32.mrf.mxu1  ;;  %v7472_v45 = vpop.f32.mrf.mxu0 }
 0x1e0   : > { %5908 = vset.pattern.permute.xlu1 %v10849_v1  ;;  %v7449_v20 = vadd.f32 %v2094_v34, %v2093_v60  ;;  %v10909_v15 = vrot.slane %v7326_v53, 4  ;;  %v1404_v30 = vadd.f32 %v7348_v13, %v1402_v62  ;;  %v1890_v41 = vmul.f32 %v6768_v61, %v7431_v47  ;;  %v10913_v47 = vld [vmem:[#allocation42_spill] sm:$0xff] }
 0x1e1   : > { %3286 = vperm.xlu1 %5908, %v7210_v17   ;;  %v2323_v54 = vadd.f32 %v2322_v25, %v2321_v50  ;;  %v1260_v16 = vmul.f32 %v6713_v33, %v10910_v39  ;;  %v2285_v60 = vrot.slane %v2284_v56, 4  ;;  %v2100_v34 = vadd.f32 %v2099_v29, %v2098_v18  ;;  %v7474_v39 = vpop.permute.xlu0 %2754 }
 0x1e2   : > { %10908 = vst [vmem:[#allocation100_spill] sm:$0xff] %v7449_v20  ;;  %v7455_v27 = vadd.f32 %v10909_v15, %v7326_v53  ;;  %5929 = vset.pattern.permute.xlu0 %v10852_v10  ;;  %v2314_v17 = vadd.f32 %v2313_v59, %v2312_v55  ;;  %v7466_v53 = vpop.permute.xlu1 %2690  ;;  %v1625_v13 = vadd.f32 %v7351_v8, %v1623_v0  ;;  %v1407_v62 = vsel %vm1375_vm0, %v1258_v38, 0.0  ;;  %v10911_v15 = vld [vmem:[#allocation35_spill] sm:$0xff]  ;;  %v10914_v55 = vld [vmem:[#allocation44_spill] sm:$0xff]  ;;  %v10915_v8 = vld [vmem:[#allocation45_spill] sm:$0xff] }
 0x1e3   : > { %2437 = vperm.xlu0 %5929, %v7449_v20   ;;  %v1326_v50 = vmul.f32 %v6715_v36, %v10911_v15  ;;  %v1406_v25 = vadd.f32 %v1405_v3, %v1404_v30  ;;  %10912 = vst [vmem:[#allocation101_spill] sm:$0xff] %v7474_v39  ;;  %v1626_v29 = vsel %vm1375_vm0, %v1325_v21, 0.0  ;;  %v1415_v18 = vsel %vm1375_vm0, %v1259_v6, 0.0  ;;  %v10916_v3 = vld [vmem:[#allocation46_spill] sm:$0xff]  ;;  %v10917_v21 = vld [vmem:[#allocation65_spill] sm:$0xff] }
 0x1e4   : > { %v1261_v59 = vmul.f32 %v6711_v31, %v10913_v47  ;;  %v1263_v0 = vmul.f32 %v6709_v26, %v10914_v55  ;;  %v1264_v38 = vmul.f32 %v6713_v33, %v10915_v8  ;;  %v1265_v30 = vmul.f32 %v6711_v31, %v10916_v3  ;;  %v7490_v47 = vpop.f32.mrf.mxu1  ;;  %v7494_v3 = vpop.f32.mrf.mxu0 }
 0x1e5   : > { %5909 = vset.pattern.permute.xlu1 %v10852_v10  ;;  %v2101_v15 = vsel %vm1375_vm0, %v1890_v41, 0.0  ;;  %v2324_v39 = vrot.slane %v2323_v54, 4  ;;  %v1416_v6 = vsel %vm1375_vm0, %v1260_v16, 0.0  ;;  %v2315_v55 = vrot.slane %v2314_v17, 1  ;;  %v10918_v41 = vld [vmem:[#allocation43_spill] sm:$0xff] }
 0x1e6   : > { %2422 = vperm.xlu1 %5909, %v10917_v21   ;;  %v2102_v19 = vadd.f32 %v2101_v15, %v2100_v34  ;;  %v2286_v44 = vadd.f32 %v2285_v60, %v2284_v56  ;;  %v1628_v40 = vsel %vm1375_vm0, %v1326_v50, 0.0  ;;  %v1408_v8 = vadd.f32 %v1407_v62, %v1406_v25  ;;  %v7505_v56 = vpop.permute.xlu1 %2758  ;;  %v7514_v50 = vpop.permute.xlu0 %2944 }
 0x1e7   : > { %5932 = vset.pattern.permute.xlu0 %v10875_v43  ;;  %v1627_v24 = vadd.f32 %v1626_v29, %v1625_v13  ;;  %v1417_v2 = vadd.f32 %v1416_v6, %v1415_v18  ;;  %v1262_v7 = vmul.f32 %v6715_v36, %v10918_v41  ;;  %v1418_v16 = vsel %vm1375_vm0, %v1261_v59, 0.0  ;;  %10920 = vst [vmem:[#allocation102_spill] sm:$0xff] %v7505_v56  ;;  %v7526_v56 = vpop.f32.mrf.mxu0 }
 0x1e8   : > { %2976 = vperm.xlu0 %5932, %v7449_v20   ;;  %v1428_v34 = vsel %vm1375_vm0, %v1263_v0, 0.0  ;;  %v7503_v15 = vadd.f32 %v7266_v32, %v7386_v63  ;;  %v1429_v60 = vsel %vm1375_vm0, %v1264_v38, 0.0  ;;  %v1431_v13 = vsel %vm1375_vm0, %v1265_v30, 0.0  ;;  %v7519_v63 = vpop.f32.mrf.mxu1  ;;  %v10924_v30 = vld [vmem:[#allocation37_spill] sm:$0xff] }
 0x1e9   : > { %v7511_v62 = vadd.f32 %v7266_v32, %v7344_v46  ;;  %v2325_v25 = vadd.f32 %v2324_v39, %v2323_v54  ;;  %v2103_v29 = vrot.slane %v2102_v19, 4  ;;  %v7517_v18 = vadd.f32 %v7266_v32, %v794_v23  ;;  %v10927_v39 = vld [vmem:[#allocation36_spill] sm:$0xff] }
 0x1ea   : > { %10919 = vst [vmem:[#allocation65_spill] sm:$0xff] %v7503_v15  ;;  %5911 = vset.pattern.permute.xlu1 %v10875_v43  ;;  %v7521_v59 = vadd.f32 %v2315_v55, %v2314_v17  ;;  %v2287_v0 = vrot.slane %v2286_v44, 2  ;;  %v1629_v38 = vadd.f32 %v1628_v40, %v1627_v24  ;;  %v1328_v46 = vmul.f32 %v6713_v33, %v10924_v30  ;;  %v10928_v55 = vld [vmem:[#allocation47_spill] sm:$0xff] }
 0x1eb   : > { %10921 = vst [vmem:[#allocation103_spill] sm:$0xff] %v7511_v62  ;;  %10922 = vst [vmem:[#allocation104_spill] sm:$0xff] %v7517_v18  ;;  %2964 = vperm.xlu1 %5911, %v10917_v21   ;;  %v1419_v6 = vadd.f32 %v1418_v16, %v1417_v2  ;;  %v1430_v41 = vadd.f32 %v1429_v60, %v1428_v34  ;;  %v10925_v54 = vrot.slane %v7355_v42, 4  ;;  %v1409_v2 = vrot.slane %v1408_v8, 4 }
 0x1ec   : > { %10923 = vst [vmem:[#allocation105_spill] sm:$0xff] %v7521_v59  ;;  %5933 = vset.pattern.permute.xlu0 %v10846_v35  ;;  %v1327_v17 = vmul.f32 %v6709_v26, %v10927_v39  ;;  %v1266_v40 = vmul.f32 %v6715_v36, %v10928_v55  ;;  %v1891_v24 = vmul.f32 %v6717_v37, %v7503_v15  ;;  %v2326_v60 = vrot.slane %v2325_v25, 2  ;;  %v1154_v39 = vpop.f32.mrf.mxu1 }
 0x1ed   : > { %v7532_v23 = vadd.f32 %v10925_v54, %v7355_v42  ;;  %2786 = vperm.xlu0 %5933, %v7521_v59   ;;  %v1432_v16 = vadd.f32 %v1431_v13, %v1430_v41  ;;  %v1892_v34 = vmul.f32 %v6744_v48, %v7511_v62  ;;  %v1420_v42 = vsel %vm1375_vm0, %v1262_v7, 0.0  ;;  %v814_v62 = vpop.f32.mrf.mxu0  ;;  %v7552_v7 = vpop.permute.xlu0 %3202 }
 0x1ee   : > { %v1893_v54 = vmul.f32 %v6746_v49, %v7517_v18  ;;  %v2288_v55 = vadd.f32 %v2287_v0, %v2286_v44  ;;  %v2104_v30 = vadd.f32 %v2103_v29, %v2102_v19  ;;  %v1630_v20 = vrot.slane %v1629_v38, 4 }
 0x1ef   : > { %10926 = vst [vmem:[#allocation106_spill] sm:$0xff] %v7532_v23  ;;  %5912 = vset.pattern.permute.xlu1 %v10849_v1  ;;  %v7547_v23 = vpop.permute.xlu1 %2948  ;;  %v1637_v41 = vsel %vm1375_vm0, %v1328_v46, 0.0  ;;  %v1421_v13 = vadd.f32 %v1420_v42, %v1419_v6  ;;  %v1636_v18 = vsel %vm1375_vm0, %v1327_v17, 0.0  ;;  %v1433_v5 = vsel %vm1375_vm0, %v1266_v40, 0.0  ;;  %v7571_v40 = vpop.f32.mrf.mxu1 }
 0x1f0   : > { %3222 = vperm.xlu1 %5912, %v10917_v21   ;;  %v2109_v44 = vsel %vm1375_vm0, %v1891_v24, 0.0  ;;  %v7559_v19 = vadd.f32 %v7266_v32, %v7416_v12  ;;  %v7562_v29 = vadd.f32 %v1409_v2, %v1408_v8  ;;  %v1434_v0 = vadd.f32 %v1433_v5, %v1432_v16  ;;  %v10932_v2 = vld [vmem:[#allocation38_spill] sm:$0xff] }
 0x1f1   : > { %5935 = vset.pattern.permute.xlu0 %v10875_v43  ;;  %v2110_v46 = vsel %vm1375_vm0, %v1892_v34, 0.0  ;;  %v2327_v21 = vadd.f32 %v2326_v60, %v2325_v25  ;;  %v2112_v6 = vsel %vm1375_vm0, %v1893_v54, 0.0  ;;  %v7569_v17 = vadd.f32 %v7266_v32, %v7490_v47  ;;  %v7577_v34 = vpop.f32.mrf.mxu0  ;;  %v10933_v25 = vld [vmem:[#allocation56_spill] sm:$0xff] }
 0x1f2   : > { %10929 = vst [vmem:[#allocation107_spill] sm:$0xff] %v7559_v19  ;;  %3044 = vperm.xlu0 %5935, %v7521_v59   ;;  %v2289_v12 = vrot.slane %v2288_v55, 1  ;;  %v2105_v24 = vrot.slane %v2104_v30, 2  ;;  %v7573_v42 = vadd.f32 %v1630_v20, %v1629_v38  ;;  %v1422_v8 = vrot.slane %v1421_v13, 4 }
 0x1f3   : > { %10930 = vst [vmem:[#allocation108_spill] sm:$0xff] %v7569_v17  ;;  %v1329_v5 = vmul.f32 %v6711_v31, %v10932_v2  ;;  %v2111_v16 = vadd.f32 %v2110_v46, %v2109_v44  ;;  %v1638_v60 = vadd.f32 %v1637_v41, %v1636_v18  ;;  %v1894_v47 = vmul.f32 %v6768_v61, %v7559_v19  ;;  %v7589_v38 = vpop.permute.xlu1 %3206  ;;  %v10936_v44 = vld [vmem:[#allocation39_spill] sm:$0xff]  ;;  %v7595_v41 = vpop.permute.xlu0 %2487 }
 0x1f4   : > { %10931 = vst [vmem:[#allocation109_spill] sm:$0xff] %v7573_v42  ;;  %3290 = vperm.xlu1 %5912, %v10933_v25   ;;  %v7584_v54 = vadd.f32 %v7266_v32, %v7463_v58  ;;  %v7587_v20 = vadd.f32 %v7266_v32, %v1154_v39  ;;  %v1330_v46 = vmul.f32 %v6715_v36, %v10936_v44  ;;  %v2328_v18 = vrot.slane %v2327_v21, 1  ;;  %v1164_v19 = vpop.f32.mrf.mxu1  ;;  %v824_v36 = vpop.f32.mrf.mxu0 }
 0x1f5   : > { %v2113_v2 = vadd.f32 %v2112_v6, %v2111_v16  ;;  %10937 = vst [vmem:[#allocation111_spill] sm:$0xff] %v7595_v41  ;;  %v1435_v25 = vrot.slane %v1434_v0, 4  ;;  %v1963_v58 = vmul.f32 %v6717_v37, %v7569_v17  ;;  %v7600_v39 = vadd.f32 %v2289_v12, %v2288_v55  ;;  %v10938_v6 = vld [vmem:[#allocation53_spill] sm:$0xff]  ;;  %v10941_v12 = vld [vmem:[#allocation52_spill] sm:$0xff] }
 0x1f6   : > { %10934 = vst [vmem:[#allocation56_spill] sm:$0xff] %v7584_v54  ;;  %10935 = vst [vmem:[#allocation110_spill] sm:$0xff] %v7587_v20  ;;  %5936 = vset.pattern.permute.xlu0 %v10849_v1  ;;  %v2106_v42 = vadd.f32 %v2105_v24, %v2104_v30  ;;  %v7602_v15 = vadd.f32 %v1422_v8, %v1421_v13  ;;  %v1639_v44 = vsel %vm1375_vm0, %v1329_v5, 0.0  ;;  %v2114_v17 = vsel %vm1375_vm0, %v1894_v47, 0.0 }
 0x1f7   : > { %3302 = vperm.xlu0 %5936, %v7521_v59   ;;  %v1268_v16 = vmul.f32 %v6713_v33, %v10938_v6  ;;  %v7609_v41 = vadd.f32 %v7266_v32, %v7494_v3  ;;  %v7615_v55 = vadd.f32 %v7266_v32, %v7472_v45  ;;  %v1964_v30 = vmul.f32 %v6744_v48, %v7584_v54 }
 0x1f8   : > { %5915 = vset.pattern.permute.xlu1 %v10852_v10  ;;  %v1965_v13 = vmul.f32 %v6746_v49, %v7587_v20  ;;  %v1267_v3 = vmul.f32 %v6709_v26, %v10941_v12  ;;  %v2115_v24 = vadd.f32 %v2114_v17, %v2113_v2  ;;  %v7625_v8 = vadd.f32 %v7266_v32, %v814_v62  ;;  %v7636_v20 = vpop.f32.mrf.mxu1  ;;  %v7639_v12 = vpop.permute.xlu1 %3016 }
 0x1f9   : > { %10939 = vst [vmem:[#allocation112_spill] sm:$0xff] %v7609_v41  ;;  %10940 = vst [vmem:[#allocation113_spill] sm:$0xff] %v7615_v55  ;;  %2512 = vperm.xlu1 %5915, %v7600_v39   ;;  %v7627_v5 = vadd.f32 %v2328_v18, %v2327_v21  ;;  %v7629_v47 = vadd.f32 %v1435_v25, %v1434_v0  ;;  %v2343_v45 = vsel %vm1375_vm0, %v1963_v58, 0.0  ;;  %v2107_v54 = vrot.slane %v2106_v42, 1  ;;  %v5643_v17 = vpop.f32.mrf.mxu0  ;;  %v7653_v2 = vpop.permute.xlu0 %2407 }
 0x1fa   : > { %10942 = vst [vmem:[#allocation114_spill] sm:$0xff] %v7625_v8  ;;  %v7634_v6 = vadd.f32 %v7266_v32, %v7519_v63  ;;  %10945 = vst [vmem:[#allocation117_spill] sm:$0xff] %v7639_v12  ;;  %v7642_v62 = vsel %vm1375_vm0, %v1330_v46, 0.0  ;;  %v7644_v21 = vadd.f32 %v1639_v44, %v1638_v60  ;;  %v7648_v0 = vadd.f32 %v7266_v32, %v7335_v22 }
 0x1fb   : > { %10943 = vst [vmem:[#allocation115_spill] sm:$0xff] %v7629_v47  ;;  %5938 = vset.pattern.permute.xlu0 %v10852_v10  ;;  %10946 = vst [vmem:[#allocation118_spill] sm:$0xff] %v7642_v62  ;;  %v1895_v63 = vmul.f32 %v6717_v37, %v7609_v41  ;;  %v1896_v46 = vmul.f32 %v6744_v48, %v7615_v55  ;;  %v2344_v60 = vsel %vm1375_vm0, %v1964_v30, 0.0  ;;  %v2346_v44 = vsel %vm1375_vm0, %v1965_v13, 0.0  ;;  %v1174_v13 = vpop.f32.mrf.mxu1  ;;  %v834_v18 = vpop.f32.mrf.mxu0 }
 0x1fc   : > { %10944 = vst [vmem:[#allocation116_spill] sm:$0xff] %v7634_v6  ;;  %10947 = vst [vmem:[#allocation119_spill] sm:$0xff] %v7644_v21  ;;  %2527 = vperm.xlu0 %5938, %v7627_v5   ;;  %v7662_v22 = vsel %vm1375_vm0, %v1268_v16, 0.0  ;;  %v2116_v25 = vrot.slane %v2115_v24, 4  ;;  %v2345_v58 = vadd.f32 %v2344_v60, %v2343_v45  ;;  %v1897_v41 = vmul.f32 %v6746_v49, %v7625_v8 }
 0x1fd   : > { %10948 = vst [vmem:[#allocation120_spill] sm:$0xff] %v7648_v0  ;;  %5916 = vset.pattern.permute.xlu1 %v10846_v35  ;;  %v7669_v55 = vsel %vm1375_vm0, %v1267_v3, 0.0  ;;  %v1966_v30 = vmul.f32 %v6768_v61, %v7634_v6  ;;  %v7673_v12 = vadd.f32 %v2107_v54, %v2106_v42  ;;  %v1960_v16 = vmul.f32 %v6744_v48, %v7648_v0  ;;  %v10951_v3 = vld [vmem:[#allocation54_spill] sm:$0xff] }
 0x1fe   : > { %2710 = vperm.xlu1 %5916, %v7235_v57   ;;  %v2122_v45 = vsel %vm1375_vm0, %v1895_v63, 0.0  ;;  %v7680_v60 = vadd.f32 %v7266_v32, %v7526_v56  ;;  %v2347_v8 = vadd.f32 %v2346_v44, %v2345_v58  ;;  %v7685_v26 = vmul.f32 %v6711_v31, %v10951_v3  ;;  %v7696_v56 = vpop.permute.xlu1 %3274 }
 0x1ff   : > { %10949 = vst [vmem:[#allocation121_spill] sm:$0xff] %v7673_v12  ;;  %v7689_v42 = vadd.f32 %v7266_v32, %v7372_v28  ;;  %v2123_v54 = vsel %vm1375_vm0, %v1896_v46, 0.0  ;;  %v10953_v63 = vrot.slane %v7455_v27, 2  ;;  %10954 = vst [vmem:[#allocation124_spill] sm:$0xff] %v7696_v56  ;;  %v2125_v44 = vsel %vm1375_vm0, %v1897_v41, 0.0  ;;  %v7706_v28 = vpop.permute.xlu0 %2762 }
 0x200   : > { %10950 = vst [vmem:[#allocation122_spill] sm:$0xff] %v7680_v60  ;;  %5939 = vset.pattern.permute.xlu0 %v10846_v35  ;;  %v7700_v58 = vadd.f32 %v7266_v32, %v824_v36  ;;  %v7703_v3 = vadd.f32 %v7266_v32, %v1164_v19  ;;  %10957 = vst [vmem:[#allocation127_spill] sm:$0xff] %v7706_v28  ;;  %v2117_v46 = vadd.f32 %v2116_v25, %v2115_v24  ;;  %v7717_v36 = vpop.f32.mrf.mxu1 }
 0x201   : > { %10952 = vst [vmem:[#allocation123_spill] sm:$0xff] %v7689_v42  ;;  %v1399_v6 = vadd.f32 %v10953_v63, %v7455_v27  ;;  %2722 = vperm.xlu0 %5939, %v7673_v12   ;;  %v2124_v0 = vadd.f32 %v2123_v54, %v2122_v45  ;;  %v2348_v27 = vsel %vm1375_vm0, %v1966_v30, 0.0  ;;  %v7711_v63 = vadd.f32 %v7266_v32, %v7577_v34  ;;  %v5646_v34 = vpop.f32.mrf.mxu0 }
 0x202   : > { %10955 = vst [vmem:[#allocation125_spill] sm:$0xff] %v7700_v58  ;;  %10956 = vst [vmem:[#allocation126_spill] sm:$0xff] %v7703_v3  ;;  %5917 = vset.pattern.permute.xlu1 %v10875_v43  ;;  %v7715_v41 = vadd.f32 %v7266_v32, %v7571_v40  ;;  %v7721_v19 = vsel %vm1375_vm0, %v1960_v16, 0.0  ;;  %v1898_v24 = vmul.f32 %v6768_v61, %v7680_v60  ;;  %v2118_v60 = vrot.slane %v2117_v46, 2 }
 0x203   : > { %10958 = vst [vmem:[#allocation128_spill] sm:$0xff] %v7711_v63  ;;  %2968 = vperm.xlu1 %5917, %v7235_v57   ;;  %v2349_v25 = vadd.f32 %v2348_v27, %v2347_v8  ;;  %v7726_v30 = vadd.f32 %v7266_v32, %v834_v18  ;;  %v1959_v40 = vmul.f32 %v6717_v37, %v7689_v42  ;;  %v1400_v16 = vrot.slane %v1399_v6, 1  ;;  %v7767_v31 = vpop.permute.xlu0 %3210 }
 0x204   : > { %10959 = vst [vmem:[#allocation129_spill] sm:$0xff] %v7715_v41  ;;  %v7734_v45 = vadd.f32 %v7266_v32, %v7438_v51  ;;  %v2126_v54 = vadd.f32 %v2125_v44, %v2124_v0  ;;  %v1899_v8 = vmul.f32 %v6717_v37, %v7700_v58  ;;  %v1967_v18 = vmul.f32 %v6717_v37, %v7703_v3  ;;  %v1184_v44 = vpop.f32.mrf.mxu1  ;;  %v7755_v3 = vpop.permute.xlu1 %2492 }
 0x205   : > { %10960 = vst [vmem:[#allocation130_spill] sm:$0xff] %v7726_v30  ;;  %2790 = vperm.xlu0 %5939, %v7627_v5   ;;  %v7742_v27 = vadd.f32 %v7266_v32, %v1174_v13  ;;  %v1900_v28 = vmul.f32 %v6744_v48, %v7711_v63  ;;  %v1968_v51 = vmul.f32 %v6744_v48, %v7715_v41  ;;  %v10964_v58 = vrot.slane %v7257_v9, 2  ;;  %v7764_v41 = vpop.f32.mrf.mxu0 }
 0x206   : > { %10961 = vst [vmem:[#allocation131_spill] sm:$0xff] %v7734_v45  ;;  %v7749_v0 = vadd.f32 %v7266_v32, %v5643_v17  ;;  %10965 = vst [vmem:[#allocation134_spill] sm:$0xff] %v7755_v3  ;;  %v2127_v13 = vsel %vm1375_vm0, %v1898_v24, 0.0  ;;  %v2350_v56 = vrot.slane %v2349_v25, 4  ;;  %v7760_v63 = vadd.f32 %v7266_v32, %v7636_v20 }
 0x207   : > { %10962 = vst [vmem:[#allocation132_spill] sm:$0xff] %v7742_v27  ;;  %v1386_v42 = vadd.f32 %v10964_v58, %v7257_v9  ;;  %5918 = vset.pattern.permute.xlu1 %v10849_v1  ;;  %v1901_v17 = vmul.f32 %v6746_v49, %v7726_v30  ;;  %v7770_v9 = vsel %vm1375_vm0, %v1959_v40, 0.0  ;;  %v7774_v58 = vmul.f32 %v6746_v49, %v7734_v45 }
 0x208   : > { %10963 = vst [vmem:[#allocation133_spill] sm:$0xff] %v7749_v0  ;;  %10966 = vst [vmem:[#allocation135_spill] sm:$0xff] %v7760_v63  ;;  %3226 = vperm.xlu1 %5918, %v7235_v57   ;;  %v2128_v24 = vadd.f32 %v2127_v13, %v2126_v54  ;;  %v1401_v20 = vadd.f32 %v1400_v16, %v1399_v6  ;;  %v2135_v30 = vsel %vm1375_vm0, %v1899_v8, 0.0  ;;  %v2356_v3 = vsel %vm1375_vm0, %v1967_v18, 0.0  ;;  %v7786_v6 = vpop.f32.mrf.mxu1  ;;  %v7791_v13 = vpop.f32.mrf.mxu0 }
 0x209   : > { %5942 = vset.pattern.permute.xlu0 %v10875_v43  ;;  %v1969_v57 = vmul.f32 %v6746_v49, %v7742_v27  ;;  %v2119_v40 = vadd.f32 %v2118_v60, %v2117_v46  ;;  %v2136_v12 = vsel %vm1375_vm0, %v1900_v28, 0.0  ;;  %v2357_v45 = vsel %vm1375_vm0, %v1968_v51, 0.0  ;;  %v7799_v62 = vpop.permute.xlu1 %2694 }
 0x20a   : > { %3048 = vperm.xlu0 %5942, %v7627_v5   ;;  %v1902_v54 = vmul.f32 %v6768_v61, %v7749_v0  ;;  %v1387_v16 = vrot.slane %v1386_v42, 1  ;;  %v1970_v8 = vmul.f32 %v6768_v61, %v7760_v63  ;;  %v2138_v18 = vsel %vm1375_vm0, %v1901_v17, 0.0 }
 0x20b   : > { %v7794_v27 = vstv %s7728_s18  ;;  %v2351_v60 = vadd.f32 %v2350_v56, %v2349_v25  ;;  %v2129_v28 = vrot.slane %v2128_v24, 4  ;;  %v2137_v46 = vadd.f32 %v2136_v12, %v2135_v30  ;;  %v7809_v12 = vpop.permute.xlu0 %2497  ;;  %v1194_v30 = vpop.f32.mrf.mxu1 }
 0x20c   : > { %5919 = vset.pattern.permute.xlu1 %v10846_v35  ;;  %v2358_v51 = vadd.f32 %v2357_v45, %v2356_v3  ;;  %v1795_v0 = vadd.f32 %v7794_v27, %v1401_v20  ;;  %v2359_v63 = vsel %vm1375_vm0, %v1969_v57, 0.0  ;;  %v7803_v17 = vadd.f32 %v7266_v32, %v5646_v34  ;;  %10969 = vst [vmem:[#allocation137_spill] sm:$0xff] %v7809_v12 }
 0x20d   : > { %2778 = vperm.xlu1 %5919, %v7600_v39   ;;  %v10968_v21 = vrot.slane %v7562_v29, 2  ;;  %v2120_v56 = vrot.slane %v2119_v40, 1  ;;  %v2140_v3 = vsel %vm1375_vm0, %v1902_v54, 0.0  ;;  %v2139_v25 = vadd.f32 %v2138_v18, %v2137_v46 }
 0x20e   : > { %10967 = vst [vmem:[#allocation136_spill] sm:$0xff] %v7803_v17  ;;  %5943 = vset.pattern.permute.xlu0 %v10849_v1  ;;  %v1388_v45 = vadd.f32 %v1387_v16, %v1386_v42  ;;  %v2814_v20 = vsub.f32 %v1795_v0, %v7466_v53  ;;  %v2361_v34 = vsel %vm1375_vm0, %v1970_v8, 0.0  ;;  %v7816_v57 = vadd.f32 %v7266_v32, %v1184_v44 }
 0x20f   : > { %v1412_v33 = vadd.f32 %v10968_v21, %v7562_v29  ;;  %3306 = vperm.xlu0 %5943, %v7627_v5   ;;  %v854_v29 = vpop.f32.mrf.mxu0  ;;  %v2556_v21 = vsub.f32 %v1795_v0, %v7425_v4  ;;  %v2352_v47 = vrot.slane %v2351_v60, 2  ;;  %v2360_v59 = vadd.f32 %v2359_v63, %v2358_v51 }
 0x210   : > { %10970 = vst [vmem:[#allocation138_spill] sm:$0xff] %v7816_v57  ;;  %v7821_v54 = vadd.f32 %v7266_v32, %v7717_v36  ;;  %v3072_v42 = vsub.f32 %v1795_v0, %v7547_v23  ;;  %v2130_v53 = vadd.f32 %v2129_v28, %v2128_v24  ;;  %v7827_v5 = vmul.f32 %v6744_v48, %v7803_v17  ;;  %v7838_v24 = vpop.permute.xlu1 %2952  ;;  %v7849_v28 = vpop.permute.xlu0 %2698 }
 0x211   : > { %5920 = vset.pattern.permute.xlu1 %v10875_v43  ;;  %v7830_v44 = vadd.f32 %v7266_v32, %v1194_v30  ;;  %v1413_v16 = vrot.slane %v1412_v33, 1  ;;  %v7832_v4 = vadd.f32 %v2120_v56, %v2119_v40  ;;  %v2141_v63 = vadd.f32 %v2140_v3, %v2139_v25  ;;  %v7846_v18 = vpop.f32.mrf.mxu0 }
 0x212   : > { %10971 = vst [vmem:[#allocation139_spill] sm:$0xff] %v7821_v54  ;;  %3036 = vperm.xlu1 %5920, %v7600_v39   ;;  %v1794_v36 = vadd.f32 %v7794_v27, %v1388_v45  ;;  %5992 = vtanh.f32 %v2814_v20  ;;  %v3330_v23 = vsub.f32 %v1795_v0, %v7589_v38  ;;  %v7842_v8 = vadd.f32 %v7266_v32, %v7764_v41 }
 0x213   : > { %10972 = vst [vmem:[#allocation140_spill] sm:$0xff] %v7830_v44  ;;  %5944 = vset.pattern.permute.xlu0 %v10852_v10  ;;  %v1971_v40 = vmul.f32 %v6717_v37, %v7816_v57  ;;  %5994 = vtanh.f32 %v2556_v21  ;;  %v2353_v46 = vadd.f32 %v2352_v47, %v2351_v60  ;;  %v1972_v38 = vmul.f32 %v6744_v48, %v7821_v54  ;;  %v10987_v57 = vld [vmem:[#allocation11_spill] sm:$0xff] }
 0x214   : > { %10973 = vst [vmem:[#allocation141_spill] sm:$0xff] %v7842_v8  ;;  %2447 = vperm.xlu0 %5944, %v7832_v4   ;;  %v2813_v0 = vsub.f32 %v1794_v36, %v7434_v11  ;;  %5996 = vtanh.f32 %v3072_v42  ;;  %v2131_v51 = vrot.slane %v2130_v53, 2  ;;  %v7854_v41 = vadd.f32 %v2361_v34, %v2360_v59  ;;  %v7878_v34 = vpop.permute.xlu1 %3020  ;;  %v7890_v42 = vpop.permute.xlu0 %2956 }
 0x215   : > { %v1973_v56 = vmul.f32 %v6746_v49, %v7830_v44  ;;  %v2555_v3 = vsub.f32 %v1794_v36, %v7389_v14  ;;  %v1414_v25 = vadd.f32 %v1413_v16, %v1412_v33  ;;  %v2142_v30 = vrot.slane %v2141_v63, 4  ;;  %v7872_v33 = vpop.f32.mrf.mxu0  ;;  %10976 = vst [vmem:[#allocation144_spill] sm:$0xff] %v7878_v34 }
 0x216   : > { %5921 = vset.pattern.permute.xlu1 %v10849_v1  ;;  %v7861_v47 = vadd.f32 %v7266_v32, %v854_v29  ;;  %v3071_v60 = vsub.f32 %v1794_v36, %v7514_v50  ;;  %5998 = vtanh.f32 %v3330_v23  ;;  %v1903_v11 = vmul.f32 %v6717_v37, %v7842_v8 }
 0x217   : > { %3294 = vperm.xlu1 %5921, %v7600_v39   ;;  %v2369_v59 = vsel %vm1375_vm0, %v1971_v40, 0.0  ;;  %v7870_v14 = vadd.f32 %v7266_v32, %v7786_v6  ;;  %v2354_v45 = vrot.slane %v2353_v46, 1  ;;  %v2370_v20 = vsel %vm1375_vm0, %v1972_v38, 0.0  ;;  %v7900_v23 = vpop.f32.mrf.mxu0 }
 0x218   : > { %10974 = vst [vmem:[#allocation142_spill] sm:$0xff] %v7861_v47  ;;  %5948 = vset.pattern.permute.xlu0 %v10849_v1  ;;  %6000 = vtanh.f32 %v2813_v0  ;;  %v3329_v50 = vsub.f32 %v1794_v36, %v7552_v7  ;;  %v2132_v39 = vadd.f32 %v2131_v51, %v2130_v53  ;;  %v7882_v29 = vadd.f32 %v7266_v32, %v7791_v13 }
 0x219   : > { %10975 = vst [vmem:[#allocation143_spill] sm:$0xff] %v7870_v14  ;;  %3242 = vperm.xlu0 %5948, %v7832_v4   ;;  %v2372_v6 = vsel %vm1375_vm0, %v1973_v56, 0.0  ;;  %6002 = vtanh.f32 %v2555_v3  ;;  %v7888_v21 = vadd.f32 %v7794_v27, %v1414_v25  ;;  %v2371_v7 = vadd.f32 %v2370_v20, %v2369_v59  ;;  %v10978_v3 = vld [vmem:[#allocation98_spill] sm:$0xff] }
 0x21a   : > { %10977 = vst [vmem:[#allocation145_spill] sm:$0xff] %v7882_v29  ;;  %v1905_v53 = vmul.f32 %v6746_v49, %v7861_v47  ;;  %6004 = vtanh.f32 %v3071_v60  ;;  %v2143_v13 = vadd.f32 %v2142_v30, %v2141_v63  ;;  %v2148_v16 = vsel %vm1375_vm0, %v1903_v11, 0.0  ;;  %v7932_v11 = vpop.f32.mrf.mxu0 }
 0x21b   : > { %5922 = vset.pattern.permute.xlu1 %v10852_v10  ;;  %v1974_v36 = vmul.f32 %v6768_v61, %v7870_v14  ;;  %v7904_v40 = vadd.f32 %v2354_v45, %v2353_v46  ;;  %v2815_v38 = vsub.f32 %v7888_v21, %v7799_v62  ;;  %v2373_v0 = vadd.f32 %v2372_v6, %v2371_v7  ;;  %v7937_v45 = vpop.permute.xlu0 %3024  ;;  %v10983_v7 = vld [vmem:[#allocation84_spill] sm:$0xff] }
 0x21c   : > { %2432 = vperm.xlu1 %5922, %v7323_v52   ;;  %6006 = vtanh.f32 %v3329_v50  ;;  %v2557_v63 = vsub.f32 %v7888_v21, %v7653_v2  ;;  %v2133_v51 = vrot.slane %v2132_v39, 1  ;;  %v2332_v56 = vadd.f32 %v7721_v19, %v7770_v9  ;;  %10982 = vst [vmem:[#allocation147_spill] sm:$0xff] %v7937_v45 }
 0x21d   : > { %5953 = vset.pattern.permute.xlu0 %v10852_v10  ;;  %v7916_v46 = vadd.f32 %v7266_v32, %v10978_v3  ;;  %v2333_v52 = vsel %vm1375_vm0, %v7774_v58, 0.0  ;;  %v3073_v62 = vsub.f32 %v7888_v21, %v7838_v24  ;;  %v2363_v2 = vrot.slane %v7854_v41, 4  ;;  %v7929_v32 = vpop.permute.xlu1 %3278 }
 0x21e   : > { %2537 = vperm.xlu0 %5953, %v7904_v40   ;;  %v2149_v25 = vsel %vm1375_vm0, %v7827_v5, 0.0  ;;  %v2151_v19 = vsel %vm1375_vm0, %v1905_v53, 0.0  ;;  %v2144_v9 = vrot.slane %v2143_v13, 2  ;;  %10980 = vst [vmem:[#allocation146_spill] sm:$0xff] %v7929_v32  ;;  %v2374_v58 = vsel %vm1375_vm0, %v1974_v36, 0.0 }
 0x21f   : > { %10979 = vst [vmem:[#allocation98_spill] sm:$0xff] %v7916_v46  ;;  %v5993_v30 = vpop.eup %5992  ;;  %v2150_v60 = vadd.f32 %v2149_v25, %v2148_v16  ;;  %v10981_v24 = vrot.slane %v7602_v15, 2  ;;  %6008 = vtanh.f32 %v2815_v38  ;;  %v1906_v20 = vmul.f32 %v6768_v61, %v7882_v29  ;;  %v7955_v25 = vpop.f32.mrf.mxu0 }
 0x220   : > { %5924 = vset.pattern.permute.xlu1 %v10846_v35  ;;  %v5995_v5 = vpop.eup %5994  ;;  %v2375_v50 = vadd.f32 %v2374_v58, %v2373_v0  ;;  %6010 = vtanh.f32 %v2557_v63  ;;  %v7942_v6 = vadd.f32 %v2133_v51, %v2132_v39  ;;  %v7946_v36 = vstv %s7885_s21 }
 0x221   : > { %v1425_v59 = vadd.f32 %v10981_v24, %v7602_v15  ;;  %2782 = vperm.xlu1 %5924, %v10983_v7   ;;  %v5997_v53 = vpop.eup %5996  ;;  %v2152_v16 = vadd.f32 %v2151_v19, %v2150_v60  ;;  %v5754_v15 = vpop.f32.mrf.mxu1  ;;  %v3331_v38 = vsub.f32 %v7888_v21, %v7767_v31  ;;  %6012 = vtanh.f32 %v3073_v62 }
 0x222   : > { %5954 = vset.pattern.permute.xlu0 %v10846_v35  ;;  %v1962_v0 = vmul.f32 %v6768_v61, %v7916_v46  ;;  %v2334_v39 = vadd.f32 %v2333_v52, %v2332_v56  ;;  %v2880_v63 = vmul.f32 %v5993_v30, %v7946_v36  ;;  %v2145_v51 = vadd.f32 %v2144_v9, %v2143_v13  ;;  %v7968_v13 = vpop.permute.xlu1 %2412 }
 0x223   : > { %2730 = vperm.xlu0 %5954, %v7942_v6   ;;  %v5999_v3 = vpop.eup %5998  ;;  %v7958_v19 = vstv %s7894_s28  ;;  %v7961_v60 = vstv %s7902_s19  ;;  %v1426_v31 = vrot.slane %v1425_v59, 1  ;;  %v2364_v21 = vadd.f32 %v2363_v2, %v7854_v41  ;;  %v1204_v14 = vpop.f32.mrf.mxu1  ;;  %s11372_s19 = sadd.s32 4294967295, %s6334_s12  }
 0x224   : > { %v2153_v62 = vsel %vm1375_vm0, %v1906_v20, 0.0  ;;  %v2376_v58 = vrot.slane %v2375_v50, 4  ;;  %v2622_v56 = vmul.f32 %v5995_v5, %v7958_v19  ;;  %v3138_v52 = vmul.f32 %v5997_v53, %v7961_v60  ;;  %v7975_v41 = vpop.permute.xlu0 %3282 }
 0x225   : > { %5925 = vset.pattern.permute.xlu1 %v10875_v43  ;;  %v6001_v9 = vpop.eup %6000  ;;  %v1443_v30 = vadd.f32 %v7662_v22, %v7669_v55  ;;  %v2154_v24 = vadd.f32 %v2153_v62, %v2152_v16  ;;  %v7973_v44 = vstv %s7920_s24  ;;  %6014 = vtanh.f32 %v3331_v38  ;;  %10984 = vst [vmem:[#allocation84_spill] sm:$0xff] %v7975_v41  ;;  %v7985_v16 = vpop.f32.mrf.mxu0  ;;  %v10996_v41 = vld [vmem:[#allocation105_spill] sm:$0xff]  ;;  %s5347_s24 = sshll.u32 %s11372_s19, 2 }
 0x226   : > { %3040 = vperm.xlu1 %5925, %v10983_v7   ;;  %v6003_v2 = vpop.eup %6002  ;;  %v2335_v5 = vsel %vm1375_vm0, %v1962_v0, 0.0  ;;  %v2912_v20 = vadd.f32 %v2880_v63, %v2622_v56  ;;  %v3396_v53 = vmul.f32 %v5999_v3, %v7973_v44  ;;  %v2146_v29 = vrot.slane %v2145_v51, 1  ;;  %v7991_v0 = vld [vmem:[%s10474_s7] ss:$0 sm:$0xff]  ;;  %v8009_v17 = vpop.f32.mrf.mxu1  ;;  %p364_p13 = scmp.lt.s32.totalorder %s5347_s24, 7 }
 0x227   : > { %5956 = vset.pattern.permute.xlu0 %v10849_v1  ;;  %v6005_v47 = vpop.eup %6004  ;;  %v1444_v55 = vsel %vm1375_vm0, %v7685_v26, 0.0  ;;  %v7983_v22 = vadd.f32 %v2335_v5, %v2334_v39  ;;  %v1427_v38 = vadd.f32 %v1426_v31, %v1425_v59  ;;  %v2365_v62 = vrot.slane %v2364_v21, 2  ;;  %v10986_v5 = vld [vmem:[#allocation55_spill] sm:$0xff] }
 0x228   : > { %3246 = vperm.xlu0 %5956, %v7942_v6   ;;  %v7995_v63 = vadd.f32 %v7991_v0, %v7872_v33  ;;  %v2879_v3 = vmul.f32 %v6001_v9, %v7946_v36  ;;  %v2377_v26 = vadd.f32 %v2376_v58, %v2375_v50  ;;  %v3170_v39 = vadd.f32 %v3138_v52, %v2912_v20  ;;  %v8017_v52 = vpop.permute.xlu1 %2766  ;;  %v8022_v20 = vpop.f32.mrf.mxu0  ;;  %s11378_s24 = smov (!%p364_p13, %s5347_s24), 7 }
 0x229   : > { %v6007_v56 = vpop.eup %6006  ;;  %v8000_v59 = vmul.f32 %v10987_v57, %v10986_v5  ;;  %v2155_v31 = vrot.slane %v2154_v24, 4  ;;  %v8004_v8 = vadd.f32 %v7991_v0, %v7846_v18  ;;  %v8007_v54 = vadd.f32 %v7991_v0, %v5754_v15  ;;  %10991 = vst [vmem:[#allocation151_spill] sm:$0xff] %v8017_v52  ;;  %v1214_v15 = vpop.f32.mrf.mxu1  ;;  %s5348_s27 = sshll.u32 %s11378_s24, 3 }
 0x22a   : > { %10985 = vst [vmem:[#allocation148_spill] sm:$0xff] %v7995_v63  ;;  %5927 = vset.pattern.permute.xlu1 %v10849_v1  ;;  %v2621_v33 = vmul.f32 %v6003_v2, %v7958_v19  ;;  %v3137_v50 = vmul.f32 %v6005_v47, %v7961_v60  ;;  %v8014_v58 = vadd.f32 %v2146_v29, %v2145_v51  ;;  %v8028_v2 = vpop.permute.xlu0 %2417  ;;  %s367_s25 = scalar_lea.vmem %s10476_s9, %s5348_s27 }
 0x22b   : > { %10988 = vst [vmem:[#allocation11_spill] sm:$0xff] %v8004_v8  ;;  %10989 = vst [vmem:[#allocation149_spill] sm:$0xff] %v8007_v54  ;;  %3298 = vperm.xlu1 %5927, %v10983_v7   ;;  %v3428_v9 = vadd.f32 %v3396_v53, %v3170_v39  ;;  %v8019_v18 = vadd.f32 %v1444_v55, %v1443_v30  ;;  %v8025_v5 = vadd.f32 %v7794_v27, %v1427_v38 }
 0x22c   : > { %10990 = vst [vmem:[#allocation150_spill] sm:$0xff] %v8014_v58  ;;  %5960 = vset.pattern.permute.xlu0 %v10852_v10  ;;  %v2366_v47 = vadd.f32 %v2365_v62, %v2364_v21  ;;  %v6009_v29 = vpop.eup %6008  ;;  %v1907_v7 = vmul.f32 %v6717_v37, %v7995_v63  ;;  %v2911_v51 = vadd.f32 %v2879_v3, %v2621_v33  ;;  %v2378_v53 = vrot.slane %v2377_v26, 2  ;;  %v8043_v3 = vld [vmem:[%s10474_s7 + $0x1] ss:$0 sm:$0xff] }
 0x22d   : > { %v3395_v30 = vmul.f32 %v6007_v56, %v7973_v44  ;;  %2457 = vperm.xlu0 %5960, %v8014_v58   ;;  %v6011_v55 = vpop.eup %6010  ;;  %v1908_v38 = vmul.f32 %v6744_v48, %v8004_v8  ;;  %v1976_v39 = vmul.f32 %v6744_v48, %v8007_v54  ;;  %v2558_v21 = vsub.f32 %v8025_v5, %v7968_v13 }
 0x22e   : > { %v2156_v62 = vadd.f32 %v2155_v31, %v2154_v24  ;;  %v6013_v56 = vpop.eup %6012  ;;  %v8046_v33 = vadd.f32 %v7991_v0, %v1204_v14  ;;  %v8050_v63 = vadd.f32 %v7991_v0, %v7932_v11  ;;  %v3169_v54 = vadd.f32 %v3137_v50, %v2911_v51  ;;  %v8060_v24 = vpop.f32.mrf.mxu0 }
 0x22f   : > { %5930 = vset.pattern.permute.xlu1 %v10852_v10  ;;  %v8054_v8 = vadd.f32 %v8043_v3, %v3428_v9  ;;  %v8058_v13 = vadd.f32 %v7991_v0, %v7900_v23  ;;  %v2816_v14 = vsub.f32 %v8025_v5, %v7849_v28  ;;  %v2881_v31 = vmul.f32 %v6009_v29, %v7946_v36  ;;  %v3215_v23 = vpop.permute.xlu1 %3214  ;;  %v8074_v28 = vpop.permute.xlu0 %2507 }
 0x230   : > { %10992 = vst [vmem:[#allocation152_spill] sm:$0xff] %v8046_v33  ;;  %10993 = vst [vmem:[#allocation153_spill] sm:$0xff] %v8050_v63  ;;  %2522 = vperm.xlu1 %5930, %v10996_v41   ;;  %v2367_v11 = vrot.slane %v2366_v47, 1  ;;  %v2161_v52 = vsel %vm1375_vm0, %v1907_v7, 0.0  ;;  %v8068_v50 = vadd.f32 %v7991_v0, %v1214_v15  ;;  %v2379_v9 = vadd.f32 %v2378_v53, %v2377_v26 }
 0x231   : > { %10994 = vst [vmem:[#allocation154_spill] sm:$0xff] %v8054_v8  ;;  %10995 = vst [vmem:[#allocation155_spill] sm:$0xff] %v8058_v13  ;;  %5964 = vset.pattern.permute.xlu0 %v10849_v1  ;;  %v3427_v51 = vadd.f32 %v3395_v30, %v3169_v54  ;;  %v2623_v45 = vmul.f32 %v6011_v55, %v7958_v19  ;;  %v3139_v12 = vmul.f32 %v6013_v56, %v7961_v60  ;;  %v8083_v30 = vpop.f32.mrf.mxu0 }
 0x232   : > { %10997 = vst [vmem:[#allocation105_spill] sm:$0xff] %v8068_v50  ;;  %3250 = vperm.xlu0 %5964, %v8014_v58   ;;  %10998 = vst [vmem:[#allocation156_spill] sm:$0xff] %v8074_v28  ;;  %6016 = vtanh.f32 %v2558_v21  ;;  %v2157_v41 = vrot.slane %v2156_v62, 2  ;;  %v6015_v29 = vpop.eup %6014  ;;  %v1975_v15 = vmul.f32 %v6717_v37, %v8046_v33  ;;  %v1909_v7 = vmul.f32 %v6746_v49, %v8050_v63  ;;  %v10999_v28 = vld [vmem:[#allocation100_spill] sm:$0xff] }
 0x233   : > { %v3074_v54 = vsub.f32 %v8025_v5, %v7890_v42  ;;  %v4168_v26 = vrot.slane %v8054_v8, 7  ;;  %6018 = vtanh.f32 %v2816_v14  ;;  %v2913_v53 = vadd.f32 %v2881_v31, %v2623_v45  ;;  %v11001_v14 = vld [vmem:[#allocation115_spill] sm:$0xff]  ;;  %v904_v8 = vpop.f32.mrf.mxu0 }
 0x234   : > { %v8085_v55 = vadd.f32 %v2367_v11, %v2366_v47  ;;  %5931 = vset.pattern.permute.xlu1 %v10846_v35  ;;  %v3332_v21 = vsub.f32 %v8025_v5, %v3215_v23  ;;  %v1977_v56 = vmul.f32 %v6746_v49, %v8068_v50  ;;  %v2380_v63 = vrot.slane %v2379_v9, 1 }
 0x235   : > { %2718 = vperm.xlu1 %5931, %v10999_v28   ;;  %v8093_v42 = vadd.f32 %v8043_v3, %v3427_v51  ;;  %v3397_v33 = vmul.f32 %v6015_v29, %v7973_v44  ;;  %v11002_v45 = vrot.slane %v11001_v14, 2  ;;  %v2158_v31 = vadd.f32 %v2157_v41, %v2156_v62 }
 0x236   : > { %3318 = vperm.xlu0 %5964, %v8085_v55   ;;  %v3171_v5 = vadd.f32 %v3139_v12, %v2913_v53  ;;  %v2162_v11 = vsel %vm1375_vm0, %v1908_v38, 0.0  ;;  %v8103_v23 = vadd.f32 %v7991_v0, %v8009_v17  ;;  %6020 = vtanh.f32 %v3074_v54 }
 0x237   : > { %11000 = vst [vmem:[#allocation100_spill] sm:$0xff] %v8093_v42  ;;  %v1438_v47 = vadd.f32 %v11002_v45, %v11001_v14  ;;  %v4170_v51 = vsel %vm4169_vm1, %v4168_v26, %v8093_v42  ;;  %v2382_v29 = vsel %vm1375_vm0, %v1975_v15, 0.0  ;;  %v2164_v50 = vsel %vm1375_vm0, %v1909_v7, 0.0  ;;  %v8109_v14 = vpop.permute.xlu0 %2706 }
 0x238   : > { %11003 = vst [vmem:[#allocation115_spill] sm:$0xff] %v8103_v23  ;;  %6022 = vtanh.f32 %v3332_v21  ;;  %v3429_v62 = vadd.f32 %v3397_v33, %v3171_v5  ;;  %v2383_v12 = vsel %vm1375_vm0, %v1976_v39, 0.0  ;;  %v2163_v38 = vadd.f32 %v2162_v11, %v2161_v52  ;;  %v11005_v39 = vld [vmem:[#allocation58_spill] sm:$0xff] }
 0x239   : > { %v1910_v17 = vmul.f32 %v6768_v61, %v8058_v13  ;;  %v8114_v41 = vadd.f32 %v2380_v63, %v2379_v9  ;;  %5934 = vset.pattern.permute.xlu1 %v10849_v1  ;;  %v2385_v54 = vsel %vm1375_vm0, %v1977_v56, 0.0  ;;  %v1439_v15 = vrot.slane %v1438_v47, 1  ;;  %v11006_v52 = vld [vmem:[#allocation10_spill] sm:$0xff]  ;;  %v8136_v56 = vpop.f32.mrf.mxu0 }
 0x23a   : > { %5968 = vset.pattern.permute.xlu0 %v10852_v10  ;;  %3234 = vperm.xlu1 %5934, %v10999_v28   ;;  %v2159_v7 = vrot.slane %v2158_v31, 1  ;;  %v8121_v33 = vadd.f32 %v8043_v3, %v3429_v62  ;;  %v8125_v26 = vmul.f32 %v11006_v52, %v11005_v39  ;;  %v1446_v63 = vsel %vm1375_vm0, %v8000_v59, 0.0 }
 0x23b   : > { %v2384_v9 = vadd.f32 %v2383_v12, %v2382_v29  ;;  %v2165_v53 = vadd.f32 %v2164_v50, %v2163_v38  ;;  %2547 = vperm.xlu0 %5968, %v8114_v41   ;;  %v1978_v21 = vmul.f32 %v6768_v61, %v8103_v23  ;;  %v8134_v28 = vadd.f32 %v7991_v0, %v7985_v16  ;;  %v8152_v38 = vpop.permute.xlu0 %2774  ;;  %v11017_v23 = vld [vmem:[#allocation8_spill] sm:$0xff] }
 0x23c   : > { %11004 = vst [vmem:[#allocation157_spill] sm:$0xff] %v8121_v33  ;;  %v11008_v45 = vrot.slane %v7983_v22, 4  ;;  %v4171_v11 = vrot.slane %v8121_v33, 6  ;;  %v1447_v59 = vadd.f32 %v1446_v63, %v8019_v18  ;;  %v8145_v29 = vadd.f32 %v7991_v0, %v7955_v25  ;;  %11011 = vst [vmem:[#allocation160_spill] sm:$0xff] %v8152_v38  ;;  %v11013_v63 = vld [vmem:[#allocation106_spill] sm:$0xff]  ;;  %v914_v38 = vpop.f32.mrf.mxu0 }
 0x23d   : > { %11007 = vst [vmem:[#allocation10_spill] sm:$0xff] %v8134_v28  ;;  %v2386_v50 = vadd.f32 %v2385_v54, %v2384_v9  ;;  %v2166_v62 = vsel %vm1375_vm0, %v1910_v17, 0.0  ;;  %v8150_v16 = vadd.f32 %v7991_v0, %v8060_v24  ;;  %v1440_v12 = vadd.f32 %v1439_v15, %v1438_v47  ;;  %v11014_v9 = vld [vmem:[#allocation119_spill] sm:$0xff]  ;;  %v11016_v17 = vld [vmem:[#allocation57_spill] sm:$0xff] }
 0x23e   : > { %v2338_v5 = vadd.f32 %v11008_v45, %v7983_v22  ;;  %11009 = vst [vmem:[#allocation158_spill] sm:$0xff] %v8145_v29  ;;  %v8154_v22 = vadd.f32 %v2159_v7, %v2158_v31  ;;  %5937 = vset.pattern.permute.xlu1 %v10852_v10  ;;  %v8157_v18 = vpop.permute.xlu1 %2502  ;;  %v11015_v45 = vld [vmem:[#allocation118_spill] sm:$0xff]  ;;  %v8166_v24 = vmul.f32 %v11017_v23, %v11016_v17  ;;  %v11018_v31 = vld [vmem:[#allocation121_spill] sm:$0xff]  ;;  %v2387_v15 = vsel %vm1375_vm0, %v1978_v21, 0.0 }
 0x23f   : > { %11010 = vst [vmem:[#allocation159_spill] sm:$0xff] %v8150_v16  ;;  %11012 = vst [vmem:[#allocation161_spill] sm:$0xff] %v8157_v18  ;;  %v6017_v54 = vpop.eup %6016  ;;  %v8162_v39 = vadd.f32 %v11015_v45, %v11014_v9  ;;  %v2167_v47 = vadd.f32 %v2166_v62, %v2165_v53  ;;  %5969 = vset.pattern.permute.xlu0 %v10846_v35  ;;  %2442 = vperm.xlu1 %5937, %v11018_v31   ;;  %v1448_v17 = vrot.slane %v1447_v59, 4  ;;  %v11019_v18 = vld [vmem:[#allocation61_spill] sm:$0xff] }
 0x240   : > { %v1911_v7 = vmul.f32 %v6717_v37, %v8134_v28  ;;  %2738 = vperm.xlu0 %5969, %v8154_v22   ;;  %v2339_v25 = vrot.slane %v2338_v5, 2  ;;  %v8175_v9 = vsel %vm4172_vm2, %v4171_v11, %v4170_v51  ;;  %v6019_v45 = vpop.eup %6018  ;;  %v8179_v53 = vmul.f32 %v11006_v52, %v11019_v18  ;;  %v11021_v11 = vld [vmem:[#allocation60_spill] sm:$0xff] }
 0x241   : > { %v2388_v62 = vadd.f32 %v2387_v15, %v2386_v50  ;;  %v1912_v21 = vmul.f32 %v6744_v48, %v8145_v29  ;;  %v1913_v28 = vmul.f32 %v6746_v49, %v8150_v16  ;;  %v8186_v13 = vadd.f32 %v7991_v0, %v904_v8 }
 0x242   : > { %v8189_v33 = vadd.f32 %v7794_v27, %v1440_v12  ;;  %v2624_v51 = vmul.f32 %v6017_v54, %v7958_v19  ;;  %v1271_v46 = vmul.f32 %v11017_v23, %v11021_v11  ;;  %v2168_v18 = vrot.slane %v2167_v47, 4  ;;  %v8204_v54 = vpop.permute.xlu0 %3032 }
 0x243   : > { %11020 = vst [vmem:[#allocation106_spill] sm:$0xff] %v8186_v13  ;;  %v8196_v50 = vadd.f32 %v7991_v0, %v8083_v30  ;;  %v8199_v15 = vadd.f32 %v7991_v0, %v914_v38  ;;  %5940 = vset.pattern.permute.xlu1 %v10875_v43  ;;  %v2703_v8 = vpop.permute.xlu1 %2702  ;;  %v6021_v16 = vpop.eup %6020  ;;  %v2174_v12 = vsel %vm1375_vm0, %v1911_v7, 0.0  ;;  %v2882_v29 = vmul.f32 %v6019_v45, %v7946_v36 }
 0x244   : > { %11024 = vst [vmem:[#allocation8_spill] sm:$0xff] %v8204_v54  ;;  %5970 = vset.pattern.permute.xlu0 %v10875_v43  ;;  %v2817_v11 = vsub.f32 %v8189_v33, %v2703_v8  ;;  %2980 = vperm.xlu1 %5940, %v11018_v31   ;;  %v2340_v30 = vadd.f32 %v2339_v25, %v2338_v5  ;;  %v2389_v58 = vrot.slane %v2388_v62, 4  ;;  %v2175_v34 = vsel %vm1375_vm0, %v1912_v21, 0.0 }
 0x245   : > { %11022 = vst [vmem:[#allocation119_spill] sm:$0xff] %v8196_v50  ;;  %11023 = vst [vmem:[#allocation118_spill] sm:$0xff] %v8199_v15  ;;  %v6023_v32 = vpop.eup %6022  ;;  %v8209_v38 = vadd.f32 %v1448_v17, %v1447_v59  ;;  %v8214_v7 = vadd.f32 %v7991_v0, %v8022_v20  ;;  %2996 = vperm.xlu0 %5970, %v8154_v22   ;;  %v2177_v45 = vsel %vm1375_vm0, %v1913_v28, 0.0 }
 0x246   : > { %v1915_v8 = vmul.f32 %v6717_v37, %v8186_v13  ;;  %v2559_v5 = vsub.f32 %v8189_v33, %v8028_v2  ;;  %v2914_v25 = vadd.f32 %v2882_v29, %v2624_v51  ;;  %v2176_v59 = vadd.f32 %v2175_v34, %v2174_v12 }
 0x247   : > { %11025 = vst [vmem:[#allocation121_spill] sm:$0xff] %v8214_v7  ;;  %v1916_v17 = vmul.f32 %v6744_v48, %v8196_v50  ;;  %v1917_v21 = vmul.f32 %v6746_v49, %v8199_v15  ;;  %v2169_v20 = vadd.f32 %v2168_v18, %v2167_v47  ;;  %v3140_v54 = vmul.f32 %v6021_v16, %v7961_v60  ;;  %v8241_v16 = vpop.permute.xlu0 %2427  ;;  %v11027_v18 = vld [vmem:[#allocation62_spill] sm:$0xff]  ;;  %v11028_v47 = vld [vmem:[#allocation9_spill] sm:$0xff] }
 0x248   : > { %v3398_v42 = vmul.f32 %v6023_v32, %v7973_v44  ;;  %6024 = vtanh.f32 %v2817_v11  ;;  %5941 = vset.pattern.permute.xlu1 %v10849_v1  ;;  %v2961_v37 = vpop.permute.xlu1 %2960  ;;  %v2341_v28 = vrot.slane %v2340_v30, 1  ;;  %v1650_v2 = vsel %vm1375_vm0, %v8125_v26, 0.0  ;;  %v11043_v15 = vld [vmem:[#allocation73_spill] sm:$0xff] }
 0x249   : > { %v1914_v34 = vmul.f32 %v6768_v61, %v8214_v7  ;;  %v2178_v48 = vadd.f32 %v2177_v45, %v2176_v59  ;;  %5971 = vset.pattern.permute.xlu0 %v10849_v1  ;;  %v3075_v49 = vsub.f32 %v8189_v33, %v2961_v37  ;;  %3238 = vperm.xlu1 %5941, %v11018_v31   ;;  %v2187_v32 = vsel %vm1375_vm0, %v1915_v8, 0.0 }
 0x24a   : > { %v8239_v29 = vadd.f32 %v7991_v0, %v8136_v56  ;;  %6026 = vtanh.f32 %v2559_v5  ;;  %3254 = vperm.xlu0 %5971, %v8154_v22   ;;  %v3172_v26 = vadd.f32 %v3140_v54, %v2914_v25  ;;  %v1273_v51 = vmul.f32 %v11028_v47, %v11027_v18  ;;  %v11029_v5 = vld [vmem:[#allocation59_spill] sm:$0xff] }
 0x24b   : > { %v2188_v11 = vsel %vm1375_vm0, %v1916_v17, 0.0  ;;  %6028 = vtanh.f32 %v3075_v49  ;;  %v2170_v12 = vrot.slane %v2169_v20, 2  ;;  %v2190_v31 = vsel %vm1375_vm0, %v1917_v21, 0.0  ;;  %v11037_v18 = vld [vmem:[#allocation71_spill] sm:$0xff] }
 0x24c   : > { %11026 = vst [vmem:[#allocation162_spill] sm:$0xff] %v8239_v29  ;;  %v8248_v45 = vadd.f32 %v2341_v28, %v2340_v30  ;;  %v2390_v8 = vadd.f32 %v2389_v58, %v2388_v62  ;;  %v3430_v0 = vadd.f32 %v3398_v42, %v3172_v26  ;;  %v1649_v56 = vsel %vm1375_vm0, %v8166_v24, 0.0  ;;  %v8270_v28 = vpop.permute.xlu0 %2517 }
 0x24d   : > { %v1333_v59 = vmul.f32 %v11028_v47, %v11029_v5  ;;  %v2179_v54 = vsel %vm1375_vm0, %v1914_v34, 0.0  ;;  %v2189_v25 = vadd.f32 %v2188_v11, %v2187_v32  ;;  %5945 = vset.pattern.permute.xlu1 %v10852_v10  ;;  %v3219_v17 = vpop.permute.xlu1 %3218  ;;  %v1454_v37 = vsel %vm1375_vm0, %v1271_v46, 0.0  ;;  %v11031_v32 = vld [vmem:[#allocation63_spill] sm:$0xff]  ;;  %v11032_v11 = vld [vmem:[#allocation64_spill] sm:$0xff] }
 0x24e   : > { %v2180_v49 = vadd.f32 %v2179_v54, %v2178_v48  ;;  %v1918_v30 = vmul.f32 %v6768_v61, %v8239_v29  ;;  %5972 = vset.pattern.permute.xlu0 %v10846_v35  ;;  %v3333_v58 = vsub.f32 %v8189_v33, %v3219_v17  ;;  %2532 = vperm.xlu1 %5945, %v8248_v45   ;;  %v1455_v42 = vsel %vm1375_vm0, %v8179_v53, 0.0 }
 0x24f   : > { %v2191_v24 = vadd.f32 %v2190_v31, %v2189_v25  ;;  %2806 = vperm.xlu0 %5972, %v8114_v41   ;;  %v2171_v62 = vadd.f32 %v2170_v12, %v2169_v20  ;;  %v8266_v21 = vadd.f32 %v8043_v3, %v3430_v0  ;;  %v1450_v46 = vrot.slane %v8209_v38, 2 }
 0x250   : > { %v1457_v61 = vsel %vm1375_vm0, %v1273_v51, 0.0  ;;  %6030 = vtanh.f32 %v3333_v58  ;;  %v2391_v33 = vrot.slane %v2390_v8, 2  ;;  %v1643_v34 = vrot.slane %v8162_v39, 4 }
 0x251   : > { %11030 = vst [vmem:[#allocation9_spill] sm:$0xff] %v8266_v21  ;;  %v1651_v48 = vadd.f32 %v1650_v2, %v1649_v56  ;;  %v1334_v53 = vmul.f32 %v10987_v57, %v11031_v32  ;;  %v1456_v26 = vadd.f32 %v1455_v42, %v1454_v37  ;;  %v1652_v20 = vsel %vm1375_vm0, %v1333_v59, 0.0  ;;  %v11034_v59 = vld [vmem:[#allocation69_spill] sm:$0xff] }
 0x252   : > { %v1274_v12 = vmul.f32 %v10987_v57, %v11032_v11  ;;  %v2181_v31 = vrot.slane %v2180_v49, 4  ;;  %v2192_v0 = vsel %vm1375_vm0, %v1918_v30, 0.0  ;;  %5946 = vset.pattern.permute.xlu1 %v10846_v35  ;;  %v8280_v51 = vpop.permute.xlu1 %2770  ;;  %v2172_v2 = vrot.slane %v2171_v62, 1  ;;  %v11035_v42 = vld [vmem:[#allocation109_spill] sm:$0xff] }
 0x253   : > { %11033 = vst [vmem:[#allocation163_spill] sm:$0xff] %v8280_v51  ;;  %v1458_v54 = vadd.f32 %v1457_v61, %v1456_v26  ;;  %v2193_v25 = vadd.f32 %v2192_v0, %v2191_v24  ;;  %5973 = vset.pattern.permute.xlu0 %v10875_v43  ;;  %2726 = vperm.xlu1 %5946, %v7832_v4   ;;  %v4174_v56 = vrot.slane %v8266_v21, 5  ;;  %v11036_v0 = vld [vmem:[#allocation70_spill] sm:$0xff]  ;;  %v1654_v32 = vsel %vm1375_vm0, %v1334_v53, 0.0 }
 0x254   : > { %v1275_v17 = vmul.f32 %v11017_v23, %v11034_v59  ;;  %v1451_v37 = vadd.f32 %v1450_v46, %v8209_v38  ;;  %3064 = vperm.xlu0 %5973, %v8114_v41   ;;  %v2392_v30 = vadd.f32 %v2391_v33, %v2390_v8  ;;  %v8291_v24 = vadd.f32 %v1643_v34, %v8162_v39  ;;  %v8299_v46 = vpop.permute.xlu0 %2714 }
 0x255   : > { %v6025_v58 = vpop.eup %6024  ;;  %v1653_v26 = vadd.f32 %v1652_v20, %v1651_v48  ;;  %v1276_v5 = vmul.f32 %v11006_v52, %v11036_v0  ;;  %v1459_v11 = vsel %vm1375_vm0, %v1274_v12, 0.0  ;;  %v1277_v38 = vmul.f32 %v11028_v47, %v11037_v18  ;;  %v11055_v18 = vld [vmem:[#allocation79_spill] sm:$0xff] }
 0x256   : > { %v2182_v8 = vadd.f32 %v2181_v31, %v2180_v49  ;;  %v1460_v51 = vadd.f32 %v1459_v11, %v1458_v54  ;;  %v2194_v61 = vrot.slane %v2193_v25, 4  ;;  %v8301_v29 = vadd.f32 %v2172_v2, %v2171_v62  ;;  %v11040_v11 = vld [vmem:[#allocation49_spill] sm:$0xff]  ;;  %v11041_v2 = vld [vmem:[#allocation67_spill] sm:$0xff] }
 0x257   : > { %v6027_v33 = vpop.eup %6026  ;;  %5947 = vset.pattern.permute.xlu1 %v10875_v43  ;;  %v8304_v39 = vpop.permute.xlu1 %3028  ;;  %v8308_v34 = vsel %vm4175_vm3, %v4174_v56, %v8175_v9  ;;  %v1467_v53 = vsel %vm1375_vm0, %v1275_v17, 0.0  ;;  %v1452_v20 = vrot.slane %v1451_v37, 1  ;;  %v2883_v12 = vmul.f32 %v6025_v58, %v7946_v36 }
 0x258   : > { %11038 = vst [vmem:[#allocation109_spill] sm:$0xff] %v8301_v29  ;;  %11039 = vst [vmem:[#allocation164_spill] sm:$0xff] %v8304_v39  ;;  %v6029_v48 = vpop.eup %6028  ;;  %5975 = vset.pattern.permute.xlu0 %v10852_v10  ;;  %2984 = vperm.xlu1 %5947, %v7832_v4   ;;  %v2393_v49 = vrot.slane %v2392_v30, 1  ;;  %v1655_v62 = vadd.f32 %v1654_v32, %v1653_v26  ;;  %v1336_v31 = vmul.f32 %v11006_v52, %v11040_v11  ;;  %v11042_v32 = vld [vmem:[#allocation66_spill] sm:$0xff]  ;;  %v8327_v50 = vpop.permute.xlu0 %2972 }
 0x259   : > { %v1468_v54 = vsel %vm1375_vm0, %v1276_v5, 0.0  ;;  %v1344_v9 = vmul.f32 %v11006_v52, %v11041_v2  ;;  %2467 = vperm.xlu0 %5975, %v8301_v29   ;;  %v1470_v56 = vsel %vm1375_vm0, %v1277_v38, 0.0  ;;  %v2625_v17 = vmul.f32 %v6027_v33, %v7958_v19 }
 0x25a   : > { %v3141_v58 = vmul.f32 %v6029_v48, %v7961_v60  ;;  %v2183_v0 = vrot.slane %v2182_v8, 2  ;;  %v1461_v4 = vrot.slane %v1460_v51, 4  ;;  %v1469_v39 = vadd.f32 %v1468_v54, %v1467_v53  ;;  %v11045_v54 = vld [vmem:[#allocation68_spill] sm:$0xff] }
 0x25b   : > { %v1343_v26 = vmul.f32 %v11017_v23, %v11042_v32  ;;  %v2195_v11 = vadd.f32 %v2194_v61, %v2193_v25  ;;  %v1278_v5 = vmul.f32 %v10987_v57, %v11043_v15  ;;  %v1453_v13 = vadd.f32 %v1452_v20, %v1451_v37  ;;  %v11046_v61 = vld [vmem:[#allocation81_spill] sm:$0xff]  ;;  %v11056_v32 = vld [vmem:[#allocation78_spill] sm:$0xff] }
 0x25c   : > { %v2915_v2 = vadd.f32 %v2883_v12, %v2625_v17  ;;  %v8329_v7 = vadd.f32 %v2393_v49, %v2392_v30  ;;  %5949 = vset.pattern.permute.xlu1 %v10846_v35  ;;  %v8332_v38 = vpop.permute.xlu1 %3286  ;;  %v1471_v53 = vadd.f32 %v1470_v56, %v1469_v39  ;;  %v1345_v25 = vmul.f32 %v11028_v47, %v11045_v54 }
 0x25d   : > { %11044 = vst [vmem:[#allocation165_spill] sm:$0xff] %v8332_v38  ;;  %v6031_v33 = vpop.eup %6030  ;;  %v11047_v15 = vrot.slane %v11046_v61, 2  ;;  %5981 = vset.pattern.permute.xlu0 %v10875_v43  ;;  %2794 = vperm.xlu1 %5949, %v8248_v45   ;;  %v1656_v30 = vrot.slane %v1655_v62, 4  ;;  %v2184_v12 = vadd.f32 %v2183_v0, %v2182_v8  ;;  %v8345_v39 = vsel %vm1375_vm0, %v1336_v31, 0.0 }
 0x25e   : > { %v3399_v20 = vmul.f32 %v6031_v33, %v7973_v44  ;;  %3068 = vperm.xlu0 %5981, %v8329_v7   ;;  %v3173_v49 = vadd.f32 %v3141_v58, %v2915_v2  ;;  %11048 = vst [vmem:[#allocation81_spill] sm:$0xff] %v8345_v39  ;;  %v8347_v56 = vadd.f32 %v1461_v4, %v1460_v51  ;;  %v1688_v17 = vsel %vm1375_vm0, %v1343_v26, 0.0  ;;  %v8359_v4 = vpop.permute.xlu0 %3230 }
 0x25f   : > { %v1607_v37 = vadd.f32 %v11047_v15, %v11046_v61  ;;  %v2196_v48 = vrot.slane %v2195_v11, 2  ;;  %v1472_v15 = vsel %vm1375_vm0, %v1278_v5, 0.0  ;;  %v11049_v61 = vld [vmem:[#allocation72_spill] sm:$0xff]  ;;  %v8354_v38 = vadd.f32 %v7794_v27, %v1453_v13 }
 0x260   : > { %v1346_v54 = vmul.f32 %v10987_v57, %v11049_v61  ;;  %v3431_v33 = vadd.f32 %v3399_v20, %v3173_v49  ;;  %v1689_v0 = vsel %vm1375_vm0, %v1344_v9, 0.0  ;;  %v1473_v8 = vadd.f32 %v1472_v15, %v1471_v53  ;;  %v11052_v53 = vld [vmem:[#allocation48_spill] sm:$0xff] }
 0x261   : > { %v1691_v31 = vsel %vm1375_vm0, %v1345_v25, 0.0  ;;  %v1608_v2 = vrot.slane %v1607_v37, 1  ;;  %5950 = vset.pattern.permute.xlu1 %v10875_v43  ;;  %v2423_v51 = vpop.permute.xlu1 %2422  ;;  %v1690_v58 = vadd.f32 %v1689_v0, %v1688_v17  ;;  %v2185_v13 = vrot.slane %v2184_v12, 1  ;;  %v11053_v0 = vld [vmem:[#allocation74_spill] sm:$0xff] }
 0x262   : > { %5982 = vset.pattern.permute.xlu0 %v10849_v1  ;;  %v2560_v26 = vsub.f32 %v8354_v38, %v2423_v51  ;;  %3052 = vperm.xlu1 %5950, %v8248_v45   ;;  %v8365_v5 = vadd.f32 %v8043_v3, %v3431_v33  ;;  %v8367_v9 = vadd.f32 %v1656_v30, %v1655_v62  ;;  %v1463_v20 = vrot.slane %v8347_v56, 2  ;;  %v11054_v62 = vld [vmem:[#allocation75_spill] sm:$0xff] }
 0x263   : > { %v1335_v25 = vmul.f32 %v11017_v23, %v11052_v53  ;;  %3326 = vperm.xlu0 %5982, %v8329_v7   ;;  %v2197_v49 = vadd.f32 %v2196_v48, %v2195_v11  ;;  %v1693_v17 = vsel %vm1375_vm0, %v1346_v54, 0.0  ;;  %v1692_v15 = vadd.f32 %v1691_v31, %v1690_v58 }
 0x264   : > { %11050 = vst [vmem:[#allocation166_spill] sm:$0xff] %v8365_v5  ;;  %11051 = vst [vmem:[#allocation167_spill] sm:$0xff] %v8367_v9  ;;  %v1279_v51 = vmul.f32 %v11017_v23, %v11053_v0  ;;  %v2818_v33 = vsub.f32 %v8354_v38, %v8109_v14  ;;  %v1474_v61 = vrot.slane %v1473_v8, 4  ;;  %v1280_v30 = vmul.f32 %v11006_v52, %v11054_v62  ;;  %v11058_v14 = vld [vmem:[#allocation76_spill] sm:$0xff]  ;;  %v11070_v0 = vld [vmem:[#allocation95_spill] sm:$0xff] }
 0x265   : > { %v1348_v53 = vmul.f32 %v11006_v52, %v11055_v18  ;;  %v1609_v59 = vadd.f32 %v1608_v2, %v1607_v37  ;;  %v1347_v11 = vmul.f32 %v11017_v23, %v11056_v32  ;;  %6032 = vtanh.f32 %v2560_v26  ;;  %v8397_v18 = vpop.permute.xlu0 %2437 }
 0x266   : > { %v8384_v48 = vadd.f32 %v2185_v13, %v2184_v12  ;;  %5951 = vset.pattern.permute.xlu1 %v10849_v1  ;;  %v2965_v54 = vpop.permute.xlu1 %2964  ;;  %v4177_v31 = vrot.slane %v8365_v5, 4  ;;  %v1281_v58 = vmul.f32 %v11028_v47, %v11058_v14  ;;  %v2198_v37 = vrot.slane %v2197_v49, 1  ;;  %11060 = vst [vmem:[#allocation169_spill] sm:$0xff] %v8397_v18  ;;  %v11061_v14 = vld [vmem:[#allocation80_spill] sm:$0xff] }
 0x267   : > { %5984 = vset.pattern.permute.xlu0 %v10846_v35  ;;  %v3076_v62 = vsub.f32 %v8354_v38, %v2965_v54  ;;  %3310 = vperm.xlu1 %5951, %v8248_v45   ;;  %v1694_v2 = vadd.f32 %v1693_v17, %v1692_v15  ;;  %v1480_v12 = vsel %vm1375_vm0, %v1279_v51, 0.0  ;;  %v11059_v26 = vrot.slane %v11013_v63, 2 }
 0x268   : > { %11057 = vst [vmem:[#allocation168_spill] sm:$0xff] %v8384_v48  ;;  %6034 = vtanh.f32 %v2818_v33  ;;  %2746 = vperm.xlu0 %5984, %v8384_v48   ;;  %v1349_v32 = vmul.f32 %v11028_v47, %v11061_v14  ;;  %v8403_v54 = vadd.f32 %v7794_v27, %v1609_v59  ;;  %v8407_v45 = vsel %vm4178_vm4, %v4177_v31, %v8308_v34  ;;  %v11063_v59 = vld [vmem:[#allocation101_spill] sm:$0xff] }
 0x269   : > { %v1620_v13 = vadd.f32 %v11059_v26, %v11013_v63  ;;  %6036 = vtanh.f32 %v3076_v62  ;;  %v8410_v17 = vsel %vm1375_vm0, %v1335_v25, 0.0  ;;  %v8412_v63 = vadd.f32 %v1474_v61, %v1473_v8 }
 0x26a   : > { %11062 = vst [vmem:[#allocation170_spill] sm:$0xff] %v8410_v17  ;;  %v1481_v15 = vsel %vm1375_vm0, %v1280_v30, 0.0  ;;  %v1702_v51 = vsel %vm1375_vm0, %v1348_v53, 0.0  ;;  %v1701_v33 = vsel %vm1375_vm0, %v1347_v11, 0.0  ;;  %v1483_v26 = vsel %vm1375_vm0, %v1281_v58, 0.0  ;;  %v11065_v30 = vld [vmem:[#allocation77_spill] sm:$0xff] }
 0x26b   : > { %v2830_v62 = vsub.f32 %v8403_v54, %v11063_v59  ;;  %v8420_v14 = vadd.f32 %v2198_v37, %v2197_v49  ;;  %5952 = vset.pattern.permute.xlu1 %v10852_v10  ;;  %v3223_v34 = vpop.permute.xlu1 %3222  ;;  %v1482_v25 = vadd.f32 %v1481_v15, %v1480_v12  ;;  %v1621_v31 = vrot.slane %v1620_v13, 1  ;;  %v11066_v58 = vld [vmem:[#allocation83_spill] sm:$0xff]  ;;  %v8435_v59 = vpop.permute.xlu0 %2976 }
 0x26c   : > { %v1464_v61 = vadd.f32 %v1463_v20, %v8347_v56  ;;  %5987 = vset.pattern.permute.xlu0 %v10852_v10  ;;  %v3334_v8 = vsub.f32 %v8354_v38, %v3223_v34  ;;  %2452 = vperm.xlu1 %5952, %v7942_v6   ;;  %v1695_v53 = vrot.slane %v1694_v2, 4  ;;  %v1282_v11 = vmul.f32 %v10987_v57, %v11065_v30  ;;  %v11067_v56 = vld [vmem:[#allocation93_spill] sm:$0xff]  ;;  %v11069_v38 = vld [vmem:[#allocation82_spill] sm:$0xff] }
 0x26d   : > { %11064 = vst [vmem:[#allocation101_spill] sm:$0xff] %v8420_v14  ;;  %v1704_v49 = vsel %vm1375_vm0, %v1349_v32, 0.0  ;;  %v2572_v37 = vsub.f32 %v8403_v54, %v11066_v58  ;;  %2477 = vperm.xlu0 %5987, %v8420_v14   ;;  %v1703_v12 = vadd.f32 %v1702_v51, %v1701_v33  ;;  %v1484_v15 = vadd.f32 %v1483_v26, %v1482_v25  ;;  %v11071_v32 = vld [vmem:[#allocation88_spill] sm:$0xff]  ;;  %v11073_v33 = vld [vmem:[#allocation90_spill] sm:$0xff] }
 0x26e   : > { %v1283_v20 = vmul.f32 %v11017_v23, %v11067_v56  ;;  %11068 = vst [vmem:[#allocation83_spill] sm:$0xff] %v8435_v59  ;;  %6038 = vtanh.f32 %v3334_v8  ;;  %v1350_v34 = vmul.f32 %v10987_v57, %v11069_v38  ;;  %v1284_v30 = vmul.f32 %v11006_v52, %v11070_v0  ;;  %v11074_v38 = vld [vmem:[#allocation91_spill] sm:$0xff]  ;;  %v11075_v0 = vld [vmem:[#allocation89_spill] sm:$0xff] }
 0x26f   : > { %v1351_v39 = vmul.f32 %v11017_v23, %v11071_v32  ;;  %6040 = vtanh.f32 %v2830_v62  ;;  %v8443_v58 = vpop.permute.xlu1 %3290  ;;  %v1705_v51 = vadd.f32 %v1704_v49, %v1703_v12  ;;  %v1352_v26 = vmul.f32 %v11006_v52, %v11073_v33 }
 0x270   : > { %11072 = vst [vmem:[#allocation171_spill] sm:$0xff] %v8443_v58  ;;  %v1622_v25 = vadd.f32 %v1621_v31, %v1620_v13  ;;  %v1465_v56 = vrot.slane %v1464_v61, 1  ;;  %5955 = vset.pattern.permute.xlu1 %v10875_v43  ;;  %v1485_v8 = vsel %vm1375_vm0, %v1282_v11, 0.0  ;;  %v1353_v17 = vmul.f32 %v11028_v47, %v11074_v38  ;;  %v11076_v38 = vld [vmem:[#allocation96_spill] sm:$0xff] }
 0x271   : > { %6042 = vtanh.f32 %v2572_v37  ;;  %v3088_v32 = vsub.f32 %v8403_v54, %v11075_v0  ;;  %5989 = vset.pattern.permute.xlu0 %v10875_v43  ;;  %2988 = vperm.xlu1 %5955, %v7942_v6   ;;  %v8456_v49 = vadd.f32 %v1695_v53, %v1694_v2  ;;  %v8458_v13 = vadd.f32 %v1485_v8, %v1484_v15  ;;  %v8469_v8 = vpop.permute.xlu0 %2786 }
 0x272   : > { %v1493_v31 = vsel %vm1375_vm0, %v1283_v20, 0.0  ;;  %3008 = vperm.xlu0 %5989, %v8420_v14   ;;  %v6033_v11 = vpop.eup %6032  ;;  %v1706_v37 = vsel %vm1375_vm0, %v1350_v34, 0.0  ;;  %v1494_v12 = vsel %vm1375_vm0, %v1284_v30, 0.0  ;;  %v1714_v0 = vsel %vm1375_vm0, %v1351_v39, 0.0  ;;  %v11078_v30 = vld [vmem:[#allocation94_spill] sm:$0xff]  ;;  %v11083_v14 = vld [vmem:[#allocation99_spill] sm:$0xff] }
 0x273   : > { %v1285_v6 = vmul.f32 %v11028_v47, %v11076_v38  ;;  %v1707_v58 = vadd.f32 %v1706_v37, %v1705_v51  ;;  %v1715_v2 = vsel %vm1375_vm0, %v1352_v26, 0.0  ;;  %v1812_v53 = vadd.f32 %v7794_v27, %v1622_v25  ;;  %v11079_v25 = vld [vmem:[#allocation102_spill] sm:$0xff] }
 0x274   : > { %v1466_v15 = vadd.f32 %v1465_v56, %v1464_v61  ;;  %v8471_v20 = vpop.permute.xlu1 %2512  ;;  %v1495_v33 = vadd.f32 %v1494_v12, %v1493_v31  ;;  %v1717_v34 = vsel %vm1375_vm0, %v1353_v17, 0.0  ;;  %6044 = vtanh.f32 %v3088_v32  ;;  %v11080_v31 = vld [vmem:[#allocation97_spill] sm:$0xff] }
 0x275   : > { %11077 = vst [vmem:[#allocation89_spill] sm:$0xff] %v8471_v20  ;;  %v6035_v62 = vpop.eup %6034  ;;  %v3346_v39 = vsub.f32 %v8403_v54, %v11078_v30  ;;  %5957 = vset.pattern.permute.xlu1 %v10846_v35  ;;  %v1487_v26 = vrot.slane %v8458_v13, 4  ;;  %v1716_v37 = vadd.f32 %v1715_v2, %v1714_v0  ;;  %v2831_v61 = vsub.f32 %v1812_v53, %v11079_v25  ;;  %v11081_v54 = vld [vmem:[#allocation111_spill] sm:$0xff] }
 0x276   : > { %v6037_v51 = vpop.eup %6036  ;;  %v2626_v56 = vmul.f32 %v6033_v11, %v7958_v19  ;;  %2798 = vperm.xlu1 %5957, %v7904_v40   ;;  %5991 = vset.pattern.permute.xlu0 %v10849_v1  ;;  %v1354_v17 = vmul.f32 %v10987_v57, %v11080_v31  ;;  %v1496_v32 = vsel %vm1375_vm0, %v1285_v6, 0.0  ;;  %v2573_v12 = vsub.f32 %v1812_v53, %v11081_v54  ;;  %v11084_v6 = vld [vmem:[#allocation117_spill] sm:$0xff] }
 0x277   : > { %v11082_v30 = vrot.slane %v11035_v42, 2  ;;  %v1718_v0 = vadd.f32 %v1717_v34, %v1716_v37  ;;  %v2884_v2 = vmul.f32 %v6035_v62, %v7946_v36  ;;  %v8491_v11 = vadd.f32 %v7794_v27, %v1466_v15  ;;  %v11085_v37 = vld [vmem:[#allocation124_spill] sm:$0xff] }
 0x278   : > { %v3142_v25 = vmul.f32 %v6037_v51, %v7961_v60  ;;  %v1708_v38 = vrot.slane %v1707_v58, 4  ;;  %v1286_v31 = vmul.f32 %v10987_v57, %v11083_v14  ;;  %6046 = vtanh.f32 %v3346_v39 }
 0x279   : > { %v1633_v20 = vadd.f32 %v11082_v30, %v11035_v42  ;;  %v3089_v9 = vsub.f32 %v1812_v53, %v11084_v6  ;;  %v2711_v54 = vpop.permute.xlu1 %2710  ;;  %v1497_v5 = vadd.f32 %v1496_v32, %v1495_v33  ;;  %6048 = vtanh.f32 %v2831_v61  ;;  %v8497_v42 = vpop.permute.xlu0 %3044 }
 0x27a   : > { %v2916_v48 = vadd.f32 %v2884_v2, %v2626_v56  ;;  %v2819_v62 = vsub.f32 %v8491_v11, %v2711_v54  ;;  %5958 = vset.pattern.permute.xlu1 %v10875_v43  ;;  %v1719_v34 = vsel %vm1375_vm0, %v1354_v17, 0.0  ;;  %6050 = vtanh.f32 %v2573_v12  ;;  %v11086_v54 = vld [vmem:[#allocation103_spill] sm:$0xff] }
 0x27b   : > { %v6039_v15 = vpop.eup %6038  ;;  %v1634_v51 = vrot.slane %v1633_v20, 1  ;;  %v3347_v30 = vsub.f32 %v1812_v53, %v11085_v37  ;;  %3056 = vperm.xlu1 %5958, %v7904_v40   ;;  %v1720_v6 = vadd.f32 %v1719_v34, %v1718_v0  ;;  %v2561_v33 = vsub.f32 %v8491_v11, %v8241_v16 }
 0x27c   : > { %v6041_v39 = vpop.eup %6040  ;;  %v3400_v61 = vmul.f32 %v6039_v15, %v7973_v44  ;;  %v3174_v56 = vadd.f32 %v3142_v25, %v2916_v48  ;;  %v8507_v32 = vadd.f32 %v1708_v38, %v1707_v58  ;;  %v1498_v2 = vsel %vm1375_vm0, %v1286_v31, 0.0 }
 0x27d   : > { %v1288_v17 = vmul.f32 %v11006_v52, %v11086_v54  ;;  %6052 = vtanh.f32 %v3089_v9  ;;  %v8512_v53 = vadd.f32 %v1498_v2, %v1497_v5  ;;  %v10762_v0 = vlaneseq  ;;  %v8521_v31 = vpop.permute.xlu0 %3302 }
 0x27e   : > { %v6043_v12 = vpop.eup %6042  ;;  %6054 = vtanh.f32 %v2819_v62  ;;  %v2969_v37 = vpop.permute.xlu1 %2968  ;;  %v3432_v34 = vadd.f32 %v3400_v61, %v3174_v56  ;;  %v2896_v16 = vmul.f32 %v6041_v39, %v7946_v36  ;;  %v1635_v14 = vadd.f32 %v1634_v51, %v1633_v20 }
 0x27f   : > { %6056 = vtanh.f32 %v3347_v30  ;;  %v3077_v48 = vsub.f32 %v8491_v11, %v2969_v37  ;;  %5959 = vset.pattern.permute.xlu1 %v10849_v1  ;;  %v1721_v58 = vrot.slane %v1720_v6, 4  ;;  %v11087_v9 = vrot.slane %v8291_v24, 2 }
 0x280   : > { %6058 = vtanh.f32 %v2561_v33  ;;  %3314 = vperm.xlu1 %5959, %v7904_v40   ;;  %v8525_v25 = vadd.f32 %v1487_v26, %v8458_v13  ;;  %v2638_v20 = vmul.f32 %v6043_v12, %v7958_v19  ;;  %v8529_v62 = vadd.f32 %v8043_v3, %v3432_v34  ;;  %v11091_v13 = vld [vmem:[#allocation65_spill] sm:$0xff]  ;;  %v11092_v12 = vld [vmem:[#allocation123_spill] sm:$0xff] }
 0x281   : > { %v1646_v5 = vadd.f32 %v11087_v9, %v8291_v24  ;;  %6060 = vtanh.f32 %v3077_v48  ;;  %v6045_v15 = vpop.eup %6044  ;;  %v1507_v30 = vsel %vm1375_vm0, %v1288_v17, 0.0  ;;  %v11089_v24 = vld [vmem:[#allocation120_spill] sm:$0xff]  ;;  %v8536_v33 = vshrl.u32 %v10762_v0, 7  ;;  %v11093_v9 = vld [vmem:[#allocation127_spill] sm:$0xff] }
 0x282   : > { %11088 = vst [vmem:[#allocation94_spill] sm:$0xff] %v8529_v62  ;;  %v1356_v39 = vmul.f32 %v11006_v52, %v11089_v24  ;;  %v1500_v40 = vrot.slane %v8512_v53, 4  ;;  %v1287_v26 = vmul.f32 %v11017_v23, %v11091_v13  ;;  %v2928_v61 = vadd.f32 %v2896_v16, %v2638_v20  ;;  %v11094_v16 = vld [vmem:[#allocation134_spill] sm:$0xff] }
 0x283   : > { %11090 = vst [vmem:[#allocation102_spill] sm:$0xff] %v8536_v33  ;;  %v8542_v3 = vadd.f32 %v7794_v27, %v1635_v14  ;;  %v3227_v56 = vpop.permute.xlu1 %3226  ;;  %v8544_v2 = vadd.f32 %v1721_v58, %v1720_v6  ;;  %v1355_v17 = vmul.f32 %v11017_v23, %v11092_v12  ;;  %v1647_v37 = vrot.slane %v1646_v5, 1 }
 0x284   : > { %v3335_v34 = vsub.f32 %v8491_v11, %v3227_v56  ;;  %5961 = vset.pattern.permute.xlu1 %v10852_v10  ;;  %v3154_v48 = vmul.f32 %v6045_v15, %v7961_v60  ;;  %v4180_v14 = vrot.slane %v8529_v62, 3  ;;  %v11095_v20 = vrot.slane %v8412_v63, 2  ;;  %v8560_v56 = vpop.permute.xlu0 %2527 }
 0x285   : > { %v2832_v0 = vsub.f32 %v8542_v3, %v11093_v9  ;;  %2542 = vperm.xlu1 %5961, %v8085_v55   ;;  %v6047_v6 = vpop.eup %6046  ;;  %v2574_v58 = vsub.f32 %v8542_v3, %v11094_v16  ;;  %v8563_v15 = vsub.s32 0, %v8536_v33  ;;  %v1728_v51 = vsel %vm1375_vm0, %v1356_v39, 0.0  ;;  %v11098_v33 = vld [vmem:[#allocation100_spill] sm:$0xff] }
 0x286   : > { %v1477_v11 = vadd.f32 %v11095_v20, %v8412_v63  ;;  %6062 = vtanh.f32 %v3335_v34  ;;  %v6049_v9 = vpop.eup %6048  ;;  %v1506_v38 = vsel %vm1375_vm0, %v1287_v26, 0.0  ;;  %v3186_v24 = vadd.f32 %v3154_v48, %v2928_v61  ;;  %v11096_v63 = vld [vmem:[#allocation107_spill] sm:$0xff]  ;;  %v11099_v39 = vld [vmem:[#allocation104_spill] sm:$0xff] }
 0x287   : > { %v8569_v13 = vsel %vm4181_vm5, %v4180_v14, %v8407_v45  ;;  %v6051_v16 = vpop.eup %6050  ;;  %v1727_v12 = vsel %vm1375_vm0, %v1355_v17, 0.0  ;;  %v1290_v20 = vmul.f32 %v10987_v57, %v11096_v63  ;;  %v1648_v34 = vadd.f32 %v1647_v37, %v1646_v5  ;;  %v11100_v45 = vld [vmem:[#allocation144_spill] sm:$0xff]  ;;  %v11101_v14 = vld [vmem:[#allocation150_spill] sm:$0xff] }
 0x288   : > { %v8574_v54 = vpop.permute.xlu1 %2778  ;;  %v8578_v62 = vrot.slane %v11098_v33, %v8563_v15  ;;  %v1289_v26 = vmul.f32 %v11028_v47, %v11099_v39  ;;  %v3412_v61 = vmul.f32 %v6047_v6, %v7973_v44  ;;  %6064 = vtanh.f32 %v2832_v0  ;;  %v11102_v6 = vld [vmem:[#allocation146_spill] sm:$0xff] }
 0x289   : > { %11097 = vst [vmem:[#allocation111_spill] sm:$0xff] %v8574_v54  ;;  %v3090_v48 = vsub.f32 %v8542_v3, %v11100_v45  ;;  %5962 = vset.pattern.permute.xlu1 %v10846_v35  ;;  %v8587_v5 = vadd.f32 %v1500_v40, %v8512_v53  ;;  %6066 = vtanh.f32 %v2574_v58  ;;  %v1478_v33 = vrot.slane %v1477_v11, 1  ;;  %v8600_v40 = vpop.permute.xlu0 %2722  ;;  %v11104_v58 = vld [vmem:[#allocation16_spill] sm:$0xff] }
 0x28a   : > { %v6053_v17 = vpop.eup %6052  ;;  %2734 = vperm.xlu1 %5962, %v11101_v14   ;;  %v2897_v39 = vmul.f32 %v6049_v9, %v7946_v36  ;;  %v2639_v0 = vmul.f32 %v6051_v16, %v7958_v19  ;;  %v3348_v45 = vsub.f32 %v8542_v3, %v11102_v6  ;;  %v3444_v63 = vadd.f32 %v3412_v61, %v3186_v24  ;;  %v11105_v16 = vld [vmem:[#allocation98_spill] sm:$0xff] }
 0x28b   : > { %v6055_v54 = vpop.eup %6054  ;;  %v1508_v18 = vadd.f32 %v1507_v30, %v1506_v38  ;;  %v8595_v21 = vadd.f32 %v1728_v51, %v1727_v12  ;;  %v8598_v53 = vadd.f32 %v7794_v27, %v1648_v34  ;;  %11103 = vst [vmem:[#allocation117_spill] sm:$0xff] %v8600_v40  ;;  %v3625_v37 = vmul.f32 %v8578_v62, %v11104_v58  ;;  %v11107_v12 = vld [vmem:[#allocation137_spill] sm:$0xff] }
 0x28c   : > { %v6057_v59 = vpop.eup %6056  ;;  %v8605_v9 = vsel %vm1375_vm0, %v1290_v20, 0.0  ;;  %v8609_v3 = vmul.f32 %v10987_v57, %v11105_v16  ;;  %v1509_v38 = vsel %vm1375_vm0, %v1289_v26, 0.0  ;;  %6068 = vtanh.f32 %v3090_v48  ;;  %v11108_v58 = vld [vmem:[#allocation17_spill] sm:$0xff]  ;;  %v8625_v48 = vld [vmem:[%s10474_s7 + $0x1] ss:$0 sm:$0xff]  ;;  %v11112_v16 = vld [vmem:[#allocation151_spill] sm:$0xff] }
 0x28d   : > { %v6059_v29 = vpop.eup %6058  ;;  %v8612_v51 = vpop.permute.xlu1 %3036  ;;  %v3155_v24 = vmul.f32 %v6053_v17, %v7961_v60  ;;  %v2575_v34 = vsub.f32 %v8598_v53, %v11107_v12  ;;  %v1479_v61 = vadd.f32 %v1478_v33, %v1477_v11  ;;  %v2885_v6 = vmul.f32 %v6055_v54, %v7946_v36  ;;  %v11111_v12 = vld [vmem:[#allocation147_spill] sm:$0xff] }
 0x28e   : > { %11106 = vst [vmem:[#allocation124_spill] sm:$0xff] %v8612_v51  ;;  %v6061_v30 = vpop.eup %6060  ;;  %5963 = vset.pattern.permute.xlu1 %v10875_v43  ;;  %v2929_v20 = vadd.f32 %v2897_v39, %v2639_v0  ;;  %6070 = vtanh.f32 %v3348_v45  ;;  %v3626_v26 = vmul.f32 %v8578_v62, %v11108_v58  ;;  %v8628_v17 = vadd.f32 %v8625_v48, %v3444_v63  ;;  %v11110_v0 = vld [vmem:[#allocation131_spill] sm:$0xff]  ;;  %v8644_v40 = vpop.permute.xlu0 %2790 }
 0x28f   : > { %2992 = vperm.xlu1 %5963, %v11101_v14   ;;  %v3413_v11 = vmul.f32 %v6057_v59, %v7973_v44  ;;  %v2627_v54 = vmul.f32 %v6059_v29, %v7958_v19  ;;  %v3143_v39 = vmul.f32 %v6061_v30, %v7961_v60  ;;  %v3755_v33 = vsel %vm1375_vm0, %v3625_v37, 0.0 }
 0x290   : > { %11109 = vst [vmem:[#allocation127_spill] sm:$0xff] %v8628_v17  ;;  %v1510_v14 = vadd.f32 %v1509_v38, %v1508_v18  ;;  %v1357_v45 = vmul.f32 %v11028_v47, %v11110_v0  ;;  %v3091_v58 = vsub.f32 %v8598_v53, %v11111_v12  ;;  %v2833_v51 = vsub.f32 %v8598_v53, %v11112_v16  ;;  %v11115_v16 = vld [vmem:[#allocation19_spill] sm:$0xff] }
 0x291   : > { %3756 = vadd.xlane.f32.xlu0 %v3755_v33  ;;  %v11113_v59 = vrot.slane %v8456_v49, 2  ;;  %v1801_v29 = vadd.f32 %v7794_v27, %v1479_v61  ;;  %v2917_v30 = vadd.f32 %v2885_v6, %v2627_v54  ;;  %v3187_v37 = vadd.f32 %v3155_v24, %v2929_v20 }
 0x292   : > { %v8646_v18 = vpop.permute.xlu1 %3294  ;;  %6072 = vtanh.f32 %v2575_v34  ;;  %v3758_v12 = vsel %vm1375_vm0, %v3626_v26, 0.0  ;;  %v3627_v33 = vmul.f32 %v8578_v62, %v11115_v16  ;;  %v1730_v34 = vsel %vm1375_vm0, %v1357_v45, 0.0 }
 0x293   : > { %v1698_v63 = vadd.f32 %v11113_v59, %v8456_v49  ;;  %11114 = vst [vmem:[#allocation134_spill] sm:$0xff] %v8646_v18  ;;  %v6063_v38 = vpop.eup %6062  ;;  %5965 = vset.pattern.permute.xlu1 %v10846_v35  ;;  %v8654_v49 = vrot.slane %v8628_v17, %v8563_v15  ;;  %v2820_v61 = vsub.f32 %v1801_v29, %v8299_v46  ;;  %6074 = vtanh.f32 %v2833_v51  ;;  %v11132_v17 = vld [vmem:[#allocation108_spill] sm:$0xff] }
 0x294   : > { %v3401_v6 = vmul.f32 %v6063_v38, %v7973_v44  ;;  %2802 = vperm.xlu1 %5965, %v8085_v55   ;;  %v3445_v24 = vadd.f32 %v3413_v11, %v3187_v37  ;;  %v3175_v20 = vadd.f32 %v3143_v39, %v2917_v30  ;;  %v3078_v26 = vsub.f32 %v1801_v29, %v8327_v50  ;;  %v11118_v50 = vld [vmem:[#allocation12_spill] sm:$0xff] }
 0x295   : > { %v11116_v54 = vrot.slane %v8507_v32, 2  ;;  %3759 = vadd.xlane.f32.xlu0 %v3758_v12  ;;  %v6065_v16 = vpop.eup %6064  ;;  %6076 = vtanh.f32 %v3091_v58  ;;  %v1699_v0 = vrot.slane %v1698_v63, 1  ;;  %v11117_v46 = vrot.slane %v8544_v2, 2  ;;  %v8675_v58 = vpop.permute.xlu0 %3048 }
 0x296   : > { %v3433_v18 = vadd.f32 %v3401_v6, %v3175_v20  ;;  %v6067_v11 = vpop.eup %6066  ;;  %v3336_v39 = vsub.f32 %v1801_v29, %v8359_v4  ;;  %v3761_v51 = vsel %vm1375_vm0, %v3627_v33, 0.0  ;;  %v3692_v30 = vmul.f32 %v8654_v49, %v11118_v50  ;;  %v11122_v6 = vld [vmem:[#allocation113_spill] sm:$0xff] }
 0x297   : > { %v1711_v59 = vadd.f32 %v11116_v54, %v8507_v32  ;;  %v1724_v38 = vadd.f32 %v11117_v46, %v8544_v2  ;;  %v2433_v45 = vpop.permute.xlu1 %2432  ;;  %v11119_v32 = vld [vmem:[#allocation154_spill] sm:$0xff]  ;;  %6078 = vtanh.f32 %v2820_v61  ;;  %v8679_v2 = vadd.f32 %v8625_v48, %v3445_v24 }
 0x298   : > { %v8673_v37 = vrot.slane %v11119_v32, %v8563_v15  ;;  %v2562_v12 = vsub.f32 %v1801_v29, %v2433_v45  ;;  %5966 = vset.pattern.permute.xlu1 %v10875_v43  ;;  %v8682_v4 = vadd.f32 %v8625_v48, %v3433_v18  ;;  %v1732_v33 = vsel %vm1375_vm0, %v8609_v3, 0.0  ;;  %v11123_v32 = vld [vmem:[#allocation20_spill] sm:$0xff] }
 0x299   : > { %11121 = vst [vmem:[#allocation144_spill] sm:$0xff] %v8679_v2  ;;  %v1292_v20 = vmul.f32 %v11006_v52, %v11122_v6  ;;  %6080 = vtanh.f32 %v3078_v26  ;;  %v1712_v54 = vrot.slane %v1711_v59, 1  ;;  %3762 = vadd.xlane.f32.xlu0 %v3761_v51  ;;  %3060 = vperm.xlu1 %5966, %v8085_v55   ;;  %v6069_v29 = vpop.eup %6068  ;;  %v1512_v61 = vadd.f32 %v8605_v9, %v1510_v14  ;;  %v11125_v14 = vld [vmem:[#allocation84_spill] sm:$0xff] }
 0x29a   : > { %11120 = vst [vmem:[#allocation100_spill] sm:$0xff] %v8673_v37  ;;  %v1731_v24 = vadd.f32 %v1730_v34, %v8595_v21  ;;  %v2898_v46 = vmul.f32 %v6065_v16, %v7946_v36  ;;  %6082 = vtanh.f32 %v2562_v12  ;;  %v2640_v18 = vmul.f32 %v6067_v11, %v7958_v19 }
 0x29b   : > { %v1700_v45 = vadd.f32 %v1699_v0, %v1698_v63  ;;  %6084 = vtanh.f32 %v3336_v39  ;;  %v1725_v3 = vrot.slane %v1724_v38, 1  ;;  %v6071_v50 = vpop.eup %6070  ;;  %v3956_v26 = vsel %vm1375_vm0, %v3692_v30, 0.0  ;;  %v11126_v30 = vld [vmem:[#allocation56_spill] sm:$0xff] }
 0x29c   : > { %v3628_v51 = vmul.f32 %v8673_v37, %v11123_v32  ;;  %v8696_v55 = vpop.permute.xlu1 %2782  ;;  %v8700_v9 = vrot.slane %v8679_v2, %v8563_v15  ;;  %v4183_v21 = vrot.slane %v8682_v4, 2  ;;  %v3349_v34 = vsub.f32 %v8598_v53, %v11125_v14  ;;  %v8713_v32 = vpop.permute.xlu0 %3306 }
 0x29d   : > { %v3156_v0 = vmul.f32 %v6069_v29, %v7961_v60  ;;  %v1713_v63 = vadd.f32 %v1712_v54, %v1711_v59  ;;  %3957 = vadd.xlane.f32.xlu0 %v3956_v26  ;;  %5967 = vset.pattern.permute.xlu1 %v10852_v10  ;;  %v1489_v16 = vrot.slane %v8525_v25, 2  ;;  %v8709_v39 = vadd.f32 %v1732_v33, %v1731_v24  ;;  %v11127_v33 = vld [vmem:[#allocation24_spill] sm:$0xff] }
 0x29e   : > { %11124 = vst [vmem:[#allocation150_spill] sm:$0xff] %v8700_v9  ;;  %v1360_v12 = vmul.f32 %v11006_v52, %v11126_v30  ;;  %2462 = vperm.xlu1 %5967, %v8154_v22   ;;  %v1513_v53 = vrot.slane %v1512_v61, 4  ;;  %v2930_v29 = vadd.f32 %v2898_v46, %v2640_v18  ;;  %v3414_v59 = vmul.f32 %v6071_v50, %v7973_v44 }
 0x29f   : > { %v8718_v54 = vadd.f32 %v7794_v27, %v1700_v45  ;;  %v6073_v26 = vpop.eup %6072  ;;  %v1726_v14 = vadd.f32 %v1725_v3, %v1724_v38  ;;  %v3764_v11 = vsel %vm1375_vm0, %v3628_v51, 0.0  ;;  %v3696_v24 = vmul.f32 %v8700_v9, %v11127_v33 }
 0x2a0   : > { %v8725_v6 = vsel %vm4184_vm6, %v4183_v21, %v8569_v13  ;;  %v8728_v22 = vsel %vm1375_vm0, %v1292_v20, 0.0  ;;  %6086 = vtanh.f32 %v3349_v34  ;;  %v8731_v46 = vadd.f32 %v7794_v27, %v1713_v63  ;;  %v6075_v45 = vpop.eup %6074  ;;  %v11128_v20 = vld [vmem:[#allocation157_spill] sm:$0xff]  ;;  %v11130_v34 = vld [vmem:[#allocation112_spill] sm:$0xff]  ;;  %v8760_v3 = vpop.permute.xlu0 %2447 }
 0x2a1   : > { %3765 = vadd.xlane.f32.xlu0 %v3764_v11  ;;  %v8733_v18 = vpop.permute.xlu1 %3040  ;;  %v3188_v38 = vadd.f32 %v3156_v0, %v2930_v29  ;;  %v8737_v50 = vsel %vm1375_vm0, %v1360_v12, 0.0  ;;  %v2579_v13 = vsub.f32 %v8718_v54, %v8270_v28  ;;  %v8744_v51 = vrot.slane %v11128_v20, %v8563_v15  ;;  %v11131_v11 = vld [vmem:[#allocation26_spill] sm:$0xff] }
 0x2a2   : > { %5974 = vset.pattern.permute.xlu1 %v10849_v1  ;;  %v6077_v21 = vpop.eup %6076  ;;  %v8748_v63 = vmul.f32 %v11017_v23, %v11130_v34  ;;  %v2838_v0 = vsub.f32 %v8731_v46, %v8469_v8  ;;  %v3698_v12 = vmul.f32 %v8700_v9, %v11131_v11  ;;  %v8755_v29 = vadd.f32 %v1513_v53, %v1512_v61  ;;  %v11155_v34 = vld [vmem:[#allocation125_spill] sm:$0xff] }
 0x2a3   : > { %11129 = vst [vmem:[#allocation146_spill] sm:$0xff] %v8744_v51  ;;  %3322 = vperm.xlu1 %5974, %v8114_v41   ;;  %v3446_v28 = vadd.f32 %v3414_v59, %v3188_v38  ;;  %v3096_v33 = vsub.f32 %v8731_v46, %v8497_v42  ;;  %v1820_v20 = vadd.f32 %v7794_v27, %v1726_v14  ;;  %v3968_v30 = vsel %vm1375_vm0, %v3696_v24, 0.0  ;;  %v11133_v38 = vld [vmem:[#allocation27_spill] sm:$0xff] }
 0x2a4   : > { %v6079_v2 = vpop.eup %6078  ;;  %v8765_v8 = vmul.f32 %v11017_v23, %v11132_v17  ;;  %v2641_v41 = vmul.f32 %v6073_v26, %v7958_v19  ;;  %v2899_v59 = vmul.f32 %v6075_v45, %v7946_v36  ;;  %v3354_v61 = vsub.f32 %v8731_v46, %v8521_v31 }
 0x2a5   : > { %3969 = vadd.xlane.f32.xlu0 %v3968_v30  ;;  %6088 = vtanh.f32 %v2579_v13  ;;  %v8772_v53 = vadd.f32 %v1489_v16, %v8525_v25  ;;  %v2581_v14 = vsub.f32 %v1820_v20, %v8560_v56  ;;  %v3632_v11 = vmul.f32 %v8744_v51, %v11133_v38  ;;  %v11137_v38 = vld [vmem:[#allocation122_spill] sm:$0xff] }
 0x2a6   : > { %v6081_v42 = vpop.eup %6080  ;;  %v8775_v24 = vpop.permute.xlu1 %3298  ;;  %6090 = vtanh.f32 %v2838_v0  ;;  %v2839_v26 = vsub.f32 %v1820_v20, %v8644_v40  ;;  %v3974_v45 = vsel %vm1375_vm0, %v3698_v12, 0.0  ;;  %v8783_v31 = vadd.f32 %v8625_v48, %v3446_v28  ;;  %v11135_v0 = vld [vmem:[#allocation30_spill] sm:$0xff] }
 0x2a7   : > { %v6083_v17 = vpop.eup %6082  ;;  %5976 = vset.pattern.permute.xlu1 %v10852_v10  ;;  %v2886_v16 = vmul.f32 %v6079_v2, %v7946_v36  ;;  %6092 = vtanh.f32 %v3096_v33  ;;  %v3097_v56 = vsub.f32 %v1820_v20, %v8675_v58  ;;  %v2931_v13 = vadd.f32 %v2899_v59, %v2641_v41  ;;  %v8794_v2 = vpop.permute.xlu0 %3242 }
 0x2a8   : > { %11134 = vst [vmem:[#allocation16_spill] sm:$0xff] %v8783_v31  ;;  %v6085_v25 = vpop.eup %6084  ;;  %v2628_v30 = vmul.f32 %v6083_v17, %v7958_v19  ;;  %2552 = vperm.xlu1 %5976, %v8329_v7   ;;  %6094 = vtanh.f32 %v3354_v61  ;;  %v2837_v40 = vsub.f32 %v8718_v54, %v8696_v55  ;;  %v3634_v12 = vmul.f32 %v8744_v51, %v11135_v0 }
 0x2a9   : > { %3975 = vadd.xlane.f32.xlu0 %v3974_v45  ;;  %v3144_v28 = vmul.f32 %v6081_v42, %v7961_v60  ;;  %6096 = vtanh.f32 %v2581_v14  ;;  %v3776_v58 = vsel %vm1375_vm0, %v3632_v11, 0.0  ;;  %v3402_v17 = vmul.f32 %v6085_v25, %v7973_v44  ;;  %v11139_v45 = vld [vmem:[#allocation109_spill] sm:$0xff] }
 0x2aa   : > { %v2918_v33 = vadd.f32 %v2886_v16, %v2628_v30  ;;  %6098 = vtanh.f32 %v2839_v26  ;;  %v3355_v41 = vsub.f32 %v1820_v20, %v8713_v32  ;;  %v8801_v55 = vrot.slane %v8783_v31, %v8563_v15  ;;  %v11141_v30 = vld [vmem:[#allocation114_spill] sm:$0xff] }
 0x2ab   : > { %v2523_v59 = vpop.permute.xlu1 %2522  ;;  %6100 = vtanh.f32 %v3097_v56  ;;  %v3095_v61 = vsub.f32 %v8718_v54, %v8733_v18  ;;  %v1294_v11 = vmul.f32 %v10987_v57, %v11137_v38  ;;  %v3157_v26 = vmul.f32 %v6077_v21, %v7961_v60 }
 0x2ac   : > { %11136 = vst [vmem:[#allocation137_spill] sm:$0xff] %v8801_v55  ;;  %v2580_v42 = vsub.f32 %v8731_v46, %v2523_v59  ;;  %5977 = vset.pattern.permute.xlu1 %v10846_v35  ;;  %v3176_v14 = vadd.f32 %v3144_v28, %v2918_v33  ;;  %v11138_v32 = vrot.slane %v8587_v5, 2  ;;  %6102 = vtanh.f32 %v2837_v40  ;;  %v8826_v28 = vpop.permute.xlu0 %2537 }
 0x2ad   : > { %3777 = vadd.xlane.f32.xlu0 %v3776_v58  ;;  %2742 = vperm.xlu1 %5977, %v11139_v45   ;;  %v6087_v25 = vpop.eup %6086  ;;  %v1491_v18 = vrot.slane %v8772_v53, 1  ;;  %v3353_v46 = vsub.f32 %v8718_v54, %v8775_v24  ;;  %v11140_v56 = vrot.slane %v8709_v39, 4  ;;  %v3189_v40 = vadd.f32 %v3157_v26, %v2931_v13  ;;  %v11142_v24 = vld [vmem:[#allocation33_spill] sm:$0xff] }
 0x2ae   : > { %v1503_v20 = vadd.f32 %v11138_v32, %v8587_v5  ;;  %6104 = vtanh.f32 %v2580_v42  ;;  %v3434_v16 = vadd.f32 %v3402_v17, %v3176_v14  ;;  %v1293_v5 = vmul.f32 %v11028_v47, %v11141_v30  ;;  %v11144_v14 = vld [vmem:[#allocation116_spill] sm:$0xff] }
 0x2af   : > { %v8820_v21 = vadd.f32 %v11140_v56, %v8709_v39  ;;  %6106 = vtanh.f32 %v3355_v41  ;;  %v1519_v0 = vsel %vm1375_vm0, %v8748_v63, 0.0  ;;  %v3782_v54 = vsel %vm1375_vm0, %v3634_v12, 0.0  ;;  %v11143_v12 = vld [vmem:[#allocation110_spill] sm:$0xff]  ;;  %v11148_v30 = vld [vmem:[#allocation128_spill] sm:$0xff] }
 0x2b0   : > { %6108 = vtanh.f32 %v3095_v61  ;;  %v3701_v33 = vmul.f32 %v8801_v55, %v11142_v24  ;;  %v8831_v58 = vpop.permute.xlu1 %2718  ;;  %v1515_v39 = vrot.slane %v8755_v29, 2  ;;  %v3415_v17 = vmul.f32 %v6087_v25, %v7973_v44  ;;  %v11145_v25 = vld [vmem:[#allocation9_spill] sm:$0xff] }
 0x2b1   : > { %v1504_v59 = vrot.slane %v1503_v20, 1  ;;  %3783 = vadd.xlane.f32.xlu0 %v3782_v54  ;;  %5978 = vset.pattern.permute.xlu1 %v10875_v43  ;;  %v8837_v63 = vadd.f32 %v8625_v48, %v3434_v16  ;;  %v1740_v13 = vsel %vm1375_vm0, %v8765_v8, 0.0  ;;  %v1361_v41 = vmul.f32 %v11028_v47, %v11143_v12  ;;  %v11149_v54 = vld [vmem:[#allocation41_spill] sm:$0xff] }
 0x2b2   : > { %v1492_v61 = vadd.f32 %v1491_v18, %v8772_v53  ;;  %6110 = vtanh.f32 %v3353_v46  ;;  %3000 = vperm.xlu1 %5978, %v11139_v45   ;;  %v8845_v42 = vpop.eup %6088  ;;  %v1362_v26 = vmul.f32 %v10987_v57, %v11144_v14  ;;  %v1522_v32 = vsel %vm1375_vm0, %v1293_v5, 0.0  ;;  %v11147_v46 = vld [vmem:[#allocation34_spill] sm:$0xff] }
 0x2b3   : > { %v8852_v16 = vrot.slane %v11145_v25, %v8563_v15  ;;  %v3447_v8 = vadd.f32 %v3415_v17, %v3189_v40  ;;  %v6091_v56 = vpop.eup %6090  ;;  %v1521_v53 = vadd.f32 %v8728_v22, %v1519_v0  ;;  %v3983_v18 = vsel %vm1375_vm0, %v3701_v33, 0.0 }
 0x2b4   : > { %v3702_v24 = vmul.f32 %v8801_v55, %v11147_v46  ;;  %v6093_v12 = vpop.eup %6092  ;;  %v1296_v14 = vmul.f32 %v11006_v52, %v11148_v30  ;;  %v1505_v5 = vadd.f32 %v1504_v59, %v1503_v20  ;;  %v4186_v40 = vrot.slane %v8837_v63, 1  ;;  %v8869_v46 = vpop.permute.xlu0 %2730  ;;  %v11152_v30 = vld [vmem:[#allocation42_spill] sm:$0xff] }
 0x2b5   : > { %11146 = vst [vmem:[#allocation17_spill] sm:$0xff] %v8852_v16  ;;  %3984 = vadd.xlane.f32.xlu0 %v3983_v18  ;;  %v8861_v31 = vpop.permute.xlu1 %3234  ;;  %v6095_v17 = vpop.eup %6094  ;;  %v1742_v25 = vadd.f32 %v8737_v50, %v1740_v13  ;;  %v1523_v22 = vadd.f32 %v1522_v32, %v1521_v53  ;;  %v1743_v0 = vsel %vm1375_vm0, %v1361_v41, 0.0  ;;  %v8867_v33 = vadd.f32 %v7794_v27, %v1492_v61  ;;  %v11151_v61 = vld [vmem:[#allocation169_spill] sm:$0xff] }
 0x2b6   : > { %5979 = vset.pattern.permute.xlu1 %v10849_v1  ;;  %v6097_v20 = vpop.eup %6096  ;;  %v1524_v59 = vsel %vm1375_vm0, %v1294_v11, 0.0  ;;  %v8874_v18 = vsel %vm1375_vm0, %v1362_v26, 0.0  ;;  %v3637_v50 = vmul.f32 %v8852_v16, %v11149_v54  ;;  %v8880_v13 = vadd.f32 %v8625_v48, %v3447_v8  ;;  %v11154_v8 = vld [vmem:[#allocation129_spill] sm:$0xff] }
 0x2b7   : > { %3258 = vperm.xlu1 %5979, %v11139_v45   ;;  %v6099_v41 = vpop.eup %6098  ;;  %v2563_v32 = vsub.f32 %v8867_v33, %v11151_v61  ;;  %v3986_v53 = vsel %vm1375_vm0, %v3702_v24, 0.0  ;;  %v3638_v11 = vmul.f32 %v8852_v16, %v11152_v30  ;;  %v8889_v26 = vsel %vm4187_vm7, %v4186_v40, %v8725_v6 }
 0x2b8   : > { %11150 = vst [vmem:[#allocation147_spill] sm:$0xff] %v8880_v13  ;;  %11153 = vst [vmem:[#allocation151_spill] sm:$0xff] %v8889_v26  ;;  %v6101_v45 = vpop.eup %6100  ;;  %v8891_v55 = vadd.f32 %v1743_v0, %v1742_v25  ;;  %v8894_v54 = vsel %vm1375_vm0, %v1296_v14, 0.0  ;;  %v8898_v38 = vmul.f32 %v11006_v52, %v11154_v8  ;;  %v8901_v61 = vadd.f32 %v7794_v27, %v1505_v5  ;;  %v11157_v26 = vld [vmem:[#allocation117_spill] sm:$0xff] }
 0x2b9   : > { %3987 = vadd.xlane.f32.xlu0 %v3986_v53  ;;  %v6103_v24 = vpop.eup %6102  ;;  %v8903_v30 = vadd.f32 %v1524_v59, %v1523_v22  ;;  %v1295_v6 = vmul.f32 %v11017_v23, %v11155_v34  ;;  %v8908_v40 = vadd.f32 %v1515_v39, %v8755_v29  ;;  %v2821_v14 = vsub.f32 %v8867_v33, %v8831_v58  ;;  %v8921_v39 = vpop.permute.xlu0 %3246 }
 0x2ba   : > { %v2443_v25 = vpop.permute.xlu1 %2442  ;;  %v2905_v8 = vmul.f32 %v6099_v41, %v7946_v36  ;;  %v3791_v5 = vsel %vm1375_vm0, %v3637_v50, 0.0  ;;  %v8918_v22 = vrot.slane %v8880_v13, %v8563_v15  ;;  %6112 = vtanh.f32 %v2563_v32 }
 0x2bb   : > { %v6105_v0 = vpop.eup %6104  ;;  %v2564_v53 = vsub.f32 %v8901_v61, %v2443_v25  ;;  %5980 = vset.pattern.permute.xlu1 %v10846_v35  ;;  %v2904_v29 = vmul.f32 %v6091_v56, %v7946_v36  ;;  %v3794_v41 = vsel %vm1375_vm0, %v3638_v11, 0.0  ;;  %v2647_v25 = vmul.f32 %v6097_v20, %v7958_v19 }
 0x2bc   : > { %11156 = vst [vmem:[#allocation19_spill] sm:$0xff] %v8918_v22  ;;  %v6107_v59 = vpop.eup %6106  ;;  %v2646_v58 = vmul.f32 %v6105_v0, %v7958_v19  ;;  %2810 = vperm.xlu1 %5980, %v8329_v7   ;;  %v2822_v34 = vsub.f32 %v8901_v61, %v11157_v26  ;;  %v3163_v13 = vmul.f32 %v6101_v45, %v7961_v60  ;;  %6114 = vtanh.f32 %v2821_v14  ;;  %v11158_v0 = vld [vmem:[#allocation43_spill] sm:$0xff] }
 0x2bd   : > { %v6109_v50 = vpop.eup %6108  ;;  %v2903_v32 = vmul.f32 %v6103_v24, %v7946_v36  ;;  %3792 = vadd.xlane.f32.xlu0 %v3791_v5  ;;  %v3162_v56 = vmul.f32 %v6093_v12, %v7961_v60  ;;  %v3639_v11 = vmul.f32 %v8852_v16, %v11158_v0  ;;  %v2645_v7 = vmul.f32 %v8845_v42, %v7958_v19  ;;  %v11159_v5 = vld [vmem:[#allocation83_spill] sm:$0xff]  ;;  %v11160_v42 = vld [vmem:[#allocation168_spill] sm:$0xff] }
 0x2be   : > { %v2936_v51 = vadd.f32 %v2904_v29, %v2646_v58  ;;  %v2937_v20 = vadd.f32 %v2905_v8, %v2647_v25  ;;  %v3421_v37 = vmul.f32 %v6107_v59, %v7973_v44  ;;  %6116 = vtanh.f32 %v2564_v53  ;;  %v8944_v53 = vpop.permute.xlu0 %2457  ;;  %v11181_v16 = vld [vmem:[#allocation52_spill] sm:$0xff] }
 0x2bf   : > { %v6111_v9 = vpop.eup %6110  ;;  %v2981_v26 = vpop.permute.xlu1 %2980  ;;  %v3420_v45 = vmul.f32 %v6095_v17, %v7973_v44  ;;  %v3161_v24 = vmul.f32 %v6109_v50, %v7961_v60  ;;  %v3079_v29 = vsub.f32 %v8867_v33, %v11159_v5  ;;  %6118 = vtanh.f32 %v2822_v34 }
 0x2c0   : > { %v3080_v12 = vsub.f32 %v8901_v61, %v2981_v26  ;;  %5983 = vset.pattern.permute.xlu1 %v10852_v10  ;;  %v3194_v14 = vadd.f32 %v3162_v56, %v2936_v51  ;;  %v2935_v58 = vadd.f32 %v2903_v32, %v2645_v7  ;;  %v3195_v8 = vadd.f32 %v3163_v13, %v2937_v20  ;;  %v11161_v51 = vld [vmem:[#allocation130_spill] sm:$0xff]  ;;  %v11162_v13 = vld [vmem:[#allocation37_spill] sm:$0xff] }
 0x2c1   : > { %3795 = vadd.xlane.f32.xlu0 %v3794_v41  ;;  %2472 = vperm.xlu1 %5983, %v11160_v42   ;;  %v3419_v17 = vmul.f32 %v6111_v9, %v7973_v44  ;;  %v3337_v59 = vsub.f32 %v8867_v33, %v8861_v31  ;;  %v1532_v10 = vsel %vm1375_vm0, %v1295_v6, 0.0  ;;  %v1297_v25 = vmul.f32 %v11028_v47, %v11161_v51 }
 0x2c2   : > { %6120 = vtanh.f32 %v3080_v12  ;;  %v3452_v50 = vadd.f32 %v3420_v45, %v3194_v14  ;;  %v1517_v34 = vrot.slane %v8908_v40, 1  ;;  %v3453_v41 = vadd.f32 %v3421_v37, %v3195_v8  ;;  %v11165_v12 = vld [vmem:[#allocation166_spill] sm:$0xff] }
 0x2c3   : > { %v3797_v32 = vsel %vm1375_vm0, %v3639_v11, 0.0  ;;  %v3705_v56 = vmul.f32 %v8918_v22, %v11162_v13  ;;  %v3193_v9 = vadd.f32 %v3161_v24, %v2935_v58  ;;  %v1526_v31 = vrot.slane %v8903_v30, 4  ;;  %v11163_v11 = vld [vmem:[#allocation126_spill] sm:$0xff]  ;;  %v11167_v58 = vld [vmem:[#allocation167_spill] sm:$0xff] }
 0x2c4   : > { %v3239_v0 = vpop.permute.xlu1 %3238  ;;  %v8957_v7 = vadd.f32 %v8625_v48, %v3452_v50  ;;  %v1746_v33 = vadd.f32 %v8874_v18, %v8891_v55  ;;  %6122 = vtanh.f32 %v3079_v29  ;;  %v1534_v37 = vadd.f32 %v8894_v54, %v1532_v10  ;;  %v8973_v18 = vpop.permute.xlu0 %3250  ;;  %v11164_v54 = vld [vmem:[#allocation38_spill] sm:$0xff]  ;;  %v11171_v10 = vld [vmem:[#allocation133_spill] sm:$0xff] }
 0x2c5   : > { %3798 = vadd.xlane.f32.xlu0 %v3797_v32  ;;  %v3338_v6 = vsub.f32 %v8901_v61, %v3239_v0  ;;  %5985 = vset.pattern.permute.xlu1 %v10875_v43  ;;  %v1363_v20 = vmul.f32 %v11017_v23, %v11163_v11  ;;  %6124 = vtanh.f32 %v3337_v59  ;;  %v3451_v26 = vadd.f32 %v3419_v17, %v3193_v9  ;;  %v11168_v8 = vld [vmem:[#allocation170_spill] sm:$0xff]  ;;  %v11169_v17 = vld [vmem:[#allocation81_spill] sm:$0xff] }
 0x2c6   : > { %3004 = vperm.xlu1 %5985, %v11160_v42   ;;  %v1535_v45 = vsel %vm1375_vm0, %v1297_v25, 0.0  ;;  %v1518_v24 = vadd.f32 %v1517_v34, %v8908_v40  ;;  %v8971_v55 = vadd.f32 %v8625_v48, %v3453_v41  ;;  %v3995_v43 = vsel %vm1375_vm0, %v3705_v56, 0.0 }
 0x2c7   : > { %6126 = vtanh.f32 %v3338_v6  ;;  %v3706_v61 = vmul.f32 %v8918_v22, %v11164_v54  ;;  %v8980_v14 = vrot.slane %v11165_v12, %v8563_v15  ;;  %v4217_v5 = vrot.slane %v8957_v7, 7  ;;  %v6113_v29 = vpop.eup %6112  ;;  %v11173_v54 = vld [vmem:[#allocation132_spill] sm:$0xff] }
 0x2c8   : > { %v8986_v59 = vadd.f32 %v11169_v17, %v11168_v8  ;;  %v1747_v50 = vrot.slane %v1746_v33, 4  ;;  %v1298_v25 = vmul.f32 %v10987_v57, %v11171_v10  ;;  %v1754_v41 = vsel %vm1375_vm0, %v8898_v38, 0.0  ;;  %v11175_v17 = vld [vmem:[#allocation135_spill] sm:$0xff] }
 0x2c9   : > { %11166 = vst [vmem:[#allocation12_spill] sm:$0xff] %v8980_v14  ;;  %3996 = vadd.xlane.f32.xlu0 %v3995_v43  ;;  %v8990_v34 = vpop.permute.xlu1 %2532  ;;  %v1536_v32 = vadd.f32 %v1535_v45, %v1534_v37  ;;  %v11172_v13 = vrot.slane %v8820_v21, 2  ;;  %v8999_v0 = vadd.f32 %v8625_v48, %v3451_v26  ;;  %v6115_v9 = vpop.eup %6114  ;;  %v9002_v6 = vadd.f32 %v1526_v31, %v8903_v30  ;;  %v11174_v26 = vld [vmem:[#allocation45_spill] sm:$0xff] }
 0x2ca   : > { %11170 = vst [vmem:[#allocation154_spill] sm:$0xff] %v8986_v59  ;;  %5986 = vset.pattern.permute.xlu1 %v10849_v1  ;;  %v1753_v43 = vsel %vm1375_vm0, %v1363_v20, 0.0  ;;  %v1365_v12 = vmul.f32 %v11028_v47, %v11173_v54  ;;  %v4219_v38 = vrot.slane %v8971_v55, 6  ;;  %v3998_v45 = vsel %vm1375_vm0, %v3706_v61, 0.0  ;;  %v11180_v59 = vld [vmem:[#allocation136_spill] sm:$0xff] }
 0x2cb   : > { %v1737_v56 = vadd.f32 %v11172_v13, %v8820_v21  ;;  %3262 = vperm.xlu1 %5986, %v11160_v42   ;;  %v6117_v37 = vpop.eup %6116  ;;  %v1804_v21 = vadd.f32 %v7794_v27, %v1518_v24  ;;  %v3641_v8 = vmul.f32 %v8980_v14, %v11174_v26  ;;  %v4218_v30 = vsel %vm4169_vm1, %v4217_v5, %v8999_v0  ;;  %v9024_v26 = vpop.permute.xlu0 %3318 }
 0x2cc   : > { %v9015_v31 = vadd.f32 %v1747_v50, %v1746_v33  ;;  %v1537_v20 = vsel %vm1375_vm0, %v1298_v25, 0.0  ;;  %v1366_v42 = vmul.f32 %v10987_v57, %v11175_v17  ;;  %v9021_v13 = vsel %vm4172_vm2, %v4219_v38, %v4218_v30  ;;  %v6119_v24 = vpop.eup %6118  ;;  %v11178_v30 = vld [vmem:[#allocation94_spill] sm:$0xff] }
 0x2cd   : > { %3999 = vadd.xlane.f32.xlu0 %v3998_v45  ;;  %v1755_v40 = vadd.f32 %v1754_v41, %v1753_v43  ;;  %v1538_v61 = vadd.f32 %v1537_v20, %v1536_v32  ;;  %v2565_v54 = vsub.f32 %v1804_v21, %v8760_v3  ;;  %v1738_v51 = vrot.slane %v1737_v56, 1  ;;  %v11176_v32 = vld [vmem:[#allocation47_spill] sm:$0xff]  ;;  %v11177_v43 = vld [vmem:[#allocation101_spill] sm:$0xff] }
 0x2ce   : > { %v2727_v5 = vpop.permute.xlu1 %2726  ;;  %v1756_v50 = vsel %vm1375_vm0, %v1365_v12, 0.0  ;;  %v2887_v25 = vmul.f32 %v6115_v9, %v7946_v36  ;;  %v2630_v17 = vmul.f32 %v6117_v37, %v7958_v19  ;;  %v2629_v38 = vmul.f32 %v6113_v29, %v7958_v19 }
 0x2cf   : > { %v6121_v33 = vpop.eup %6120  ;;  %v2823_v45 = vsub.f32 %v1804_v21, %v2727_v5  ;;  %5988 = vset.pattern.permute.xlu1 %v10846_v35  ;;  %v3803_v41 = vsel %vm1375_vm0, %v3641_v8, 0.0  ;;  %v3643_v3 = vmul.f32 %v8980_v14, %v11176_v32  ;;  %v9037_v20 = vrot.slane %v11178_v30, %v8563_v15 }
 0x2d0   : > { %2750 = vperm.xlu1 %5988, %v11177_v43   ;;  %v2888_v9 = vmul.f32 %v6119_v24, %v7946_v36  ;;  %v3339_v12 = vsub.f32 %v1804_v21, %v8794_v2  ;;  %v3146_v37 = vmul.f32 %v6121_v33, %v7961_v60  ;;  %v1528_v29 = vrot.slane %v9002_v6, 2  ;;  %v9046_v33 = vpop.permute.xlu0 %2547 }
 0x2d1   : > { %11179 = vst [vmem:[#allocation20_spill] sm:$0xff] %v9037_v20  ;;  %3804 = vadd.xlane.f32.xlu0 %v3803_v41  ;;  %6128 = vtanh.f32 %v2823_v45  ;;  %v6123_v35 = vpop.eup %6122  ;;  %v1757_v8 = vadd.f32 %v1756_v50, %v1755_v40  ;;  %v1739_v5 = vadd.f32 %v1738_v51, %v1737_v56  ;;  %v1758_v11 = vsel %vm1375_vm0, %v1366_v42, 0.0  ;;  %v11182_v42 = vld [vmem:[#allocation139_spill] sm:$0xff] }
 0x2d2   : > { %6130 = vtanh.f32 %v2565_v54  ;;  %v6125_v32 = vpop.eup %6124  ;;  %v1300_v30 = vmul.f32 %v11006_v52, %v11180_v59  ;;  %v2919_v14 = vadd.f32 %v2887_v25, %v2629_v38  ;;  %v2920_v24 = vadd.f32 %v2888_v9, %v2630_v17  ;;  %v11185_v9 = vld [vmem:[#allocation55_spill] sm:$0xff] }
 0x2d3   : > { %v2985_v22 = vpop.permute.xlu1 %2984  ;;  %v1539_v10 = vrot.slane %v1538_v61, 4  ;;  %v3809_v45 = vsel %vm1375_vm0, %v3643_v3, 0.0  ;;  %v3644_v40 = vmul.f32 %v9037_v20, %v11181_v16  ;;  %v3145_v51 = vmul.f32 %v6123_v35, %v7961_v60  ;;  %v11184_v3 = vld [vmem:[#allocation141_spill] sm:$0xff] }
 0x2d4   : > { %v6127_v2 = vpop.eup %6126  ;;  %v3081_v41 = vsub.f32 %v1804_v21, %v2985_v22  ;;  %5990 = vset.pattern.permute.xlu1 %v10849_v1  ;;  %6132 = vtanh.f32 %v3339_v12  ;;  %v3178_v54 = vadd.f32 %v3146_v37, %v2920_v24  ;;  %v9055_v17 = vadd.f32 %v1758_v11, %v1757_v8  ;;  %v11187_v24 = vld [vmem:[#allocation142_spill] sm:$0xff] }
 0x2d5   : > { %v3404_v56 = vmul.f32 %v6127_v2, %v7973_v44  ;;  %3810 = vadd.xlane.f32.xlu0 %v3809_v45  ;;  %3266 = vperm.xlu1 %5990, %v11177_v43   ;;  %v1368_v50 = vmul.f32 %v11006_v52, %v11182_v42  ;;  %v9060_v22 = vadd.f32 %v7794_v27, %v1739_v5  ;;  %v3812_v43 = vsel %vm1375_vm0, %v3644_v40, 0.0  ;;  %v11186_v5 = vld [vmem:[#allocation138_spill] sm:$0xff]  ;;  %v9086_v45 = vpop.permute.xlu0 %2738 }
 0x2d6   : > { %6134 = vtanh.f32 %v3081_v41  ;;  %v3403_v1 = vmul.f32 %v6125_v32, %v7973_v44  ;;  %v9065_v16 = vrot.slane %v8682_v4, %v8563_v15  ;;  %v3177_v21 = vadd.f32 %v3145_v51, %v2919_v14  ;;  %v11188_v41 = vld [vmem:[#allocation60_spill] sm:$0xff] }
 0x2d7   : > { %v3436_v25 = vadd.f32 %v3404_v56, %v3178_v54  ;;  %v9067_v38 = vadd.f32 %v1539_v10, %v1538_v61  ;;  %v1299_v11 = vmul.f32 %v11017_v23, %v11184_v3  ;;  %v3647_v12 = vmul.f32 %v9037_v20, %v11185_v9 }
 0x2d8   : > { %11183 = vst [vmem:[#allocation84_spill] sm:$0xff] %v9065_v16  ;;  %v2795_v37 = vpop.permute.xlu1 %2794  ;;  %v1749_v35 = vrot.slane %v9015_v31, 2  ;;  %v1529_v8 = vadd.f32 %v1528_v29, %v9002_v6  ;;  %v1546_v10 = vsel %vm1375_vm0, %v1300_v30, 0.0  ;;  %v1767_v61 = vsel %vm1375_vm0, %v1368_v50, 0.0 }
 0x2d9   : > { %3813 = vadd.xlane.f32.xlu0 %v3812_v43  ;;  %v2840_v4 = vsub.f32 %v9060_v22, %v2795_v37  ;;  %v9078_v14 = vadd.f32 %v8625_v48, %v3436_v25  ;;  %v1367_v32 = vmul.f32 %v11017_v23, %v11186_v5  ;;  %v1301_v2 = vmul.f32 %v11028_v47, %v11187_v24  ;;  %v11190_v25 = vld [vmem:[#allocation145_spill] sm:$0xff] }
 0x2da   : > { %v1760_v6 = vrot.slane %v9055_v17, 4  ;;  %v2582_v29 = vsub.f32 %v9060_v22, %v8990_v34  ;;  %v3648_v40 = vmul.f32 %v9065_v16, %v11188_v41  ;;  %v3435_v51 = vadd.f32 %v3403_v1, %v3177_v21  ;;  %v11191_v41 = vld [vmem:[#allocation140_spill] sm:$0xff] }
 0x2db   : > { %v1545_v56 = vsel %vm1375_vm0, %v1299_v11, 0.0  ;;  %v3821_v54 = vsel %vm1375_vm0, %v3647_v12, 0.0  ;;  %v9098_v50 = vrot.slane %v8999_v0, %v8563_v15  ;;  %v1302_v43 = vmul.f32 %v10987_v57, %v11190_v25 }
 0x2dc   : > { %v1530_v9 = vrot.slane %v1529_v8, 1  ;;  %6136 = vtanh.f32 %v2840_v4  ;;  %v4189_v37 = vrot.slane %v9078_v14, 7  ;;  %v1766_v21 = vsel %vm1375_vm0, %v1367_v32, 0.0  ;;  %v11192_v32 = vld [vmem:[#allocation66_spill] sm:$0xff] }
 0x2dd   : > { %11189 = vst [vmem:[#allocation24_spill] sm:$0xff] %v9098_v50  ;;  %3822 = vadd.xlane.f32.xlu0 %v3821_v54  ;;  %v3053_v34 = vpop.permute.xlu1 %3052  ;;  %v1548_v11 = vsel %vm1375_vm0, %v1301_v2, 0.0  ;;  %v1369_v12 = vmul.f32 %v11028_v47, %v11191_v41  ;;  %v1547_v42 = vadd.f32 %v1546_v10, %v1545_v56  ;;  %6138 = vtanh.f32 %v2582_v29  ;;  %v9112_v54 = vpop.permute.xlu0 %2996 }
 0x2de   : > { %v6129_v1 = vpop.eup %6128  ;;  %v3098_v0 = vsub.f32 %v9060_v22, %v3053_v34  ;;  %v3824_v25 = vsel %vm1375_vm0, %v3648_v40, 0.0  ;;  %v9110_v4 = vadd.f32 %v8625_v48, %v3435_v51  ;;  %v3720_v2 = vmul.f32 %v9098_v50, %v11192_v32 }
 0x2df   : > { %v6131_v30 = vpop.eup %6130  ;;  %v2889_v24 = vmul.f32 %v6129_v1, %v7946_v36  ;;  %v9119_v41 = vrot.slane %v8837_v63, %v8563_v15  ;;  %v1768_v34 = vadd.f32 %v1767_v61, %v1766_v21  ;;  %v1549_v10 = vadd.f32 %v1548_v11, %v1547_v42  ;;  %v11194_v1 = vld [vmem:[#allocation143_spill] sm:$0xff] }
 0x2e0   : > { %6140 = vtanh.f32 %v3098_v0  ;;  %v1531_v29 = vadd.f32 %v1530_v9, %v1529_v8  ;;  %v9123_v40 = vsel %vm4169_vm1, %v4189_v37, %v9110_v4  ;;  %v1550_v56 = vsel %vm1375_vm0, %v1302_v43, 0.0  ;;  %v11195_v61 = vld [vmem:[#allocation11_spill] sm:$0xff]  ;;  %v11196_v8 = vld [vmem:[#allocation149_spill] sm:$0xff] }
 0x2e1   : > { %11193 = vst [vmem:[#allocation157_spill] sm:$0xff] %v9119_v41  ;;  %3825 = vadd.xlane.f32.xlu0 %v3824_v25  ;;  %v6133_v51 = vpop.eup %6132  ;;  %v1370_v0 = vmul.f32 %v10987_v57, %v11194_v1  ;;  %v1769_v32 = vsel %vm1375_vm0, %v1369_v12, 0.0  ;;  %v2631_v5 = vmul.f32 %v6131_v30, %v7958_v19  ;;  %v1304_v42 = vmul.f32 %v11006_v52, %v11195_v61  ;;  %v11197_v12 = vld [vmem:[#allocation69_spill] sm:$0xff] }
 0x2e2   : > { %v3311_v63 = vpop.permute.xlu1 %3310  ;;  %v1372_v25 = vmul.f32 %v11006_v52, %v11196_v8  ;;  %v1750_v9 = vadd.f32 %v1749_v35, %v9015_v31  ;;  %v4040_v11 = vsel %vm1375_vm0, %v3720_v2, 0.0  ;;  %v3652_v30 = vmul.f32 %v9119_v41, %v11197_v12  ;;  %v11199_v2 = vld [vmem:[#allocation152_spill] sm:$0xff]  ;;  %v11201_v12 = vld [vmem:[#allocation153_spill] sm:$0xff] }
 0x2e3   : > { %v6135_v59 = vpop.eup %6134  ;;  %v3356_v37 = vsub.f32 %v9060_v22, %v3311_v63  ;;  %v2921_v43 = vadd.f32 %v2889_v24, %v2631_v5  ;;  %v9140_v1 = vadd.f32 %v1550_v56, %v1549_v10  ;;  %v1770_v50 = vadd.f32 %v1769_v32, %v1768_v34  ;;  %v11198_v5 = vld [vmem:[#allocation148_spill] sm:$0xff]  ;;  %v11200_v32 = vld [vmem:[#allocation71_spill] sm:$0xff] }
 0x2e4   : > { %v3147_v21 = vmul.f32 %v6135_v59, %v7961_v60  ;;  %v1805_v61 = vadd.f32 %v7794_v27, %v1531_v29  ;;  %v9144_v8 = vadd.f32 %v1760_v6, %v9055_v17  ;;  %v1771_v31 = vsel %vm1375_vm0, %v1370_v0, 0.0  ;;  %v9148_v59 = vpop.permute.xlu0 %3254 }
 0x2e5   : > { %4041 = vadd.xlane.f32.xlu0 %v4040_v11  ;;  %6142 = vtanh.f32 %v3356_v37  ;;  %v3405_v22 = vmul.f32 %v6133_v51, %v7973_v44  ;;  %v1303_v24 = vmul.f32 %v11017_v23, %v11198_v5  ;;  %v1371_v34 = vmul.f32 %v11017_v23, %v11199_v2  ;;  %v11219_v5 = vld [vmem:[#allocation159_spill] sm:$0xff] }
 0x2e6   : > { %v3179_v35 = vadd.f32 %v3147_v21, %v2921_v43  ;;  %v1751_v10 = vrot.slane %v1750_v9, 1  ;;  %v2824_v29 = vsub.f32 %v1805_v61, %v8869_v46  ;;  %v3836_v17 = vsel %vm1375_vm0, %v3652_v30, 0.0 }
 0x2e7   : > { %v2453_v56 = vpop.permute.xlu1 %2452  ;;  %v3654_v0 = vmul.f32 %v9119_v41, %v11200_v32  ;;  %v1552_v63 = vrot.slane %v9140_v1, 4  ;;  %v1772_v37 = vadd.f32 %v1771_v31, %v1770_v50  ;;  %v1559_v43 = vsel %vm1375_vm0, %v1304_v42, 0.0  ;;  %v11202_v50 = vld [vmem:[#allocation105_spill] sm:$0xff] }
 0x2e8   : > { %v2566_v6 = vsub.f32 %v1805_v61, %v2453_v56  ;;  %v3437_v51 = vadd.f32 %v3405_v22, %v3179_v35  ;;  %v1780_v21 = vsel %vm1375_vm0, %v1372_v25, 0.0  ;;  %v1305_v46 = vmul.f32 %v11028_v47, %v11201_v12  ;;  %v9171_v56 = vpop.permute.xlu0 %2806  ;;  %v11203_v32 = vld [vmem:[#allocation73_spill] sm:$0xff] }
 0x2e9   : > { %3837 = vadd.xlane.f32.xlu0 %v3836_v17  ;;  %v6137_v11 = vpop.eup %6136  ;;  %v3340_v2 = vsub.f32 %v1805_v61, %v8921_v39  ;;  %v1558_v22 = vsel %vm1375_vm0, %v1303_v24, 0.0  ;;  %v1779_v35 = vsel %vm1375_vm0, %v1371_v34, 0.0  ;;  %v1373_v42 = vmul.f32 %v11028_v47, %v11202_v50 }
 0x2ea   : > { %6144 = vtanh.f32 %v2566_v6  ;;  %v9165_v30 = vadd.f32 %v8625_v48, %v3437_v51  ;;  %v6139_v25 = vpop.eup %6138  ;;  %v1752_v31 = vadd.f32 %v1751_v10, %v1750_v9  ;;  %v3842_v17 = vsel %vm1375_vm0, %v3654_v0, 0.0 }
 0x2eb   : > { %6146 = vtanh.f32 %v2824_v29  ;;  %v3655_v39 = vmul.f32 %v9119_v41, %v11203_v32  ;;  %v9178_v48 = vrot.slane %v9110_v4, %v8563_v15  ;;  %v1773_v34 = vrot.slane %v1772_v37, 4 }
 0x2ec   : > { %v2989_v6 = vpop.permute.xlu1 %2988  ;;  %v2906_v51 = vmul.f32 %v6137_v11, %v7946_v36  ;;  %v4191_v9 = vrot.slane %v9165_v30, 6  ;;  %v1560_v10 = vadd.f32 %v1559_v43, %v1558_v22  ;;  %v1781_v50 = vadd.f32 %v1780_v21, %v1779_v35 }
 0x2ed   : > { %11204 = vst [vmem:[#allocation26_spill] sm:$0xff] %v9178_v48  ;;  %v6141_v24 = vpop.eup %6140  ;;  %3843 = vadd.xlane.f32.xlu0 %v3842_v17  ;;  %v3082_v29 = vsub.f32 %v1805_v61, %v2989_v6  ;;  %v1561_v0 = vsel %vm1375_vm0, %v1305_v46, 0.0  ;;  %6148 = vtanh.f32 %v3340_v2  ;;  %v1782_v32 = vsel %vm1375_vm0, %v1373_v42, 0.0  ;;  %v11205_v61 = vld [vmem:[#allocation74_spill] sm:$0xff]  ;;  %v11207_v2 = vld [vmem:[#allocation155_spill] sm:$0xff] }
 0x2ee   : > { %v2648_v41 = vmul.f32 %v6139_v25, %v7958_v19  ;;  %v3164_v4 = vmul.f32 %v6141_v24, %v7961_v60  ;;  %v9187_v12 = vadd.f32 %v7794_v27, %v1752_v31  ;;  %v3845_v11 = vsel %vm1375_vm0, %v3655_v39, 0.0  ;;  %v11208_v46 = vld [vmem:[#allocation115_spill] sm:$0xff]  ;;  %v11209_v39 = vld [vmem:[#allocation78_spill] sm:$0xff] }
 0x2ef   : > { %6150 = vtanh.f32 %v3082_v29  ;;  %v3656_v17 = vmul.f32 %v9178_v48, %v11205_v61  ;;  %v9194_v43 = vrot.slane %v8957_v7, %v8563_v15  ;;  %v1306_v21 = vmul.f32 %v10987_v57, %v11207_v2  ;;  %v9205_v7 = vpop.permute.xlu0 %3064 }
 0x2f0   : > { %v1374_v22 = vmul.f32 %v10987_v57, %v11208_v46  ;;  %v2938_v35 = vadd.f32 %v2906_v51, %v2648_v41  ;;  %v9202_v25 = vsel %vm4172_vm2, %v4191_v9, %v9123_v40  ;;  %v1562_v6 = vadd.f32 %v1561_v0, %v1560_v10  ;;  %v11210_v10 = vld [vmem:[#allocation13_spill] sm:$0xff] }
 0x2f1   : > { %11206 = vst [vmem:[#allocation27_spill] sm:$0xff] %v9194_v43  ;;  %3846 = vadd.xlane.f32.xlu0 %v3845_v11  ;;  %v2799_v42 = vpop.permute.xlu1 %2798  ;;  %v1783_v24 = vadd.f32 %v1782_v32, %v1781_v50  ;;  %v9209_v61 = vadd.f32 %v1552_v63, %v9140_v1  ;;  %v2583_v41 = vsub.f32 %v9187_v12, %v8826_v28  ;;  %v3848_v9 = vsel %vm1375_vm0, %v3656_v17, 0.0  ;;  %v11211_v63 = vld [vmem:[#allocation158_spill] sm:$0xff] }
 0x2f2   : > { %v6143_v31 = vpop.eup %6142  ;;  %v2841_v29 = vsub.f32 %v9187_v12, %v2799_v42  ;;  %v3196_v11 = vadd.f32 %v3164_v4, %v2938_v35  ;;  %v9214_v40 = vadd.f32 %v1773_v34, %v1772_v37  ;;  %v3724_v50 = vmul.f32 %v9194_v43, %v11209_v39  ;;  %v9234_v39 = vld [vmem:[%s10474_s7 + $0x1] ss:$0 sm:$0xff] }
 0x2f3   : > { %v3422_v51 = vmul.f32 %v6143_v31, %v7973_v44  ;;  %v3624_v0 = vmul.f32 %v8578_v62, %v11210_v10  ;;  %v1563_v32 = vsel %vm1375_vm0, %v1306_v21, 0.0  ;;  %v1784_v1 = vsel %vm1375_vm0, %v1374_v22, 0.0  ;;  %v11213_v21 = vld [vmem:[#allocation14_spill] sm:$0xff] }
 0x2f4   : > { %v1308_v28 = vmul.f32 %v11006_v52, %v11211_v63  ;;  %v1564_v4 = vadd.f32 %v1563_v32, %v1562_v6  ;;  %v1785_v37 = vadd.f32 %v1784_v1, %v1783_v24  ;;  %v11212_v34 = vrot.slane %v9067_v38, 2  ;;  %v11215_v32 = vld [vmem:[#allocation10_spill] sm:$0xff]  ;;  %v11216_v63 = vld [vmem:[#allocation15_spill] sm:$0xff] }
 0x2f5   : > { %3849 = vadd.xlane.f32.xlu0 %v3848_v9  ;;  %v3454_v42 = vadd.f32 %v3422_v51, %v3196_v11  ;;  %6152 = vtanh.f32 %v2841_v29  ;;  %v3693_v22 = vmul.f32 %v8654_v49, %v11213_v21  ;;  %v9240_v29 = vpop.permute.xlu0 %2467  ;;  %v11214_v51 = vld [vmem:[#allocation80_spill] sm:$0xff]  ;;  %v3752_v9 = vsel %vm1375_vm0, %v3624_v0, 0.0 }
 0x2f6   : > { %v1542_v17 = vadd.f32 %v11212_v34, %v9067_v38  ;;  %v3057_v35 = vpop.permute.xlu1 %3056  ;;  %6154 = vtanh.f32 %v2583_v41  ;;  %v4052_v41 = vsel %vm1375_vm0, %v3724_v50, 0.0  ;;  %v3726_v11 = vmul.f32 %v9194_v43, %v11214_v51 }
 0x2f7   : > { %v6145_v31 = vpop.eup %6144  ;;  %v3099_v62 = vsub.f32 %v9187_v12, %v3057_v35  ;;  %v9237_v6 = vadd.f32 %v9234_v39, %v3454_v42  ;;  %v1775_v10 = vrot.slane %v9214_v40, 2  ;;  %v1307_v1 = vmul.f32 %v11017_v23, %v11215_v32 }
 0x2f8   : > { %v6147_v24 = vpop.eup %6146  ;;  %v2632_v42 = vmul.f32 %v6145_v31, %v7958_v19  ;;  %v1565_v34 = vrot.slane %v1564_v4, 4  ;;  %v1786_v35 = vrot.slane %v1785_v37, 4  ;;  %v1572_v21 = vsel %vm1375_vm0, %v1308_v28, 0.0 }
 0x2f9   : > { %4053 = vadd.xlane.f32.xlu0 %v4052_v41  ;;  %6156 = vtanh.f32 %v3099_v62  ;;  %3753 = vadd.xlane.f32.xlu1 %v3752_v9  ;;  %v4221_v50 = vrot.slane %v9237_v6, 5  ;;  %v2890_v51 = vmul.f32 %v6147_v24, %v7946_v36  ;;  %v1543_v0 = vrot.slane %v1542_v17, 1  ;;  %v11217_v9 = vld [vmem:[#allocation82_spill] sm:$0xff] }
 0x2fa   : > { %v6149_v38 = vpop.eup %6148  ;;  %v3959_v2 = vsel %vm1375_vm0, %v3693_v22, 0.0  ;;  %v3694_v32 = vmul.f32 %v8654_v49, %v11216_v63  ;;  %v4058_v62 = vsel %vm1375_vm0, %v3726_v11, 0.0  ;;  %v3727_v28 = vmul.f32 %v9194_v43, %v11217_v9 }
 0x2fb   : > { %v3315_v46 = vpop.permute.xlu1 %3314  ;;  %v9262_v48 = vrot.slane %v9078_v14, %v8563_v15  ;;  %v1571_v24 = vsel %vm1375_vm0, %v1307_v1, 0.0  ;;  %v1309_v22 = vmul.f32 %v11028_v47, %v11219_v5  ;;  %v2922_v16 = vadd.f32 %v2890_v51, %v2632_v42  ;;  %v11220_v1 = vld [vmem:[#allocation121_spill] sm:$0xff] }
 0x2fc   : > { %v6151_v31 = vpop.eup %6150  ;;  %v3357_v41 = vsub.f32 %v9187_v12, %v3315_v46  ;;  %v9268_v11 = vadd.f32 %v1565_v34, %v1564_v4  ;;  %v9270_v12 = vadd.f32 %v1786_v35, %v1785_v37  ;;  %v9272_v46 = vpop.permute.xlu0 %3068  ;;  %v9276_v14 = vsel %vm4175_vm3, %v4221_v50, %v9021_v13  ;;  %v11221_v4 = vld [vmem:[#allocation93_spill] sm:$0xff] }
 0x2fd   : > { %11218 = vst [vmem:[#allocation30_spill] sm:$0xff] %v9262_v48  ;;  %v3148_v63 = vmul.f32 %v6151_v31, %v7961_v60  ;;  %4059 = vadd.xlane.f32.xlu0 %v4058_v62  ;;  %3960 = vadd.xlane.f32.xlu1 %v3959_v2  ;;  %v1310_v9 = vmul.f32 %v10987_v57, %v11220_v1  ;;  %v4061_v2 = vsel %vm1375_vm0, %v3727_v28, 0.0  ;;  %v3962_v35 = vsel %vm1375_vm0, %v3694_v32, 0.0  ;;  %v11222_v62 = vld [vmem:[#allocation18_spill] sm:$0xff]  ;;  %v11224_v32 = vld [vmem:[#allocation119_spill] sm:$0xff]  ;;  %v11225_v1 = vld [vmem:[#allocation21_spill] sm:$0xff] }
 0x2fe   : > { %6158 = vtanh.f32 %v3357_v41  ;;  %v3406_v42 = vmul.f32 %v6149_v38, %v7973_v44  ;;  %v1544_v51 = vadd.f32 %v1543_v0, %v1542_v17  ;;  %v3660_v37 = vmul.f32 %v9262_v48, %v11221_v4 }
 0x2ff   : > { %v3180_v31 = vadd.f32 %v3148_v63, %v2922_v16  ;;  %v3695_v13 = vmul.f32 %v8654_v49, %v11222_v62  ;;  %v1574_v50 = vsel %vm1375_vm0, %v1309_v22, 0.0  ;;  %v11223_v41 = vrot.slane %v9144_v8, 2 }
 0x300   : > { %v9284_v34 = vpop.permute.xlu1 %2542  ;;  %v1776_v16 = vadd.f32 %v1775_v10, %v9214_v40  ;;  %v1573_v63 = vadd.f32 %v1572_v21, %v1571_v24  ;;  %v1312_v4 = vmul.f32 %v11006_v52, %v11224_v32  ;;  %v1576_v22 = vsel %vm1375_vm0, %v1310_v9, 0.0  ;;  %v11228_v24 = vld [vmem:[#allocation96_spill] sm:$0xff]  ;;  %v11230_v32 = vld [vmem:[#allocation22_spill] sm:$0xff] }
 0x301   : > { %v1763_v38 = vadd.f32 %v11223_v41, %v9144_v8  ;;  %4062 = vadd.xlane.f32.xlu0 %v4061_v2  ;;  %3963 = vadd.xlane.f32.xlu1 %v3962_v35  ;;  %v3438_v17 = vadd.f32 %v3406_v42, %v3180_v31  ;;  %v1806_v62 = vadd.f32 %v7794_v27, %v1544_v51  ;;  %v11226_v8 = vld [vmem:[#allocation100_spill] sm:$0xff]  ;;  %v9305_v31 = vpop.permute.xlu0 %3326  ;;  %v3860_v21 = vsel %vm1375_vm0, %v3660_v37, 0.0 }
 0x302   : > { %v6153_v49 = vpop.eup %6152  ;;  %v3629_v41 = vmul.f32 %v11226_v8, %v11225_v1  ;;  %v1575_v42 = vadd.f32 %v1574_v50, %v1573_v63  ;;  %11227 = vst [vmem:[#allocation109_spill] sm:$0xff] %v9305_v31  ;;  %v3662_v2 = vmul.f32 %v9262_v48, %v11228_v24  ;;  %v3965_v35 = vsel %vm1375_vm0, %v3695_v13, 0.0 }
 0x303   : > { %v9303_v40 = vadd.f32 %v9234_v39, %v3438_v17  ;;  %v6155_v10 = vpop.eup %6154  ;;  %v2567_v9 = vsub.f32 %v1806_v62, %v8944_v53  ;;  %v1764_v51 = vrot.slane %v1763_v38, 1  ;;  %v1777_v28 = vrot.slane %v1776_v16, 1 }
 0x304   : > { %v11229_v1 = vrot.slane %v9209_v61, 2  ;;  %v2907_v63 = vmul.f32 %v6153_v49, %v7946_v36  ;;  %v3630_v24 = vmul.f32 %v11226_v8, %v11230_v32  ;;  %v2649_v53 = vmul.f32 %v6155_v10, %v7958_v19 }
 0x305   : > { %3861 = vadd.xlane.f32.xlu0 %v3860_v21  ;;  %v2735_v0 = vpop.permute.xlu1 %2734  ;;  %3966 = vadd.xlane.f32.xlu1 %v3965_v35  ;;  %v4193_v13 = vrot.slane %v9303_v40, 5  ;;  %v3341_v43 = vsub.f32 %v1806_v62, %v8973_v18  ;;  %v3767_v5 = vsel %vm1375_vm0, %v3629_v41, 0.0  ;;  %v3866_v49 = vsel %vm1375_vm0, %v3662_v2, 0.0  ;;  %v11232_v35 = vld [vmem:[#allocation106_spill] sm:$0xff]  ;;  %v9332_v31 = vpop.permute.xlu0 %2746 }
 0x306   : > { %v1555_v17 = vadd.f32 %v11229_v1, %v9209_v61  ;;  %v6157_v50 = vpop.eup %6156  ;;  %v2825_v37 = vsub.f32 %v1806_v62, %v2735_v0  ;;  %v9324_v61 = vrot.slane %v8971_v55, %v8563_v15  ;;  %v11231_v0 = vld [vmem:[#allocation99_spill] sm:$0xff]  ;;  %v1311_v1 = vmul.f32 %v11017_v23, %v11232_v35 }
 0x307   : > { %v3165_v21 = vmul.f32 %v6157_v50, %v7961_v60  ;;  %v3663_v32 = vmul.f32 %v9262_v48, %v11231_v0  ;;  %v1765_v10 = vadd.f32 %v1764_v51, %v1763_v38  ;;  %v1778_v41 = vadd.f32 %v1777_v28, %v1776_v16  ;;  %v11233_v50 = vld [vmem:[#allocation23_spill] sm:$0xff] }
 0x308   : > { %6160 = vtanh.f32 %v2825_v37  ;;  %v1556_v18 = vrot.slane %v1555_v17, 1  ;;  %v2939_v55 = vadd.f32 %v2907_v63, %v2649_v53  ;;  %v3631_v2 = vmul.f32 %v11226_v8, %v11233_v50 }
 0x309   : > { %6162 = vtanh.f32 %v2567_v9  ;;  %3867 = vadd.xlane.f32.xlu0 %v3866_v49  ;;  %3768 = vadd.xlane.f32.xlu1 %v3767_v5  ;;  %v9338_v37 = vsel %vm4175_vm3, %v4193_v13, %v9202_v25  ;;  %v11234_v9 = vld [vmem:[#allocation90_spill] sm:$0xff]  ;;  %v3770_v5 = vsel %vm1375_vm0, %v3630_v24, 0.0  ;;  %v3869_v28 = vsel %vm1375_vm0, %v3663_v32, 0.0  ;;  %v9363_v32 = vpop.permute.xlu0 %2477 }
 0x30a   : > { %v2993_v20 = vpop.permute.xlu1 %2992  ;;  %6164 = vtanh.f32 %v3341_v43  ;;  %v3729_v38 = vmul.f32 %v9324_v61, %v11234_v9  ;;  %v9347_v51 = vrot.slane %v9165_v30, %v8563_v15  ;;  %v3197_v8 = vadd.f32 %v3165_v21, %v2939_v55  ;;  %v11235_v24 = vld [vmem:[#allocation118_spill] sm:$0xff] }
 0x30b   : > { %v6159_v0 = vpop.eup %6158  ;;  %v3083_v48 = vsub.f32 %v1806_v62, %v2993_v20  ;;  %v9349_v63 = vadd.f32 %v1576_v22, %v1575_v42  ;;  %v1823_v25 = vadd.f32 %v7794_v27, %v1765_v10  ;;  %v1557_v43 = vadd.f32 %v1556_v18, %v1555_v17  ;;  %v11236_v17 = vld [vmem:[#allocation25_spill] sm:$0xff]  ;;  %v11237_v49 = vld [vmem:[#allocation150_spill] sm:$0xff]  ;;  %v11238_v10 = vld [vmem:[#allocation103_spill] sm:$0xff] }
 0x30c   : > { %v3423_v16 = vmul.f32 %v6159_v0, %v7973_v44  ;;  %v1585_v20 = vsel %vm1375_vm0, %v1312_v4, 0.0  ;;  %v1584_v62 = vsel %vm1375_vm0, %v1311_v1, 0.0  ;;  %v1313_v13 = vmul.f32 %v11028_v47, %v11235_v24  ;;  %v11239_v0 = vld [vmem:[#allocation162_spill] sm:$0xff] }
 0x30d   : > { %3870 = vadd.xlane.f32.xlu0 %v3869_v28  ;;  %6166 = vtanh.f32 %v3083_v48  ;;  %3771 = vadd.xlane.f32.xlu1 %v3770_v5  ;;  %v9357_v30 = vadd.f32 %v7794_v27, %v1778_v41  ;;  %v2584_v22 = vsub.f32 %v1823_v25, %v9284_v34  ;;  %v3773_v21 = vsel %vm1375_vm0, %v3631_v2, 0.0  ;;  %v11240_v5 = vld [vmem:[#allocation28_spill] sm:$0xff] }
 0x30e   : > { %v3455_v53 = vadd.f32 %v3423_v16, %v3197_v8  ;;  %v3697_v48 = vmul.f32 %v11237_v49, %v11236_v17  ;;  %v4067_v4 = vsel %vm1375_vm0, %v3729_v38, 0.0  ;;  %v3665_v18 = vmul.f32 %v9347_v51, %v11238_v10  ;;  %v11244_v10 = vld [vmem:[#allocation146_spill] sm:$0xff] }
 0x30f   : > { %v2803_v42 = vpop.permute.xlu1 %2802  ;;  %v1578_v41 = vrot.slane %v9349_v63, 4  ;;  %v1586_v34 = vadd.f32 %v1585_v20, %v1584_v62  ;;  %v3358_v50 = vsub.f32 %v1823_v25, %v9024_v26  ;;  %v9374_v2 = vadd.f32 %v7794_v27, %v1557_v43  ;;  %v11241_v20 = vld [vmem:[#allocation107_spill] sm:$0xff] }
 0x310   : > { %v2842_v1 = vsub.f32 %v1823_v25, %v2803_v42  ;;  %v9369_v55 = vadd.f32 %v9234_v39, %v3455_v53  ;;  %v1314_v9 = vmul.f32 %v10987_v57, %v11239_v0  ;;  %v2585_v38 = vsub.f32 %v9357_v30, %v9046_v33 }
 0x311   : > { %4068 = vadd.xlane.f32.xlu0 %v4067_v4  ;;  %3774 = vadd.xlane.f32.xlu1 %v3773_v21  ;;  %v3699_v16 = vmul.f32 %v11237_v49, %v11240_v5  ;;  %v1587_v28 = vsel %vm1375_vm0, %v1313_v13, 0.0  ;;  %v2826_v26 = vsub.f32 %v9374_v2, %v9086_v45  ;;  %v3971_v8 = vsel %vm1375_vm0, %v3697_v48, 0.0  ;;  %v9401_v48 = vpop.permute.xlu0 %3008 }
 0x312   : > { %6168 = vtanh.f32 %v2842_v1  ;;  %v3875_v43 = vsel %vm1375_vm0, %v3665_v18, 0.0  ;;  %v3667_v62 = vmul.f32 %v9347_v51, %v11241_v20  ;;  %v9391_v33 = vrot.slane %v9237_v6, %v8563_v15  ;;  %v11243_v1 = vld [vmem:[#allocation29_spill] sm:$0xff] }
 0x313   : > { %6170 = vtanh.f32 %v2584_v22  ;;  %v4223_v42 = vrot.slane %v9369_v55, 4  ;;  %v11242_v13 = vrot.slane %v11167_v58, 2  ;;  %v2843_v22 = vsub.f32 %v9357_v30, %v9171_v56 }
 0x314   : > { %v3061_v53 = vpop.permute.xlu1 %3060  ;;  %6172 = vtanh.f32 %v3358_v50  ;;  %v3084_v6 = vsub.f32 %v9374_v2, %v9112_v54  ;;  %v3977_v4 = vsel %vm1375_vm0, %v3699_v16, 0.0  ;;  %v3633_v18 = vmul.f32 %v11244_v10, %v11243_v1 }
 0x315   : > { %v6161_v21 = vpop.eup %6160  ;;  %v1659_v45 = vadd.f32 %v11242_v13, %v11167_v58  ;;  %3876 = vadd.xlane.f32.xlu0 %v3875_v43  ;;  %v3100_v17 = vsub.f32 %v1823_v25, %v3061_v53  ;;  %3972 = vadd.xlane.f32.xlu1 %v3971_v8  ;;  %6174 = vtanh.f32 %v2585_v38  ;;  %v3101_v58 = vsub.f32 %v9357_v30, %v9205_v7  ;;  %v11245_v38 = vld [vmem:[#allocation123_spill] sm:$0xff] }
 0x316   : > { %v6163_v49 = vpop.eup %6162  ;;  %v2891_v56 = vmul.f32 %v6161_v21, %v7946_v36  ;;  %v9411_v25 = vsel %vm4178_vm4, %v4223_v42, %v9276_v14  ;;  %v3881_v54 = vsel %vm1375_vm0, %v3667_v62, 0.0  ;;  %v3732_v5 = vmul.f32 %v9391_v33, %v11245_v38  ;;  %v11247_v21 = vld [vmem:[#allocation31_spill] sm:$0xff] }
 0x317   : > { %6176 = vtanh.f32 %v3100_v17  ;;  %v6165_v50 = vpop.eup %6164  ;;  %v9418_v16 = vrot.slane %v9303_v40, %v8563_v15  ;;  %v1588_v8 = vadd.f32 %v1587_v28, %v1586_v34  ;;  %v1660_v7 = vrot.slane %v1659_v45, 1  ;;  %v11248_v17 = vld [vmem:[#allocation112_spill] sm:$0xff] }
 0x318   : > { %6178 = vtanh.f32 %v2826_v26  ;;  %v2633_v43 = vmul.f32 %v6163_v49, %v7958_v19  ;;  %v3342_v26 = vsub.f32 %v9374_v2, %v9148_v59  ;;  %v11246_v62 = vrot.slane %v9268_v11, 2 }
 0x319   : > { %6180 = vtanh.f32 %v2843_v22  ;;  %3882 = vadd.xlane.f32.xlu0 %v3881_v54  ;;  %v2463_v20 = vpop.permute.xlu1 %2462  ;;  %3978 = vadd.xlane.f32.xlu1 %v3977_v4  ;;  %v3635_v13 = vmul.f32 %v11244_v10, %v11247_v21  ;;  %v4076_v22 = vsel %vm1375_vm0, %v3732_v5, 0.0  ;;  %v3668_v59 = vmul.f32 %v9418_v16, %v11248_v17 }
 0x31a   : > { %v6167_v14 = vpop.eup %6166  ;;  %6182 = vtanh.f32 %v3084_v6  ;;  %v1568_v53 = vadd.f32 %v11246_v62, %v9268_v11  ;;  %v9426_v42 = vpop.xlane.xlu0 %3756  ;;  %v2568_v40 = vsub.f32 %v9374_v2, %v2463_v20  ;;  %v2923_v34 = vadd.f32 %v2891_v56, %v2633_v43 }
 0x31b   : > { %6184 = vtanh.f32 %v3101_v58  ;;  %v3149_v28 = vmul.f32 %v6167_v14, %v7961_v60  ;;  %v3779_v49 = vsel %vm1375_vm0, %v3633_v18, 0.0  ;;  %v1589_v11 = vsel %vm1375_vm0, %v1314_v9, 0.0  ;;  %v11250_v18 = vld [vmem:[#allocation51_spill] sm:$0xff]  ;;  %v11253_v14 = vld [vmem:[#allocation32_spill] sm:$0xff] }
 0x31c   : > { %6186 = vtanh.f32 %v2568_v40  ;;  %v1661_v6 = vadd.f32 %v1660_v7, %v1659_v45  ;;  %v3407_v2 = vmul.f32 %v6165_v50, %v7973_v44  ;;  %v1579_v1 = vadd.f32 %v1578_v41, %v9349_v63  ;;  %v11251_v45 = vld [vmem:[#allocation50_spill] sm:$0xff] }
 0x31d   : > { %4077 = vadd.xlane.f32.xlu0 %v4076_v22  ;;  %3780 = vadd.xlane.f32.xlu1 %v3779_v49  ;;  %v3181_v4 = vadd.f32 %v3149_v28, %v2923_v34  ;;  %v1590_v10 = vadd.f32 %v1589_v11, %v1588_v8  ;;  %6188 = vtanh.f32 %v3342_v26  ;;  %v1569_v58 = vrot.slane %v1568_v53, 1  ;;  %v11252_v41 = vld [vmem:[#allocation122_spill] sm:$0xff]  ;;  %v11254_v26 = vld [vmem:[#allocation137_spill] sm:$0xff] }
 0x31e   : > { %v9441_v56 = vpop.xlane.xlu0 %3759  ;;  %v3323_v54 = vpop.permute.xlu1 %3322  ;;  %v9445_v9 = vmul.f32 %v10987_v57, %v11250_v18  ;;  %v1337_v50 = vmul.f32 %v11028_v47, %v11251_v45  ;;  %v3884_v63 = vsel %vm1375_vm0, %v3668_v59, 0.0  ;;  %v3671_v8 = vmul.f32 %v9418_v16, %v11252_v41 }
 0x31f   : > { %11249 = vst [vmem:[#allocation33_spill] sm:$0xff] %v9441_v56  ;;  %v6169_v38 = vpop.eup %6168  ;;  %v3359_v5 = vsub.f32 %v9357_v30, %v3323_v54  ;;  %v3439_v7 = vadd.f32 %v3407_v2, %v3181_v4  ;;  %v3785_v20 = vsel %vm1375_vm0, %v3635_v13, 0.0  ;;  %v3700_v62 = vmul.f32 %v11254_v26, %v11253_v14  ;;  %v11257_v2 = vld [vmem:[#allocation161_spill] sm:$0xff] }
 0x320   : > { %v6171_v43 = vpop.eup %6170  ;;  %v9457_v40 = vadd.f32 %v7794_v27, %v1661_v6  ;;  %v2908_v34 = vmul.f32 %v6169_v38, %v7946_v36  ;;  %v1580_v21 = vrot.slane %v1579_v1, 2  ;;  %v1591_v22 = vrot.slane %v1590_v10, 4 }
 0x321   : > { %3885 = vadd.xlane.f32.xlu0 %v3884_v63  ;;  %6190 = vtanh.f32 %v3359_v5  ;;  %3786 = vadd.xlane.f32.xlu1 %v3785_v20  ;;  %v3476_v30 = vadd.f32 %v9234_v39, %v3439_v7  ;;  %v6173_v28 = vpop.eup %6172  ;;  %v1570_v17 = vadd.f32 %v1569_v58, %v1568_v53  ;;  %v11255_v13 = vrot.slane %v9270_v12, 2  ;;  %v11258_v58 = vld [vmem:[#allocation163_spill] sm:$0xff] }
 0x322   : > { %v9464_v49 = vpop.xlane.xlu0 %3762  ;;  %v6175_v11 = vpop.eup %6174  ;;  %v9467_v6 = vsel %vm1375_vm0, %v1337_v50, 0.0  ;;  %v2576_v4 = vsub.f32 %v9457_v40, %v11257_v2  ;;  %v2650_v54 = vmul.f32 %v6171_v43, %v7958_v19  ;;  %v3893_v7 = vsel %vm1375_vm0, %v3671_v8, 0.0  ;;  %v11259_v50 = vld [vmem:[#allocation35_spill] sm:$0xff] }
 0x323   : > { %v1789_v59 = vadd.f32 %v11255_v13, %v9270_v12  ;;  %11256 = vst [vmem:[#allocation9_spill] sm:$0xff] %v9464_v49  ;;  %v9472_v38 = vpop.permute.xlu1 %2552  ;;  %v9475_v5 = vrot.slane %v3476_v30, %v8563_v15  ;;  %v2834_v12 = vsub.f32 %v9457_v40, %v11258_v58  ;;  %v3980_v63 = vsel %vm1375_vm0, %v3700_v62, 0.0  ;;  %v11260_v13 = vld [vmem:[#allocation125_spill] sm:$0xff] }
 0x324   : > { %v6177_v53 = vpop.eup %6176  ;;  %v3703_v41 = vmul.f32 %v11254_v26, %v11259_v50  ;;  %v2940_v14 = vadd.f32 %v2908_v34, %v2650_v54  ;;  %v4195_v45 = vrot.slane %v3476_v30, 4  ;;  %v9486_v18 = vadd.f32 %v1591_v22, %v1590_v10 }
 0x325   : > { %v6179_v20 = vpop.eup %6178  ;;  %v3166_v43 = vmul.f32 %v6177_v53, %v7961_v60  ;;  %3894 = vadd.xlane.f32.xlu0 %v3893_v7  ;;  %3981 = vadd.xlane.f32.xlu1 %v3980_v63  ;;  %v3672_v2 = vmul.f32 %v9475_v5, %v11260_v13  ;;  %v9489_v8 = vadd.f32 %v7794_v27, %v1570_v17  ;;  %v1790_v62 = vrot.slane %v1789_v59, 1  ;;  %v11261_v7 = vld [vmem:[#allocation40_spill] sm:$0xff]  ;;  %v11262_v63 = vld [vmem:[#allocation17_spill] sm:$0xff] }
 0x326   : > { %v6181_v49 = vpop.eup %6180  ;;  %v9491_v58 = vadd.f32 %v1580_v21, %v1579_v1  ;;  %v9493_v26 = vpop.xlane.xlu0 %3957  ;;  %v3424_v54 = vmul.f32 %v6173_v28, %v7973_v44  ;;  %v3636_v50 = vmul.f32 %v11262_v63, %v11261_v7  ;;  %6192 = vtanh.f32 %v2576_v4  ;;  %v11263_v17 = vld [vmem:[#allocation133_spill] sm:$0xff]  ;;  %v11264_v4 = vld [vmem:[#allocation164_spill] sm:$0xff] }
 0x327   : > { %v6183_v34 = vpop.eup %6182  ;;  %v3896_v53 = vsel %vm1375_vm0, %v3672_v2, 0.0  ;;  %v3198_v30 = vadd.f32 %v3166_v43, %v2940_v14  ;;  %v3989_v22 = vsel %vm1375_vm0, %v3703_v41, 0.0  ;;  %v3675_v1 = vmul.f32 %v9475_v5, %v11263_v17 }
 0x328   : > { %v6185_v13 = vpop.eup %6184  ;;  %v2743_v10 = vpop.permute.xlu1 %2742  ;;  %v9504_v21 = vsel %vm4178_vm4, %v4195_v45, %v9338_v37  ;;  %6194 = vtanh.f32 %v2834_v12  ;;  %v2909_v28 = vmul.f32 %v6181_v49, %v7946_v36  ;;  %v3092_v43 = vsub.f32 %v9457_v40, %v11264_v4  ;;  %v11266_v37 = vld [vmem:[#allocation36_spill] sm:$0xff]  ;;  %v11267_v45 = vld [vmem:[#allocation19_spill] sm:$0xff]  ;;  %v11268_v4 = vld [vmem:[#allocation165_spill] sm:$0xff] }
 0x329   : > { %v6187_v56 = vpop.eup %6186  ;;  %v2827_v2 = vsub.f32 %v9489_v8, %v2743_v10  ;;  %3897 = vadd.xlane.f32.xlu0 %v3896_v53  ;;  %3990 = vadd.xlane.f32.xlu1 %v3989_v22  ;;  %v3456_v14 = vadd.f32 %v3424_v54, %v3198_v30  ;;  %v2892_v41 = vmul.f32 %v6179_v20, %v7946_v36  ;;  %v3788_v53 = vsel %vm1375_vm0, %v3636_v50, 0.0 }
 0x32a   : > { %v2634_v7 = vmul.f32 %v6187_v56, %v7958_v19  ;;  %v9512_v63 = vpop.xlane.xlu0 %3765  ;;  %v3704_v17 = vmul.f32 %v11267_v45, %v11266_v37  ;;  %v6189_v12 = vpop.eup %6188  ;;  %v2651_v49 = vmul.f32 %v6175_v11, %v7958_v19  ;;  %v3167_v10 = vmul.f32 %v6185_v13, %v7961_v60 }
 0x32b   : > { %11265 = vst [vmem:[#allocation34_spill] sm:$0xff] %v9512_v63  ;;  %v2569_v54 = vsub.f32 %v9489_v8, %v9240_v29  ;;  %v3150_v30 = vmul.f32 %v6183_v34, %v7961_v60  ;;  %v3905_v56 = vsel %vm1375_vm0, %v3675_v1, 0.0  ;;  %v9524_v22 = vadd.f32 %v9234_v39, %v3456_v14 }
 0x32c   : > { %v2924_v20 = vadd.f32 %v2892_v41, %v2634_v7  ;;  %v3350_v37 = vsub.f32 %v9457_v40, %v11268_v4  ;;  %v2941_v63 = vadd.f32 %v2909_v28, %v2651_v49  ;;  %v1791_v11 = vadd.f32 %v1790_v62, %v1789_v59  ;;  %v11269_v59 = vld [vmem:[#allocation44_spill] sm:$0xff]  ;;  %v11271_v49 = vld [vmem:[#allocation154_spill] sm:$0xff] }
 0x32d   : > { %6196 = vtanh.f32 %v2827_v2  ;;  %3906 = vadd.xlane.f32.xlu0 %v3905_v56  ;;  %v3001_v13 = vpop.permute.xlu1 %3000  ;;  %3789 = vadd.xlane.f32.xlu1 %v3788_v53  ;;  %v3408_v50 = vmul.f32 %v6189_v12, %v7973_v44  ;;  %v3992_v40 = vsel %vm1375_vm0, %v3704_v17, 0.0  ;;  %v11270_v62 = vld [vmem:[#allocation12_spill] sm:$0xff]  ;;  %v1666_v12 = vadd.f32 %v9467_v6, %v11271_v49  ;;  %v11272_v6 = vld [vmem:[#allocation46_spill] sm:$0xff] }
 0x32e   : > { %v6191_v29 = vpop.eup %6190  ;;  %6198 = vtanh.f32 %v3092_v43  ;;  %v9529_v34 = vpop.xlane.xlu0 %3969  ;;  %v3085_v1 = vsub.f32 %v9489_v8, %v3001_v13  ;;  %v3182_v41 = vadd.f32 %v3150_v30, %v2924_v20  ;;  %v3199_v28 = vadd.f32 %v3167_v10, %v2941_v63 }
 0x32f   : > { %6200 = vtanh.f32 %v2569_v54  ;;  %v3425_v14 = vmul.f32 %v6191_v29, %v7973_v44  ;;  %v3640_v2 = vmul.f32 %v11270_v62, %v11269_v59  ;;  %v4225_v43 = vrot.slane %v9524_v22, 3 }
 0x330   : > { %6202 = vtanh.f32 %v3085_v1  ;;  %v3440_v7 = vadd.f32 %v3408_v50, %v3182_v41  ;;  %v1593_v53 = vrot.slane %v9486_v18, 2  ;;  %v1825_v30 = vadd.f32 %v7794_v27, %v1791_v11 }
 0x331   : > { %6204 = vtanh.f32 %v3350_v37  ;;  %3993 = vadd.xlane.f32.xlu1 %v3992_v40  ;;  %v3457_v54 = vadd.f32 %v3425_v14, %v3199_v28  ;;  %v1582_v17 = vrot.slane %v9491_v58, 1  ;;  %v4226_v56 = vsel %vm4181_vm5, %v4225_v43, %v9411_v25  ;;  %v11273_v40 = vld [vmem:[#allocation86_spill] sm:$0xff]  ;;  %v11275_v43 = vld [vmem:[#allocation53_spill] sm:$0xff] }
 0x332   : > { %v9542_v63 = vpop.xlane.xlu0 %3975  ;;  %v3259_v10 = vpop.permute.xlu1 %3258  ;;  %v3477_v20 = vadd.f32 %v9234_v39, %v3440_v7  ;;  %v3642_v13 = vmul.f32 %v11270_v62, %v11272_v6  ;;  %v1667_v11 = vsel %vm1375_vm0, %v9445_v9, 0.0  ;;  %v2586_v29 = vsub.f32 %v1825_v30, %v9472_v38  ;;  %v11279_v6 = vld [vmem:[#allocation87_spill] sm:$0xff] }
 0x333   : > { %v3343_v4 = vsub.f32 %v9489_v8, %v3259_v10  ;;  %v9551_v37 = vadd.f32 %v9234_v39, %v3457_v54  ;;  %v3800_v50 = vsel %vm1375_vm0, %v3640_v2, 0.0  ;;  %v6193_v41 = vpop.eup %6192  ;;  %v1668_v25 = vadd.f32 %v1667_v11, %v1666_v12  ;;  %v11277_v10 = vld [vmem:[#allocation109_spill] sm:$0xff] }
 0x334   : > { %v9558_v1 = vrot.slane %v3477_v20, %v8563_v15  ;;  %v3102_v8 = vsub.f32 %v1825_v30, %v9272_v46  ;;  %v1340_v28 = vmul.f32 %v11006_v52, %v11273_v40  ;;  %v1583_v59 = vadd.f32 %v1582_v17, %v9491_v58  ;;  %v11276_v46 = vld [vmem:[#allocation20_spill] sm:$0xff] }
 0x335   : > { %6206 = vtanh.f32 %v3343_v4  ;;  %3801 = vadd.xlane.f32.xlu1 %v3800_v50  ;;  %v6195_v14 = vpop.eup %6194  ;;  %v1594_v9 = vadd.f32 %v1593_v53, %v9486_v18  ;;  %v3806_v7 = vsel %vm1375_vm0, %v3642_v13, 0.0  ;;  %v3645_v49 = vmul.f32 %v11276_v46, %v11275_v43  ;;  %v11278_v53 = vld [vmem:[#allocation85_spill] sm:$0xff] }
 0x336   : > { %v9565_v38 = vpop.xlane.xlu0 %3777  ;;  %v3676_v62 = vmul.f32 %v9558_v1, %v11184_v3  ;;  %v4197_v12 = vrot.slane %v3477_v20, 3  ;;  %v4227_v54 = vrot.slane %v9551_v37, 2  ;;  %v3360_v52 = vsub.f32 %v1825_v30, %v11277_v10 }
 0x337   : > { %11274 = vst [vmem:[#allocation41_spill] sm:$0xff] %v9565_v38  ;;  %v2811_v2 = vpop.permute.xlu1 %2810  ;;  %6208 = vtanh.f32 %v2586_v29  ;;  %v1339_v17 = vmul.f32 %v11017_v23, %v11278_v53  ;;  %v1669_v4 = vrot.slane %v1668_v25, 4  ;;  %v1341_v13 = vmul.f32 %v11028_v47, %v11279_v6 }
 0x338   : > { %v2844_v58 = vsub.f32 %v1825_v30, %v2811_v2  ;;  %v3908_v18 = vsel %vm1375_vm0, %v3676_v62, 0.0  ;;  %6210 = vtanh.f32 %v3102_v8  ;;  %v9583_v11 = vsel %vm4181_vm5, %v4197_v12, %v9504_v21 }
 0x339   : > { %3909 = vadd.xlane.f32.xlu0 %v3908_v18  ;;  %3807 = vadd.xlane.f32.xlu1 %v3806_v7  ;;  %v1676_v29 = vsel %vm1375_vm0, %v1340_v28, 0.0  ;;  %v9587_v23 = vadd.f32 %v7794_v27, %v1583_v59  ;;  %v9590_v50 = vsel %vm4184_vm6, %v4227_v54, %v4226_v56  ;;  %v1595_v62 = vrot.slane %v1594_v9, 1  ;;  %v11281_v7 = vld [vmem:[#allocation54_spill] sm:$0xff] }
 0x33a   : > { %v6197_v3 = vpop.eup %6196  ;;  %v9579_v20 = vpop.xlane.xlu0 %3783  ;;  %6212 = vtanh.f32 %v2844_v58  ;;  %v3815_v2 = vsel %vm1375_vm0, %v3645_v49, 0.0  ;;  %v3646_v43 = vmul.f32 %v11276_v46, %v11281_v7  ;;  %v1675_v12 = vsel %vm1375_vm0, %v1339_v17, 0.0  ;;  %v11284_v7 = vld [vmem:[#allocation84_spill] sm:$0xff] }
 0x33b   : > { %11280 = vst [vmem:[#allocation169_spill] sm:$0xff] %v9579_v20  ;;  %v6199_v30 = vpop.eup %6198  ;;  %6214 = vtanh.f32 %v3360_v52  ;;  %v2900_v28 = vmul.f32 %v6195_v14, %v7946_v36  ;;  %v2893_v59 = vmul.f32 %v6197_v3, %v7946_v36  ;;  %v1670_v54 = vadd.f32 %v1669_v4, %v1668_v25  ;;  %v11282_v52 = vld [vmem:[#allocation92_spill] sm:$0xff] }
 0x33c   : > { %v6201_v8 = vpop.eup %6200  ;;  %v2473_v47 = vpop.permute.xlu1 %2472  ;;  %v1342_v58 = vmul.f32 %v10987_v57, %v11282_v52  ;;  %v1678_v49 = vsel %vm1375_vm0, %v1341_v13, 0.0  ;;  %v2642_v18 = vmul.f32 %v6193_v41, %v7958_v19  ;;  %v3158_v17 = vmul.f32 %v6199_v30, %v7961_v60  ;;  %v11283_v57 = vld [vmem:[#allocation61_spill] sm:$0xff] }
 0x33d   : > { %v6203_v21 = vpop.eup %6202  ;;  %v2570_v10 = vsub.f32 %v9587_v23, %v2473_v47  ;;  %3816 = vadd.xlane.f32.xlu1 %v3815_v2  ;;  %v2635_v14 = vmul.f32 %v6201_v8, %v7958_v19  ;;  %v2828_v3 = vsub.f32 %v9587_v23, %v9332_v31  ;;  %v1677_v2 = vadd.f32 %v1676_v29, %v1675_v12  ;;  %v11285_v12 = vld [vmem:[#allocation62_spill] sm:$0xff] }
 0x33e   : > { %v6205_v56 = vpop.eup %6204  ;;  %v9603_v46 = vpop.xlane.xlu0 %3984  ;;  %v3151_v47 = vmul.f32 %v6203_v21, %v7961_v60  ;;  %v1596_v25 = vadd.f32 %v1595_v62, %v1594_v9  ;;  %v3818_v4 = vsel %vm1375_vm0, %v3646_v43, 0.0  ;;  %v3649_v13 = vmul.f32 %v11284_v7, %v11283_v57  ;;  %v11286_v57 = vld [vmem:[#allocation64_spill] sm:$0xff] }
 0x33f   : > { %v2932_v6 = vadd.f32 %v2900_v28, %v2642_v18  ;;  %v3416_v41 = vmul.f32 %v6205_v56, %v7973_v44  ;;  %v2925_v20 = vadd.f32 %v2893_v59, %v2635_v14  ;;  %6216 = vtanh.f32 %v2570_v10 }
 0x340   : > { %v1671_v38 = vrot.slane %v1670_v54, 2  ;;  %v1679_v40 = vadd.f32 %v1678_v49, %v1677_v2  ;;  %6218 = vtanh.f32 %v2828_v3  ;;  %v3827_v21 = vsel %vm1375_vm0, %v3649_v13, 0.0 }
 0x341   : > { %v3005_v30 = vpop.permute.xlu1 %3004  ;;  %3819 = vadd.xlane.f32.xlu1 %v3818_v4  ;;  %v3183_v62 = vadd.f32 %v3151_v47, %v2925_v20  ;;  %v3190_v43 = vadd.f32 %v3158_v17, %v2932_v6  ;;  %v3650_v28 = vmul.f32 %v11284_v7, %v11285_v12  ;;  %v1680_v10 = vsel %vm1375_vm0, %v1342_v58, 0.0  ;;  %v11288_v12 = vld [vmem:[#allocation67_spill] sm:$0xff] }
 0x342   : > { %v6207_v8 = vpop.eup %6206  ;;  %v9614_v31 = vpop.xlane.xlu0 %3987  ;;  %v3086_v29 = vsub.f32 %v9587_v23, %v3005_v30  ;;  %v9623_v56 = vadd.f32 %v7794_v27, %v1596_v25  ;;  %v1681_v3 = vadd.f32 %v1680_v10, %v1679_v40  ;;  %v1672_v2 = vadd.f32 %v1671_v38, %v1670_v54 }
 0x343   : > { %v3409_v9 = vmul.f32 %v6207_v8, %v7973_v44  ;;  %v3448_v18 = vadd.f32 %v3416_v41, %v3190_v43  ;;  %v3651_v58 = vmul.f32 %v11284_v7, %v11286_v57  ;;  %v3830_v40 = vsel %vm1375_vm0, %v3650_v28, 0.0  ;;  %v11289_v28 = vld [vmem:[#allocation24_spill] sm:$0xff] }
 0x344   : > { %6220 = vtanh.f32 %v3086_v29  ;;  %v6209_v59 = vpop.eup %6208  ;;  %v2571_v47 = vsub.f32 %v9623_v56, %v9363_v32  ;;  %v3087_v54 = vsub.f32 %v9623_v56, %v9401_v48  ;;  %v1682_v7 = vrot.slane %v1681_v3, 4  ;;  %v11287_v48 = vld [vmem:[#allocation148_spill] sm:$0xff] }
 0x345   : > { %3828 = vadd.xlane.f32.xlu1 %v3827_v21  ;;  %v3441_v49 = vadd.f32 %v3409_v9, %v3183_v62  ;;  %v6211_v14 = vpop.eup %6210  ;;  %v2652_v13 = vmul.f32 %v6209_v59, %v7958_v19  ;;  %v1673_v30 = vrot.slane %v1672_v2, 1  ;;  %v3833_v43 = vsel %vm1375_vm0, %v3651_v58, 0.0 }
 0x346   : > { %v9625_v20 = vpop.xlane.xlu0 %3792  ;;  %v3263_v6 = vpop.permute.xlu1 %3262  ;;  %v3168_v8 = vmul.f32 %v6211_v14, %v7961_v60  ;;  %v3721_v59 = vmul.f32 %v11289_v28, %v11288_v12 }
 0x347   : > { %v6213_v17 = vpop.eup %6212  ;;  %v3344_v4 = vsub.f32 %v9587_v23, %v3263_v6  ;;  %v3478_v25 = vadd.f32 %v9234_v39, %v3441_v49  ;;  %v9642_v23 = vadd.f32 %v9234_v39, %v3448_v18 }
 0x348   : > { %v2910_v41 = vmul.f32 %v6213_v17, %v7946_v36  ;;  %v6215_v38 = vpop.eup %6214  ;;  %v11290_v17 = vld [vmem:[#allocation153_spill] sm:$0xff] }
 0x349   : > { %6222 = vtanh.f32 %v3344_v4  ;;  %3831 = vadd.xlane.f32.xlu1 %v3830_v40  ;;  %v9639_v32 = vrot.slane %v3478_v25, %v8563_v15  ;;  %v3426_v10 = vmul.f32 %v6215_v38, %v7973_v44  ;;  %v4199_v6 = vrot.slane %v3478_v25, 2 }
 0x34a   : > { %v2942_v29 = vadd.f32 %v2910_v41, %v2652_v13  ;;  %6224 = vtanh.f32 %v2571_v47  ;;  %v9645_v9 = vpop.xlane.xlu0 %3795  ;;  %v9659_v4 = vrot.slane %v9642_v23, %v8563_v15  ;;  %v1674_v25 = vadd.f32 %v1673_v30, %v1672_v2 }
 0x34b   : > { %v2751_v62 = vpop.permute.xlu1 %2750  ;;  %v3680_v21 = vmul.f32 %v9639_v32, %v11287_v48  ;;  %6226 = vtanh.f32 %v3087_v54  ;;  %v3682_v47 = vmul.f32 %v9639_v32, %v11290_v17  ;;  %v9663_v13 = vsel %vm4184_vm6, %v4199_v6, %v9583_v11  ;;  %v11295_v17 = vld [vmem:[#allocation156_spill] sm:$0xff] }
 0x34c   : > { %v2829_v49 = vsub.f32 %v9623_v56, %v2751_v62  ;;  %v3200_v18 = vadd.f32 %v3168_v8, %v2942_v29  ;;  %v6217_v57 = vpop.eup %6216  ;;  %v1683_v40 = vadd.f32 %v1682_v7, %v1681_v3  ;;  %v4043_v54 = vsel %vm1375_vm0, %v3721_v59, 0.0  ;;  %v11291_v8 = vld [vmem:[#allocation70_spill] sm:$0xff]  ;;  %v11292_v29 = vld [vmem:[#allocation157_spill] sm:$0xff] }
 0x34d   : > { %3834 = vadd.xlane.f32.xlu1 %v3833_v43  ;;  %v3920_v14 = vsel %vm1375_vm0, %v3680_v21, 0.0  ;;  %v6219_v41 = vpop.eup %6218  ;;  %v3653_v62 = vmul.f32 %v11292_v29, %v11291_v8  ;;  %v2636_v21 = vmul.f32 %v6217_v57, %v7958_v19  ;;  %v3926_v2 = vsel %vm1375_vm0, %v3682_v47, 0.0  ;;  %v11293_v3 = vld [vmem:[#allocation58_spill] sm:$0xff] }
 0x34e   : > { %6228 = vtanh.f32 %v2829_v49  ;;  %3921 = vadd.xlane.f32.xlu0 %v3920_v14  ;;  %v3458_v58 = vadd.f32 %v3426_v10, %v3200_v18  ;;  %v9672_v12 = vpop.xlane.xlu0 %3798  ;;  %v3709_v7 = vmul.f32 %v9659_v4, %v11293_v3  ;;  %v1816_v30 = vadd.f32 %v7794_v27, %v1674_v25  ;;  %v11294_v18 = vld [vmem:[#allocation68_spill] sm:$0xff] }
 0x34f   : > { %v2894_v59 = vmul.f32 %v6219_v41, %v7946_v36  ;;  %v3839_v49 = vsel %vm1375_vm0, %v3653_v62, 0.0  ;;  %v3722_v6 = vmul.f32 %v11289_v28, %v11294_v18  ;;  %v1684_v14 = vrot.slane %v1683_v40, 2  ;;  %v11298_v3 = vld [vmem:[#allocation8_spill] sm:$0xff] }
 0x350   : > { %v3267_v38 = vpop.permute.xlu1 %3266  ;;  %v9669_v43 = vadd.f32 %v9234_v39, %v3458_v58  ;;  %v2577_v47 = vsub.f32 %v1816_v30, %v11295_v17  ;;  %v4007_v58 = vsel %vm1375_vm0, %v3709_v7, 0.0  ;;  %v3093_v7 = vsub.f32 %v1816_v30, %v11298_v3 }
 0x351   : > { %v6221_v48 = vpop.eup %6220  ;;  %v3345_v11 = vsub.f32 %v9623_v56, %v3267_v38  ;;  %4044 = vadd.xlane.f32.xlu1 %v4043_v54  ;;  %v2926_v57 = vadd.f32 %v2894_v59, %v2636_v21  ;;  %v11296_v38 = vld [vmem:[#allocation160_spill] sm:$0xff]  ;;  %v1685_v59 = vadd.f32 %v1684_v14, %v1683_v40 }
 0x352   : > { %3927 = vadd.xlane.f32.xlu0 %v3926_v2  ;;  %v3152_v10 = vmul.f32 %v6221_v48, %v7961_v60  ;;  %v4229_v56 = vrot.slane %v9669_v43, 1  ;;  %v2835_v41 = vsub.f32 %v1816_v30, %v11296_v38  ;;  %v9689_v8 = vpop.xlane.xlu0 %3996  ;;  %v11297_v21 = vld [vmem:[#allocation72_spill] sm:$0xff] }
 0x353   : > { %6230 = vtanh.f32 %v3345_v11  ;;  %v4046_v11 = vsel %vm1375_vm0, %v3722_v6, 0.0  ;;  %v3723_v2 = vmul.f32 %v11289_v28, %v11297_v21  ;;  %v11300_v28 = vld [vmem:[#allocation75_spill] sm:$0xff]  ;;  %v1686_v40 = vrot.slane %v1685_v59, 1 }
 0x354   : > { %v3184_v29 = vadd.f32 %v3152_v10, %v2926_v57  ;;  %v9693_v62 = vsel %vm4187_vm7, %v4229_v56, %v9590_v50  ;;  %6232 = vtanh.f32 %v2577_v47  ;;  %v11299_v10 = vld [vmem:[#allocation171_spill] sm:$0xff]  ;;  %v11301_v47 = vld [vmem:[#allocation26_spill] sm:$0xff] }
 0x355   : > { %3840 = vadd.xlane.f32.xlu1 %v3839_v49  ;;  %6234 = vtanh.f32 %v2835_v41  ;;  %v3351_v57 = vsub.f32 %v1816_v30, %v11299_v10  ;;  %v11302_v41 = vld [vmem:[#allocation158_spill] sm:$0xff] }
 0x356   : > { %v6223_v25 = vpop.eup %6222  ;;  %4008 = vadd.xlane.f32.xlu0 %v4007_v58  ;;  %v4049_v58 = vsel %vm1375_vm0, %v3723_v2, 0.0  ;;  %6236 = vtanh.f32 %v3093_v7  ;;  %v9706_v14 = vpop.xlane.xlu0 %3999  ;;  %v1687_v7 = vadd.f32 %v1686_v40, %v1685_v59 }
 0x357   : > { %v3410_v54 = vmul.f32 %v6223_v25, %v7973_v44  ;;  %v6225_v48 = vpop.eup %6224  ;;  %v3657_v25 = vmul.f32 %v11301_v47, %v11300_v28  ;;  %6238 = vtanh.f32 %v3351_v57 }
 0x358   : > { %v6227_v18 = vpop.eup %6226  ;;  %v2637_v56 = vmul.f32 %v6225_v48, %v7958_v19  ;;  %v1817_v28 = vadd.f32 %v7794_v27, %v1687_v7  ;;  %v11309_v27 = vld [vmem:[#allocation111_spill] sm:$0xff] }
 0x359   : > { %4047 = vadd.xlane.f32.xlu1 %v4046_v11  ;;  %v3442_v49 = vadd.f32 %v3410_v54, %v3184_v29  ;;  %v3153_v30 = vmul.f32 %v6227_v18, %v7961_v60  ;;  %v3851_v48 = vsel %vm1375_vm0, %v3657_v25, 0.0  ;;  %v11303_v11 = vld [vmem:[#allocation76_spill] sm:$0xff]  ;;  %v11304_v18 = vld [vmem:[#allocation159_spill] sm:$0xff] }
 0x35a   : > { %v3658_v21 = vmul.f32 %v11301_v47, %v11303_v11  ;;  %v11306_v25 = vld [vmem:[#allocation127_spill] sm:$0xff] }
 0x35b   : > { %v6229_v17 = vpop.eup %6228  ;;  %v3479_v50 = vadd.f32 %v9234_v39, %v3442_v49  ;;  %v4203_v40 = vrot.slane %v11306_v25, 7  ;;  %v11310_v7 = vld [vmem:[#allocation147_spill] sm:$0xff] }
 0x35c   : > { %v2895_v6 = vmul.f32 %v6229_v17, %v7946_v36 }
 0x35d   : > { %4050 = vadd.xlane.f32.xlu1 %v4049_v58  ;;  %v9709_v38 = vrot.slane %v3479_v50, %v8563_v15  ;;  %v4201_v3 = vrot.slane %v3479_v50, 1  ;;  %v3854_v58 = vsel %vm1375_vm0, %v3658_v21, 0.0  ;;  %v11305_v50 = vld [vmem:[#allocation77_spill] sm:$0xff]  ;;  %v2836_v21 = vsub.f32 %v1817_v28, %v11309_v27 }
 0x35e   : > { %v2927_v39 = vadd.f32 %v2895_v6, %v2637_v56  ;;  %v9725_v56 = vpop.xlane.xlu0 %3804  ;;  %v3659_v59 = vmul.f32 %v11301_v47, %v11305_v50 }
 0x35f   : > { %v3685_v54 = vmul.f32 %v9709_v38, %v11302_v41  ;;  %v3686_v10 = vmul.f32 %v9709_v38, %v11304_v18  ;;  %v9723_v57 = vsel %vm4187_vm7, %v4201_v3, %v9663_v13  ;;  %v9736_v13 = vld [vmem:[%s10474_s7 + $0x1] ss:$0 sm:$0xff]  ;;  %6240 = vtanh.f32 %v2836_v21 }
 0x360   : > { %v6231_v29 = vpop.eup %6230  ;;  %v3185_v2 = vadd.f32 %v3153_v30, %v2927_v39 }
 0x361   : > { %v3411_v49 = vmul.f32 %v6231_v29, %v7973_v44  ;;  %3852 = vadd.xlane.f32.xlu1 %v3851_v48  ;;  %v3935_v17 = vsel %vm1375_vm0, %v3685_v54, 0.0  ;;  %v3938_v30 = vsel %vm1375_vm0, %v3686_v10, 0.0  ;;  %v6233_v41 = vpop.eup %6232  ;;  %v11307_v54 = vld [vmem:[#allocation144_spill] sm:$0xff]  ;;  %v3857_v10 = vsel %vm1375_vm0, %v3659_v59, 0.0 }
 0x362   : > { %3936 = vadd.xlane.f32.xlu0 %v3935_v17  ;;  %v4205_v29 = vrot.slane %v11307_v54, 6  ;;  %v11308_v48 = vld [vmem:[#allocation16_spill] sm:$0xff]  ;;  %v6235_v47 = vpop.eup %6234  ;;  %v11311_v17 = vld [vmem:[#allocation89_spill] sm:$0xff] }
 0x363   : > { %v3443_v6 = vadd.f32 %v3411_v49, %v3185_v2  ;;  %v4207_v11 = vrot.slane %v11308_v48, 5  ;;  %v4209_v49 = vrot.slane %v11310_v7, 4  ;;  %v2578_v18 = vsub.f32 %v1817_v28, %v11311_v17  ;;  %v9753_v48 = vpop.xlane.xlu0 %3810 }
 0x364   : > { %v2643_v7 = vmul.f32 %v6233_v41, %v7958_v19  ;;  %v2901_v59 = vmul.f32 %v6235_v47, %v7946_v36  ;;  %v11316_v41 = vld [vmem:[#allocation95_spill] sm:$0xff] }
 0x365   : > { %3855 = vadd.xlane.f32.xlu1 %v3854_v58  ;;  %v3480_v39 = vadd.f32 %v9736_v13, %v3443_v6  ;;  %v11312_v6 = vld [vmem:[#allocation79_spill] sm:$0xff]  ;;  %6242 = vtanh.f32 %v2578_v18 }
 0x366   : > { %3939 = vadd.xlane.f32.xlu0 %v3938_v30  ;;  %v11313_v58 = vld [vmem:[#allocation27_spill] sm:$0xff]  ;;  %v11314_v30 = vld [vmem:[#allocation124_spill] sm:$0xff] }
 0x367   : > { %v9743_v2 = vrot.slane %v3480_v39, %v8563_v15  ;;  %v4204_v3 = vsel %vm4169_vm1, %v4203_v40, %v3480_v39  ;;  %v3725_v50 = vmul.f32 %v11313_v58, %v11312_v6  ;;  %v3094_v54 = vsub.f32 %v1817_v28, %v11314_v30  ;;  %v6237_v39 = vpop.eup %6236 }
 0x368   : > { %v4206_v25 = vsel %vm4172_vm2, %v4205_v29, %v4204_v3  ;;  %v4211_v6 = vrot.slane %v9642_v23, 3  ;;  %v11315_v29 = vld [vmem:[#allocation134_spill] sm:$0xff]  ;;  %v3159_v23 = vmul.f32 %v6237_v39, %v7961_v60 }
 0x369   : > { %3858 = vadd.xlane.f32.xlu1 %v3857_v10  ;;  %v3688_v27 = vmul.f32 %v9743_v2, %v11232_v35  ;;  %v4208_v40 = vsel %vm4175_vm3, %v4207_v11, %v4206_v25  ;;  %v3352_v3 = vsub.f32 %v1817_v28, %v11315_v29  ;;  %v3690_v10 = vmul.f32 %v9743_v2, %v11235_v24  ;;  %v6239_v35 = vpop.eup %6238  ;;  %v11317_v25 = vld [vmem:[#allocation30_spill] sm:$0xff]  ;;  %v9774_v24 = vpop.xlane.xlu0 %3813  ;;  %v11320_v29 = vld [vmem:[#allocation91_spill] sm:$0xff] }
 0x36a   : > { %v4210_v17 = vsel %vm4178_vm4, %v4209_v49, %v4208_v40  ;;  %v4055_v11 = vsel %vm1375_vm0, %v3725_v50, 0.0  ;;  %v3661_v47 = vmul.f32 %v11317_v25, %v11316_v41  ;;  %6244 = vtanh.f32 %v3094_v54 }
 0x36b   : > { %v3944_v58 = vsel %vm1375_vm0, %v3688_v27, 0.0  ;;  %v9770_v49 = vsel %vm4181_vm5, %v4211_v6, %v4210_v17  ;;  %v2933_v28 = vadd.f32 %v2901_v59, %v2643_v7  ;;  %v3417_v21 = vmul.f32 %v6239_v35, %v7973_v44  ;;  %v11318_v27 = vld [vmem:[#allocation88_spill] sm:$0xff]  ;;  %v11319_v7 = vld [vmem:[#allocation131_spill] sm:$0xff] }
 0x36c   : > { %3945 = vadd.xlane.f32.xlu0 %v3944_v58  ;;  %6246 = vtanh.f32 %v3352_v3  ;;  %v3950_v18 = vsel %vm1375_vm0, %v3690_v10, 0.0  ;;  %v3691_v50 = vmul.f32 %v9743_v2, %v11239_v0  ;;  %v3863_v30 = vsel %vm1375_vm0, %v3661_v47, 0.0  ;;  %v11321_v35 = vld [vmem:[#allocation56_spill] sm:$0xff]  ;;  %v11322_v47 = vld [vmem:[#allocation65_spill] sm:$0xff] }
 0x36d   : > { %4056 = vadd.xlane.f32.xlu1 %v4055_v11  ;;  %v3728_v40 = vmul.f32 %v9324_v61, %v11318_v27  ;;  %v3191_v54 = vadd.f32 %v3159_v23, %v2933_v28  ;;  %v3734_v59 = vmul.f32 %v9391_v33, %v11319_v7  ;;  %v9787_v17 = vrot.slane %v9369_v55, %v8563_v15  ;;  %v9792_v58 = vpop.xlane.xlu0 %3822  ;;  %v6241_v55 = vpop.eup %6240  ;;  %v11323_v27 = vld [vmem:[#allocation39_spill] sm:$0xff] }
 0x36e   : > { %v3953_v39 = vsel %vm1375_vm0, %v3691_v50, 0.0  ;;  %v3730_v3 = vmul.f32 %v9324_v61, %v11320_v29  ;;  %v3664_v23 = vmul.f32 %v9347_v51, %v11322_v47  ;;  %v11325_v29 = vlaneseq  ;;  %v11327_v47 = vld [vmem:[#allocation120_spill] sm:$0xff] }
 0x36f   : > { %v3449_v6 = vadd.f32 %v3417_v21, %v3191_v54  ;;  %v4064_v0 = vsel %vm1375_vm0, %v3728_v40, 0.0  ;;  %v4082_v10 = vsel %vm1375_vm0, %v3734_v59, 0.0  ;;  %v3737_v11 = vmul.f32 %v9787_v17, %v11321_v35  ;;  %v11324_v59 = vld [vmem:[#allocation104_spill] sm:$0xff] }
 0x370   : > { %3951 = vadd.xlane.f32.xlu0 %v3950_v18  ;;  %v4070_v25 = vsel %vm1375_vm0, %v3730_v3, 0.0  ;;  %v2902_v18 = vmul.f32 %v6241_v55, %v7946_v36  ;;  %v3707_v40 = vmul.f32 %v11267_v45, %v11323_v27  ;;  %v3872_v7 = vsel %vm1375_vm0, %v3664_v23, 0.0 }
 0x371   : > { %3864 = vadd.xlane.f32.xlu1 %v3863_v30  ;;  %v9798_v41 = vadd.f32 %v9736_v13, %v3449_v6  ;;  %v9804_v50 = vpop.xlane.xlu0 %3825  ;;  %v4091_v30 = vsel %vm1375_vm0, %v3737_v11, 0.0  ;;  %v3666_v6 = vmul.f32 %v9347_v51, %v11324_v59  ;;  %v4389_v3 = vand.u32 127, %v11325_v29  ;;  %v11326_v11 = vld [vmem:[#allocation48_spill] sm:$0xff] }
 0x372   : > { %v6243_v28 = vpop.eup %6242  ;;  %v4001_v35 = vsel %vm1375_vm0, %v3707_v40, 0.0  ;;  %v3733_v51 = vmul.f32 %v9391_v33, %v11327_v47  ;;  %v11332_v47 = vld [vmem:[#allocation114_spill] sm:$0xff] }
 0x373   : > { %v9811_v54 = vrot.slane %v9798_v41, %v8563_v15  ;;  %v2644_v36 = vmul.f32 %v6243_v28, %v7958_v19  ;;  %v4394_v23 = vadd.s32 4294967288, %v4389_v3  ;;  %v4401_v59 = vadd.s32 4294967280, %v4389_v3 }
 0x374   : > { %3954 = vadd.xlane.f32.xlu0 %v3953_v39  ;;  %v4079_v40 = vsel %vm1375_vm0, %v3733_v51, 0.0  ;;  %v3670_v51 = vmul.f32 %v9418_v16, %v11332_v47  ;;  %v11335_v47 = vld [vmem:[#allocation130_spill] sm:$0xff] }
 0x375   : > { %4065 = vadd.xlane.f32.xlu1 %v4064_v0  ;;  %v3712_v55 = vmul.f32 %v9811_v54, %v11326_v11  ;;  %v9826_v19 = vpop.xlane.xlu0 %4041 }
 0x377   : > { %v6245_v21 = vpop.eup %6244 }
 0x378   : > { %4083 = vadd.xlane.f32.xlu0 %v4082_v10  ;;  %v3160_v0 = vmul.f32 %v6245_v21, %v7961_v60  ;;  %v2934_v10 = vadd.f32 %v2902_v18, %v2644_v36  ;;  %v11328_v21 = vld [vmem:[#allocation98_spill] sm:$0xff] }
 0x379   : > { %4071 = vadd.xlane.f32.xlu1 %v4070_v25  ;;  %v6247_v39 = vpop.eup %6246  ;;  %v3878_v25 = vsel %vm1375_vm0, %v3666_v6, 0.0  ;;  %v3735_v18 = vmul.f32 %v9391_v33, %v11328_v21  ;;  %v11330_v6 = vld [vmem:[#allocation102_spill] sm:$0xff]  ;;  %v9849_v29 = vpop.xlane.xlu0 %3837  ;;  %v11333_v21 = vld [vmem:[#allocation63_spill] sm:$0xff] }
 0x37a   : > { %v3418_v45 = vmul.f32 %v6247_v39, %v7973_v44  ;;  %v3192_v60 = vadd.f32 %v3160_v0, %v2934_v10  ;;  %v4016_v44 = vsel %vm1375_vm0, %v3712_v55, 0.0  ;;  %v11329_v39 = vld [vmem:[#allocation113_spill] sm:$0xff]  ;;  %v9841_v36 = vsub.s32 %v4394_v23, %v11330_v6 }
 0x37b   : > { %v9844_v0 = vsub.s32 %v4389_v3, %v11330_v6  ;;  %v4085_v10 = vsel %vm1375_vm0, %v3735_v18, 0.0  ;;  %v4408_v23 = vadd.s32 4294967272, %v4389_v3  ;;  %v3711_v18 = vmul.f32 %v9659_v4, %v11333_v21 }
 0x37c   : > { %4092 = vadd.xlane.f32.xlu0 %v4091_v30  ;;  %v9835_v30 = vrot.slane %v9524_v22, %v8563_v15  ;;  %v3450_v27 = vadd.f32 %v3418_v45, %v3192_v60  ;;  %v4250_v22 = vld [vmem:[%s10470_s3 + $0x18] sm:$0xff]  ;;  %v11331_v45 = vld [vmem:[#allocation126_spill] sm:$0xff]  ;;  %v9862_v60 = vsub.s32 %v4401_v59, %v11330_v6 }
 0x37d   : > { %3873 = vadd.xlane.f32.xlu1 %v3872_v7  ;;  %v3669_v7 = vmul.f32 %v9418_v16, %v11329_v39  ;;  %5758 = vmatprep.subr.mxu1 %v4250_v22  ;;  %v3890_v39 = vsel %vm1375_vm0, %v3670_v51, 0.0  ;;  %v9879_v59 = vsub.s32 %v4408_v23, %v11330_v6  ;;  %v3674_v6 = vmul.f32 %v9475_v5, %v11335_v47 }
 0x37e   : > { %v9855_v11 = vadd.f32 %v9736_v13, %v3450_v27  ;;  %5759 = vmatpush3.msra.mxu1 %v4250_v22 }
 0x380   : > { %4002 = vadd.xlane.f32.xlu0 %v4001_v35  ;;  %v3740_v35 = vmul.f32 %v9835_v30, %v11331_v45  ;;  %v9872_v16 = vrot.slane %v9855_v11, %v8563_v15 }
 0x381   : > { %3879 = vadd.xlane.f32.xlu1 %v3878_v25  ;;  %v3887_v25 = vsel %vm1375_vm0, %v3669_v7, 0.0 }
 0x382   : > { %v9828_v28 = vpop.xlane.xlu1 %3753 }
 0x384   : > { %4017 = vadd.xlane.f32.xlu0 %v4016_v44  ;;  %v4722_v44 = vrot.slane %v9493_v26, %v9844_v0  ;;  %v11334_v26 = vld [vmem:[#allocation128_spill] sm:$0xff] }
 0x385   : > { %4080 = vadd.xlane.f32.xlu1 %v4079_v40  ;;  %v4100_v40 = vsel %vm1375_vm0, %v3740_v35, 0.0  ;;  %v3673_v7 = vmul.f32 %v9475_v5, %v11334_v26  ;;  %v4013_v35 = vsel %vm1375_vm0, %v3711_v18, 0.0  ;;  %v11338_v26 = vld [vmem:[#allocation34_spill] sm:$0xff] }
 0x386   : > { %v3961_v33 = vpop.xlane.xlu1 %3960 }
 0x387   : > { %v4726_v55 = vrot.slane %v3961_v33, %v9841_v36  ;;  %v9881_v33 = vpop.xlane.xlu0 %3843 }
 0x388   : > { %4086 = vadd.xlane.f32.xlu0 %v4085_v10 }
 0x389   : > { %3888 = vadd.xlane.f32.xlu1 %v3887_v25  ;;  %v4727_v3 = vsel %vm4399_vm8, %v4726_v55, %v4722_v44  ;;  %v3716_v55 = vmul.f32 %v9872_v16, %v11278_v53  ;;  %v3899_v25 = vsel %vm1375_vm0, %v3673_v7, 0.0  ;;  %v11336_v53 = vld [vmem:[#allocation116_spill] sm:$0xff]  ;;  %v4418_v7 = vrot.slane %v11338_v26, %v9844_v0  ;;  %v11343_v26 = vld [vmem:[#allocation9_spill] sm:$0xff] }
 0x38a   : > { %v3964_v13 = vpop.xlane.xlu1 %3963  ;;  %v3739_v18 = vmul.f32 %v9787_v17, %v11336_v53 }
 0x38b   : > { %v4731_v27 = vrot.slane %v3964_v13, %v9862_v60  ;;  %v9894_v44 = vpop.xlane.xlu0 %3846  ;;  %v4393_v13 = vrot.slane %v9828_v28, %v9844_v0  ;;  %v4028_v21 = vsel %vm1375_vm0, %v3716_v55, 0.0  ;;  %v4398_v28 = vrot.slane %v9426_v42, %v9841_v36 }
 0x38c   : > { %4101 = vadd.xlane.f32.xlu0 %v4100_v40  ;;  %v3902_v40 = vsel %vm1375_vm0, %v3674_v6, 0.0 }
 0x38d   : > { %v4732_v22 = vsel %vm4406_vm9, %v4731_v27, %v4727_v3  ;;  %3891 = vadd.xlane.f32.xlu1 %v3890_v39  ;;  %v9903_v27 = vrot.slane %v9551_v37, %v8563_v15  ;;  %v11337_v3 = vld [vmem:[#allocation136_spill] sm:$0xff] }
 0x38e   : > { %v3967_v10 = vpop.xlane.xlu1 %3966  ;;  %v3677_v39 = vmul.f32 %v9558_v1, %v11337_v3  ;;  %v11342_v3 = vld [vmem:[#allocation51_spill] sm:$0xff] }
 0x38f   : > { %v4736_v45 = vrot.slane %v3967_v10, %v9879_v59  ;;  %v4400_v10 = vsel %vm4399_vm8, %v4398_v28, %v4393_v13  ;;  %v9924_v53 = vpop.xlane.xlu0 %3849  ;;  %v3715_v28 = vmul.f32 %v9811_v54, %v11342_v3 }
 0x390   : > { %4014 = vadd.xlane.f32.xlu0 %v4013_v35  ;;  %v11339_v35 = vld [vmem:[#allocation138_spill] sm:$0xff]  ;;  %v3911_v42 = vsel %vm1375_vm0, %v3677_v39, 0.0 }
 0x391   : > { %v9892_v51 = vsel %vm4413_vm10, %v4736_v45, %v4732_v22  ;;  %3900 = vadd.xlane.f32.xlu1 %v3899_v25  ;;  %v4097_v45 = vsel %vm1375_vm0, %v3739_v18, 0.0  ;;  %v3744_v55 = vmul.f32 %v9903_v27, %v11339_v35  ;;  %v11340_v25 = vld [vmem:[#allocation33_spill] sm:$0xff] }
 0x392   : > { %v3769_v23 = vpop.xlane.xlu1 %3768  ;;  %v4405_v47 = vrot.slane %v11340_v25, %v9862_v60 }
 0x393   : > { %v4422_v5 = vrot.slane %v3769_v23, %v9841_v36  ;;  %v11341_v23 = vld [vmem:[#allocation142_spill] sm:$0xff]  ;;  %v4112_v39 = vsel %vm1375_vm0, %v3744_v55, 0.0  ;;  %v4741_v55 = vrot.slane %v9529_v34, %v9844_v0  ;;  %v4750_v34 = vrot.slane %v9542_v63, %v9862_v60 }
 0x394   : > { %4029 = vadd.xlane.f32.xlu0 %v4028_v21  ;;  %v3678_v21 = vmul.f32 %v9558_v1, %v11341_v23  ;;  %v4407_v18 = vsel %vm4406_vm9, %v4405_v47, %v4400_v10 }
 0x395   : > { %3903 = vadd.xlane.f32.xlu1 %v3902_v40  ;;  %v4423_v6 = vsel %vm4399_vm8, %v4422_v5, %v4418_v7  ;;  %v4412_v5 = vrot.slane %v11343_v26, %v9879_v59 }
 0x396   : > { %v3772_v22 = vpop.xlane.xlu1 %3771 }
 0x397   : > { %v4427_v37 = vrot.slane %v3772_v22, %v9862_v60  ;;  %v3914_v22 = vsel %vm1375_vm0, %v3678_v21, 0.0  ;;  %v4414_v35 = vsel %vm4413_vm10, %v4412_v5, %v4407_v18  ;;  %v11345_v21 = vld [vmem:[#allocation135_spill] sm:$0xff] }
 0x398   : > { %4098 = vadd.xlane.f32.xlu0 %v4097_v45  ;;  %v11344_v45 = vld [vmem:[#allocation145_spill] sm:$0xff] }
 0x399   : > { %v4428_v13 = vsel %vm4406_vm9, %v4427_v37, %v4423_v6  ;;  %3912 = vadd.xlane.f32.xlu1 %v3911_v42  ;;  %v3679_v37 = vmul.f32 %v9558_v1, %v11344_v45  ;;  %v4025_v6 = vsel %vm1375_vm0, %v3715_v28, 0.0  ;;  %v9945_v42 = vpop.xlane.xlu0 %4053  ;;  %v3743_v1 = vmul.f32 %v9835_v30, %v11345_v21  ;;  %v11348_v45 = vld [vmem:[#allocation155_spill] sm:$0xff] }
 0x39a   : > { %v3775_v40 = vpop.xlane.xlu1 %3774 }
 0x39b   : > { %v4432_v7 = vrot.slane %v3775_v40, %v9879_v59  ;;  %v3917_v18 = vsel %vm1375_vm0, %v3679_v37, 0.0  ;;  %v11346_v40 = vld [vmem:[#allocation11_spill] sm:$0xff]  ;;  %v3683_v37 = vmul.f32 %v9639_v32, %v11348_v45  ;;  %v11352_v45 = vld [vmem:[#allocation97_spill] sm:$0xff] }
 0x39c   : > { %4113 = vadd.xlane.f32.xlu0 %v4112_v39  ;;  %v3681_v3 = vmul.f32 %v9639_v32, %v11346_v40  ;;  %v11347_v39 = vld [vmem:[#allocation152_spill] sm:$0xff] }
 0x39d   : > { %v4433_v10 = vsel %vm4413_vm10, %v4432_v7, %v4428_v13  ;;  %3915 = vadd.xlane.f32.xlu1 %v3914_v22  ;;  %v9952_v13 = vrot.slane %v9669_v43, %v8563_v15  ;;  %v4109_v7 = vsel %vm1375_vm0, %v3743_v1, 0.0  ;;  %v3929_v32 = vsel %vm1375_vm0, %v3683_v37, 0.0 }
 0x39e   : > { %v9940_v25 = vsel %vm4169_vm1, %v4433_v10, %v4414_v35  ;;  %v3973_v47 = vpop.xlane.xlu1 %3972  ;;  %v3923_v22 = vsel %vm1375_vm0, %v3681_v3, 0.0  ;;  %v9968_v35 = vpop.xlane.xlu0 %4059  ;;  %v4249_v10 = vld [vmem:[%s10470_s3 + $0x10] sm:$0xff]  ;;  %v11350_v3 = vld [vmem:[#allocation105_spill] sm:$0xff]  ;;  %v3731_v37 = vmul.f32 %v9324_v61, %v11352_v45 }
 0x39f   : > { %v4745_v23 = vrot.slane %v3973_v47, %v9841_v36  ;;  %v3748_v15 = vmul.f32 %v9952_v13, %v11347_v39  ;;  %5760 = vmatprep.subr.mxu1 %v4249_v10 }
 0x3a0   : > { %4026 = vadd.xlane.f32.xlu0 %v4025_v6  ;;  %5761 = vmatpush3.msra.mxu1 %v4249_v10 }
 0x3a1   : > { %v4746_v28 = vsel %vm4399_vm8, %v4745_v23, %v4741_v55  ;;  %3918 = vadd.xlane.f32.xlu1 %v3917_v18  ;;  %v4124_v6 = vsel %vm1375_vm0, %v3748_v15, 0.0  ;;  %v3719_v55 = vmul.f32 %v9872_v16, %v11282_v52  ;;  %v11349_v23 = vld [vmem:[#allocation57_spill] sm:$0xff] }
 0x3a2   : > { %v3979_v26 = vpop.xlane.xlu1 %3978  ;;  %v4751_v43 = vsel %vm4406_vm9, %v4750_v34, %v4746_v28  ;;  %v3708_v21 = vmul.f32 %v9659_v4, %v11349_v23  ;;  %v9986_v18 = vpop.xlane.xlu0 %4062  ;;  %v3750_v28 = vmul.f32 %v9952_v13, %v11350_v3  ;;  %v11351_v34 = vld [vmem:[#allocation10_spill] sm:$0xff]  ;;  %v4073_v3 = vsel %vm1375_vm0, %v3731_v37, 0.0 }
 0x3a3   : > { %v4755_v5 = vrot.slane %v3979_v26, %v9879_v59  ;;  %v4037_v40 = vsel %vm1375_vm0, %v3719_v55, 0.0  ;;  %v3684_v26 = vmul.f32 %v9709_v38, %v11351_v34  ;;  %v4769_v55 = vrot.slane %v9614_v31, %v9862_v60 }
 0x3a4   : > { %4110 = vadd.xlane.f32.xlu0 %v4109_v7  ;;  %v4004_v52 = vsel %vm1375_vm0, %v3708_v21, 0.0  ;;  %v4764_v7 = vrot.slane %v9603_v46, %v9841_v36  ;;  %v4130_v15 = vsel %vm1375_vm0, %v3750_v28, 0.0  ;;  %v11353_v21 = vld [vmem:[#allocation151_spill] sm:$0xff] }
 0x3a5   : > { %v9971_v63 = vsel %vm4413_vm10, %v4755_v5, %v4751_v43  ;;  %3924 = vadd.xlane.f32.xlu1 %v3923_v22  ;;  %v4213_v43 = vrot.slane %v9798_v41, 2  ;;  %v3932_v22 = vsel %vm1375_vm0, %v3684_v26, 0.0  ;;  %v4215_v41 = vrot.slane %v9855_v11, 1 }
 0x3a6   : > { %v9976_v47 = vpop.xlane.xlu1 %3780  ;;  %v10002_v10 = vpop.xlane.xlu0 %3861 }
 0x3a7   : > { %v4214_v46 = vsel %vm4184_vm6, %v4213_v43, %v9770_v49  ;;  %v11356_v43 = vld [vmem:[#allocation121_spill] sm:$0xff] }
 0x3a8   : > { %4125 = vadd.xlane.f32.xlu0 %v4124_v6  ;;  %v4216_v28 = vsel %vm4187_vm7, %v4215_v41, %v4214_v46  ;;  %v11357_v46 = vld [vmem:[#allocation59_spill] sm:$0xff] }
 0x3a9   : > { %3930 = vadd.xlane.f32.xlu1 %v3929_v32  ;;  %v4241_v26 = vsel %vm1375_vm0, %v4216_v28, 0.0 }
 0x3aa   : > { %v9984_v1 = vpop.xlane.xlu1 %3786  ;;  %v10021_v34 = vpop.xlane.xlu0 %3867 }
 0x3ac   : > { %4038 = vadd.xlane.f32.xlu0 %v4037_v40  ;;  %v4235_v40 = vsel %vm1375_vm0, %v11353_v21, 0.0 }
 0x3ad   : > { %4005 = vadd.xlane.f32.xlu1 %v4004_v52  ;;  %v11354_v52 = vld [vmem:[#allocation119_spill] sm:$0xff] }
 0x3ae   : > { %v3982_v5 = vpop.xlane.xlu1 %3981  ;;  %v3689_v49 = vmul.f32 %v9743_v2, %v11354_v52  ;;  %v10032_v45 = vpop.xlane.xlu0 %3870 }
 0x3af   : > { %v4760_v39 = vrot.slane %v3982_v5, %v9844_v0 }
 0x3b0   : > { %4131 = vadd.xlane.f32.xlu0 %v4130_v15  ;;  %v3947_v5 = vsel %vm1375_vm0, %v3689_v49, 0.0 }
 0x3b1   : > { %v4765_v6 = vsel %vm4399_vm8, %v4764_v7, %v4760_v39  ;;  %3933 = vadd.xlane.f32.xlu1 %v3932_v22  ;;  %v11355_v7 = vld [vmem:[#allocation108_spill] sm:$0xff]  ;;  %v3687_v22 = vmul.f32 %v9709_v38, %v11356_v43  ;;  %v11358_v38 = vld [vmem:[#allocation49_spill] sm:$0xff] }
 0x3b2   : > { %v3991_v32 = vpop.xlane.xlu1 %3990  ;;  %v4770_v61 = vsel %vm4406_vm9, %v4769_v55, %v4765_v6  ;;  %v3736_v39 = vmul.f32 %v9787_v17, %v11355_v7  ;;  %v3710_v55 = vmul.f32 %v9659_v4, %v11357_v46  ;;  %v10037_v41 = vpop.xlane.xlu0 %4068  ;;  %v11359_v4 = vld [vmem:[#allocation110_spill] sm:$0xff] }
 0x3b3   : > { %v4774_v23 = vrot.slane %v3991_v32, %v9879_v59  ;;  %v3941_v6 = vsel %vm1375_vm0, %v3687_v22, 0.0  ;;  %v3738_v28 = vmul.f32 %v9787_v17, %v11359_v4  ;;  %v11361_v22 = vld [vmem:[#allocation50_spill] sm:$0xff] }
 0x3b4   : > { %4236 = vadd.xlane.f32.xlu0 %v4235_v40  ;;  %v4088_v2 = vsel %vm1375_vm0, %v3736_v39, 0.0  ;;  %v4010_v21 = vsel %vm1375_vm0, %v3710_v55, 0.0  ;;  %v3713_v40 = vmul.f32 %v9811_v54, %v11358_v38  ;;  %v11362_v46 = vld [vmem:[#allocation86_spill] sm:$0xff] }
 0x3b5   : > { %v10019_v31 = vsel %vm4413_vm10, %v4774_v23, %v4770_v61  ;;  %4074 = vadd.xlane.f32.xlu1 %v4073_v3  ;;  %v4248_v23 = vld [vmem:[%s10470_s3 + $0x8] sm:$0xff]  ;;  %v3717_v55 = vmul.f32 %v9872_v16, %v11362_v46 }
 0x3b6   : > { %v3790_v11 = vpop.xlane.xlu1 %3789  ;;  %5762 = vmatprep.subr.mxu1 %v4248_v23  ;;  %v4019_v3 = vsel %vm1375_vm0, %v3713_v40, 0.0  ;;  %v10048_v52 = vpop.xlane.xlu0 %3876  ;;  %v4441_v40 = vrot.slane %v9976_v47, %v9841_v36 }
 0x3b7   : > { %5763 = vmatpush3.msra.mxu1 %v4248_v23 }
 0x3b8   : > { %4242 = vadd.xlane.f32.xlu0 %v4241_v26  ;;  %v4094_v26 = vsel %vm1375_vm0, %v3738_v28, 0.0  ;;  %v11364_v28 = vld [vmem:[#allocation41_spill] sm:$0xff] }
 0x3b9   : > { %3948 = vadd.xlane.f32.xlu1 %v3947_v5  ;;  %v11360_v5 = vld [vmem:[#allocation129_spill] sm:$0xff] }
 0x3ba   : > { %v10027_v15 = vpop.xlane.xlu1 %3993  ;;  %v3741_v7 = vmul.f32 %v9835_v30, %v11360_v5  ;;  %v10056_v43 = vpop.xlane.xlu0 %3882 }
 0x3bc   : > { %v4103_v17 = vsel %vm1375_vm0, %v3741_v7, 0.0  ;;  %v4031_v7 = vsel %vm1375_vm0, %v3717_v55, 0.0  ;;  %v4465_v55 = vrot.slane %v9645_v9, %v9862_v60  ;;  %v4855_v9 = vrot.slane %v9826_v19, %v9844_v0 }
 0x3bd   : > { %4089 = vadd.xlane.f32.xlu1 %v4088_v2  ;;  %v4247_v2 = vld [vmem:[%s10470_s3] sm:$0xff] }
 0x3be   : > { %v3802_v37 = vpop.xlane.xlu1 %3801  ;;  %5764 = vmatprep.subr.mxu1 %v4247_v2  ;;  %v10073_v5 = vpop.xlane.xlu0 %4077 }
 0x3bf   : > { %5765 = vmatpush3.msra.mxu1 %v4247_v2  ;;  %v4475_v47 = vrot.slane %v3802_v37, %v9844_v0  ;;  %v4479_v37 = vrot.slane %v9725_v56, %v9841_v36 }
 0x3c1   : > { %3942 = vadd.xlane.f32.xlu1 %v3941_v6  ;;  %v3714_v6 = vmul.f32 %v9811_v54, %v11361_v22  ;;  %v4460_v54 = vrot.slane %v9625_v20, %v9841_v36  ;;  %v11366_v22 = vld [vmem:[#allocation139_spill] sm:$0xff] }
 0x3c2   : > { %v3808_v32 = vpop.xlane.xlu1 %3807 }
 0x3c3   : > { %v4022_v4 = vsel %vm1375_vm0, %v3714_v6, 0.0  ;;  %v3745_v6 = vmul.f32 %v9903_v27, %v11366_v22 }
 0x3c5   : > { %4011 = vadd.xlane.f32.xlu1 %v4010_v21  ;;  %v11363_v21 = vld [vmem:[#allocation132_spill] sm:$0xff] }
 0x3c6   : > { %v3817_v61 = vpop.xlane.xlu1 %3816  ;;  %v3742_v38 = vmul.f32 %v9835_v30, %v11363_v21  ;;  %v11365_v30 = vld [vmem:[#allocation169_spill] sm:$0xff]  ;;  %v4484_v21 = vrot.slane %v3808_v32, %v9862_v60  ;;  %v4494_v32 = vrot.slane %v9774_v24, %v9844_v0 }
 0x3c7   : > { %v4446_v2 = vrot.slane %v11365_v30, %v9862_v60 }
 0x3c9   : > { %4020 = vadd.xlane.f32.xlu1 %v4019_v3  ;;  %v4456_v3 = vrot.slane %v3790_v11, %v9844_v0  ;;  %v4106_v11 = vsel %vm1375_vm0, %v3742_v38, 0.0  ;;  %v4451_v38 = vrot.slane %v9984_v1, %v9879_v59  ;;  %v4480_v1 = vsel %vm4399_vm8, %v4479_v37, %v4475_v47 }
 0x3ca   : > { %v3820_v49 = vpop.xlane.xlu1 %3819  ;;  %v4508_v47 = vrot.slane %v9792_v58, %v9879_v59 }
 0x3cb   : > { %v4461_v20 = vsel %vm4399_vm8, %v4460_v54, %v4456_v3  ;;  %v4489_v3 = vrot.slane %v9753_v48, %v9879_v59  ;;  %v4485_v48 = vsel %vm4406_vm9, %v4484_v21, %v4480_v1 }
 0x3cd   : > { %4095 = vadd.xlane.f32.xlu1 %v4094_v26  ;;  %v4437_v26 = vrot.slane %v11364_v28, %v9844_v0  ;;  %v4503_v28 = vrot.slane %v3820_v49, %v9862_v60 }
 0x3ce   : > { %v3829_v39 = vpop.xlane.xlu1 %3828 }
 0x3cf   : > { %v4442_v46 = vsel %vm4399_vm8, %v4441_v40, %v4437_v26  ;;  %v4470_v40 = vrot.slane %v9672_v12, %v9879_v59  ;;  %v4517_v49 = vrot.slane %v3829_v39, %v9841_v36  ;;  %v10105_v12 = vpop.xlane.xlu0 %3885 }
 0x3d0   : > { %v4447_v56 = vsel %vm4406_vm9, %v4446_v2, %v4442_v46 }
 0x3d1   : > { %4104 = vadd.xlane.f32.xlu1 %v4103_v17  ;;  %v4452_v30 = vsel %vm4413_vm10, %v4451_v38, %v4447_v56 }
 0x3d2   : > { %v3832_v23 = vpop.xlane.xlu1 %3831 }
 0x3d3   : > { %v4522_v24 = vrot.slane %v3832_v23, %v9862_v60  ;;  %v4532_v23 = vrot.slane %v9849_v29, %v9844_v0  ;;  %v4541_v29 = vrot.slane %v9881_v33, %v9862_v60 }
 0x3d5   : > { %4023 = vadd.xlane.f32.xlu1 %v4022_v4  ;;  %v4498_v4 = vrot.slane %v3817_v61, %v9841_v36  ;;  %v4466_v61 = vsel %vm4406_vm9, %v4465_v55, %v4461_v20  ;;  %v4490_v20 = vsel %vm4413_vm10, %v4489_v3, %v4485_v48  ;;  %v10138_v3 = vpop.xlane.xlu0 %3894 }
 0x3d6   : > { %v3835_v17 = vpop.xlane.xlu1 %3834  ;;  %v4471_v22 = vsel %vm4413_vm10, %v4470_v40, %v4466_v61 }
 0x3d7   : > { %v4499_v54 = vsel %vm4399_vm8, %v4498_v4, %v4494_v32  ;;  %v4527_v39 = vrot.slane %v3835_v17, %v9879_v59  ;;  %v11367_v4 = vld [vmem:[#allocation87_spill] sm:$0xff]  ;;  %v5005_v17 = vsel %vm4172_vm2, %v4452_v30, %v9940_v25 }
 0x3d8   : > { %v4504_v2 = vsel %vm4406_vm9, %v4503_v28, %v4499_v54  ;;  %v3718_v55 = vmul.f32 %v9872_v16, %v11367_v4  ;;  %v4115_v28 = vsel %vm1375_vm0, %v3745_v6, 0.0  ;;  %v5006_v40 = vsel %vm4175_vm3, %v4471_v22, %v5005_v17 }
 0x3d9   : > { %4032 = vadd.xlane.f32.xlu1 %v4031_v7  ;;  %v4513_v7 = vrot.slane %v9804_v50, %v9844_v0  ;;  %v4509_v58 = vsel %vm4413_vm10, %v4508_v47, %v4504_v2  ;;  %v4546_v16 = vrot.slane %v9894_v44, %v9879_v59  ;;  %v5007_v32 = vsel %vm4178_vm4, %v4490_v20, %v5006_v40  ;;  %v10151_v54 = vpop.xlane.xlu0 %3897  ;;  %v11369_v2 = vld [vmem:[#allocation149_spill] sm:$0xff] }
 0x3da   : > { %v4045_v26 = vpop.xlane.xlu1 %4044  ;;  %v5008_v33 = vsel %vm4181_vm5, %v4509_v58, %v5007_v32  ;;  %v4034_v44 = vsel %vm1375_vm0, %v3718_v55, 0.0 }
 0x3db   : > { %v4859_v19 = vrot.slane %v4045_v26, %v9841_v36  ;;  %v4518_v50 = vsel %vm4399_vm8, %v4517_v49, %v4513_v7  ;;  %v11368_v26 = vld [vmem:[#allocation140_spill] sm:$0xff] }
 0x3dc   : > { %v4523_v37 = vsel %vm4406_vm9, %v4522_v24, %v4518_v50  ;;  %v3746_v48 = vmul.f32 %v9903_v27, %v11368_v26 }
 0x3dd   : > { %v4860_v46 = vsel %vm4399_vm8, %v4859_v19, %v4855_v9  ;;  %4107 = vadd.xlane.f32.xlu1 %v4106_v11  ;;  %v4528_v38 = vsel %vm4413_vm10, %v4527_v39, %v4523_v37  ;;  %v3749_v39 = vmul.f32 %v9952_v13, %v11369_v2  ;;  %v10162_v20 = vpop.xlane.xlu0 %3906 }
 0x3de   : > { %v3841_v21 = vpop.xlane.xlu1 %3840  ;;  %v5009_v1 = vsel %vm4184_vm6, %v4528_v38, %v5008_v33  ;;  %v4118_v30 = vsel %vm1375_vm0, %v3746_v48, 0.0  ;;  %v4238_v33 = vsel %vm1375_vm0, %v9723_v57, 0.0  ;;  %v4579_v57 = vrot.slane %v10021_v34, %v9862_v60 }
 0x3df   : > { %v4536_v11 = vrot.slane %v3841_v21, %v9841_v36  ;;  %v4127_v50 = vsel %vm1375_vm0, %v3749_v39, 0.0  ;;  %v11370_v21 = vld [vmem:[#allocation143_spill] sm:$0xff] }
 0x3e0   : > { %v3747_v4 = vmul.f32 %v9903_v27, %v11370_v21 }
 0x3e1   : > { %v4537_v25 = vsel %vm4399_vm8, %v4536_v11, %v4532_v23  ;;  %4116 = vadd.xlane.f32.xlu1 %v4115_v28  ;;  %v4551_v23 = vrot.slane %v9924_v53, %v9844_v0  ;;  %v10169_v58 = vpop.xlane.xlu0 %3909  ;;  %v11371_v53 = vld [vmem:[#allocation115_spill] sm:$0xff] }
 0x3e2   : > { %v4542_v9 = vsel %vm4406_vm9, %v4541_v29, %v4537_v25  ;;  %v4048_v56 = vpop.xlane.xlu1 %4047  ;;  %v4121_v11 = vsel %vm1375_vm0, %v3747_v4, 0.0  ;;  %v3751_v29 = vmul.f32 %v9952_v13, %v11371_v53  ;;  %v4883_v13 = vrot.slane %v9968_v35, %v9862_v60 }
 0x3e3   : > { %v4864_v6 = vrot.slane %v4048_v56, %v9862_v60  ;;  %v4547_v61 = vsel %vm4413_vm10, %v4546_v16, %v4542_v9  ;;  %v4874_v9 = vrot.slane %v9945_v42, %v9844_v0  ;;  %v4570_v42 = vrot.slane %v10002_v10, %v9844_v0 }
 0x3e4   : > { %v5010_v49 = vsel %vm4187_vm7, %v4547_v61, %v5009_v1  ;;  %v4133_v16 = vsel %vm1375_vm0, %v3751_v29, 0.0  ;;  %v4593_v4 = vrot.slane %v10048_v52, %v9841_v36 }
 0x3e5   : > { %v4865_v24 = vsel %vm4406_vm9, %v4864_v6, %v4860_v46  ;;  %4035 = vadd.xlane.f32.xlu1 %v4034_v44  ;;  %5766 = vmatprep.mubr.msk.f32.mxu1 %vm5032_vm11, %v5010_v49  ;;  %v10176_v40 = vpop.xlane.xlu0 %3921  ;;  %v4888_v6 = vrot.slane %v9986_v18, %v9879_v59  ;;  %v4244_v18 = vsel %vm1375_vm0, %v9693_v62, 0.0 }
 0x3e6   : > { %v4051_v19 = vpop.xlane.xlu1 %4050 }
 0x3e7   : > { %v4869_v7 = vrot.slane %v4051_v19, %v9879_v59 }
 0x3e9   : > { %v4870_v47 = vsel %vm4413_vm10, %v4869_v7, %v4865_v24  ;;  %4119 = vadd.xlane.f32.xlu1 %v4118_v30  ;;  %v10190_v61 = vpop.xlane.xlu0 %3927  ;;  %v4584_v24 = vrot.slane %v10032_v45, %v9879_v59  ;;  %v4897_v30 = vrot.slane %v10037_v41, %v9841_v36 }
 0x3ea   : > { %v3853_v22 = vpop.xlane.xlu1 %3852 }
 0x3eb   : > { %v4555_v46 = vrot.slane %v3853_v22, %v9841_v36 }
 0x3ed   : > { %v4556_v55 = vsel %vm4399_vm8, %v4555_v46, %v4551_v23  ;;  %4128 = vadd.xlane.f32.xlu1 %v4127_v50  ;;  %v10211_v2 = vpop.xlane.xlu0 %4008 }
 0x3ee   : > { %v3856_v17 = vpop.xlane.xlu1 %3855 }
 0x3ef   : > { %v4560_v37 = vrot.slane %v3856_v17, %v9862_v60 }
 0x3f1   : > { %v4561_v38 = vsel %vm4406_vm9, %v4560_v37, %v4556_v55  ;;  %4122 = vadd.xlane.f32.xlu1 %v4121_v11  ;;  %v10217_v22 = vpop.xlane.xlu0 %3936  ;;  %v4603_v37 = vrot.slane %v10056_v43, %v9879_v59 }
 0x3f2   : > { %v3859_v28 = vpop.xlane.xlu1 %3858 }
 0x3f3   : > { %v4565_v27 = vrot.slane %v3859_v28, %v9879_v59 }
 0x3f5   : > { %v4566_v25 = vsel %vm4413_vm10, %v4565_v27, %v4561_v38  ;;  %4134 = vadd.xlane.f32.xlu1 %v4133_v16  ;;  %v10222_v21 = vpop.xlane.xlu0 %3939  ;;  %v4912_v27 = vrot.slane %v10073_v5, %v9844_v0 }
 0x3f6   : > { %v4057_v32 = vpop.xlane.xlu1 %4056 }
 0x3f7   : > { %v4878_v56 = vrot.slane %v4057_v32, %v9841_v36 }
 0x3f9   : > { %v4879_v1 = vsel %vm4399_vm8, %v4878_v56, %v4874_v9  ;;  %4239 = vadd.xlane.f32.xlu1 %v4238_v33  ;;  %v10230_v53 = vpop.xlane.xlu0 %3945 }
 0x3fa   : > { %v4884_v44 = vsel %vm4406_vm9, %v4883_v13, %v4879_v1  ;;  %v3865_v49 = vpop.xlane.xlu1 %3864 }
 0x3fb   : > { %v4889_v26 = vsel %vm4413_vm10, %v4888_v6, %v4884_v44  ;;  %v4574_v35 = vrot.slane %v3865_v49, %v9841_v36 }
 0x3fc   : > { %v10203_v48 = vsel %vm4169_vm1, %v4889_v26, %v4870_v47 }
 0x3fd   : > { %v4575_v19 = vsel %vm4399_vm8, %v4574_v35, %v4570_v42  ;;  %4245 = vadd.xlane.f32.xlu1 %v4244_v18  ;;  %v10241_v32 = vpop.xlane.xlu0 %3951 }
 0x3fe   : > { %v4580_v10 = vsel %vm4406_vm9, %v4579_v57, %v4575_v19  ;;  %v4066_v7 = vpop.xlane.xlu1 %4065  ;;  %v4779_v19 = vrot.slane %v10027_v15, %v9844_v0  ;;  %v4627_v15 = vrot.slane %v10151_v54, %v9844_v0  ;;  %v4665_v54 = vrot.slane %v10176_v40, %v9844_v0 }
 0x3ff   : > { %v4585_v34 = vsel %vm4413_vm10, %v4584_v24, %v4580_v10  ;;  %v4893_v62 = vrot.slane %v4066_v7, %v9844_v0  ;;  %v4783_v10 = vrot.slane %v9689_v8, %v9841_v36  ;;  %v4641_v8 = vrot.slane %v10162_v20, %v9879_v59 }
 0x400   : > { %v5011_v39 = vsel %vm4169_vm1, %v4585_v34, %v4566_v25  ;;  %v4788_v34 = vrot.slane %v9706_v14, %v9862_v60 }
 0x401   : > { %v4898_v47 = vsel %vm4399_vm8, %v4897_v30, %v4893_v62  ;;  %v10243_v56 = vpop.xlane.xlu0 %3954  ;;  %v4784_v30 = vsel %vm4399_vm8, %v4783_v10, %v4779_v19  ;;  %v4608_v62 = vrot.slane %v10105_v12, %v9844_v0  ;;  %v4688_v10 = vrot.slane %v10217_v22, %v9841_v36 }
 0x402   : > { %v4072_v45 = vpop.xlane.xlu1 %4071  ;;  %v4789_v14 = vsel %vm4406_vm9, %v4788_v34, %v4784_v30 }
 0x403   : > { %v4902_v23 = vrot.slane %v4072_v45, %v9862_v60  ;;  %v4622_v45 = vrot.slane %v10138_v3, %v9879_v59  ;;  %v4646_v3 = vrot.slane %v10169_v58, %v9844_v0  ;;  %v4712_v58 = vrot.slane %v10241_v32, %v9862_v60 }
 0x405   : > { %v4903_v46 = vsel %vm4406_vm9, %v4902_v23, %v4898_v47  ;;  %v4084_v6 = vpop.xlane.xlu0 %4083 }
 0x406   : > { %v3874_v50 = vpop.xlane.xlu1 %3873 }
 0x407   : > { %v4589_v41 = vrot.slane %v3874_v50, %v9844_v0 }
 0x409   : > { %v4594_v11 = vsel %vm4399_vm8, %v4593_v4, %v4589_v41  ;;  %v10245_v44 = vpop.xlane.xlu0 %4092 }
 0x40a   : > { %v3880_v55 = vpop.xlane.xlu1 %3879 }
 0x40b   : > { %v4598_v17 = vrot.slane %v3880_v55, %v9862_v60 }
 0x40d   : > { %v4599_v29 = vsel %vm4406_vm9, %v4598_v17, %v4594_v11  ;;  %v10251_v42 = vpop.xlane.xlu0 %4002  ;;  %v4674_v17 = vrot.slane %v10190_v61, %v9862_v60 }
 0x40e   : > { %v4604_v38 = vsel %vm4413_vm10, %v4603_v37, %v4599_v29  ;;  %v4081_v28 = vpop.xlane.xlu1 %4080  ;;  %v4703_v37 = vrot.slane %v10230_v53, %v9844_v0 }
 0x40f   : > { %v10237_v52 = vsel %vm4172_vm2, %v4604_v38, %v5011_v39  ;;  %v4916_v16 = vrot.slane %v4081_v28, %v9841_v36  ;;  %v4921_v39 = vrot.slane %v4084_v6, %v9862_v60 }
 0x411   : > { %v4917_v25 = vsel %vm4399_vm8, %v4916_v16, %v4912_v27  ;;  %v10253_v35 = vpop.xlane.xlu0 %4017 }
 0x412   : > { %v3889_v43 = vpop.xlane.xlu1 %3888  ;;  %v4922_v12 = vsel %vm4406_vm9, %v4921_v39, %v4917_v25 }
 0x413   : > { %v4612_v41 = vrot.slane %v3889_v43, %v9841_v36  ;;  %v4717_v43 = vrot.slane %v10243_v56, %v9879_v59 }
 0x415   : > { %v4087_v24 = vpop.xlane.xlu0 %4086  ;;  %v4613_v61 = vsel %vm4399_vm8, %v4612_v41, %v4608_v62 }
 0x416   : > { %v3892_v9 = vpop.xlane.xlu1 %3891  ;;  %v4926_v23 = vrot.slane %v4087_v24, %v9879_v59 }
 0x417   : > { %v4617_v55 = vrot.slane %v3892_v9, %v9862_v60 }
 0x418   : > { %v4927_v38 = vsel %vm4413_vm10, %v4926_v23, %v4922_v12 }
 0x419   : > { %v10269_v47 = vpop.xlane.xlu0 %4101  ;;  %v4618_v32 = vsel %vm4406_vm9, %v4617_v55, %v4613_v61 }
 0x41a   : > { %v3901_v13 = vpop.xlane.xlu1 %3900 }
 0x41b   : > { %v4631_v20 = vrot.slane %v3901_v13, %v9841_v36 }
 0x41d   : > { %v4015_v16 = vpop.xlane.xlu0 %4014  ;;  %v4632_v9 = vsel %vm4399_vm8, %v4631_v20, %v4627_v15 }
 0x41e   : > { %v3904_v33 = vpop.xlane.xlu1 %3903 }
 0x41f   : > { %v4636_v11 = vrot.slane %v3904_v33, %v9862_v60 }
 0x421   : > { %v4637_v13 = vsel %vm4406_vm9, %v4636_v11, %v4632_v9  ;;  %v4030_v39 = vpop.xlane.xlu0 %4029 }
 0x422   : > { %v3913_v1 = vpop.xlane.xlu1 %3912  ;;  %v4642_v34 = vsel %vm4413_vm10, %v4641_v8, %v4637_v13 }
 0x423   : > { %v4650_v53 = vrot.slane %v3913_v1, %v9841_v36 }
 0x426   : > { %v10247_v5 = vpop.xlane.xlu1 %3915 }
 0x42a   : > { %v10249_v49 = vpop.xlane.xlu1 %3918 }
 0x42b   : > { %v4660_v33 = vrot.slane %v10249_v49, %v9879_v59  ;;  %v4623_v49 = vsel %vm4413_vm10, %v4622_v45, %v4618_v32 }
 0x42e   : > { %v3925_v26 = vpop.xlane.xlu1 %3924 }
 0x42f   : > { %v4669_v40 = vrot.slane %v3925_v26, %v9841_v36  ;;  %v4793_v26 = vrot.slane %v10251_v42, %v9879_v59  ;;  %v4693_v42 = vrot.slane %v10222_v21, %v9862_v60  ;;  %v5013_v21 = vsel %vm4175_vm3, %v4623_v49, %v10237_v52 }
 0x430   : > { %v5014_v41 = vsel %vm4178_vm4, %v4642_v34, %v5013_v21 }
 0x431   : > { %v4670_v56 = vsel %vm4399_vm8, %v4669_v40, %v4665_v54 }
 0x432   : > { %v10255_v57 = vpop.xlane.xlu1 %3930  ;;  %v4675_v22 = vsel %vm4406_vm9, %v4674_v17, %v4670_v56 }
 0x433   : > { %v4679_v24 = vrot.slane %v10255_v57, %v9879_v59 }
 0x435   : > { %v4680_v8 = vsel %vm4413_vm10, %v4679_v24, %v4675_v22 }
 0x436   : > { %v10257_v18 = vpop.xlane.xlu1 %4005 }
 0x43a   : > { %v3934_v7 = vpop.xlane.xlu1 %3933 }
 0x43b   : > { %v4684_v6 = vrot.slane %v3934_v7, %v9844_v0  ;;  %v4651_v7 = vsel %vm4399_vm8, %v4650_v53, %v4646_v3 }
 0x43d   : > { %v4689_v45 = vsel %vm4399_vm8, %v4688_v10, %v4684_v6  ;;  %v4836_v10 = vrot.slane %v4030_v39, %v9844_v0 }
 0x43e   : > { %v4075_v50 = vpop.xlane.xlu1 %4074 }
 0x43f   : > { %v4907_v4 = vrot.slane %v4075_v50, %v9879_v59  ;;  %v4794_v50 = vsel %vm4413_vm10, %v4793_v26, %v4789_v14  ;;  %v4694_v14 = vsel %vm4406_vm9, %v4693_v42, %v4689_v45 }
 0x441   : > { %v4908_v29 = vsel %vm4413_vm10, %v4907_v4, %v4903_v46 }
 0x442   : > { %v5026_v28 = vsel %vm4172_vm2, %v4908_v29, %v10203_v48  ;;  %v3949_v27 = vpop.xlane.xlu1 %3948  ;;  %v4655_v48 = vrot.slane %v10247_v5, %v9862_v60  ;;  %v4812_v29 = vrot.slane %v4015_v16, %v9879_v59 }
 0x443   : > { %v10303_v25 = vsel %vm4175_vm3, %v4927_v38, %v5026_v28  ;;  %v4707_v46 = vrot.slane %v3949_v27, %v9841_v36 }
 0x444   : > { %v4656_v57 = vsel %vm4406_vm9, %v4655_v48, %v4651_v7 }
 0x445   : > { %v4708_v1 = vsel %vm4399_vm8, %v4707_v46, %v4703_v37  ;;  %v4661_v15 = vsel %vm4413_vm10, %v4660_v33, %v4656_v57  ;;  %v4099_v37 = vpop.xlane.xlu0 %4098  ;;  %v4817_v33 = vrot.slane %v10253_v35, %v9844_v0 }
 0x446   : > { %v4713_v19 = vsel %vm4406_vm9, %v4712_v58, %v4708_v1  ;;  %v10323_v5 = vpop.xlane.xlu1 %4089  ;;  %v5015_v54 = vsel %vm4181_vm5, %v4661_v15, %v5014_v41 }
 0x447   : > { %v4718_v30 = vsel %vm4413_vm10, %v4717_v43, %v4713_v19  ;;  %v5016_v52 = vsel %vm4184_vm6, %v4680_v8, %v5015_v54  ;;  %v4931_v39 = vrot.slane %v10323_v5, %v9844_v0 }
 0x448   : > { %v5018_v62 = vsel %vm4169_vm1, %v9892_v51, %v4718_v30 }
 0x449   : > { %v5019_v23 = vsel %vm4172_vm2, %v9971_v63, %v5018_v62  ;;  %v4798_v63 = vrot.slane %v10257_v18, %v9844_v0 }
 0x44a   : > { %v3943_v12 = vpop.xlane.xlu1 %3942  ;;  %v5020_v51 = vsel %vm4175_vm3, %v10019_v31, %v5019_v23  ;;  %v4802_v31 = vrot.slane %v10211_v2, %v9841_v36  ;;  %v4114_v2 = vpop.xlane.xlu0 %4113 }
 0x44b   : > { %v4698_v4 = vrot.slane %v3943_v12, %v9879_v59  ;;  %v5021_v3 = vsel %vm4178_vm4, %v4794_v50, %v5020_v51  ;;  %v4935_v50 = vrot.slane %v10245_v44, %v9841_v36  ;;  %v4950_v12 = vrot.slane %v10269_v47, %v9844_v0 }
 0x44c   : > { %v4803_v18 = vsel %vm4399_vm8, %v4802_v31, %v4798_v63  ;;  %v4945_v44 = vrot.slane %v4099_v37, %v9879_v59  ;;  %v4969_v63 = vrot.slane %v4114_v2, %v9844_v0 }
 0x44d   : > { %v4699_v55 = vsel %vm4413_vm10, %v4698_v4, %v4694_v14  ;;  %v4936_v51 = vsel %vm4399_vm8, %v4935_v50, %v4931_v39 }
 0x44e   : > { %v5017_v20 = vsel %vm4187_vm7, %v4699_v55, %v5016_v52  ;;  %v4012_v17 = vpop.xlane.xlu1 %4011  ;;  %v4027_v53 = vpop.xlane.xlu0 %4026 }
 0x44f   : > { %v4807_v11 = vrot.slane %v4012_v17, %v9862_v60  ;;  %5767 = vmatmul.mubr.msk.f32.vlgmr.msra.gmra.mxu1 %vm5032_vm11, %v5017_v20  ;;  %v4831_v24 = vrot.slane %v4027_v53, %v9879_v59 }
 0x451   : > { %v4808_v58 = vsel %vm4406_vm9, %v4807_v11, %v4803_v18 }
 0x452   : > { %v4813_v38 = vsel %vm4413_vm10, %v4812_v29, %v4808_v58  ;;  %v4021_v40 = vpop.xlane.xlu1 %4020  ;;  %v4111_v43 = vpop.xlane.xlu0 %4110 }
 0x453   : > { %v5022_v28 = vsel %vm4181_vm5, %v4813_v38, %v5021_v3  ;;  %v4821_v16 = vrot.slane %v4021_v40, %v9841_v36  ;;  %v4964_v47 = vrot.slane %v4111_v43, %v9879_v59 }
 0x455   : > { %v4822_v1 = vsel %vm4399_vm8, %v4821_v16, %v4817_v33 }
 0x456   : > { %v4096_v27 = vpop.xlane.xlu1 %4095  ;;  %v4126_v48 = vpop.xlane.xlu0 %4125 }
 0x457   : > { %v4940_v45 = vrot.slane %v4096_v27, %v9862_v60  ;;  %v4988_v55 = vrot.slane %v4126_v48, %v9844_v0 }
 0x459   : > { %v4941_v5 = vsel %vm4406_vm9, %v4940_v45, %v4936_v51 }
 0x45a   : > { %v4105_v61 = vpop.xlane.xlu1 %4104  ;;  %v4039_v19 = vpop.xlane.xlu0 %4038  ;;  %v4946_v17 = vsel %vm4413_vm10, %v4945_v44, %v4941_v5 }
 0x45b   : > { %v4850_v42 = vrot.slane %v4039_v19, %v9879_v59  ;;  %v4954_v23 = vrot.slane %v4105_v61, %v9841_v36  ;;  %v5028_v0 = vsel %vm4178_vm4, %v4946_v17, %v10303_v25  ;;  %v5145_v25 = vld [vmem:[%s10471_s4 + $0x8] sm:$0xff] }
 0x45d   : > { %v4955_v4 = vsel %vm4399_vm8, %v4954_v23, %v4950_v12 }
 0x45e   : > { %v4024_v46 = vpop.xlane.xlu1 %4023  ;;  %v4132_v31 = vpop.xlane.xlu0 %4131 }
 0x45f   : > { %v4826_v13 = vrot.slane %v4024_v46, %v9862_v60  ;;  %v4997_v18 = vrot.slane %v4132_v31, %v9862_v60  ;;  %v5144_v46 = vld [vmem:[%s10471_s4] sm:$0xff] }
 0x461   : > { %v4827_v26 = vsel %vm4406_vm9, %v4826_v13, %v4822_v1 }
 0x462   : > { %v4033_v32 = vpop.xlane.xlu1 %4032  ;;  %v4832_v7 = vsel %vm4413_vm10, %v4831_v24, %v4827_v26  ;;  %v5365_v24 = vld [vmem:[%s10473_s6 + $0x2] ss:$0 sm:$0xff] }
 0x463   : > { %v4840_v56 = vrot.slane %v4033_v32, %v9841_v36  ;;  %v5023_v15 = vsel %vm4184_vm6, %v4832_v7, %v5022_v28  ;;  %v5359_v32 = vld [vmem:[%s10473_s6] ss:$0 sm:$0xff] }
 0x465   : > { %v4841_v35 = vsel %vm4399_vm8, %v4840_v56, %v4836_v10 }
 0x466   : > { %v4108_v9 = vpop.xlane.xlu1 %4107 }
 0x467   : > { %v4959_v21 = vrot.slane %v4108_v9, %v9862_v60  ;;  %v4237_v9 = vpop.xlane.xlu0 %4236 }
 0x468   : > { %v4256_v13 = vmul.f32 %v5359_v32, %v4237_v9 }
 0x469   : > { %v4960_v14 = vsel %vm4406_vm9, %v4959_v21, %v4955_v4  ;;  %v5366_v21 = vld [vmem:[%s10475_s8] ss:$0 sm:$0xff] }
 0x46a   : > { %v4117_v6 = vpop.xlane.xlu1 %4116 }
 0x46b   : > { %v4973_v41 = vrot.slane %v4117_v6, %v9841_v36  ;;  %v5364_v6 = vld [vmem:[%s10473_s6 + $0x1] ss:$0 sm:$0xff] }
 0x46d   : > { %v4974_v11 = vsel %vm4399_vm8, %v4973_v41, %v4969_v63 }
 0x46e   : > { %v4036_v49 = vpop.xlane.xlu1 %4035 }
 0x46f   : > { %v4845_v30 = vrot.slane %v4036_v49, %v9862_v60 }
 0x471   : > { %v4846_v34 = vsel %vm4406_vm9, %v4845_v30, %v4841_v35  ;;  %v4243_v30 = vpop.xlane.xlu0 %4242 }
 0x472   : > { %v4120_v57 = vpop.xlane.xlu1 %4119  ;;  %v4851_v62 = vsel %vm4413_vm10, %v4850_v42, %v4846_v34  ;;  %v4258_v34 = vmul.f32 %v5359_v32, %v4243_v30 }
 0x473   : > { %v5024_v22 = vsel %vm4187_vm7, %v4851_v62, %v5023_v15  ;;  %v4978_v3 = vrot.slane %v4120_v57, %v9862_v60  ;;  %v5147_v60 = vld [vmem:[%s10471_s4 + $0x18] sm:$0xff] }
 0x474   : > { %5769 = vmatprep.mubr.msk.f32.mxu1 %vm5032_vm11, %v5024_v22  ;;  %5772 = vmatprep.subr.mxu1 %v5147_v60 }
 0x475   : > { %v4979_v37 = vsel %vm4406_vm9, %v4978_v3, %v4974_v11  ;;  %5773 = vmatpush3.msra.mxu1 %v5147_v60 }
 0x476   : > { %v4129_v8 = vpop.xlane.xlu1 %4128 }
 0x477   : > { %v4992_v54 = vrot.slane %v4129_v8, %v9841_v36  ;;  %v4965_v36 = vsel %vm4413_vm10, %v4964_v47, %v4960_v14 }
 0x478   : > { %v5029_v2 = vsel %vm4181_vm5, %v4965_v36, %v5028_v0 }
 0x479   : > { %v4993_v29 = vsel %vm4399_vm8, %v4992_v54, %v4988_v55 }
 0x47a   : > { %v4123_v52 = vpop.xlane.xlu1 %4122  ;;  %v4998_v28 = vsel %vm4406_vm9, %v4997_v18, %v4993_v29 }
 0x47b   : > { %v4983_v20 = vrot.slane %v4123_v52, %v9879_v59 }
 0x47d   : > { %v4984_v58 = vsel %vm4413_vm10, %v4983_v20, %v4979_v37 }
 0x47e   : > { %v4135_v38 = vpop.xlane.xlu1 %4134  ;;  %v5030_v61 = vsel %vm4184_vm6, %v4984_v58, %v5029_v2 }
 0x47f   : > { %v5002_v40 = vrot.slane %v4135_v38, %v9879_v59  ;;  %v5146_v59 = vld [vmem:[%s10471_s4 + $0x10] sm:$0xff] }
 0x480   : > { %5774 = vmatprep.subr.mxu1 %v5146_v59 }
 0x481   : > { %v5003_v27 = vsel %vm4413_vm10, %v5002_v40, %v4998_v28  ;;  %5775 = vmatpush3.msra.mxu1 %v5146_v59 }
 0x482   : > { %v5031_v53 = vsel %vm4187_vm7, %v5003_v27, %v5030_v61  ;;  %5776 = vmatprep.subr.mxu1 %v5145_v25  ;;  %v4240_v43 = vpop.xlane.xlu1 %4239 }
 0x483   : > { %5770 = vmatmul.mubr.msk.f32.gmra.mxu1 %vm5032_vm11, %v5031_v53  ;;  %v4257_v48 = vmul.f32 %v5359_v32, %v4240_v43 }
 0x484   : > { %5777 = vmatpush3.msra.mxu1 %v5145_v25 }
 0x485   : > { %5778 = vmatprep.subr.mxu1 %v5144_v46 }
 0x486   : > { %5779 = vmatpush3.msra.mxu1 %v5144_v46  ;;  %v4246_v7 = vpop.xlane.xlu1 %4245 }
 0x487   : > { %v4259_v42 = vmul.f32 %v5359_v32, %v4246_v7 }
 0x50f   : > { %v5768_v16 = vpop.f32.mrf.mxu1 }
 0x510   : > { %v5113_v33 = vadd.f32 %v5768_v16, %v4257_v48 }
 0x511   : > { %v5107_v1 = vpop.f32.mrf.mxu1 }
 0x512   : > { %v5108_v26 = vadd.f32 %v5107_v1, %v4256_v13  ;;  %v5132_v56 = vmul.f32 %v5364_v6, %v5113_v33 }
 0x514   : > { %v5131_v19 = vmul.f32 %v5364_v6, %v5108_v26  ;;  %v5141_v49 = vadd.f32 %v5365_v24, %v5132_v56 }
 0x516   : > { %v5140_v10 = vadd.f32 %v5365_v24, %v5131_v19 }
 0x518   : > { %5780 = vmatprep.mubr.msk.f32.mxu1 %vm5032_vm11, %v5140_v10 }
 0x519   : > { %5781 = vmatmul.mubr.msk.f32.vlgmr.msra.gmra.mxu1 %vm5032_vm11, %v5141_v49 }
 0x543   : > { %v5771_v35 = vpop.f32.mrf.mxu1 }
 0x544   : > { %v5123_v57 = vadd.f32 %v5771_v35, %v4259_v42 }
 0x545   : > { %v5117_v62 = vpop.f32.mrf.mxu1 }
 0x546   : > { %v5118_v15 = vadd.f32 %v5117_v62, %v4258_v34  ;;  %v5134_v22 = vmul.f32 %v5364_v6, %v5123_v57 }
 0x548   : > { %v5133_v39 = vmul.f32 %v5364_v6, %v5118_v15  ;;  %v5143_v23 = vadd.f32 %v5365_v24, %v5134_v22 }
 0x54a   : > { %v5142_v45 = vadd.f32 %v5365_v24, %v5133_v39 }
 0x54c   : > { %5783 = vmatprep.mubr.msk.f32.mxu1 %vm5032_vm11, %v5142_v45 }
 0x54d   : > { %5784 = vmatmul.mubr.msk.f32.gmra.mxu1 %vm5032_vm11, %v5143_v23 }
 0x5d9   : > { %v5782_v50 = vpop.f32.mrf.mxu1 }
 0x5da   : > { %v5239_v51 = vadd.f32 %v5782_v50, %v5366_v21 }
 0x5db   : > { %v5233_v8 = vpop.f32.mrf.mxu1 }
 0x5dc   : > { %v5234_v12 = vadd.f32 %v5366_v21, %v5233_v8  ;;  %5254 = vst.msk [vmem:[%s367_s25 + $0x8] sm:$0xff] %vm5252_vm12, %v5239_v51 }
 0x5de   : > { %5253 = vst.msk [vmem:[%s367_s25] sm:$0xff] %vm5252_vm12, %v5234_v12 }
 0x60d   : > { %v5785_v41 = vpop.f32.mrf.mxu1 }
 0x60e   : > { %v5249_v3 = vadd.f32 %v5785_v41, %v5366_v21 }
 0x60f   : > { %v5243_v5 = vpop.f32.mrf.mxu1 }
 0x610   : > { %v5244_v4 = vadd.f32 %v5366_v21, %v5243_v5  ;;  %5256 = vst.msk [vmem:[%s367_s25 + $0x18] sm:$0xff] %vm5252_vm12, %v5249_v3 }
 0x612   : > { %5255 = vst.msk [vmem:[%s367_s25 + $0x10] sm:$0xff] %vm5252_vm12, %v5244_v4 }
 0x613 PF: > { %p20_p11 = scmp.ge.s32.totalorder %s6414_s14, 4   ;;  %s11373_s30 = smov %s6326_s10 }
 0x614   : > { %s11374_s10 = smov %s6330_s11  ;;  %s11375_s11 = smov %s6424_s17 }
 0x615   : > { %s11376_s12 = smov %s6414_s14  ;;  %22 = sbr.rel (!%p20_p11) target bundleno = 6 (0x6), region = 102 }
 0x61a   :  { %5279 = vsyncpa [#allocation3], 1 }
 0x61b   :  { %5281 = vsyncpa [#allocation3 + $0x1], 1 }
 0x61c   :  { %5282 = vsyncpa [#allocation4], 1 }
 0x61d   :  { %5284 = vsyncpa [#allocation4 + $0x1], 1 }

</bundles_post_ra>
